<compile_context>
chip_gen: v7x
topology: tpu7x:2x2x1
jax: 0.10.0
libtpu: 0.0.40
codegen_flags: <defaults>
</compile_context>

<pallas_src>
import math

import jax
import jax.numpy as jnp
from jax.experimental import pallas as pl
from jax.experimental.pallas import tpu as pltpu

D_MODEL = 64
NUM_STEPS = 5
NUM_HEADS = 4
HEAD_DIM = D_MODEL // NUM_HEADS


def pde_kernel(x_ref, coeffs_ref, w1_ref, b1_ref, w2_ref, b2_ref,
               wq_ref, wk_ref, wv_ref, bq_ref, bk_ref, bv_ref,
               wo_ref, bo_ref, out_ref):
    # x_ref:   (TB, S, D)
    # out_ref: (NUM_STEPS+1, TB, S, D)  all states (incl. the initial one)
    f32 = jnp.float32
    bf16 = jnp.bfloat16

    state = x_ref[...].astype(f32)                        # (TB, S, D)
    TB, S, D = state.shape
    R = TB * S
    out_ref[0] = state.astype(out_ref.dtype)

    wo = wo_ref[...]                                      # (D, D) bf16

    # Hoisted bias broadcasts (done once, reused by every unrolled step).
    bo_full = jnp.broadcast_to(bo_ref[...], (R, D))                      # f32
    bq_full = [jnp.broadcast_to(bq_ref[h], (R, HEAD_DIM))
               for h in range(NUM_HEADS)]
    bk_full = [jnp.broadcast_to(bk_ref[h], (R, HEAD_DIM))
               for h in range(NUM_HEADS)]
    bv_full = [jnp.broadcast_to(bv_ref[h], (R, HEAD_DIM))
               for h in range(NUM_HEADS)]

    for i in range(NUM_STEPS):                            # static unroll
        dc_i = coeffs_ref[i]                              # SMEM scalar reads
        ts_i = coeffs_ref[NUM_STEPS + i]

        # --- diffusion: circular second difference along the seq axis,
        #     computed in f32 with rolls (no dense Laplacian matmul) ---
        lap = (jnp.roll(state, 1, axis=1) + jnp.roll(state, -1, axis=1)
               - 2.0 * state)                             # (TB, S, D) f32

        flat = state.reshape(R, D)                        # free: S % 8 == 0
        sb = flat.astype(bf16)                            # shared bf16 operand

        # --- nonlinear MLP (Linear -> ReLU -> Linear), per-step weights ---
        h = jnp.dot(sb, w1_ref[i], preferred_element_type=f32) + b1_ref[i]
        h = jnp.maximum(h, 0.0)
        nonlinear = (jnp.dot(h.astype(bf16), w2_ref[i],
                             preferred_element_type=f32) + b2_ref[i])  # (R, D)

        # --- multi-head self-attention (shared weights across steps) ---
        # Per-head Q/K/V come from per-head weight matmuls: no sub-vreg lane
        # slicing of a fused QKV activation.  Scale is folded into Wq/bq.
        head_outs = []
        for hh in range(NUM_HEADS):
            qh = jnp.dot(sb, wq_ref[hh], preferred_element_type=f32) + bq_full[hh]
            kh = jnp.dot(sb, wk_ref[hh], preferred_element_type=f32) + bk_full[hh]
            vh = jnp.dot(sb, wv_ref[hh], preferred_element_type=f32) + bv_full[hh]
            q3 = qh.astype(bf16).reshape(TB, S, HEAD_DIM)
            k3 = kh.astype(bf16).reshape(TB, S, HEAD_DIM)
            v3 = vh.astype(bf16).reshape(TB, S, HEAD_DIM)

            s = jnp.einsum('bqd,bkd->bqk', q3, k3,
                           preferred_element_type=f32)    # (TB, S, S) f32
            s = s - jnp.max(s, axis=-1, keepdims=True)
            p = jnp.exp(s)
            p = p / jnp.sum(p, axis=-1, keepdims=True)    # exact normalization
            oh = jnp.einsum('bqk,bkd->bqd', p.astype(bf16), v3,
                            preferred_element_type=f32)   # (TB, S, hd)
            head_outs.append(oh.reshape(R, HEAD_DIM).astype(bf16))

        # One lane-axis concatenate per step, then a single K=64 Wo matmul
        # (instead of 4 K=16 matmuls + accumulator adds).
        o_cat = jnp.concatenate(head_outs, axis=-1)                     # (R, D)
        attn = jnp.dot(o_cat, wo, preferred_element_type=f32) + bo_full  # (R, D)

        # --- explicit Euler update (f32) ---
        state = state + ts_i * (dc_i * lap
                                + (nonlinear + attn).reshape(TB, S, D))
        out_ref[i + 1] = state.astype(out_ref.dtype)


def _pick_tile_b(batch, tile_b):
    """Largest divisor of `batch` <= tile_b, preferring a grid of >= 2 blocks
    (keeps both v7x TensorCores busy) and never producing a padded tail."""
    tile_b = max(1, min(tile_b, batch))
    divisors = [d for d in range(1, batch + 1) if batch % d == 0]
    cands = [d for d in divisors if d <= tile_b]
    if batch >= 2:
        multi = [d for d in cands if batch // d >= 2]
        if multi:
            return max(multi)
    return max(cands)


def improved_pde_model(x, params, *, tile_b=4, vmem_limit_bytes=None):
    """x: (B, S, D) float32.  Returns a list of NUM_STEPS + 1 arrays (B, S, D).

    tile_b:            batch elements per grid step.  Default 4 targets the
                       v7x 64 MiB/TC VMEM budget; on v5e/v6e (128 MiB) raise
                       it (8-16) together with vmem_limit_bytes (64-96 MiB).
    vmem_limit_bytes:  scoped VMEM limit; default 48 MiB is safe on all of
                       v5e/v6e/v7x.
    """
    dc, ts, w1, b1, w2, b2, wq, wk, wv, bq, bk, bv, wo, bo = params
    B, S, D = x.shape
    assert D == D_MODEL
    assert S % 8 == 0, "seq length must be a multiple of 8 (sublane tile)"
    n_out = NUM_STEPS + 1

    TB = _pick_tile_b(B, tile_b)
    n_blocks = B // TB

    if vmem_limit_bytes is None:
        # 48 MiB fits v7x's 64 MiB/TC; after removing the (R,R) Laplacian the
        # working set is small, so this is not binding at moderate S.
        vmem_limit_bytes = 48 * 1024 * 1024

    # --- parameter packing (wrapper-side, free) ---
    # per-step scalars -> one SMEM array: [dc_0..dc_4, ts_0..ts_4]
    coeffs = jnp.concatenate(
        [dc.reshape(-1), ts.reshape(-1)]).astype(jnp.float32)      # (2*steps,)

    scale = 1.0 / math.sqrt(HEAD_DIM)

    def to_heads(w):
        # (D, D) -> (H, D, hd): head h gets output columns [h*hd, (h+1)*hd)
        return jnp.transpose(w.reshape(D, NUM_HEADS, HEAD_DIM), (1, 0, 2))

    wq_h = to_heads(wq * scale).astype(jnp.bfloat16)    # scale folded into Wq
    wk_h = to_heads(wk).astype(jnp.bfloat16)
    wv_h = to_heads(wv).astype(jnp.bfloat16)
    bq_h = (bq * scale).reshape(NUM_HEADS, 1, HEAD_DIM).astype(jnp.float32)
    bk_h = bk.reshape(NUM_HEADS, 1, HEAD_DIM).astype(jnp.float32)
    bv_h = bv.reshape(NUM_HEADS, 1, HEAD_DIM).astype(jnp.float32)
    wo_b = wo.astype(jnp.bfloat16)
    bo_f = bo.astype(jnp.float32)
    w1_b = w1.astype(jnp.bfloat16)
    w2_b = w2.astype(jnp.bfloat16)
    b1_f = b1.astype(jnp.float32)
    b2_f = b2.astype(jnp.float32)

    def rep(shape):
        # grid-invariant (replicated) operand; all weights are tiny (<~200 KB
        # total) so default double-buffering of these blocks is negligible.
        nd = len(shape)
        return pl.BlockSpec(shape, lambda b, _nd=nd: (0,) * _nd)

    in_specs = [
        pl.BlockSpec((TB, S, D), lambda b: (b, 0, 0)),          # x
        pl.BlockSpec(memory_space=pltpu.MemorySpace.SMEM),      # coeffs
        rep((NUM_STEPS, D, 2 * D)),                             # W1 (per step)
        rep((NUM_STEPS, 1, 2 * D)),                             # b1
        rep((NUM_STEPS, 2 * D, D)),                             # W2
        rep((NUM_STEPS, 1, D)),                                 # b2
        rep((NUM_HEADS, D, HEAD_DIM)),                          # Wq per head
        rep((NUM_HEADS, D, HEAD_DIM)),                          # Wk per head
        rep((NUM_HEADS, D, HEAD_DIM)),                          # Wv per head
        rep((NUM_HEADS, 1, HEAD_DIM)),                          # bq per head
        rep((NUM_HEADS, 1, HEAD_DIM)),                          # bk per head
        rep((NUM_HEADS, 1, HEAD_DIM)),                          # bv per head
        rep((D, D)),                                            # Wo
        rep((1, D)),                                            # bo
    ]
    out_spec = pl.BlockSpec((n_out, TB, S, D), lambda b: (0, b, 0, 0))
    out_shape = jax.ShapeDtypeStruct((n_out, B, S, D), jnp.float32)

    stacked = pl.pallas_call(
        pde_kernel,
        grid=(n_blocks,),
        in_specs=in_specs,
        out_specs=out_spec,
        out_shape=out_shape,
        compiler_params=pltpu.CompilerParams(
            dimension_semantics=("parallel",),
            vmem_limit_bytes=vmem_limit_bytes),
    )(x, coeffs, w1_b, b1_f, w2_b, b2_f,
      wq_h, wk_h, wv_h, bq_h, bk_h, bv_h, wo_b, bo_f)

    return [stacked[i] for i in range(n_out)]


def init_params(key):
    """Deterministic synthetic parameters (same shapes as the nn.Module)."""
    d = D_MODEL
    keys = jax.random.split(key, 12)

    def uni(k, shape, fan_in):
        bound = 1.0 / math.sqrt(fan_in)
        return jax.random.uniform(k, shape, jnp.float32, -bound, bound)

    dc = jax.random.uniform(keys[0], (1, NUM_STEPS), jnp.float32)   # rand()
    ts = jax.random.uniform(keys[1], (1, NUM_STEPS), jnp.float32)   # rand()

    w1 = uni(keys[2], (NUM_STEPS, d, 2 * d), d)
    b1 = uni(keys[3], (NUM_STEPS, 1, 2 * d), d)
    w2 = uni(keys[4], (NUM_STEPS, 2 * d, d), 2 * d)
    b2 = uni(keys[5], (NUM_STEPS, 1, d), 2 * d)

    wq = uni(keys[6], (d, d), d)
    wk = uni(keys[7], (d, d), d)
    wv = uni(keys[8], (d, d), d)
    wo = uni(keys[9], (d, d), d)
    bq = jnp.zeros((1, d), jnp.float32)
    bk = jnp.zeros((1, d), jnp.float32)
    bv = jnp.zeros((1, d), jnp.float32)
    bo = jnp.zeros((1, d), jnp.float32)

    return (dc, ts, w1, b1, w2, b2, wq, wk, wv, bq, bk, bv, wo, bo)


def reference(x, params):
    """Pure-JAX (f32) reference implementing the PyTorch forward pass."""
    dc, ts, w1, b1, w2, b2, wq, wk, wv, bq, bk, bv, wo, bo = params
    B, S, D = x.shape
    scale = 1.0 / math.sqrt(HEAD_DIM)
    states = [x]
    state = x
    for i in range(NUM_STEPS):
        lap = (jnp.roll(state, 1, axis=1) + jnp.roll(state, -1, axis=1)
               - 2.0 * state)
        diffusion = dc[0, i] * lap
        h = jnp.maximum(state @ w1[i] + b1[i], 0.0)
        nonlinear = h @ w2[i] + b2[i]

        q = (state @ wq + bq).reshape(B, S, NUM_HEADS, HEAD_DIM)
        k = (state @ wk + bk).reshape(B, S, NUM_HEADS, HEAD_DIM)
        v = (state @ wv + bv).reshape(B, S, NUM_HEADS, HEAD_DIM)
        q = jnp.transpose(q, (0, 2, 1, 3)) * scale
        k = jnp.transpose(k, (0, 2, 1, 3))
        v = jnp.transpose(v, (0, 2, 1, 3))
        scores = q @ jnp.transpose(k, (0, 1, 3, 2))
        p = jax.nn.softmax(scores, axis=-1)
        o = jnp.transpose(p @ v, (0, 2, 1, 3)).reshape(B, S, D)
        attn = o @ wo + bo

        state = state + ts[0, i] * (diffusion + nonlinear + attn)
        states.append(state)
    return states


if __name__ == "__main__":
    key = jax.random.PRNGKey(0)
    kx, kp = jax.random.split(key)

    B, S = 4, 8                                   # small test shapes
    x = jax.random.normal(kx, (B, S, D_MODEL), jnp.float32)
    params = init_params(kp)

    # default tile_b=4 -> divisor/grid logic picks TB=2, grid of 2 batch
    # tiles (both TensorCores get work on megacore parts).
    states = improved_pde_model(x, params)
    states = jax.block_until_ready(states)

    ref_states = reference(x, params)
    assert len(states) == NUM_STEPS + 1
    for got, want in zip(states, ref_states):
        assert got.shape == (B, S, D_MODEL)
        # bf16 matmul operands (f32 accumulation) -> slightly looser tolerance
        if not jnp.allclose(got, want, rtol=5e-2, atol=5e-2):
            raise AssertionError("Pallas kernel disagrees with JAX reference")

    print("KERNEL_OK")
</pallas_src>

<mosaic_0001>
module attributes {stable_mosaic.version = 11 : i64} {
  func.func @pde_kernel(%arg0: i32, %arg1: memref<2x8x64xf32, #tpu.memory_space<vmem>>, %arg2: memref<10xf32, #tpu.memory_space<smem>>, %arg3: memref<5x64x128xbf16, #tpu.memory_space<vmem>>, %arg4: memref<5x1x128xf32, #tpu.memory_space<vmem>>, %arg5: memref<5x128x64xbf16, #tpu.memory_space<vmem>>, %arg6: memref<5x1x64xf32, #tpu.memory_space<vmem>>, %arg7: memref<4x64x16xbf16, #tpu.memory_space<vmem>>, %arg8: memref<4x64x16xbf16, #tpu.memory_space<vmem>>, %arg9: memref<4x64x16xbf16, #tpu.memory_space<vmem>>, %arg10: memref<4x1x16xf32, #tpu.memory_space<vmem>>, %arg11: memref<4x1x16xf32, #tpu.memory_space<vmem>>, %arg12: memref<4x1x16xf32, #tpu.memory_space<vmem>>, %arg13: memref<64x64xbf16, #tpu.memory_space<vmem>>, %arg14: memref<1x64xf32, #tpu.memory_space<vmem>>, %arg15: memref<6x2x8x64xf32, #tpu.memory_space<vmem>>) attributes {dimension_semantics = [#tpu.dimension_semantics<parallel>], iteration_bounds = array<i64: 2>, scalar_prefetch = 0 : i64, scratch_operands = 0 : i64, tpu.core_type = #tpu.core_type<tc>, window_params = [{transform_indices = @transform_0, window_bounds = array<i64: 2, 8, 64>}, {transform_indices = @transform_1, window_bounds = array<i64: 10>}, {pipeline_mode = #tpu.pipeline_mode<synchronous>, transform_indices = @transform_2, window_bounds = array<i64: 5, 64, 128>}, {pipeline_mode = #tpu.pipeline_mode<synchronous>, transform_indices = @transform_3, window_bounds = array<i64: 5, 1, 128>}, {pipeline_mode = #tpu.pipeline_mode<synchronous>, transform_indices = @transform_4, window_bounds = array<i64: 5, 128, 64>}, {pipeline_mode = #tpu.pipeline_mode<synchronous>, transform_indices = @transform_5, window_bounds = array<i64: 5, 1, 64>}, {pipeline_mode = #tpu.pipeline_mode<synchronous>, transform_indices = @transform_6, window_bounds = array<i64: 4, 64, 16>}, {pipeline_mode = #tpu.pipeline_mode<synchronous>, transform_indices = @transform_7, window_bounds = array<i64: 4, 64, 16>}, {pipeline_mode = #tpu.pipeline_mode<synchronous>, transform_indices = @transform_8, window_bounds = array<i64: 4, 64, 16>}, {pipeline_mode = #tpu.pipeline_mode<synchronous>, transform_indices = @transform_9, window_bounds = array<i64: 4, 1, 16>}, {pipeline_mode = #tpu.pipeline_mode<synchronous>, transform_indices = @transform_10, window_bounds = array<i64: 4, 1, 16>}, {pipeline_mode = #tpu.pipeline_mode<synchronous>, transform_indices = @transform_11, window_bounds = array<i64: 4, 1, 16>}, {pipeline_mode = #tpu.pipeline_mode<synchronous>, transform_indices = @transform_12, window_bounds = array<i64: 64, 64>}, {pipeline_mode = #tpu.pipeline_mode<synchronous>, transform_indices = @transform_13, window_bounds = array<i64: 1, 64>}, {transform_indices = @transform_14, window_bounds = array<i64: 6, 2, 8, 64>}]} {
    %c0 = arith.constant 0 : index
    %c0_0 = arith.constant 0 : index
    %c0_1 = arith.constant 0 : index
    %0 = vector.load %arg1[%c0, %c0_0, %c0_1] : memref<2x8x64xf32, #tpu.memory_space<vmem>>, vector<2x8x64xf32>
    %c0_2 = arith.constant 0 : index
    %c0_3 = arith.constant 0 : index
    %c0_4 = arith.constant 0 : index
    %c0_5 = arith.constant 0 : index
    %1 = vector.load %arg15[%c0_2, %c0_3, %c0_4, %c0_5] : memref<6x2x8x64xf32, #tpu.memory_space<vmem>>, vector<1x2x8x64xf32>
    %2 = vector.shape_cast %1 : vector<1x2x8x64xf32> to vector<2x8x64xf32>
    %3 = vector.shape_cast %0 : vector<2x8x64xf32> to vector<1x2x8x64xf32>
    tpu.vector_store %arg15[%c0_2, %c0_3, %c0_4, %c0_5], %3 {strides = array<i32>} : memref<6x2x8x64xf32, #tpu.memory_space<vmem>>, vector<1x2x8x64xf32>,
    %c0_6 = arith.constant 0 : index
    %c0_7 = arith.constant 0 : index
    %4 = vector.load %arg13[%c0_6, %c0_7] : memref<64x64xbf16, #tpu.memory_space<vmem>>, vector<64x64xbf16>
    %c0_8 = arith.constant 0 : index
    %c0_9 = arith.constant 0 : index
    %5 = vector.load %arg14[%c0_8, %c0_9] : memref<1x64xf32, #tpu.memory_space<vmem>>, vector<1x64xf32>
    %6 = vector.shape_cast %5 : vector<1x64xf32> to vector<1x64xf32>
    %7 = vector.broadcast %6 : vector<1x64xf32> to vector<16x64xf32>
    %c0_10 = arith.constant 0 : index
    %c0_11 = arith.constant 0 : index
    %c0_12 = arith.constant 0 : index
    %8 = vector.load %arg10[%c0_10, %c0_11, %c0_12] : memref<4x1x16xf32, #tpu.memory_space<vmem>>, vector<1x1x16xf32>
    %9 = vector.shape_cast %8 : vector<1x1x16xf32> to vector<1x16xf32>
    %10 = vector.shape_cast %9 : vector<1x16xf32> to vector<1x16xf32>
    %11 = vector.broadcast %10 : vector<1x16xf32> to vector<16x16xf32>
    %c1 = arith.constant 1 : index
    %c0_13 = arith.constant 0 : index
    %c0_14 = arith.constant 0 : index
    %12 = vector.load %arg10[%c1, %c0_13, %c0_14] : memref<4x1x16xf32, #tpu.memory_space<vmem>>, vector<1x1x16xf32>
    %13 = vector.shape_cast %12 : vector<1x1x16xf32> to vector<1x16xf32>
    %14 = vector.shape_cast %13 : vector<1x16xf32> to vector<1x16xf32>
    %15 = vector.broadcast %14 : vector<1x16xf32> to vector<16x16xf32>
    %c2 = arith.constant 2 : index
    %c0_15 = arith.constant 0 : index
    %c0_16 = arith.constant 0 : index
    %16 = vector.load %arg10[%c2, %c0_15, %c0_16] : memref<4x1x16xf32, #tpu.memory_space<vmem>>, vector<1x1x16xf32>
    %17 = vector.shape_cast %16 : vector<1x1x16xf32> to vector<1x16xf32>
    %18 = vector.shape_cast %17 : vector<1x16xf32> to vector<1x16xf32>
    %19 = vector.broadcast %18 : vector<1x16xf32> to vector<16x16xf32>
    %c3 = arith.constant 3 : index
    %c0_17 = arith.constant 0 : index
    %c0_18 = arith.constant 0 : index
    %20 = vector.load %arg10[%c3, %c0_17, %c0_18] : memref<4x1x16xf32, #tpu.memory_space<vmem>>, vector<1x1x16xf32>
    %21 = vector.shape_cast %20 : vector<1x1x16xf32> to vector<1x16xf32>
    %22 = vector.shape_cast %21 : vector<1x16xf32> to vector<1x16xf32>
    %23 = vector.broadcast %22 : vector<1x16xf32> to vector<16x16xf32>
    %c0_19 = arith.constant 0 : index
    %c0_20 = arith.constant 0 : index
    %c0_21 = arith.constant 0 : index
    %24 = vector.load %arg11[%c0_19, %c0_20, %c0_21] : memref<4x1x16xf32, #tpu.memory_space<vmem>>, vector<1x1x16xf32>
    %25 = vector.shape_cast %24 : vector<1x1x16xf32> to vector<1x16xf32>
    %26 = vector.shape_cast %25 : vector<1x16xf32> to vector<1x16xf32>
    %27 = vector.broadcast %26 : vector<1x16xf32> to vector<16x16xf32>
    %c1_22 = arith.constant 1 : index
    %c0_23 = arith.constant 0 : index
    %c0_24 = arith.constant 0 : index
    %28 = vector.load %arg11[%c1_22, %c0_23, %c0_24] : memref<4x1x16xf32, #tpu.memory_space<vmem>>, vector<1x1x16xf32>
    %29 = vector.shape_cast %28 : vector<1x1x16xf32> to vector<1x16xf32>
    %30 = vector.shape_cast %29 : vector<1x16xf32> to vector<1x16xf32>
    %31 = vector.broadcast %30 : vector<1x16xf32> to vector<16x16xf32>
    %c2_25 = arith.constant 2 : index
    %c0_26 = arith.constant 0 : index
    %c0_27 = arith.constant 0 : index
    %32 = vector.load %arg11[%c2_25, %c0_26, %c0_27] : memref<4x1x16xf32, #tpu.memory_space<vmem>>, vector<1x1x16xf32>
    %33 = vector.shape_cast %32 : vector<1x1x16xf32> to vector<1x16xf32>
    %34 = vector.shape_cast %33 : vector<1x16xf32> to vector<1x16xf32>
    %35 = vector.broadcast %34 : vector<1x16xf32> to vector<16x16xf32>
    %c3_28 = arith.constant 3 : index
    %c0_29 = arith.constant 0 : index
    %c0_30 = arith.constant 0 : index
    %36 = vector.load %arg11[%c3_28, %c0_29, %c0_30] : memref<4x1x16xf32, #tpu.memory_space<vmem>>, vector<1x1x16xf32>
    %37 = vector.shape_cast %36 : vector<1x1x16xf32> to vector<1x16xf32>
    %38 = vector.shape_cast %37 : vector<1x16xf32> to vector<1x16xf32>
    %39 = vector.broadcast %38 : vector<1x16xf32> to vector<16x16xf32>
    %c0_31 = arith.constant 0 : index
    %c0_32 = arith.constant 0 : index
    %c0_33 = arith.constant 0 : index
    %40 = vector.load %arg12[%c0_31, %c0_32, %c0_33] : memref<4x1x16xf32, #tpu.memory_space<vmem>>, vector<1x1x16xf32>
    %41 = vector.shape_cast %40 : vector<1x1x16xf32> to vector<1x16xf32>
    %42 = vector.shape_cast %41 : vector<1x16xf32> to vector<1x16xf32>
    %43 = vector.broadcast %42 : vector<1x16xf32> to vector<16x16xf32>
    %c1_34 = arith.constant 1 : index
    %c0_35 = arith.constant 0 : index
    %c0_36 = arith.constant 0 : index
    %44 = vector.load %arg12[%c1_34, %c0_35, %c0_36] : memref<4x1x16xf32, #tpu.memory_space<vmem>>, vector<1x1x16xf32>
    %45 = vector.shape_cast %44 : vector<1x1x16xf32> to vector<1x16xf32>
    %46 = vector.shape_cast %45 : vector<1x16xf32> to vector<1x16xf32>
    %47 = vector.broadcast %46 : vector<1x16xf32> to vector<16x16xf32>
    %c2_37 = arith.constant 2 : index
    %c0_38 = arith.constant 0 : index
    %c0_39 = arith.constant 0 : index
    %48 = vector.load %arg12[%c2_37, %c0_38, %c0_39] : memref<4x1x16xf32, #tpu.memory_space<vmem>>, vector<1x1x16xf32>
    %49 = vector.shape_cast %48 : vector<1x1x16xf32> to vector<1x16xf32>
    %50 = vector.shape_cast %49 : vector<1x16xf32> to vector<1x16xf32>
    %51 = vector.broadcast %50 : vector<1x16xf32> to vector<16x16xf32>
    %c3_40 = arith.constant 3 : index
    %c0_41 = arith.constant 0 : index
    %c0_42 = arith.constant 0 : index
    %52 = vector.load %arg12[%c3_40, %c0_41, %c0_42] : memref<4x1x16xf32, #tpu.memory_space<vmem>>, vector<1x1x16xf32>
    %53 = vector.shape_cast %52 : vector<1x1x16xf32> to vector<1x16xf32>
    %54 = vector.shape_cast %53 : vector<1x16xf32> to vector<1x16xf32>
    %55 = vector.broadcast %54 : vector<1x16xf32> to vector<16x16xf32>
    %c0_43 = arith.constant 0 : index
    %56 = memref.load %arg2[%c0_43] : memref<10xf32, #tpu.memory_space<smem>>
    %c5 = arith.constant 5 : index
    %57 = memref.load %arg2[%c5] : memref<10xf32, #tpu.memory_space<smem>>
    %58 = vector.extract_strided_slice %0 {offsets = [0, 7, 0], sizes = [2, 1, 64], strides = [1, 1, 1]} : vector<2x8x64xf32> to vector<2x1x64xf32>
    %59 = vector.extract_strided_slice %0 {offsets = [0, 0, 0], sizes = [2, 7, 64], strides = [1, 1, 1]} : vector<2x8x64xf32> to vector<2x7x64xf32>
    %60 = tpu.concatenate %58, %59 in 1 : vector<2x1x64xf32>, vector<2x7x64xf32> -> vector<2x8x64xf32>
    %61 = vector.extract_strided_slice %0 {offsets = [0, 1, 0], sizes = [2, 7, 64], strides = [1, 1, 1]} : vector<2x8x64xf32> to vector<2x7x64xf32>
    %62 = vector.extract_strided_slice %0 {offsets = [0, 0, 0], sizes = [2, 1, 64], strides = [1, 1, 1]} : vector<2x8x64xf32> to vector<2x1x64xf32>
    %63 = tpu.concatenate %61, %62 in 1 : vector<2x7x64xf32>, vector<2x1x64xf32> -> vector<2x8x64xf32>
    %64 = arith.addf %60, %63 : vector<2x8x64xf32>
    %cst = arith.constant 2.000000e+00 : f32
    %65 = vector.broadcast %cst : f32 to vector<2x8x64xf32>
    %66 = arith.mulf %65, %0 : vector<2x8x64xf32>
    %67 = arith.subf %64, %66 : vector<2x8x64xf32>
    %68 = vector.shape_cast %0 : vector<2x8x64xf32> to vector<16x64xf32>
    %69 = arith.truncf %68 : vector<16x64xf32> to vector<16x64xbf16>
    %c0_44 = arith.constant 0 : index
    %c0_45 = arith.constant 0 : index
    %c0_46 = arith.constant 0 : index
    %70 = vector.load %arg3[%c0_44, %c0_45, %c0_46] : memref<5x64x128xbf16, #tpu.memory_space<vmem>>, vector<1x64x128xbf16>
    %71 = vector.shape_cast %70 : vector<1x64x128xbf16> to vector<64x128xbf16>
    %cst_47 = arith.constant dense<0.000000e+00> : vector<16x128xf32>
    %72 = tpu.matmul %69, %71, %cst_47 {dimension_numbers = #tpu.dot_dimension_numbers<[1], [0], [0], [1], [0, 0, 1, 1], [], []>} : vector<16x64xbf16>, vector<64x128xbf16>, vector<16x128xf32> -> vector<16x128xf32>
    %c0_48 = arith.constant 0 : index
    %c0_49 = arith.constant 0 : index
    %c0_50 = arith.constant 0 : index
    %73 = vector.load %arg4[%c0_48, %c0_49, %c0_50] : memref<5x1x128xf32, #tpu.memory_space<vmem>>, vector<1x1x128xf32>
    %74 = vector.shape_cast %73 : vector<1x1x128xf32> to vector<1x128xf32>
    %75 = vector.broadcast %74 : vector<1x128xf32> to vector<16x128xf32>
    %76 = arith.addf %72, %75 : vector<16x128xf32>
    %cst_51 = arith.constant 0.000000e+00 : f32
    %77 = vector.broadcast %cst_51 : f32 to vector<16x128xf32>
    %78 = arith.maximumf %76, %77 : vector<16x128xf32>
    %79 = arith.truncf %78 : vector<16x128xf32> to vector<16x128xbf16>
    %c0_52 = arith.constant 0 : index
    %c0_53 = arith.constant 0 : index
    %c0_54 = arith.constant 0 : index
    %80 = vector.load %arg5[%c0_52, %c0_53, %c0_54] : memref<5x128x64xbf16, #tpu.memory_space<vmem>>, vector<1x128x64xbf16>
    %81 = vector.shape_cast %80 : vector<1x128x64xbf16> to vector<128x64xbf16>
    %cst_55 = arith.constant dense<0.000000e+00> : vector<16x64xf32>
    %82 = tpu.matmul %79, %81, %cst_55 {dimension_numbers = #tpu.dot_dimension_numbers<[1], [0], [0], [1], [0, 0, 1, 1], [], []>} : vector<16x128xbf16>, vector<128x64xbf16>, vector<16x64xf32> -> vector<16x64xf32>
    %c0_56 = arith.constant 0 : index
    %c0_57 = arith.constant 0 : index
    %c0_58 = arith.constant 0 : index
    %83 = vector.load %arg6[%c0_56, %c0_57, %c0_58] : memref<5x1x64xf32, #tpu.memory_space<vmem>>, vector<1x1x64xf32>
    %84 = vector.shape_cast %83 : vector<1x1x64xf32> to vector<1x64xf32>
    %85 = vector.broadcast %84 : vector<1x64xf32> to vector<16x64xf32>
    %86 = arith.addf %82, %85 : vector<16x64xf32>
    %c0_59 = arith.constant 0 : index
    %c0_60 = arith.constant 0 : index
    %c0_61 = arith.constant 0 : index
    %87 = vector.load %arg7[%c0_59, %c0_60, %c0_61] : memref<4x64x16xbf16, #tpu.memory_space<vmem>>, vector<1x64x16xbf16>
    %88 = vector.shape_cast %87 : vector<1x64x16xbf16> to vector<64x16xbf16>
    %cst_62 = arith.constant dense<0.000000e+00> : vector<16x16xf32>
    %89 = tpu.matmul %69, %88, %cst_62 {dimension_numbers = #tpu.dot_dimension_numbers<[1], [0], [0], [1], [0, 0, 1, 1], [], []>} : vector<16x64xbf16>, vector<64x16xbf16>, vector<16x16xf32> -> vector<16x16xf32>
    %90 = arith.addf %89, %11 : vector<16x16xf32>
    %c0_63 = arith.constant 0 : index
    %c0_64 = arith.constant 0 : index
    %c0_65 = arith.constant 0 : index
    %91 = vector.load %arg8[%c0_63, %c0_64, %c0_65] : memref<4x64x16xbf16, #tpu.memory_space<vmem>>, vector<1x64x16xbf16>
    %92 = vector.shape_cast %91 : vector<1x64x16xbf16> to vector<64x16xbf16>
    %cst_66 = arith.constant dense<0.000000e+00> : vector<16x16xf32>
    %93 = tpu.matmul %69, %92, %cst_66 {dimension_numbers = #tpu.dot_dimension_numbers<[1], [0], [0], [1], [0, 0, 1, 1], [], []>} : vector<16x64xbf16>, vector<64x16xbf16>, vector<16x16xf32> -> vector<16x16xf32>
    %94 = arith.addf %93, %27 : vector<16x16xf32>
    %c0_67 = arith.constant 0 : index
    %c0_68 = arith.constant 0 : index
    %c0_69 = arith.constant 0 : index
    %95 = vector.load %arg9[%c0_67, %c0_68, %c0_69] : memref<4x64x16xbf16, #tpu.memory_space<vmem>>, vector<1x64x16xbf16>
    %96 = vector.shape_cast %95 : vector<1x64x16xbf16> to vector<64x16xbf16>
    %cst_70 = arith.constant dense<0.000000e+00> : vector<16x16xf32>
    %97 = tpu.matmul %69, %96, %cst_70 {dimension_numbers = #tpu.dot_dimension_numbers<[1], [0], [0], [1], [0, 0, 1, 1], [], []>} : vector<16x64xbf16>, vector<64x16xbf16>, vector<16x16xf32> -> vector<16x16xf32>
    %98 = arith.addf %97, %43 : vector<16x16xf32>
    %99 = arith.truncf %90 : vector<16x16xf32> to vector<16x16xbf16>
    %100 = vector.shape_cast %99 : vector<16x16xbf16> to vector<2x8x16xbf16>
    %101 = arith.truncf %94 : vector<16x16xf32> to vector<16x16xbf16>
    %102 = vector.shape_cast %101 : vector<16x16xbf16> to vector<2x8x16xbf16>
    %103 = arith.truncf %98 : vector<16x16xf32> to vector<16x16xbf16>
    %104 = vector.shape_cast %103 : vector<16x16xbf16> to vector<2x8x16xbf16>
    "tpu.trace_start"() <{level = 10 : i32, message = "bqd,bkd->bqk"}> : () -> ()
    %cst_71 = arith.constant dense<0.000000e+00> : vector<2x8x8xf32>
    %105 = tpu.matmul %100, %102, %cst_71 {dimension_numbers = #tpu.dot_dimension_numbers<[2], [2], [1], [1], [0, 0, 0, 1, 1, 1], [0], [0]>} : vector<2x8x16xbf16>, vector<2x8x16xbf16>, vector<2x8x8xf32> -> vector<2x8x8xf32>
    "tpu.trace_stop"() : () -> ()
    %cst_72 = arith.constant dense<0xFF800000> : vector<2x8xf32>
    %106 = vector.multi_reduction <maximumf>, %105, %cst_72 [2] : vector<2x8x8xf32> to vector<2x8xf32>
    %107 = vector.shape_cast %106 : vector<2x8xf32> to vector<2x8x1xf32>
    %108 = vector.broadcast %107 : vector<2x8x1xf32> to vector<2x8x8xf32>
    %109 = arith.subf %105, %108 : vector<2x8x8xf32>
    %110 = math.exp %109 : vector<2x8x8xf32>
    %cst_73 = arith.constant dense<0.000000e+00> : vector<2x8xf32>
    %111 = vector.multi_reduction <add>, %110, %cst_73 [2] : vector<2x8x8xf32> to vector<2x8xf32>
    %112 = vector.shape_cast %111 : vector<2x8xf32> to vector<2x8x1xf32>
    %113 = vector.broadcast %112 : vector<2x8x1xf32> to vector<2x8x8xf32>
    %114 = arith.divf %110, %113 : vector<2x8x8xf32>
    %115 = arith.truncf %114 : vector<2x8x8xf32> to vector<2x8x8xbf16>
    "tpu.trace_start"() <{level = 10 : i32, message = "bqk,bkd->bqd"}> : () -> ()
    %cst_74 = arith.constant dense<0.000000e+00> : vector<2x8x16xf32>
    %116 = tpu.matmul %115, %104, %cst_74 {dimension_numbers = #tpu.dot_dimension_numbers<[2], [1], [1], [2], [0, 0, 0, 1, 1, 2], [0], [0]>} : vector<2x8x8xbf16>, vector<2x8x16xbf16>, vector<2x8x16xf32> -> vector<2x8x16xf32>
    "tpu.trace_stop"() : () -> ()
    %117 = vector.shape_cast %116 : vector<2x8x16xf32> to vector<16x16xf32>
    %118 = arith.truncf %117 : vector<16x16xf32> to vector<16x16xbf16>
    %c1_75 = arith.constant 1 : index
    %c0_76 = arith.constant 0 : index
    %c0_77 = arith.constant 0 : index
    %119 = vector.load %arg7[%c1_75, %c0_76, %c0_77] : memref<4x64x16xbf16, #tpu.memory_space<vmem>>, vector<1x64x16xbf16>
    %120 = vector.shape_cast %119 : vector<1x64x16xbf16> to vector<64x16xbf16>
    %cst_78 = arith.constant dense<0.000000e+00> : vector<16x16xf32>
    %121 = tpu.matmul %69, %120, %cst_78 {dimension_numbers = #tpu.dot_dimension_numbers<[1], [0], [0], [1], [0, 0, 1, 1], [], []>} : vector<16x64xbf16>, vector<64x16xbf16>, vector<16x16xf32> -> vector<16x16xf32>
    %122 = arith.addf %121, %15 : vector<16x16xf32>
    %c1_79 = arith.constant 1 : index
    %c0_80 = arith.constant 0 : index
    %c0_81 = arith.constant 0 : index
    %123 = vector.load %arg8[%c1_79, %c0_80, %c0_81] : memref<4x64x16xbf16, #tpu.memory_space<vmem>>, vector<1x64x16xbf16>
    %124 = vector.shape_cast %123 : vector<1x64x16xbf16> to vector<64x16xbf16>
    %cst_82 = arith.constant dense<0.000000e+00> : vector<16x16xf32>
    %125 = tpu.matmul %69, %124, %cst_82 {dimension_numbers = #tpu.dot_dimension_numbers<[1], [0], [0], [1], [0, 0, 1, 1], [], []>} : vector<16x64xbf16>, vector<64x16xbf16>, vector<16x16xf32> -> vector<16x16xf32>
    %126 = arith.addf %125, %31 : vector<16x16xf32>
    %c1_83 = arith.constant 1 : index
    %c0_84 = arith.constant 0 : index
    %c0_85 = arith.constant 0 : index
    %127 = vector.load %arg9[%c1_83, %c0_84, %c0_85] : memref<4x64x16xbf16, #tpu.memory_space<vmem>>, vector<1x64x16xbf16>
    %128 = vector.shape_cast %127 : vector<1x64x16xbf16> to vector<64x16xbf16>
    %cst_86 = arith.constant dense<0.000000e+00> : vector<16x16xf32>
    %129 = tpu.matmul %69, %128, %cst_86 {dimension_numbers = #tpu.dot_dimension_numbers<[1], [0], [0], [1], [0, 0, 1, 1], [], []>} : vector<16x64xbf16>, vector<64x16xbf16>, vector<16x16xf32> -> vector<16x16xf32>
    %130 = arith.addf %129, %47 : vector<16x16xf32>
    %131 = arith.truncf %122 : vector<16x16xf32> to vector<16x16xbf16>
    %132 = vector.shape_cast %131 : vector<16x16xbf16> to vector<2x8x16xbf16>
    %133 = arith.truncf %126 : vector<16x16xf32> to vector<16x16xbf16>
    %134 = vector.shape_cast %133 : vector<16x16xbf16> to vector<2x8x16xbf16>
    %135 = arith.truncf %130 : vector<16x16xf32> to vector<16x16xbf16>
    %136 = vector.shape_cast %135 : vector<16x16xbf16> to vector<2x8x16xbf16>
    "tpu.trace_start"() <{level = 10 : i32, message = "bqd,bkd->bqk"}> : () -> ()
    %cst_87 = arith.constant dense<0.000000e+00> : vector<2x8x8xf32>
    %137 = tpu.matmul %132, %134, %cst_87 {dimension_numbers = #tpu.dot_dimension_numbers<[2], [2], [1], [1], [0, 0, 0, 1, 1, 1], [0], [0]>} : vector<2x8x16xbf16>, vector<2x8x16xbf16>, vector<2x8x8xf32> -> vector<2x8x8xf32>
    "tpu.trace_stop"() : () -> ()
    %cst_88 = arith.constant dense<0xFF800000> : vector<2x8xf32>
    %138 = vector.multi_reduction <maximumf>, %137, %cst_88 [2] : vector<2x8x8xf32> to vector<2x8xf32>
    %139 = vector.shape_cast %138 : vector<2x8xf32> to vector<2x8x1xf32>
    %140 = vector.broadcast %139 : vector<2x8x1xf32> to vector<2x8x8xf32>
    %141 = arith.subf %137, %140 : vector<2x8x8xf32>
    %142 = math.exp %141 : vector<2x8x8xf32>
    %cst_89 = arith.constant dense<0.000000e+00> : vector<2x8xf32>
    %143 = vector.multi_reduction <add>, %142, %cst_89 [2] : vector<2x8x8xf32> to vector<2x8xf32>
    %144 = vector.shape_cast %143 : vector<2x8xf32> to vector<2x8x1xf32>
    %145 = vector.broadcast %144 : vector<2x8x1xf32> to vector<2x8x8xf32>
    %146 = arith.divf %142, %145 : vector<2x8x8xf32>
    %147 = arith.truncf %146 : vector<2x8x8xf32> to vector<2x8x8xbf16>
    "tpu.trace_start"() <{level = 10 : i32, message = "bqk,bkd->bqd"}> : () -> ()
    %cst_90 = arith.constant dense<0.000000e+00> : vector<2x8x16xf32>
    %148 = tpu.matmul %147, %136, %cst_90 {dimension_numbers = #tpu.dot_dimension_numbers<[2], [1], [1], [2], [0, 0, 0, 1, 1, 2], [0], [0]>} : vector<2x8x8xbf16>, vector<2x8x16xbf16>, vector<2x8x16xf32> -> vector<2x8x16xf32>
    "tpu.trace_stop"() : () -> ()
    %149 = vector.shape_cast %148 : vector<2x8x16xf32> to vector<16x16xf32>
    %150 = arith.truncf %149 : vector<16x16xf32> to vector<16x16xbf16>
    %c2_91 = arith.constant 2 : index
    %c0_92 = arith.constant 0 : index
    %c0_93 = arith.constant 0 : index
    %151 = vector.load %arg7[%c2_91, %c0_92, %c0_93] : memref<4x64x16xbf16, #tpu.memory_space<vmem>>, vector<1x64x16xbf16>
    %152 = vector.shape_cast %151 : vector<1x64x16xbf16> to vector<64x16xbf16>
    %cst_94 = arith.constant dense<0.000000e+00> : vector<16x16xf32>
    %153 = tpu.matmul %69, %152, %cst_94 {dimension_numbers = #tpu.dot_dimension_numbers<[1], [0], [0], [1], [0, 0, 1, 1], [], []>} : vector<16x64xbf16>, vector<64x16xbf16>, vector<16x16xf32> -> vector<16x16xf32>
    %154 = arith.addf %153, %19 : vector<16x16xf32>
    %c2_95 = arith.constant 2 : index
    %c0_96 = arith.constant 0 : index
    %c0_97 = arith.constant 0 : index
    %155 = vector.load %arg8[%c2_95, %c0_96, %c0_97] : memref<4x64x16xbf16, #tpu.memory_space<vmem>>, vector<1x64x16xbf16>
    %156 = vector.shape_cast %155 : vector<1x64x16xbf16> to vector<64x16xbf16>
    %cst_98 = arith.constant dense<0.000000e+00> : vector<16x16xf32>
    %157 = tpu.matmul %69, %156, %cst_98 {dimension_numbers = #tpu.dot_dimension_numbers<[1], [0], [0], [1], [0, 0, 1, 1], [], []>} : vector<16x64xbf16>, vector<64x16xbf16>, vector<16x16xf32> -> vector<16x16xf32>
    %158 = arith.addf %157, %35 : vector<16x16xf32>
    %c2_99 = arith.constant 2 : index
    %c0_100 = arith.constant 0 : index
    %c0_101 = arith.constant 0 : index
    %159 = vector.load %arg9[%c2_99, %c0_100, %c0_101] : memref<4x64x16xbf16, #tpu.memory_space<vmem>>, vector<1x64x16xbf16>
    %160 = vector.shape_cast %159 : vector<1x64x16xbf16> to vector<64x16xbf16>
    %cst_102 = arith.constant dense<0.000000e+00> : vector<16x16xf32>
    %161 = tpu.matmul %69, %160, %cst_102 {dimension_numbers = #tpu.dot_dimension_numbers<[1], [0], [0], [1], [0, 0, 1, 1], [], []>} : vector<16x64xbf16>, vector<64x16xbf16>, vector<16x16xf32> -> vector<16x16xf32>
    %162 = arith.addf %161, %51 : vector<16x16xf32>
    %163 = arith.truncf %154 : vector<16x16xf32> to vector<16x16xbf16>
    %164 = vector.shape_cast %163 : vector<16x16xbf16> to vector<2x8x16xbf16>
    %165 = arith.truncf %158 : vector<16x16xf32> to vector<16x16xbf16>
    %166 = vector.shape_cast %165 : vector<16x16xbf16> to vector<2x8x16xbf16>
    %167 = arith.truncf %162 : vector<16x16xf32> to vector<16x16xbf16>
    %168 = vector.shape_cast %167 : vector<16x16xbf16> to vector<2x8x16xbf16>
    "tpu.trace_start"() <{level = 10 : i32, message = "bqd,bkd->bqk"}> : () -> ()
    %cst_103 = arith.constant dense<0.000000e+00> : vector<2x8x8xf32>
    %169 = tpu.matmul %164, %166, %cst_103 {dimension_numbers = #tpu.dot_dimension_numbers<[2], [2], [1], [1], [0, 0, 0, 1, 1, 1], [0], [0]>} : vector<2x8x16xbf16>, vector<2x8x16xbf16>, vector<2x8x8xf32> -> vector<2x8x8xf32>
    "tpu.trace_stop"() : () -> ()
    %cst_104 = arith.constant dense<0xFF800000> : vector<2x8xf32>
    %170 = vector.multi_reduction <maximumf>, %169, %cst_104 [2] : vector<2x8x8xf32> to vector<2x8xf32>
    %171 = vector.shape_cast %170 : vector<2x8xf32> to vector<2x8x1xf32>
    %172 = vector.broadcast %171 : vector<2x8x1xf32> to vector<2x8x8xf32>
    %173 = arith.subf %169, %172 : vector<2x8x8xf32>
    %174 = math.exp %173 : vector<2x8x8xf32>
    %cst_105 = arith.constant dense<0.000000e+00> : vector<2x8xf32>
    %175 = vector.multi_reduction <add>, %174, %cst_105 [2] : vector<2x8x8xf32> to vector<2x8xf32>
    %176 = vector.shape_cast %175 : vector<2x8xf32> to vector<2x8x1xf32>
    %177 = vector.broadcast %176 : vector<2x8x1xf32> to vector<2x8x8xf32>
    %178 = arith.divf %174, %177 : vector<2x8x8xf32>
    %179 = arith.truncf %178 : vector<2x8x8xf32> to vector<2x8x8xbf16>
    "tpu.trace_start"() <{level = 10 : i32, message = "bqk,bkd->bqd"}> : () -> ()
    %cst_106 = arith.constant dense<0.000000e+00> : vector<2x8x16xf32>
    %180 = tpu.matmul %179, %168, %cst_106 {dimension_numbers = #tpu.dot_dimension_numbers<[2], [1], [1], [2], [0, 0, 0, 1, 1, 2], [0], [0]>} : vector<2x8x8xbf16>, vector<2x8x16xbf16>, vector<2x8x16xf32> -> vector<2x8x16xf32>
    "tpu.trace_stop"() : () -> ()
    %181 = vector.shape_cast %180 : vector<2x8x16xf32> to vector<16x16xf32>
    %182 = arith.truncf %181 : vector<16x16xf32> to vector<16x16xbf16>
    %c3_107 = arith.constant 3 : index
    %c0_108 = arith.constant 0 : index
    %c0_109 = arith.constant 0 : index
    %183 = vector.load %arg7[%c3_107, %c0_108, %c0_109] : memref<4x64x16xbf16, #tpu.memory_space<vmem>>, vector<1x64x16xbf16>
    %184 = vector.shape_cast %183 : vector<1x64x16xbf16> to vector<64x16xbf16>
    %cst_110 = arith.constant dense<0.000000e+00> : vector<16x16xf32>
    %185 = tpu.matmul %69, %184, %cst_110 {dimension_numbers = #tpu.dot_dimension_numbers<[1], [0], [0], [1], [0, 0, 1, 1], [], []>} : vector<16x64xbf16>, vector<64x16xbf16>, vector<16x16xf32> -> vector<16x16xf32>
    %186 = arith.addf %185, %23 : vector<16x16xf32>
    %c3_111 = arith.constant 3 : index
    %c0_112 = arith.constant 0 : index
    %c0_113 = arith.constant 0 : index
    %187 = vector.load %arg8[%c3_111, %c0_112, %c0_113] : memref<4x64x16xbf16, #tpu.memory_space<vmem>>, vector<1x64x16xbf16>
    %188 = vector.shape_cast %187 : vector<1x64x16xbf16> to vector<64x16xbf16>
    %cst_114 = arith.constant dense<0.000000e+00> : vector<16x16xf32>
    %189 = tpu.matmul %69, %188, %cst_114 {dimension_numbers = #tpu.dot_dimension_numbers<[1], [0], [0], [1], [0, 0, 1, 1], [], []>} : vector<16x64xbf16>, vector<64x16xbf16>, vector<16x16xf32> -> vector<16x16xf32>
    %190 = arith.addf %189, %39 : vector<16x16xf32>
    %c3_115 = arith.constant 3 : index
    %c0_116 = arith.constant 0 : index
    %c0_117 = arith.constant 0 : index
    %191 = vector.load %arg9[%c3_115, %c0_116, %c0_117] : memref<4x64x16xbf16, #tpu.memory_space<vmem>>, vector<1x64x16xbf16>
    %192 = vector.shape_cast %191 : vector<1x64x16xbf16> to vector<64x16xbf16>
    %cst_118 = arith.constant dense<0.000000e+00> : vector<16x16xf32>
    %193 = tpu.matmul %69, %192, %cst_118 {dimension_numbers = #tpu.dot_dimension_numbers<[1], [0], [0], [1], [0, 0, 1, 1], [], []>} : vector<16x64xbf16>, vector<64x16xbf16>, vector<16x16xf32> -> vector<16x16xf32>
    %194 = arith.addf %193, %55 : vector<16x16xf32>
    %195 = arith.truncf %186 : vector<16x16xf32> to vector<16x16xbf16>
    %196 = vector.shape_cast %195 : vector<16x16xbf16> to vector<2x8x16xbf16>
    %197 = arith.truncf %190 : vector<16x16xf32> to vector<16x16xbf16>
    %198 = vector.shape_cast %197 : vector<16x16xbf16> to vector<2x8x16xbf16>
    %199 = arith.truncf %194 : vector<16x16xf32> to vector<16x16xbf16>
    %200 = vector.shape_cast %199 : vector<16x16xbf16> to vector<2x8x16xbf16>
    "tpu.trace_start"() <{level = 10 : i32, message = "bqd,bkd->bqk"}> : () -> ()
    %cst_119 = arith.constant dense<0.000000e+00> : vector<2x8x8xf32>
    %201 = tpu.matmul %196, %198, %cst_119 {dimension_numbers = #tpu.dot_dimension_numbers<[2], [2], [1], [1], [0, 0, 0, 1, 1, 1], [0], [0]>} : vector<2x8x16xbf16>, vector<2x8x16xbf16>, vector<2x8x8xf32> -> vector<2x8x8xf32>
    "tpu.trace_stop"() : () -> ()
    %cst_120 = arith.constant dense<0xFF800000> : vector<2x8xf32>
    %202 = vector.multi_reduction <maximumf>, %201, %cst_120 [2] : vector<2x8x8xf32> to vector<2x8xf32>
    %203 = vector.shape_cast %202 : vector<2x8xf32> to vector<2x8x1xf32>
    %204 = vector.broadcast %203 : vector<2x8x1xf32> to vector<2x8x8xf32>
    %205 = arith.subf %201, %204 : vector<2x8x8xf32>
    %206 = math.exp %205 : vector<2x8x8xf32>
    %cst_121 = arith.constant dense<0.000000e+00> : vector<2x8xf32>
    %207 = vector.multi_reduction <add>, %206, %cst_121 [2] : vector<2x8x8xf32> to vector<2x8xf32>
    %208 = vector.shape_cast %207 : vector<2x8xf32> to vector<2x8x1xf32>
    %209 = vector.broadcast %208 : vector<2x8x1xf32> to vector<2x8x8xf32>
    %210 = arith.divf %206, %209 : vector<2x8x8xf32>
    %211 = arith.truncf %210 : vector<2x8x8xf32> to vector<2x8x8xbf16>
    "tpu.trace_start"() <{level = 10 : i32, message = "bqk,bkd->bqd"}> : () -> ()
    %cst_122 = arith.constant dense<0.000000e+00> : vector<2x8x16xf32>
    %212 = tpu.matmul %211, %200, %cst_122 {dimension_numbers = #tpu.dot_dimension_numbers<[2], [1], [1], [2], [0, 0, 0, 1, 1, 2], [0], [0]>} : vector<2x8x8xbf16>, vector<2x8x16xbf16>, vector<2x8x16xf32> -> vector<2x8x16xf32>
    "tpu.trace_stop"() : () -> ()
    %213 = vector.shape_cast %212 : vector<2x8x16xf32> to vector<16x16xf32>
    %214 = arith.truncf %213 : vector<16x16xf32> to vector<16x16xbf16>
    %215 = tpu.concatenate %118, %150, %182, %214 in 1 : vector<16x16xbf16>, vector<16x16xbf16>, vector<16x16xbf16>, vector<16x16xbf16> -> vector<16x64xbf16>
    %cst_123 = arith.constant dense<0.000000e+00> : vector<16x64xf32>
    %216 = tpu.matmul %215, %4, %cst_123 {dimension_numbers = #tpu.dot_dimension_numbers<[1], [0], [0], [1], [0, 0, 1, 1], [], []>} : vector<16x64xbf16>, vector<64x64xbf16>, vector<16x64xf32> -> vector<16x64xf32>
    %217 = arith.addf %216, %7 : vector<16x64xf32>
    %218 = vector.broadcast %56 : f32 to vector<2x8x64xf32>
    %219 = arith.mulf %218, %67 : vector<2x8x64xf32>
    %220 = arith.addf %86, %217 : vector<16x64xf32>
    %221 = vector.shape_cast %220 : vector<16x64xf32> to vector<2x8x64xf32>
    %222 = arith.addf %219, %221 : vector<2x8x64xf32>
    %223 = vector.broadcast %57 : f32 to vector<2x8x64xf32>
    %224 = arith.mulf %223, %222 : vector<2x8x64xf32>
    %225 = arith.addf %0, %224 : vector<2x8x64xf32>
    %c1_124 = arith.constant 1 : index
    %c0_125 = arith.constant 0 : index
    %c0_126 = arith.constant 0 : index
    %c0_127 = arith.constant 0 : index
    %226 = vector.load %arg15[%c1_124, %c0_125, %c0_126, %c0_127] : memref<6x2x8x64xf32, #tpu.memory_space<vmem>>, vector<1x2x8x64xf32>
    %227 = vector.shape_cast %226 : vector<1x2x8x64xf32> to vector<2x8x64xf32>
    %228 = vector.shape_cast %225 : vector<2x8x64xf32> to vector<1x2x8x64xf32>
    tpu.vector_store %arg15[%c1_124, %c0_125, %c0_126, %c0_127], %228 {strides = array<i32>} : memref<6x2x8x64xf32, #tpu.memory_space<vmem>>, vector<1x2x8x64xf32>,
    %c1_128 = arith.constant 1 : index
    %229 = memref.load %arg2[%c1_128] : memref<10xf32, #tpu.memory_space<smem>>
    %c6 = arith.constant 6 : index
    %230 = memref.load %arg2[%c6] : memref<10xf32, #tpu.memory_space<smem>>
    %231 = vector.extract_strided_slice %225 {offsets = [0, 7, 0], sizes = [2, 1, 64], strides = [1, 1, 1]} : vector<2x8x64xf32> to vector<2x1x64xf32>
    %232 = vector.extract_strided_slice %225 {offsets = [0, 0, 0], sizes = [2, 7, 64], strides = [1, 1, 1]} : vector<2x8x64xf32> to vector<2x7x64xf32>
    %233 = tpu.concatenate %231, %232 in 1 : vector<2x1x64xf32>, vector<2x7x64xf32> -> vector<2x8x64xf32>
    %234 = vector.extract_strided_slice %225 {offsets = [0, 1, 0], sizes = [2, 7, 64], strides = [1, 1, 1]} : vector<2x8x64xf32> to vector<2x7x64xf32>
    %235 = vector.extract_strided_slice %225 {offsets = [0, 0, 0], sizes = [2, 1, 64], strides = [1, 1, 1]} : vector<2x8x64xf32> to vector<2x1x64xf32>
    %236 = tpu.concatenate %234, %235 in 1 : vector<2x7x64xf32>, vector<2x1x64xf32> -> vector<2x8x64xf32>
    %237 = arith.addf %233, %236 : vector<2x8x64xf32>
    %cst_129 = arith.constant 2.000000e+00 : f32
    %238 = vector.broadcast %cst_129 : f32 to vector<2x8x64xf32>
    %239 = arith.mulf %238, %225 : vector<2x8x64xf32>
    %240 = arith.subf %237, %239 : vector<2x8x64xf32>
    %241 = vector.shape_cast %225 : vector<2x8x64xf32> to vector<16x64xf32>
    %242 = arith.truncf %241 : vector<16x64xf32> to vector<16x64xbf16>
    %c1_130 = arith.constant 1 : index
    %c0_131 = arith.constant 0 : index
    %c0_132 = arith.constant 0 : index
    %243 = vector.load %arg3[%c1_130, %c0_131, %c0_132] : memref<5x64x128xbf16, #tpu.memory_space<vmem>>, vector<1x64x128xbf16>
    %244 = vector.shape_cast %243 : vector<1x64x128xbf16> to vector<64x128xbf16>
    %cst_133 = arith.constant dense<0.000000e+00> : vector<16x128xf32>
    %245 = tpu.matmul %242, %244, %cst_133 {dimension_numbers = #tpu.dot_dimension_numbers<[1], [0], [0], [1], [0, 0, 1, 1], [], []>} : vector<16x64xbf16>, vector<64x128xbf16>, vector<16x128xf32> -> vector<16x128xf32>
    %c1_134 = arith.constant 1 : index
    %c0_135 = arith.constant 0 : index
    %c0_136 = arith.constant 0 : index
    %246 = vector.load %arg4[%c1_134, %c0_135, %c0_136] : memref<5x1x128xf32, #tpu.memory_space<vmem>>, vector<1x1x128xf32>
    %247 = vector.shape_cast %246 : vector<1x1x128xf32> to vector<1x128xf32>
    %248 = vector.broadcast %247 : vector<1x128xf32> to vector<16x128xf32>
    %249 = arith.addf %245, %248 : vector<16x128xf32>
    %cst_137 = arith.constant 0.000000e+00 : f32
    %250 = vector.broadcast %cst_137 : f32 to vector<16x128xf32>
    %251 = arith.maximumf %249, %250 : vector<16x128xf32>
    %252 = arith.truncf %251 : vector<16x128xf32> to vector<16x128xbf16>
    %c1_138 = arith.constant 1 : index
    %c0_139 = arith.constant 0 : index
    %c0_140 = arith.constant 0 : index
    %253 = vector.load %arg5[%c1_138, %c0_139, %c0_140] : memref<5x128x64xbf16, #tpu.memory_space<vmem>>, vector<1x128x64xbf16>
    %254 = vector.shape_cast %253 : vector<1x128x64xbf16> to vector<128x64xbf16>
    %cst_141 = arith.constant dense<0.000000e+00> : vector<16x64xf32>
    %255 = tpu.matmul %252, %254, %cst_141 {dimension_numbers = #tpu.dot_dimension_numbers<[1], [0], [0], [1], [0, 0, 1, 1], [], []>} : vector<16x128xbf16>, vector<128x64xbf16>, vector<16x64xf32> -> vector<16x64xf32>
    %c1_142 = arith.constant 1 : index
    %c0_143 = arith.constant 0 : index
    %c0_144 = arith.constant 0 : index
    %256 = vector.load %arg6[%c1_142, %c0_143, %c0_144] : memref<5x1x64xf32, #tpu.memory_space<vmem>>, vector<1x1x64xf32>
    %257 = vector.shape_cast %256 : vector<1x1x64xf32> to vector<1x64xf32>
    %258 = vector.broadcast %257 : vector<1x64xf32> to vector<16x64xf32>
    %259 = arith.addf %255, %258 : vector<16x64xf32>
    %c0_145 = arith.constant 0 : index
    %c0_146 = arith.constant 0 : index
    %c0_147 = arith.constant 0 : index
    %260 = vector.load %arg7[%c0_145, %c0_146, %c0_147] : memref<4x64x16xbf16, #tpu.memory_space<vmem>>, vector<1x64x16xbf16>
    %261 = vector.shape_cast %260 : vector<1x64x16xbf16> to vector<64x16xbf16>
    %cst_148 = arith.constant dense<0.000000e+00> : vector<16x16xf32>
    %262 = tpu.matmul %242, %261, %cst_148 {dimension_numbers = #tpu.dot_dimension_numbers<[1], [0], [0], [1], [0, 0, 1, 1], [], []>} : vector<16x64xbf16>, vector<64x16xbf16>, vector<16x16xf32> -> vector<16x16xf32>
    %263 = arith.addf %262, %11 : vector<16x16xf32>
    %c0_149 = arith.constant 0 : index
    %c0_150 = arith.constant 0 : index
    %c0_151 = arith.constant 0 : index
    %264 = vector.load %arg8[%c0_149, %c0_150, %c0_151] : memref<4x64x16xbf16, #tpu.memory_space<vmem>>, vector<1x64x16xbf16>
    %265 = vector.shape_cast %264 : vector<1x64x16xbf16> to vector<64x16xbf16>
    %cst_152 = arith.constant dense<0.000000e+00> : vector<16x16xf32>
    %266 = tpu.matmul %242, %265, %cst_152 {dimension_numbers = #tpu.dot_dimension_numbers<[1], [0], [0], [1], [0, 0, 1, 1], [], []>} : vector<16x64xbf16>, vector<64x16xbf16>, vector<16x16xf32> -> vector<16x16xf32>
    %267 = arith.addf %266, %27 : vector<16x16xf32>
    %c0_153 = arith.constant 0 : index
    %c0_154 = arith.constant 0 : index
    %c0_155 = arith.constant 0 : index
    %268 = vector.load %arg9[%c0_153, %c0_154, %c0_155] : memref<4x64x16xbf16, #tpu.memory_space<vmem>>, vector<1x64x16xbf16>
    %269 = vector.shape_cast %268 : vector<1x64x16xbf16> to vector<64x16xbf16>
    %cst_156 = arith.constant dense<0.000000e+00> : vector<16x16xf32>
    %270 = tpu.matmul %242, %269, %cst_156 {dimension_numbers = #tpu.dot_dimension_numbers<[1], [0], [0], [1], [0, 0, 1, 1], [], []>} : vector<16x64xbf16>, vector<64x16xbf16>, vector<16x16xf32> -> vector<16x16xf32>
    %271 = arith.addf %270, %43 : vector<16x16xf32>
    %272 = arith.truncf %263 : vector<16x16xf32> to vector<16x16xbf16>
    %273 = vector.shape_cast %272 : vector<16x16xbf16> to vector<2x8x16xbf16>
    %274 = arith.truncf %267 : vector<16x16xf32> to vector<16x16xbf16>
    %275 = vector.shape_cast %274 : vector<16x16xbf16> to vector<2x8x16xbf16>
    %276 = arith.truncf %271 : vector<16x16xf32> to vector<16x16xbf16>
    %277 = vector.shape_cast %276 : vector<16x16xbf16> to vector<2x8x16xbf16>
    "tpu.trace_start"() <{level = 10 : i32, message = "bqd,bkd->bqk"}> : () -> ()
    %cst_157 = arith.constant dense<0.000000e+00> : vector<2x8x8xf32>
    %278 = tpu.matmul %273, %275, %cst_157 {dimension_numbers = #tpu.dot_dimension_numbers<[2], [2], [1], [1], [0, 0, 0, 1, 1, 1], [0], [0]>} : vector<2x8x16xbf16>, vector<2x8x16xbf16>, vector<2x8x8xf32> -> vector<2x8x8xf32>
    "tpu.trace_stop"() : () -> ()
    %cst_158 = arith.constant dense<0xFF800000> : vector<2x8xf32>
    %279 = vector.multi_reduction <maximumf>, %278, %cst_158 [2] : vector<2x8x8xf32> to vector<2x8xf32>
    %280 = vector.shape_cast %279 : vector<2x8xf32> to vector<2x8x1xf32>
    %281 = vector.broadcast %280 : vector<2x8x1xf32> to vector<2x8x8xf32>
    %282 = arith.subf %278, %281 : vector<2x8x8xf32>
    %283 = math.exp %282 : vector<2x8x8xf32>
    %cst_159 = arith.constant dense<0.000000e+00> : vector<2x8xf32>
    %284 = vector.multi_reduction <add>, %283, %cst_159 [2] : vector<2x8x8xf32> to vector<2x8xf32>
    %285 = vector.shape_cast %284 : vector<2x8xf32> to vector<2x8x1xf32>
    %286 = vector.broadcast %285 : vector<2x8x1xf32> to vector<2x8x8xf32>
    %287 = arith.divf %283, %286 : vector<2x8x8xf32>
    %288 = arith.truncf %287 : vector<2x8x8xf32> to vector<2x8x8xbf16>
    "tpu.trace_start"() <{level = 10 : i32, message = "bqk,bkd->bqd"}> : () -> ()
    %cst_160 = arith.constant dense<0.000000e+00> : vector<2x8x16xf32>
    %289 = tpu.matmul %288, %277, %cst_160 {dimension_numbers = #tpu.dot_dimension_numbers<[2], [1], [1], [2], [0, 0, 0, 1, 1, 2], [0], [0]>} : vector<2x8x8xbf16>, vector<2x8x16xbf16>, vector<2x8x16xf32> -> vector<2x8x16xf32>
    "tpu.trace_stop"() : () -> ()
    %290 = vector.shape_cast %289 : vector<2x8x16xf32> to vector<16x16xf32>
    %291 = arith.truncf %290 : vector<16x16xf32> to vector<16x16xbf16>
    %c1_161 = arith.constant 1 : index
    %c0_162 = arith.constant 0 : index
    %c0_163 = arith.constant 0 : index
    %292 = vector.load %arg7[%c1_161, %c0_162, %c0_163] : memref<4x64x16xbf16, #tpu.memory_space<vmem>>, vector<1x64x16xbf16>
    %293 = vector.shape_cast %292 : vector<1x64x16xbf16> to vector<64x16xbf16>
    %cst_164 = arith.constant dense<0.000000e+00> : vector<16x16xf32>
    %294 = tpu.matmul %242, %293, %cst_164 {dimension_numbers = #tpu.dot_dimension_numbers<[1], [0], [0], [1], [0, 0, 1, 1], [], []>} : vector<16x64xbf16>, vector<64x16xbf16>, vector<16x16xf32> -> vector<16x16xf32>
    %295 = arith.addf %294, %15 : vector<16x16xf32>
    %c1_165 = arith.constant 1 : index
    %c0_166 = arith.constant 0 : index
    %c0_167 = arith.constant 0 : index
    %296 = vector.load %arg8[%c1_165, %c0_166, %c0_167] : memref<4x64x16xbf16, #tpu.memory_space<vmem>>, vector<1x64x16xbf16>
    %297 = vector.shape_cast %296 : vector<1x64x16xbf16> to vector<64x16xbf16>
    %cst_168 = arith.constant dense<0.000000e+00> : vector<16x16xf32>
    %298 = tpu.matmul %242, %297, %cst_168 {dimension_numbers = #tpu.dot_dimension_numbers<[1], [0], [0], [1], [0, 0, 1, 1], [], []>} : vector<16x64xbf16>, vector<64x16xbf16>, vector<16x16xf32> -> vector<16x16xf32>
    %299 = arith.addf %298, %31 : vector<16x16xf32>
    %c1_169 = arith.constant 1 : index
    %c0_170 = arith.constant 0 : index
    %c0_171 = arith.constant 0 : index
    %300 = vector.load %arg9[%c1_169, %c0_170, %c0_171] : memref<4x64x16xbf16, #tpu.memory_space<vmem>>, vector<1x64x16xbf16>
    %301 = vector.shape_cast %300 : vector<1x64x16xbf16> to vector<64x16xbf16>
    %cst_172 = arith.constant dense<0.000000e+00> : vector<16x16xf32>
    %302 = tpu.matmul %242, %301, %cst_172 {dimension_numbers = #tpu.dot_dimension_numbers<[1], [0], [0], [1], [0, 0, 1, 1], [], []>} : vector<16x64xbf16>, vector<64x16xbf16>, vector<16x16xf32> -> vector<16x16xf32>
    %303 = arith.addf %302, %47 : vector<16x16xf32>
    %304 = arith.truncf %295 : vector<16x16xf32> to vector<16x16xbf16>
    %305 = vector.shape_cast %304 : vector<16x16xbf16> to vector<2x8x16xbf16>
    %306 = arith.truncf %299 : vector<16x16xf32> to vector<16x16xbf16>
    %307 = vector.shape_cast %306 : vector<16x16xbf16> to vector<2x8x16xbf16>
    %308 = arith.truncf %303 : vector<16x16xf32> to vector<16x16xbf16>
    %309 = vector.shape_cast %308 : vector<16x16xbf16> to vector<2x8x16xbf16>
    "tpu.trace_start"() <{level = 10 : i32, message = "bqd,bkd->bqk"}> : () -> ()
    %cst_173 = arith.constant dense<0.000000e+00> : vector<2x8x8xf32>
    %310 = tpu.matmul %305, %307, %cst_173 {dimension_numbers = #tpu.dot_dimension_numbers<[2], [2], [1], [1], [0, 0, 0, 1, 1, 1], [0], [0]>} : vector<2x8x16xbf16>, vector<2x8x16xbf16>, vector<2x8x8xf32> -> vector<2x8x8xf32>
    "tpu.trace_stop"() : () -> ()
    %cst_174 = arith.constant dense<0xFF800000> : vector<2x8xf32>
    %311 = vector.multi_reduction <maximumf>, %310, %cst_174 [2] : vector<2x8x8xf32> to vector<2x8xf32>
    %312 = vector.shape_cast %311 : vector<2x8xf32> to vector<2x8x1xf32>
    %313 = vector.broadcast %312 : vector<2x8x1xf32> to vector<2x8x8xf32>
    %314 = arith.subf %310, %313 : vector<2x8x8xf32>
    %315 = math.exp %314 : vector<2x8x8xf32>
    %cst_175 = arith.constant dense<0.000000e+00> : vector<2x8xf32>
    %316 = vector.multi_reduction <add>, %315, %cst_175 [2] : vector<2x8x8xf32> to vector<2x8xf32>
    %317 = vector.shape_cast %316 : vector<2x8xf32> to vector<2x8x1xf32>
    %318 = vector.broadcast %317 : vector<2x8x1xf32> to vector<2x8x8xf32>
    %319 = arith.divf %315, %318 : vector<2x8x8xf32>
    %320 = arith.truncf %319 : vector<2x8x8xf32> to vector<2x8x8xbf16>
    "tpu.trace_start"() <{level = 10 : i32, message = "bqk,bkd->bqd"}> : () -> ()
    %cst_176 = arith.constant dense<0.000000e+00> : vector<2x8x16xf32>
    %321 = tpu.matmul %320, %309, %cst_176 {dimension_numbers = #tpu.dot_dimension_numbers<[2], [1], [1], [2], [0, 0, 0, 1, 1, 2], [0], [0]>} : vector<2x8x8xbf16>, vector<2x8x16xbf16>, vector<2x8x16xf32> -> vector<2x8x16xf32>
    "tpu.trace_stop"() : () -> ()
    %322 = vector.shape_cast %321 : vector<2x8x16xf32> to vector<16x16xf32>
    %323 = arith.truncf %322 : vector<16x16xf32> to vector<16x16xbf16>
    %c2_177 = arith.constant 2 : index
    %c0_178 = arith.constant 0 : index
    %c0_179 = arith.constant 0 : index
    %324 = vector.load %arg7[%c2_177, %c0_178, %c0_179] : memref<4x64x16xbf16, #tpu.memory_space<vmem>>, vector<1x64x16xbf16>
    %325 = vector.shape_cast %324 : vector<1x64x16xbf16> to vector<64x16xbf16>
    %cst_180 = arith.constant dense<0.000000e+00> : vector<16x16xf32>
    %326 = tpu.matmul %242, %325, %cst_180 {dimension_numbers = #tpu.dot_dimension_numbers<[1], [0], [0], [1], [0, 0, 1, 1], [], []>} : vector<16x64xbf16>, vector<64x16xbf16>, vector<16x16xf32> -> vector<16x16xf32>
    %327 = arith.addf %326, %19 : vector<16x16xf32>
    %c2_181 = arith.constant 2 : index
    %c0_182 = arith.constant 0 : index
    %c0_183 = arith.constant 0 : index
    %328 = vector.load %arg8[%c2_181, %c0_182, %c0_183] : memref<4x64x16xbf16, #tpu.memory_space<vmem>>, vector<1x64x16xbf16>
    %329 = vector.shape_cast %328 : vector<1x64x16xbf16> to vector<64x16xbf16>
    %cst_184 = arith.constant dense<0.000000e+00> : vector<16x16xf32>
    %330 = tpu.matmul %242, %329, %cst_184 {dimension_numbers = #tpu.dot_dimension_numbers<[1], [0], [0], [1], [0, 0, 1, 1], [], []>} : vector<16x64xbf16>, vector<64x16xbf16>, vector<16x16xf32> -> vector<16x16xf32>
    %331 = arith.addf %330, %35 : vector<16x16xf32>
    %c2_185 = arith.constant 2 : index
    %c0_186 = arith.constant 0 : index
    %c0_187 = arith.constant 0 : index
    %332 = vector.load %arg9[%c2_185, %c0_186, %c0_187] : memref<4x64x16xbf16, #tpu.memory_space<vmem>>, vector<1x64x16xbf16>
    %333 = vector.shape_cast %332 : vector<1x64x16xbf16> to vector<64x16xbf16>
    %cst_188 = arith.constant dense<0.000000e+00> : vector<16x16xf32>
    %334 = tpu.matmul %242, %333, %cst_188 {dimension_numbers = #tpu.dot_dimension_numbers<[1], [0], [0], [1], [0, 0, 1, 1], [], []>} : vector<16x64xbf16>, vector<64x16xbf16>, vector<16x16xf32> -> vector<16x16xf32>
    %335 = arith.addf %334, %51 : vector<16x16xf32>
    %336 = arith.truncf %327 : vector<16x16xf32> to vector<16x16xbf16>
    %337 = vector.shape_cast %336 : vector<16x16xbf16> to vector<2x8x16xbf16>
    %338 = arith.truncf %331 : vector<16x16xf32> to vector<16x16xbf16>
    %339 = vector.shape_cast %338 : vector<16x16xbf16> to vector<2x8x16xbf16>
    %340 = arith.truncf %335 : vector<16x16xf32> to vector<16x16xbf16>
    %341 = vector.shape_cast %340 : vector<16x16xbf16> to vector<2x8x16xbf16>
    "tpu.trace_start"() <{level = 10 : i32, message = "bqd,bkd->bqk"}> : () -> ()
    %cst_189 = arith.constant dense<0.000000e+00> : vector<2x8x8xf32>
    %342 = tpu.matmul %337, %339, %cst_189 {dimension_numbers = #tpu.dot_dimension_numbers<[2], [2], [1], [1], [0, 0, 0, 1, 1, 1], [0], [0]>} : vector<2x8x16xbf16>, vector<2x8x16xbf16>, vector<2x8x8xf32> -> vector<2x8x8xf32>
    "tpu.trace_stop"() : () -> ()
    %cst_190 = arith.constant dense<0xFF800000> : vector<2x8xf32>
    %343 = vector.multi_reduction <maximumf>, %342, %cst_190 [2] : vector<2x8x8xf32> to vector<2x8xf32>
    %344 = vector.shape_cast %343 : vector<2x8xf32> to vector<2x8x1xf32>
    %345 = vector.broadcast %344 : vector<2x8x1xf32> to vector<2x8x8xf32>
    %346 = arith.subf %342, %345 : vector<2x8x8xf32>
    %347 = math.exp %346 : vector<2x8x8xf32>
    %cst_191 = arith.constant dense<0.000000e+00> : vector<2x8xf32>
    %348 = vector.multi_reduction <add>, %347, %cst_191 [2] : vector<2x8x8xf32> to vector<2x8xf32>
    %349 = vector.shape_cast %348 : vector<2x8xf32> to vector<2x8x1xf32>
    %350 = vector.broadcast %349 : vector<2x8x1xf32> to vector<2x8x8xf32>
    %351 = arith.divf %347, %350 : vector<2x8x8xf32>
    %352 = arith.truncf %351 : vector<2x8x8xf32> to vector<2x8x8xbf16>
    "tpu.trace_start"() <{level = 10 : i32, message = "bqk,bkd->bqd"}> : () -> ()
    %cst_192 = arith.constant dense<0.000000e+00> : vector<2x8x16xf32>
    %353 = tpu.matmul %352, %341, %cst_192 {dimension_numbers = #tpu.dot_dimension_numbers<[2], [1], [1], [2], [0, 0, 0, 1, 1, 2], [0], [0]>} : vector<2x8x8xbf16>, vector<2x8x16xbf16>, vector<2x8x16xf32> -> vector<2x8x16xf32>
    "tpu.trace_stop"() : () -> ()
    %354 = vector.shape_cast %353 : vector<2x8x16xf32> to vector<16x16xf32>
    %355 = arith.truncf %354 : vector<16x16xf32> to vector<16x16xbf16>
    %c3_193 = arith.constant 3 : index
    %c0_194 = arith.constant 0 : index
    %c0_195 = arith.constant 0 : index
    %356 = vector.load %arg7[%c3_193, %c0_194, %c0_195] : memref<4x64x16xbf16, #tpu.memory_space<vmem>>, vector<1x64x16xbf16>
    %357 = vector.shape_cast %356 : vector<1x64x16xbf16> to vector<64x16xbf16>
    %cst_196 = arith.constant dense<0.000000e+00> : vector<16x16xf32>
    %358 = tpu.matmul %242, %357, %cst_196 {dimension_numbers = #tpu.dot_dimension_numbers<[1], [0], [0], [1], [0, 0, 1, 1], [], []>} : vector<16x64xbf16>, vector<64x16xbf16>, vector<16x16xf32> -> vector<16x16xf32>
    %359 = arith.addf %358, %23 : vector<16x16xf32>
    %c3_197 = arith.constant 3 : index
    %c0_198 = arith.constant 0 : index
    %c0_199 = arith.constant 0 : index
    %360 = vector.load %arg8[%c3_197, %c0_198, %c0_199] : memref<4x64x16xbf16, #tpu.memory_space<vmem>>, vector<1x64x16xbf16>
    %361 = vector.shape_cast %360 : vector<1x64x16xbf16> to vector<64x16xbf16>
    %cst_200 = arith.constant dense<0.000000e+00> : vector<16x16xf32>
    %362 = tpu.matmul %242, %361, %cst_200 {dimension_numbers = #tpu.dot_dimension_numbers<[1], [0], [0], [1], [0, 0, 1, 1], [], []>} : vector<16x64xbf16>, vector<64x16xbf16>, vector<16x16xf32> -> vector<16x16xf32>
    %363 = arith.addf %362, %39 : vector<16x16xf32>
    %c3_201 = arith.constant 3 : index
    %c0_202 = arith.constant 0 : index
    %c0_203 = arith.constant 0 : index
    %364 = vector.load %arg9[%c3_201, %c0_202, %c0_203] : memref<4x64x16xbf16, #tpu.memory_space<vmem>>, vector<1x64x16xbf16>
    %365 = vector.shape_cast %364 : vector<1x64x16xbf16> to vector<64x16xbf16>
    %cst_204 = arith.constant dense<0.000000e+00> : vector<16x16xf32>
    %366 = tpu.matmul %242, %365, %cst_204 {dimension_numbers = #tpu.dot_dimension_numbers<[1], [0], [0], [1], [0, 0, 1, 1], [], []>} : vector<16x64xbf16>, vector<64x16xbf16>, vector<16x16xf32> -> vector<16x16xf32>
    %367 = arith.addf %366, %55 : vector<16x16xf32>
    %368 = arith.truncf %359 : vector<16x16xf32> to vector<16x16xbf16>
    %369 = vector.shape_cast %368 : vector<16x16xbf16> to vector<2x8x16xbf16>
    %370 = arith.truncf %363 : vector<16x16xf32> to vector<16x16xbf16>
    %371 = vector.shape_cast %370 : vector<16x16xbf16> to vector<2x8x16xbf16>
    %372 = arith.truncf %367 : vector<16x16xf32> to vector<16x16xbf16>
    %373 = vector.shape_cast %372 : vector<16x16xbf16> to vector<2x8x16xbf16>
    "tpu.trace_start"() <{level = 10 : i32, message = "bqd,bkd->bqk"}> : () -> ()
    %cst_205 = arith.constant dense<0.000000e+00> : vector<2x8x8xf32>
    %374 = tpu.matmul %369, %371, %cst_205 {dimension_numbers = #tpu.dot_dimension_numbers<[2], [2], [1], [1], [0, 0, 0, 1, 1, 1], [0], [0]>} : vector<2x8x16xbf16>, vector<2x8x16xbf16>, vector<2x8x8xf32> -> vector<2x8x8xf32>
    "tpu.trace_stop"() : () -> ()
    %cst_206 = arith.constant dense<0xFF800000> : vector<2x8xf32>
    %375 = vector.multi_reduction <maximumf>, %374, %cst_206 [2] : vector<2x8x8xf32> to vector<2x8xf32>
    %376 = vector.shape_cast %375 : vector<2x8xf32> to vector<2x8x1xf32>
    %377 = vector.broadcast %376 : vector<2x8x1xf32> to vector<2x8x8xf32>
    %378 = arith.subf %374, %377 : vector<2x8x8xf32>
    %379 = math.exp %378 : vector<2x8x8xf32>
    %cst_207 = arith.constant dense<0.000000e+00> : vector<2x8xf32>
    %380 = vector.multi_reduction <add>, %379, %cst_207 [2] : vector<2x8x8xf32> to vector<2x8xf32>
    %381 = vector.shape_cast %380 : vector<2x8xf32> to vector<2x8x1xf32>
    %382 = vector.broadcast %381 : vector<2x8x1xf32> to vector<2x8x8xf32>
    %383 = arith.divf %379, %382 : vector<2x8x8xf32>
    %384 = arith.truncf %383 : vector<2x8x8xf32> to vector<2x8x8xbf16>
    "tpu.trace_start"() <{level = 10 : i32, message = "bqk,bkd->bqd"}> : () -> ()
    %cst_208 = arith.constant dense<0.000000e+00> : vector<2x8x16xf32>
    %385 = tpu.matmul %384, %373, %cst_208 {dimension_numbers = #tpu.dot_dimension_numbers<[2], [1], [1], [2], [0, 0, 0, 1, 1, 2], [0], [0]>} : vector<2x8x8xbf16>, vector<2x8x16xbf16>, vector<2x8x16xf32> -> vector<2x8x16xf32>
    "tpu.trace_stop"() : () -> ()
    %386 = vector.shape_cast %385 : vector<2x8x16xf32> to vector<16x16xf32>
    %387 = arith.truncf %386 : vector<16x16xf32> to vector<16x16xbf16>
    %388 = tpu.concatenate %291, %323, %355, %387 in 1 : vector<16x16xbf16>, vector<16x16xbf16>, vector<16x16xbf16>, vector<16x16xbf16> -> vector<16x64xbf16>
    %cst_209 = arith.constant dense<0.000000e+00> : vector<16x64xf32>
    %389 = tpu.matmul %388, %4, %cst_209 {dimension_numbers = #tpu.dot_dimension_numbers<[1], [0], [0], [1], [0, 0, 1, 1], [], []>} : vector<16x64xbf16>, vector<64x64xbf16>, vector<16x64xf32> -> vector<16x64xf32>
    %390 = arith.addf %389, %7 : vector<16x64xf32>
    %391 = vector.broadcast %229 : f32 to vector<2x8x64xf32>
    %392 = arith.mulf %391, %240 : vector<2x8x64xf32>
    %393 = arith.addf %259, %390 : vector<16x64xf32>
    %394 = vector.shape_cast %393 : vector<16x64xf32> to vector<2x8x64xf32>
    %395 = arith.addf %392, %394 : vector<2x8x64xf32>
    %396 = vector.broadcast %230 : f32 to vector<2x8x64xf32>
    %397 = arith.mulf %396, %395 : vector<2x8x64xf32>
    %398 = arith.addf %225, %397 : vector<2x8x64xf32>
    %c2_210 = arith.constant 2 : index
    %c0_211 = arith.constant 0 : index
    %c0_212 = arith.constant 0 : index
    %c0_213 = arith.constant 0 : index
    %399 = vector.load %arg15[%c2_210, %c0_211, %c0_212, %c0_213] : memref<6x2x8x64xf32, #tpu.memory_space<vmem>>, vector<1x2x8x64xf32>
    %400 = vector.shape_cast %399 : vector<1x2x8x64xf32> to vector<2x8x64xf32>
    %401 = vector.shape_cast %398 : vector<2x8x64xf32> to vector<1x2x8x64xf32>
    tpu.vector_store %arg15[%c2_210, %c0_211, %c0_212, %c0_213], %401 {strides = array<i32>} : memref<6x2x8x64xf32, #tpu.memory_space<vmem>>, vector<1x2x8x64xf32>,
    %c2_214 = arith.constant 2 : index
    %402 = memref.load %arg2[%c2_214] : memref<10xf32, #tpu.memory_space<smem>>
    %c7 = arith.constant 7 : index
    %403 = memref.load %arg2[%c7] : memref<10xf32, #tpu.memory_space<smem>>
    %404 = vector.extract_strided_slice %398 {offsets = [0, 7, 0], sizes = [2, 1, 64], strides = [1, 1, 1]} : vector<2x8x64xf32> to vector<2x1x64xf32>
    %405 = vector.extract_strided_slice %398 {offsets = [0, 0, 0], sizes = [2, 7, 64], strides = [1, 1, 1]} : vector<2x8x64xf32> to vector<2x7x64xf32>
    %406 = tpu.concatenate %404, %405 in 1 : vector<2x1x64xf32>, vector<2x7x64xf32> -> vector<2x8x64xf32>
    %407 = vector.extract_strided_slice %398 {offsets = [0, 1, 0], sizes = [2, 7, 64], strides = [1, 1, 1]} : vector<2x8x64xf32> to vector<2x7x64xf32>
    %408 = vector.extract_strided_slice %398 {offsets = [0, 0, 0], sizes = [2, 1, 64], strides = [1, 1, 1]} : vector<2x8x64xf32> to vector<2x1x64xf32>
    %409 = tpu.concatenate %407, %408 in 1 : vector<2x7x64xf32>, vector<2x1x64xf32> -> vector<2x8x64xf32>
    %410 = arith.addf %406, %409 : vector<2x8x64xf32>
    %cst_215 = arith.constant 2.000000e+00 : f32
    %411 = vector.broadcast %cst_215 : f32 to vector<2x8x64xf32>
    %412 = arith.mulf %411, %398 : vector<2x8x64xf32>
    %413 = arith.subf %410, %412 : vector<2x8x64xf32>
    %414 = vector.shape_cast %398 : vector<2x8x64xf32> to vector<16x64xf32>
    %415 = arith.truncf %414 : vector<16x64xf32> to vector<16x64xbf16>
    %c2_216 = arith.constant 2 : index
    %c0_217 = arith.constant 0 : index
    %c0_218 = arith.constant 0 : index
    %416 = vector.load %arg3[%c2_216, %c0_217, %c0_218] : memref<5x64x128xbf16, #tpu.memory_space<vmem>>, vector<1x64x128xbf16>
    %417 = vector.shape_cast %416 : vector<1x64x128xbf16> to vector<64x128xbf16>
    %cst_219 = arith.constant dense<0.000000e+00> : vector<16x128xf32>
    %418 = tpu.matmul %415, %417, %cst_219 {dimension_numbers = #tpu.dot_dimension_numbers<[1], [0], [0], [1], [0, 0, 1, 1], [], []>} : vector<16x64xbf16>, vector<64x128xbf16>, vector<16x128xf32> -> vector<16x128xf32>
    %c2_220 = arith.constant 2 : index
    %c0_221 = arith.constant 0 : index
    %c0_222 = arith.constant 0 : index
    %419 = vector.load %arg4[%c2_220, %c0_221, %c0_222] : memref<5x1x128xf32, #tpu.memory_space<vmem>>, vector<1x1x128xf32>
    %420 = vector.shape_cast %419 : vector<1x1x128xf32> to vector<1x128xf32>
    %421 = vector.broadcast %420 : vector<1x128xf32> to vector<16x128xf32>
    %422 = arith.addf %418, %421 : vector<16x128xf32>
    %cst_223 = arith.constant 0.000000e+00 : f32
    %423 = vector.broadcast %cst_223 : f32 to vector<16x128xf32>
    %424 = arith.maximumf %422, %423 : vector<16x128xf32>
    %425 = arith.truncf %424 : vector<16x128xf32> to vector<16x128xbf16>
    %c2_224 = arith.constant 2 : index
    %c0_225 = arith.constant 0 : index
    %c0_226 = arith.constant 0 : index
    %426 = vector.load %arg5[%c2_224, %c0_225, %c0_226] : memref<5x128x64xbf16, #tpu.memory_space<vmem>>, vector<1x128x64xbf16>
    %427 = vector.shape_cast %426 : vector<1x128x64xbf16> to vector<128x64xbf16>
    %cst_227 = arith.constant dense<0.000000e+00> : vector<16x64xf32>
    %428 = tpu.matmul %425, %427, %cst_227 {dimension_numbers = #tpu.dot_dimension_numbers<[1], [0], [0], [1], [0, 0, 1, 1], [], []>} : vector<16x128xbf16>, vector<128x64xbf16>, vector<16x64xf32> -> vector<16x64xf32>
    %c2_228 = arith.constant 2 : index
    %c0_229 = arith.constant 0 : index
    %c0_230 = arith.constant 0 : index
    %429 = vector.load %arg6[%c2_228, %c0_229, %c0_230] : memref<5x1x64xf32, #tpu.memory_space<vmem>>, vector<1x1x64xf32>
    %430 = vector.shape_cast %429 : vector<1x1x64xf32> to vector<1x64xf32>
    %431 = vector.broadcast %430 : vector<1x64xf32> to vector<16x64xf32>
    %432 = arith.addf %428, %431 : vector<16x64xf32>
    %c0_231 = arith.constant 0 : index
    %c0_232 = arith.constant 0 : index
    %c0_233 = arith.constant 0 : index
    %433 = vector.load %arg7[%c0_231, %c0_232, %c0_233] : memref<4x64x16xbf16, #tpu.memory_space<vmem>>, vector<1x64x16xbf16>
    %434 = vector.shape_cast %433 : vector<1x64x16xbf16> to vector<64x16xbf16>
    %cst_234 = arith.constant dense<0.000000e+00> : vector<16x16xf32>
    %435 = tpu.matmul %415, %434, %cst_234 {dimension_numbers = #tpu.dot_dimension_numbers<[1], [0], [0], [1], [0, 0, 1, 1], [], []>} : vector<16x64xbf16>, vector<64x16xbf16>, vector<16x16xf32> -> vector<16x16xf32>
    %436 = arith.addf %435, %11 : vector<16x16xf32>
    %c0_235 = arith.constant 0 : index
    %c0_236 = arith.constant 0 : index
    %c0_237 = arith.constant 0 : index
    %437 = vector.load %arg8[%c0_235, %c0_236, %c0_237] : memref<4x64x16xbf16, #tpu.memory_space<vmem>>, vector<1x64x16xbf16>
    %438 = vector.shape_cast %437 : vector<1x64x16xbf16> to vector<64x16xbf16>
    %cst_238 = arith.constant dense<0.000000e+00> : vector<16x16xf32>
    %439 = tpu.matmul %415, %438, %cst_238 {dimension_numbers = #tpu.dot_dimension_numbers<[1], [0], [0], [1], [0, 0, 1, 1], [], []>} : vector<16x64xbf16>, vector<64x16xbf16>, vector<16x16xf32> -> vector<16x16xf32>
    %440 = arith.addf %439, %27 : vector<16x16xf32>
    %c0_239 = arith.constant 0 : index
    %c0_240 = arith.constant 0 : index
    %c0_241 = arith.constant 0 : index
    %441 = vector.load %arg9[%c0_239, %c0_240, %c0_241] : memref<4x64x16xbf16, #tpu.memory_space<vmem>>, vector<1x64x16xbf16>
    %442 = vector.shape_cast %441 : vector<1x64x16xbf16> to vector<64x16xbf16>
    %cst_242 = arith.constant dense<0.000000e+00> : vector<16x16xf32>
    %443 = tpu.matmul %415, %442, %cst_242 {dimension_numbers = #tpu.dot_dimension_numbers<[1], [0], [0], [1], [0, 0, 1, 1], [], []>} : vector<16x64xbf16>, vector<64x16xbf16>, vector<16x16xf32> -> vector<16x16xf32>
    %444 = arith.addf %443, %43 : vector<16x16xf32>
    %445 = arith.truncf %436 : vector<16x16xf32> to vector<16x16xbf16>
    %446 = vector.shape_cast %445 : vector<16x16xbf16> to vector<2x8x16xbf16>
    %447 = arith.truncf %440 : vector<16x16xf32> to vector<16x16xbf16>
    %448 = vector.shape_cast %447 : vector<16x16xbf16> to vector<2x8x16xbf16>
    %449 = arith.truncf %444 : vector<16x16xf32> to vector<16x16xbf16>
    %450 = vector.shape_cast %449 : vector<16x16xbf16> to vector<2x8x16xbf16>
    "tpu.trace_start"() <{level = 10 : i32, message = "bqd,bkd->bqk"}> : () -> ()
    %cst_243 = arith.constant dense<0.000000e+00> : vector<2x8x8xf32>
    %451 = tpu.matmul %446, %448, %cst_243 {dimension_numbers = #tpu.dot_dimension_numbers<[2], [2], [1], [1], [0, 0, 0, 1, 1, 1], [0], [0]>} : vector<2x8x16xbf16>, vector<2x8x16xbf16>, vector<2x8x8xf32> -> vector<2x8x8xf32>
    "tpu.trace_stop"() : () -> ()
    %cst_244 = arith.constant dense<0xFF800000> : vector<2x8xf32>
    %452 = vector.multi_reduction <maximumf>, %451, %cst_244 [2] : vector<2x8x8xf32> to vector<2x8xf32>
    %453 = vector.shape_cast %452 : vector<2x8xf32> to vector<2x8x1xf32>
    %454 = vector.broadcast %453 : vector<2x8x1xf32> to vector<2x8x8xf32>
    %455 = arith.subf %451, %454 : vector<2x8x8xf32>
    %456 = math.exp %455 : vector<2x8x8xf32>
    %cst_245 = arith.constant dense<0.000000e+00> : vector<2x8xf32>
    %457 = vector.multi_reduction <add>, %456, %cst_245 [2] : vector<2x8x8xf32> to vector<2x8xf32>
    %458 = vector.shape_cast %457 : vector<2x8xf32> to vector<2x8x1xf32>
    %459 = vector.broadcast %458 : vector<2x8x1xf32> to vector<2x8x8xf32>
    %460 = arith.divf %456, %459 : vector<2x8x8xf32>
    %461 = arith.truncf %460 : vector<2x8x8xf32> to vector<2x8x8xbf16>
    "tpu.trace_start"() <{level = 10 : i32, message = "bqk,bkd->bqd"}> : () -> ()
    %cst_246 = arith.constant dense<0.000000e+00> : vector<2x8x16xf32>
    %462 = tpu.matmul %461, %450, %cst_246 {dimension_numbers = #tpu.dot_dimension_numbers<[2], [1], [1], [2], [0, 0, 0, 1, 1, 2], [0], [0]>} : vector<2x8x8xbf16>, vector<2x8x16xbf16>, vector<2x8x16xf32> -> vector<2x8x16xf32>
    "tpu.trace_stop"() : () -> ()
    %463 = vector.shape_cast %462 : vector<2x8x16xf32> to vector<16x16xf32>
    %464 = arith.truncf %463 : vector<16x16xf32> to vector<16x16xbf16>
    %c1_247 = arith.constant 1 : index
    %c0_248 = arith.constant 0 : index
    %c0_249 = arith.constant 0 : index
    %465 = vector.load %arg7[%c1_247, %c0_248, %c0_249] : memref<4x64x16xbf16, #tpu.memory_space<vmem>>, vector<1x64x16xbf16>
    %466 = vector.shape_cast %465 : vector<1x64x16xbf16> to vector<64x16xbf16>
    %cst_250 = arith.constant dense<0.000000e+00> : vector<16x16xf32>
    %467 = tpu.matmul %415, %466, %cst_250 {dimension_numbers = #tpu.dot_dimension_numbers<[1], [0], [0], [1], [0, 0, 1, 1], [], []>} : vector<16x64xbf16>, vector<64x16xbf16>, vector<16x16xf32> -> vector<16x16xf32>
    %468 = arith.addf %467, %15 : vector<16x16xf32>
    %c1_251 = arith.constant 1 : index
    %c0_252 = arith.constant 0 : index
    %c0_253 = arith.constant 0 : index
    %469 = vector.load %arg8[%c1_251, %c0_252, %c0_253] : memref<4x64x16xbf16, #tpu.memory_space<vmem>>, vector<1x64x16xbf16>
    %470 = vector.shape_cast %469 : vector<1x64x16xbf16> to vector<64x16xbf16>
    %cst_254 = arith.constant dense<0.000000e+00> : vector<16x16xf32>
    %471 = tpu.matmul %415, %470, %cst_254 {dimension_numbers = #tpu.dot_dimension_numbers<[1], [0], [0], [1], [0, 0, 1, 1], [], []>} : vector<16x64xbf16>, vector<64x16xbf16>, vector<16x16xf32> -> vector<16x16xf32>
    %472 = arith.addf %471, %31 : vector<16x16xf32>
    %c1_255 = arith.constant 1 : index
    %c0_256 = arith.constant 0 : index
    %c0_257 = arith.constant 0 : index
    %473 = vector.load %arg9[%c1_255, %c0_256, %c0_257] : memref<4x64x16xbf16, #tpu.memory_space<vmem>>, vector<1x64x16xbf16>
    %474 = vector.shape_cast %473 : vector<1x64x16xbf16> to vector<64x16xbf16>
    %cst_258 = arith.constant dense<0.000000e+00> : vector<16x16xf32>
    %475 = tpu.matmul %415, %474, %cst_258 {dimension_numbers = #tpu.dot_dimension_numbers<[1], [0], [0], [1], [0, 0, 1, 1], [], []>} : vector<16x64xbf16>, vector<64x16xbf16>, vector<16x16xf32> -> vector<16x16xf32>
    %476 = arith.addf %475, %47 : vector<16x16xf32>
    %477 = arith.truncf %468 : vector<16x16xf32> to vector<16x16xbf16>
    %478 = vector.shape_cast %477 : vector<16x16xbf16> to vector<2x8x16xbf16>
    %479 = arith.truncf %472 : vector<16x16xf32> to vector<16x16xbf16>
    %480 = vector.shape_cast %479 : vector<16x16xbf16> to vector<2x8x16xbf16>
    %481 = arith.truncf %476 : vector<16x16xf32> to vector<16x16xbf16>
    %482 = vector.shape_cast %481 : vector<16x16xbf16> to vector<2x8x16xbf16>
    "tpu.trace_start"() <{level = 10 : i32, message = "bqd,bkd->bqk"}> : () -> ()
    %cst_259 = arith.constant dense<0.000000e+00> : vector<2x8x8xf32>
    %483 = tpu.matmul %478, %480, %cst_259 {dimension_numbers = #tpu.dot_dimension_numbers<[2], [2], [1], [1], [0, 0, 0, 1, 1, 1], [0], [0]>} : vector<2x8x16xbf16>, vector<2x8x16xbf16>, vector<2x8x8xf32> -> vector<2x8x8xf32>
    "tpu.trace_stop"() : () -> ()
    %cst_260 = arith.constant dense<0xFF800000> : vector<2x8xf32>
    %484 = vector.multi_reduction <maximumf>, %483, %cst_260 [2] : vector<2x8x8xf32> to vector<2x8xf32>
    %485 = vector.shape_cast %484 : vector<2x8xf32> to vector<2x8x1xf32>
    %486 = vector.broadcast %485 : vector<2x8x1xf32> to vector<2x8x8xf32>
    %487 = arith.subf %483, %486 : vector<2x8x8xf32>
    %488 = math.exp %487 : vector<2x8x8xf32>
    %cst_261 = arith.constant dense<0.000000e+00> : vector<2x8xf32>
    %489 = vector.multi_reduction <add>, %488, %cst_261 [2] : vector<2x8x8xf32> to vector<2x8xf32>
    %490 = vector.shape_cast %489 : vector<2x8xf32> to vector<2x8x1xf32>
    %491 = vector.broadcast %490 : vector<2x8x1xf32> to vector<2x8x8xf32>
    %492 = arith.divf %488, %491 : vector<2x8x8xf32>
    %493 = arith.truncf %492 : vector<2x8x8xf32> to vector<2x8x8xbf16>
    "tpu.trace_start"() <{level = 10 : i32, message = "bqk,bkd->bqd"}> : () -> ()
    %cst_262 = arith.constant dense<0.000000e+00> : vector<2x8x16xf32>
    %494 = tpu.matmul %493, %482, %cst_262 {dimension_numbers = #tpu.dot_dimension_numbers<[2], [1], [1], [2], [0, 0, 0, 1, 1, 2], [0], [0]>} : vector<2x8x8xbf16>, vector<2x8x16xbf16>, vector<2x8x16xf32> -> vector<2x8x16xf32>
    "tpu.trace_stop"() : () -> ()
    %495 = vector.shape_cast %494 : vector<2x8x16xf32> to vector<16x16xf32>
    %496 = arith.truncf %495 : vector<16x16xf32> to vector<16x16xbf16>
    %c2_263 = arith.constant 2 : index
    %c0_264 = arith.constant 0 : index
    %c0_265 = arith.constant 0 : index
    %497 = vector.load %arg7[%c2_263, %c0_264, %c0_265] : memref<4x64x16xbf16, #tpu.memory_space<vmem>>, vector<1x64x16xbf16>
    %498 = vector.shape_cast %497 : vector<1x64x16xbf16> to vector<64x16xbf16>
    %cst_266 = arith.constant dense<0.000000e+00> : vector<16x16xf32>
    %499 = tpu.matmul %415, %498, %cst_266 {dimension_numbers = #tpu.dot_dimension_numbers<[1], [0], [0], [1], [0, 0, 1, 1], [], []>} : vector<16x64xbf16>, vector<64x16xbf16>, vector<16x16xf32> -> vector<16x16xf32>
    %500 = arith.addf %499, %19 : vector<16x16xf32>
    %c2_267 = arith.constant 2 : index
    %c0_268 = arith.constant 0 : index
    %c0_269 = arith.constant 0 : index
    %501 = vector.load %arg8[%c2_267, %c0_268, %c0_269] : memref<4x64x16xbf16, #tpu.memory_space<vmem>>, vector<1x64x16xbf16>
    %502 = vector.shape_cast %501 : vector<1x64x16xbf16> to vector<64x16xbf16>
    %cst_270 = arith.constant dense<0.000000e+00> : vector<16x16xf32>
    %503 = tpu.matmul %415, %502, %cst_270 {dimension_numbers = #tpu.dot_dimension_numbers<[1], [0], [0], [1], [0, 0, 1, 1], [], []>} : vector<16x64xbf16>, vector<64x16xbf16>, vector<16x16xf32> -> vector<16x16xf32>
    %504 = arith.addf %503, %35 : vector<16x16xf32>
    %c2_271 = arith.constant 2 : index
    %c0_272 = arith.constant 0 : index
    %c0_273 = arith.constant 0 : index
    %505 = vector.load %arg9[%c2_271, %c0_272, %c0_273] : memref<4x64x16xbf16, #tpu.memory_space<vmem>>, vector<1x64x16xbf16>
    %506 = vector.shape_cast %505 : vector<1x64x16xbf16> to vector<64x16xbf16>
    %cst_274 = arith.constant dense<0.000000e+00> : vector<16x16xf32>
    %507 = tpu.matmul %415, %506, %cst_274 {dimension_numbers = #tpu.dot_dimension_numbers<[1], [0], [0], [1], [0, 0, 1, 1], [], []>} : vector<16x64xbf16>, vector<64x16xbf16>, vector<16x16xf32> -> vector<16x16xf32>
    %508 = arith.addf %507, %51 : vector<16x16xf32>
    %509 = arith.truncf %500 : vector<16x16xf32> to vector<16x16xbf16>
    %510 = vector.shape_cast %509 : vector<16x16xbf16> to vector<2x8x16xbf16>
    %511 = arith.truncf %504 : vector<16x16xf32> to vector<16x16xbf16>
    %512 = vector.shape_cast %511 : vector<16x16xbf16> to vector<2x8x16xbf16>
    %513 = arith.truncf %508 : vector<16x16xf32> to vector<16x16xbf16>
    %514 = vector.shape_cast %513 : vector<16x16xbf16> to vector<2x8x16xbf16>
    "tpu.trace_start"() <{level = 10 : i32, message = "bqd,bkd->bqk"}> : () -> ()
    %cst_275 = arith.constant dense<0.000000e+00> : vector<2x8x8xf32>
    %515 = tpu.matmul %510, %512, %cst_275 {dimension_numbers = #tpu.dot_dimension_numbers<[2], [2], [1], [1], [0, 0, 0, 1, 1, 1], [0], [0]>} : vector<2x8x16xbf16>, vector<2x8x16xbf16>, vector<2x8x8xf32> -> vector<2x8x8xf32>
    "tpu.trace_stop"() : () -> ()
    %cst_276 = arith.constant dense<0xFF800000> : vector<2x8xf32>
    %516 = vector.multi_reduction <maximumf>, %515, %cst_276 [2] : vector<2x8x8xf32> to vector<2x8xf32>
    %517 = vector.shape_cast %516 : vector<2x8xf32> to vector<2x8x1xf32>
    %518 = vector.broadcast %517 : vector<2x8x1xf32> to vector<2x8x8xf32>
    %519 = arith.subf %515, %518 : vector<2x8x8xf32>
    %520 = math.exp %519 : vector<2x8x8xf32>
    %cst_277 = arith.constant dense<0.000000e+00> : vector<2x8xf32>
    %521 = vector.multi_reduction <add>, %520, %cst_277 [2] : vector<2x8x8xf32> to vector<2x8xf32>
    %522 = vector.shape_cast %521 : vector<2x8xf32> to vector<2x8x1xf32>
    %523 = vector.broadcast %522 : vector<2x8x1xf32> to vector<2x8x8xf32>
    %524 = arith.divf %520, %523 : vector<2x8x8xf32>
    %525 = arith.truncf %524 : vector<2x8x8xf32> to vector<2x8x8xbf16>
    "tpu.trace_start"() <{level = 10 : i32, message = "bqk,bkd->bqd"}> : () -> ()
    %cst_278 = arith.constant dense<0.000000e+00> : vector<2x8x16xf32>
    %526 = tpu.matmul %525, %514, %cst_278 {dimension_numbers = #tpu.dot_dimension_numbers<[2], [1], [1], [2], [0, 0, 0, 1, 1, 2], [0], [0]>} : vector<2x8x8xbf16>, vector<2x8x16xbf16>, vector<2x8x16xf32> -> vector<2x8x16xf32>
    "tpu.trace_stop"() : () -> ()
    %527 = vector.shape_cast %526 : vector<2x8x16xf32> to vector<16x16xf32>
    %528 = arith.truncf %527 : vector<16x16xf32> to vector<16x16xbf16>
    %c3_279 = arith.constant 3 : index
    %c0_280 = arith.constant 0 : index
    %c0_281 = arith.constant 0 : index
    %529 = vector.load %arg7[%c3_279, %c0_280, %c0_281] : memref<4x64x16xbf16, #tpu.memory_space<vmem>>, vector<1x64x16xbf16>
    %530 = vector.shape_cast %529 : vector<1x64x16xbf16> to vector<64x16xbf16>
    %cst_282 = arith.constant dense<0.000000e+00> : vector<16x16xf32>
    %531 = tpu.matmul %415, %530, %cst_282 {dimension_numbers = #tpu.dot_dimension_numbers<[1], [0], [0], [1], [0, 0, 1, 1], [], []>} : vector<16x64xbf16>, vector<64x16xbf16>, vector<16x16xf32> -> vector<16x16xf32>
    %532 = arith.addf %531, %23 : vector<16x16xf32>
    %c3_283 = arith.constant 3 : index
    %c0_284 = arith.constant 0 : index
    %c0_285 = arith.constant 0 : index
    %533 = vector.load %arg8[%c3_283, %c0_284, %c0_285] : memref<4x64x16xbf16, #tpu.memory_space<vmem>>, vector<1x64x16xbf16>
    %534 = vector.shape_cast %533 : vector<1x64x16xbf16> to vector<64x16xbf16>
    %cst_286 = arith.constant dense<0.000000e+00> : vector<16x16xf32>
    %535 = tpu.matmul %415, %534, %cst_286 {dimension_numbers = #tpu.dot_dimension_numbers<[1], [0], [0], [1], [0, 0, 1, 1], [], []>} : vector<16x64xbf16>, vector<64x16xbf16>, vector<16x16xf32> -> vector<16x16xf32>
    %536 = arith.addf %535, %39 : vector<16x16xf32>
    %c3_287 = arith.constant 3 : index
    %c0_288 = arith.constant 0 : index
    %c0_289 = arith.constant 0 : index
    %537 = vector.load %arg9[%c3_287, %c0_288, %c0_289] : memref<4x64x16xbf16, #tpu.memory_space<vmem>>, vector<1x64x16xbf16>
    %538 = vector.shape_cast %537 : vector<1x64x16xbf16> to vector<64x16xbf16>
    %cst_290 = arith.constant dense<0.000000e+00> : vector<16x16xf32>
    %539 = tpu.matmul %415, %538, %cst_290 {dimension_numbers = #tpu.dot_dimension_numbers<[1], [0], [0], [1], [0, 0, 1, 1], [], []>} : vector<16x64xbf16>, vector<64x16xbf16>, vector<16x16xf32> -> vector<16x16xf32>
    %540 = arith.addf %539, %55 : vector<16x16xf32>
    %541 = arith.truncf %532 : vector<16x16xf32> to vector<16x16xbf16>
    %542 = vector.shape_cast %541 : vector<16x16xbf16> to vector<2x8x16xbf16>
    %543 = arith.truncf %536 : vector<16x16xf32> to vector<16x16xbf16>
    %544 = vector.shape_cast %543 : vector<16x16xbf16> to vector<2x8x16xbf16>
    %545 = arith.truncf %540 : vector<16x16xf32> to vector<16x16xbf16>
    %546 = vector.shape_cast %545 : vector<16x16xbf16> to vector<2x8x16xbf16>
    "tpu.trace_start"() <{level = 10 : i32, message = "bqd,bkd->bqk"}> : () -> ()
    %cst_291 = arith.constant dense<0.000000e+00> : vector<2x8x8xf32>
    %547 = tpu.matmul %542, %544, %cst_291 {dimension_numbers = #tpu.dot_dimension_numbers<[2], [2], [1], [1], [0, 0, 0, 1, 1, 1], [0], [0]>} : vector<2x8x16xbf16>, vector<2x8x16xbf16>, vector<2x8x8xf32> -> vector<2x8x8xf32>
    "tpu.trace_stop"() : () -> ()
    %cst_292 = arith.constant dense<0xFF800000> : vector<2x8xf32>
    %548 = vector.multi_reduction <maximumf>, %547, %cst_292 [2] : vector<2x8x8xf32> to vector<2x8xf32>
    %549 = vector.shape_cast %548 : vector<2x8xf32> to vector<2x8x1xf32>
    %550 = vector.broadcast %549 : vector<2x8x1xf32> to vector<2x8x8xf32>
    %551 = arith.subf %547, %550 : vector<2x8x8xf32>
    %552 = math.exp %551 : vector<2x8x8xf32>
    %cst_293 = arith.constant dense<0.000000e+00> : vector<2x8xf32>
    %553 = vector.multi_reduction <add>, %552, %cst_293 [2] : vector<2x8x8xf32> to vector<2x8xf32>
    %554 = vector.shape_cast %553 : vector<2x8xf32> to vector<2x8x1xf32>
    %555 = vector.broadcast %554 : vector<2x8x1xf32> to vector<2x8x8xf32>
    %556 = arith.divf %552, %555 : vector<2x8x8xf32>
    %557 = arith.truncf %556 : vector<2x8x8xf32> to vector<2x8x8xbf16>
    "tpu.trace_start"() <{level = 10 : i32, message = "bqk,bkd->bqd"}> : () -> ()
    %cst_294 = arith.constant dense<0.000000e+00> : vector<2x8x16xf32>
    %558 = tpu.matmul %557, %546, %cst_294 {dimension_numbers = #tpu.dot_dimension_numbers<[2], [1], [1], [2], [0, 0, 0, 1, 1, 2], [0], [0]>} : vector<2x8x8xbf16>, vector<2x8x16xbf16>, vector<2x8x16xf32> -> vector<2x8x16xf32>
    "tpu.trace_stop"() : () -> ()
    %559 = vector.shape_cast %558 : vector<2x8x16xf32> to vector<16x16xf32>
    %560 = arith.truncf %559 : vector<16x16xf32> to vector<16x16xbf16>
    %561 = tpu.concatenate %464, %496, %528, %560 in 1 : vector<16x16xbf16>, vector<16x16xbf16>, vector<16x16xbf16>, vector<16x16xbf16> -> vector<16x64xbf16>
    %cst_295 = arith.constant dense<0.000000e+00> : vector<16x64xf32>
    %562 = tpu.matmul %561, %4, %cst_295 {dimension_numbers = #tpu.dot_dimension_numbers<[1], [0], [0], [1], [0, 0, 1, 1], [], []>} : vector<16x64xbf16>, vector<64x64xbf16>, vector<16x64xf32> -> vector<16x64xf32>
    %563 = arith.addf %562, %7 : vector<16x64xf32>
    %564 = vector.broadcast %402 : f32 to vector<2x8x64xf32>
    %565 = arith.mulf %564, %413 : vector<2x8x64xf32>
    %566 = arith.addf %432, %563 : vector<16x64xf32>
    %567 = vector.shape_cast %566 : vector<16x64xf32> to vector<2x8x64xf32>
    %568 = arith.addf %565, %567 : vector<2x8x64xf32>
    %569 = vector.broadcast %403 : f32 to vector<2x8x64xf32>
    %570 = arith.mulf %569, %568 : vector<2x8x64xf32>
    %571 = arith.addf %398, %570 : vector<2x8x64xf32>
    %c3_296 = arith.constant 3 : index
    %c0_297 = arith.constant 0 : index
    %c0_298 = arith.constant 0 : index
    %c0_299 = arith.constant 0 : index
    %572 = vector.load %arg15[%c3_296, %c0_297, %c0_298, %c0_299] : memref<6x2x8x64xf32, #tpu.memory_space<vmem>>, vector<1x2x8x64xf32>
    %573 = vector.shape_cast %572 : vector<1x2x8x64xf32> to vector<2x8x64xf32>
    %574 = vector.shape_cast %571 : vector<2x8x64xf32> to vector<1x2x8x64xf32>
    tpu.vector_store %arg15[%c3_296, %c0_297, %c0_298, %c0_299], %574 {strides = array<i32>} : memref<6x2x8x64xf32, #tpu.memory_space<vmem>>, vector<1x2x8x64xf32>,
    %c3_300 = arith.constant 3 : index
    %575 = memref.load %arg2[%c3_300] : memref<10xf32, #tpu.memory_space<smem>>
    %c8 = arith.constant 8 : index
    %576 = memref.load %arg2[%c8] : memref<10xf32, #tpu.memory_space<smem>>
    %577 = vector.extract_strided_slice %571 {offsets = [0, 7, 0], sizes = [2, 1, 64], strides = [1, 1, 1]} : vector<2x8x64xf32> to vector<2x1x64xf32>
    %578 = vector.extract_strided_slice %571 {offsets = [0, 0, 0], sizes = [2, 7, 64], strides = [1, 1, 1]} : vector<2x8x64xf32> to vector<2x7x64xf32>
    %579 = tpu.concatenate %577, %578 in 1 : vector<2x1x64xf32>, vector<2x7x64xf32> -> vector<2x8x64xf32>
    %580 = vector.extract_strided_slice %571 {offsets = [0, 1, 0], sizes = [2, 7, 64], strides = [1, 1, 1]} : vector<2x8x64xf32> to vector<2x7x64xf32>
    %581 = vector.extract_strided_slice %571 {offsets = [0, 0, 0], sizes = [2, 1, 64], strides = [1, 1, 1]} : vector<2x8x64xf32> to vector<2x1x64xf32>
    %582 = tpu.concatenate %580, %581 in 1 : vector<2x7x64xf32>, vector<2x1x64xf32> -> vector<2x8x64xf32>
    %583 = arith.addf %579, %582 : vector<2x8x64xf32>
    %cst_301 = arith.constant 2.000000e+00 : f32
    %584 = vector.broadcast %cst_301 : f32 to vector<2x8x64xf32>
    %585 = arith.mulf %584, %571 : vector<2x8x64xf32>
    %586 = arith.subf %583, %585 : vector<2x8x64xf32>
    %587 = vector.shape_cast %571 : vector<2x8x64xf32> to vector<16x64xf32>
    %588 = arith.truncf %587 : vector<16x64xf32> to vector<16x64xbf16>
    %c3_302 = arith.constant 3 : index
    %c0_303 = arith.constant 0 : index
    %c0_304 = arith.constant 0 : index
    %589 = vector.load %arg3[%c3_302, %c0_303, %c0_304] : memref<5x64x128xbf16, #tpu.memory_space<vmem>>, vector<1x64x128xbf16>
    %590 = vector.shape_cast %589 : vector<1x64x128xbf16> to vector<64x128xbf16>
    %cst_305 = arith.constant dense<0.000000e+00> : vector<16x128xf32>
    %591 = tpu.matmul %588, %590, %cst_305 {dimension_numbers = #tpu.dot_dimension_numbers<[1], [0], [0], [1], [0, 0, 1, 1], [], []>} : vector<16x64xbf16>, vector<64x128xbf16>, vector<16x128xf32> -> vector<16x128xf32>
    %c3_306 = arith.constant 3 : index
    %c0_307 = arith.constant 0 : index
    %c0_308 = arith.constant 0 : index
    %592 = vector.load %arg4[%c3_306, %c0_307, %c0_308] : memref<5x1x128xf32, #tpu.memory_space<vmem>>, vector<1x1x128xf32>
    %593 = vector.shape_cast %592 : vector<1x1x128xf32> to vector<1x128xf32>
    %594 = vector.broadcast %593 : vector<1x128xf32> to vector<16x128xf32>
    %595 = arith.addf %591, %594 : vector<16x128xf32>
    %cst_309 = arith.constant 0.000000e+00 : f32
    %596 = vector.broadcast %cst_309 : f32 to vector<16x128xf32>
    %597 = arith.maximumf %595, %596 : vector<16x128xf32>
    %598 = arith.truncf %597 : vector<16x128xf32> to vector<16x128xbf16>
    %c3_310 = arith.constant 3 : index
    %c0_311 = arith.constant 0 : index
    %c0_312 = arith.constant 0 : index
    %599 = vector.load %arg5[%c3_310, %c0_311, %c0_312] : memref<5x128x64xbf16, #tpu.memory_space<vmem>>, vector<1x128x64xbf16>
    %600 = vector.shape_cast %599 : vector<1x128x64xbf16> to vector<128x64xbf16>
    %cst_313 = arith.constant dense<0.000000e+00> : vector<16x64xf32>
    %601 = tpu.matmul %598, %600, %cst_313 {dimension_numbers = #tpu.dot_dimension_numbers<[1], [0], [0], [1], [0, 0, 1, 1], [], []>} : vector<16x128xbf16>, vector<128x64xbf16>, vector<16x64xf32> -> vector<16x64xf32>
    %c3_314 = arith.constant 3 : index
    %c0_315 = arith.constant 0 : index
    %c0_316 = arith.constant 0 : index
    %602 = vector.load %arg6[%c3_314, %c0_315, %c0_316] : memref<5x1x64xf32, #tpu.memory_space<vmem>>, vector<1x1x64xf32>
    %603 = vector.shape_cast %602 : vector<1x1x64xf32> to vector<1x64xf32>
    %604 = vector.broadcast %603 : vector<1x64xf32> to vector<16x64xf32>
    %605 = arith.addf %601, %604 : vector<16x64xf32>
    %c0_317 = arith.constant 0 : index
    %c0_318 = arith.constant 0 : index
    %c0_319 = arith.constant 0 : index
    %606 = vector.load %arg7[%c0_317, %c0_318, %c0_319] : memref<4x64x16xbf16, #tpu.memory_space<vmem>>, vector<1x64x16xbf16>
    %607 = vector.shape_cast %606 : vector<1x64x16xbf16> to vector<64x16xbf16>
    %cst_320 = arith.constant dense<0.000000e+00> : vector<16x16xf32>
    %608 = tpu.matmul %588, %607, %cst_320 {dimension_numbers = #tpu.dot_dimension_numbers<[1], [0], [0], [1], [0, 0, 1, 1], [], []>} : vector<16x64xbf16>, vector<64x16xbf16>, vector<16x16xf32> -> vector<16x16xf32>
    %609 = arith.addf %608, %11 : vector<16x16xf32>
    %c0_321 = arith.constant 0 : index
    %c0_322 = arith.constant 0 : index
    %c0_323 = arith.constant 0 : index
    %610 = vector.load %arg8[%c0_321, %c0_322, %c0_323] : memref<4x64x16xbf16, #tpu.memory_space<vmem>>, vector<1x64x16xbf16>
    %611 = vector.shape_cast %610 : vector<1x64x16xbf16> to vector<64x16xbf16>
    %cst_324 = arith.constant dense<0.000000e+00> : vector<16x16xf32>
    %612 = tpu.matmul %588, %611, %cst_324 {dimension_numbers = #tpu.dot_dimension_numbers<[1], [0], [0], [1], [0, 0, 1, 1], [], []>} : vector<16x64xbf16>, vector<64x16xbf16>, vector<16x16xf32> -> vector<16x16xf32>
    %613 = arith.addf %612, %27 : vector<16x16xf32>
    %c0_325 = arith.constant 0 : index
    %c0_326 = arith.constant 0 : index
    %c0_327 = arith.constant 0 : index
    %614 = vector.load %arg9[%c0_325, %c0_326, %c0_327] : memref<4x64x16xbf16, #tpu.memory_space<vmem>>, vector<1x64x16xbf16>
    %615 = vector.shape_cast %614 : vector<1x64x16xbf16> to vector<64x16xbf16>
    %cst_328 = arith.constant dense<0.000000e+00> : vector<16x16xf32>
    %616 = tpu.matmul %588, %615, %cst_328 {dimension_numbers = #tpu.dot_dimension_numbers<[1], [0], [0], [1], [0, 0, 1, 1], [], []>} : vector<16x64xbf16>, vector<64x16xbf16>, vector<16x16xf32> -> vector<16x16xf32>
    %617 = arith.addf %616, %43 : vector<16x16xf32>
    %618 = arith.truncf %609 : vector<16x16xf32> to vector<16x16xbf16>
    %619 = vector.shape_cast %618 : vector<16x16xbf16> to vector<2x8x16xbf16>
    %620 = arith.truncf %613 : vector<16x16xf32> to vector<16x16xbf16>
    %621 = vector.shape_cast %620 : vector<16x16xbf16> to vector<2x8x16xbf16>
    %622 = arith.truncf %617 : vector<16x16xf32> to vector<16x16xbf16>
    %623 = vector.shape_cast %622 : vector<16x16xbf16> to vector<2x8x16xbf16>
    "tpu.trace_start"() <{level = 10 : i32, message = "bqd,bkd->bqk"}> : () -> ()
    %cst_329 = arith.constant dense<0.000000e+00> : vector<2x8x8xf32>
    %624 = tpu.matmul %619, %621, %cst_329 {dimension_numbers = #tpu.dot_dimension_numbers<[2], [2], [1], [1], [0, 0, 0, 1, 1, 1], [0], [0]>} : vector<2x8x16xbf16>, vector<2x8x16xbf16>, vector<2x8x8xf32> -> vector<2x8x8xf32>
    "tpu.trace_stop"() : () -> ()
    %cst_330 = arith.constant dense<0xFF800000> : vector<2x8xf32>
    %625 = vector.multi_reduction <maximumf>, %624, %cst_330 [2] : vector<2x8x8xf32> to vector<2x8xf32>
    %626 = vector.shape_cast %625 : vector<2x8xf32> to vector<2x8x1xf32>
    %627 = vector.broadcast %626 : vector<2x8x1xf32> to vector<2x8x8xf32>
    %628 = arith.subf %624, %627 : vector<2x8x8xf32>
    %629 = math.exp %628 : vector<2x8x8xf32>
    %cst_331 = arith.constant dense<0.000000e+00> : vector<2x8xf32>
    %630 = vector.multi_reduction <add>, %629, %cst_331 [2] : vector<2x8x8xf32> to vector<2x8xf32>
    %631 = vector.shape_cast %630 : vector<2x8xf32> to vector<2x8x1xf32>
    %632 = vector.broadcast %631 : vector<2x8x1xf32> to vector<2x8x8xf32>
    %633 = arith.divf %629, %632 : vector<2x8x8xf32>
    %634 = arith.truncf %633 : vector<2x8x8xf32> to vector<2x8x8xbf16>
    "tpu.trace_start"() <{level = 10 : i32, message = "bqk,bkd->bqd"}> : () -> ()
    %cst_332 = arith.constant dense<0.000000e+00> : vector<2x8x16xf32>
    %635 = tpu.matmul %634, %623, %cst_332 {dimension_numbers = #tpu.dot_dimension_numbers<[2], [1], [1], [2], [0, 0, 0, 1, 1, 2], [0], [0]>} : vector<2x8x8xbf16>, vector<2x8x16xbf16>, vector<2x8x16xf32> -> vector<2x8x16xf32>
    "tpu.trace_stop"() : () -> ()
    %636 = vector.shape_cast %635 : vector<2x8x16xf32> to vector<16x16xf32>
    %637 = arith.truncf %636 : vector<16x16xf32> to vector<16x16xbf16>
    %c1_333 = arith.constant 1 : index
    %c0_334 = arith.constant 0 : index
    %c0_335 = arith.constant 0 : index
    %638 = vector.load %arg7[%c1_333, %c0_334, %c0_335] : memref<4x64x16xbf16, #tpu.memory_space<vmem>>, vector<1x64x16xbf16>
    %639 = vector.shape_cast %638 : vector<1x64x16xbf16> to vector<64x16xbf16>
    %cst_336 = arith.constant dense<0.000000e+00> : vector<16x16xf32>
    %640 = tpu.matmul %588, %639, %cst_336 {dimension_numbers = #tpu.dot_dimension_numbers<[1], [0], [0], [1], [0, 0, 1, 1], [], []>} : vector<16x64xbf16>, vector<64x16xbf16>, vector<16x16xf32> -> vector<16x16xf32>
    %641 = arith.addf %640, %15 : vector<16x16xf32>
    %c1_337 = arith.constant 1 : index
    %c0_338 = arith.constant 0 : index
    %c0_339 = arith.constant 0 : index
    %642 = vector.load %arg8[%c1_337, %c0_338, %c0_339] : memref<4x64x16xbf16, #tpu.memory_space<vmem>>, vector<1x64x16xbf16>
    %643 = vector.shape_cast %642 : vector<1x64x16xbf16> to vector<64x16xbf16>
    %cst_340 = arith.constant dense<0.000000e+00> : vector<16x16xf32>
    %644 = tpu.matmul %588, %643, %cst_340 {dimension_numbers = #tpu.dot_dimension_numbers<[1], [0], [0], [1], [0, 0, 1, 1], [], []>} : vector<16x64xbf16>, vector<64x16xbf16>, vector<16x16xf32> -> vector<16x16xf32>
    %645 = arith.addf %644, %31 : vector<16x16xf32>
    %c1_341 = arith.constant 1 : index
    %c0_342 = arith.constant 0 : index
    %c0_343 = arith.constant 0 : index
    %646 = vector.load %arg9[%c1_341, %c0_342, %c0_343] : memref<4x64x16xbf16, #tpu.memory_space<vmem>>, vector<1x64x16xbf16>
    %647 = vector.shape_cast %646 : vector<1x64x16xbf16> to vector<64x16xbf16>
    %cst_344 = arith.constant dense<0.000000e+00> : vector<16x16xf32>
    %648 = tpu.matmul %588, %647, %cst_344 {dimension_numbers = #tpu.dot_dimension_numbers<[1], [0], [0], [1], [0, 0, 1, 1], [], []>} : vector<16x64xbf16>, vector<64x16xbf16>, vector<16x16xf32> -> vector<16x16xf32>
    %649 = arith.addf %648, %47 : vector<16x16xf32>
    %650 = arith.truncf %641 : vector<16x16xf32> to vector<16x16xbf16>
    %651 = vector.shape_cast %650 : vector<16x16xbf16> to vector<2x8x16xbf16>
    %652 = arith.truncf %645 : vector<16x16xf32> to vector<16x16xbf16>
    %653 = vector.shape_cast %652 : vector<16x16xbf16> to vector<2x8x16xbf16>
    %654 = arith.truncf %649 : vector<16x16xf32> to vector<16x16xbf16>
    %655 = vector.shape_cast %654 : vector<16x16xbf16> to vector<2x8x16xbf16>
    "tpu.trace_start"() <{level = 10 : i32, message = "bqd,bkd->bqk"}> : () -> ()
    %cst_345 = arith.constant dense<0.000000e+00> : vector<2x8x8xf32>
    %656 = tpu.matmul %651, %653, %cst_345 {dimension_numbers = #tpu.dot_dimension_numbers<[2], [2], [1], [1], [0, 0, 0, 1, 1, 1], [0], [0]>} : vector<2x8x16xbf16>, vector<2x8x16xbf16>, vector<2x8x8xf32> -> vector<2x8x8xf32>
    "tpu.trace_stop"() : () -> ()
    %cst_346 = arith.constant dense<0xFF800000> : vector<2x8xf32>
    %657 = vector.multi_reduction <maximumf>, %656, %cst_346 [2] : vector<2x8x8xf32> to vector<2x8xf32>
    %658 = vector.shape_cast %657 : vector<2x8xf32> to vector<2x8x1xf32>
    %659 = vector.broadcast %658 : vector<2x8x1xf32> to vector<2x8x8xf32>
    %660 = arith.subf %656, %659 : vector<2x8x8xf32>
    %661 = math.exp %660 : vector<2x8x8xf32>
    %cst_347 = arith.constant dense<0.000000e+00> : vector<2x8xf32>
    %662 = vector.multi_reduction <add>, %661, %cst_347 [2] : vector<2x8x8xf32> to vector<2x8xf32>
    %663 = vector.shape_cast %662 : vector<2x8xf32> to vector<2x8x1xf32>
    %664 = vector.broadcast %663 : vector<2x8x1xf32> to vector<2x8x8xf32>
    %665 = arith.divf %661, %664 : vector<2x8x8xf32>
    %666 = arith.truncf %665 : vector<2x8x8xf32> to vector<2x8x8xbf16>
    "tpu.trace_start"() <{level = 10 : i32, message = "bqk,bkd->bqd"}> : () -> ()
    %cst_348 = arith.constant dense<0.000000e+00> : vector<2x8x16xf32>
    %667 = tpu.matmul %666, %655, %cst_348 {dimension_numbers = #tpu.dot_dimension_numbers<[2], [1], [1], [2], [0, 0, 0, 1, 1, 2], [0], [0]>} : vector<2x8x8xbf16>, vector<2x8x16xbf16>, vector<2x8x16xf32> -> vector<2x8x16xf32>
    "tpu.trace_stop"() : () -> ()
    %668 = vector.shape_cast %667 : vector<2x8x16xf32> to vector<16x16xf32>
    %669 = arith.truncf %668 : vector<16x16xf32> to vector<16x16xbf16>
    %c2_349 = arith.constant 2 : index
    %c0_350 = arith.constant 0 : index
    %c0_351 = arith.constant 0 : index
    %670 = vector.load %arg7[%c2_349, %c0_350, %c0_351] : memref<4x64x16xbf16, #tpu.memory_space<vmem>>, vector<1x64x16xbf16>
    %671 = vector.shape_cast %670 : vector<1x64x16xbf16> to vector<64x16xbf16>
    %cst_352 = arith.constant dense<0.000000e+00> : vector<16x16xf32>
    %672 = tpu.matmul %588, %671, %cst_352 {dimension_numbers = #tpu.dot_dimension_numbers<[1], [0], [0], [1], [0, 0, 1, 1], [], []>} : vector<16x64xbf16>, vector<64x16xbf16>, vector<16x16xf32> -> vector<16x16xf32>
    %673 = arith.addf %672, %19 : vector<16x16xf32>
    %c2_353 = arith.constant 2 : index
    %c0_354 = arith.constant 0 : index
    %c0_355 = arith.constant 0 : index
    %674 = vector.load %arg8[%c2_353, %c0_354, %c0_355] : memref<4x64x16xbf16, #tpu.memory_space<vmem>>, vector<1x64x16xbf16>
    %675 = vector.shape_cast %674 : vector<1x64x16xbf16> to vector<64x16xbf16>
    %cst_356 = arith.constant dense<0.000000e+00> : vector<16x16xf32>
    %676 = tpu.matmul %588, %675, %cst_356 {dimension_numbers = #tpu.dot_dimension_numbers<[1], [0], [0], [1], [0, 0, 1, 1], [], []>} : vector<16x64xbf16>, vector<64x16xbf16>, vector<16x16xf32> -> vector<16x16xf32>
    %677 = arith.addf %676, %35 : vector<16x16xf32>
    %c2_357 = arith.constant 2 : index
    %c0_358 = arith.constant 0 : index
    %c0_359 = arith.constant 0 : index
    %678 = vector.load %arg9[%c2_357, %c0_358, %c0_359] : memref<4x64x16xbf16, #tpu.memory_space<vmem>>, vector<1x64x16xbf16>
    %679 = vector.shape_cast %678 : vector<1x64x16xbf16> to vector<64x16xbf16>
    %cst_360 = arith.constant dense<0.000000e+00> : vector<16x16xf32>
    %680 = tpu.matmul %588, %679, %cst_360 {dimension_numbers = #tpu.dot_dimension_numbers<[1], [0], [0], [1], [0, 0, 1, 1], [], []>} : vector<16x64xbf16>, vector<64x16xbf16>, vector<16x16xf32> -> vector<16x16xf32>
    %681 = arith.addf %680, %51 : vector<16x16xf32>
    %682 = arith.truncf %673 : vector<16x16xf32> to vector<16x16xbf16>
    %683 = vector.shape_cast %682 : vector<16x16xbf16> to vector<2x8x16xbf16>
    %684 = arith.truncf %677 : vector<16x16xf32> to vector<16x16xbf16>
    %685 = vector.shape_cast %684 : vector<16x16xbf16> to vector<2x8x16xbf16>
    %686 = arith.truncf %681 : vector<16x16xf32> to vector<16x16xbf16>
    %687 = vector.shape_cast %686 : vector<16x16xbf16> to vector<2x8x16xbf16>
    "tpu.trace_start"() <{level = 10 : i32, message = "bqd,bkd->bqk"}> : () -> ()
    %cst_361 = arith.constant dense<0.000000e+00> : vector<2x8x8xf32>
    %688 = tpu.matmul %683, %685, %cst_361 {dimension_numbers = #tpu.dot_dimension_numbers<[2], [2], [1], [1], [0, 0, 0, 1, 1, 1], [0], [0]>} : vector<2x8x16xbf16>, vector<2x8x16xbf16>, vector<2x8x8xf32> -> vector<2x8x8xf32>
    "tpu.trace_stop"() : () -> ()
    %cst_362 = arith.constant dense<0xFF800000> : vector<2x8xf32>
    %689 = vector.multi_reduction <maximumf>, %688, %cst_362 [2] : vector<2x8x8xf32> to vector<2x8xf32>
    %690 = vector.shape_cast %689 : vector<2x8xf32> to vector<2x8x1xf32>
    %691 = vector.broadcast %690 : vector<2x8x1xf32> to vector<2x8x8xf32>
    %692 = arith.subf %688, %691 : vector<2x8x8xf32>
    %693 = math.exp %692 : vector<2x8x8xf32>
    %cst_363 = arith.constant dense<0.000000e+00> : vector<2x8xf32>
    %694 = vector.multi_reduction <add>, %693, %cst_363 [2] : vector<2x8x8xf32> to vector<2x8xf32>
    %695 = vector.shape_cast %694 : vector<2x8xf32> to vector<2x8x1xf32>
    %696 = vector.broadcast %695 : vector<2x8x1xf32> to vector<2x8x8xf32>
    %697 = arith.divf %693, %696 : vector<2x8x8xf32>
    %698 = arith.truncf %697 : vector<2x8x8xf32> to vector<2x8x8xbf16>
    "tpu.trace_start"() <{level = 10 : i32, message = "bqk,bkd->bqd"}> : () -> ()
    %cst_364 = arith.constant dense<0.000000e+00> : vector<2x8x16xf32>
    %699 = tpu.matmul %698, %687, %cst_364 {dimension_numbers = #tpu.dot_dimension_numbers<[2], [1], [1], [2], [0, 0, 0, 1, 1, 2], [0], [0]>} : vector<2x8x8xbf16>, vector<2x8x16xbf16>, vector<2x8x16xf32> -> vector<2x8x16xf32>
    "tpu.trace_stop"() : () -> ()
    %700 = vector.shape_cast %699 : vector<2x8x16xf32> to vector<16x16xf32>
    %701 = arith.truncf %700 : vector<16x16xf32> to vector<16x16xbf16>
    %c3_365 = arith.constant 3 : index
    %c0_366 = arith.constant 0 : index
    %c0_367 = arith.constant 0 : index
    %702 = vector.load %arg7[%c3_365, %c0_366, %c0_367] : memref<4x64x16xbf16, #tpu.memory_space<vmem>>, vector<1x64x16xbf16>
    %703 = vector.shape_cast %702 : vector<1x64x16xbf16> to vector<64x16xbf16>
    %cst_368 = arith.constant dense<0.000000e+00> : vector<16x16xf32>
    %704 = tpu.matmul %588, %703, %cst_368 {dimension_numbers = #tpu.dot_dimension_numbers<[1], [0], [0], [1], [0, 0, 1, 1], [], []>} : vector<16x64xbf16>, vector<64x16xbf16>, vector<16x16xf32> -> vector<16x16xf32>
    %705 = arith.addf %704, %23 : vector<16x16xf32>
    %c3_369 = arith.constant 3 : index
    %c0_370 = arith.constant 0 : index
    %c0_371 = arith.constant 0 : index
    %706 = vector.load %arg8[%c3_369, %c0_370, %c0_371] : memref<4x64x16xbf16, #tpu.memory_space<vmem>>, vector<1x64x16xbf16>
    %707 = vector.shape_cast %706 : vector<1x64x16xbf16> to vector<64x16xbf16>
    %cst_372 = arith.constant dense<0.000000e+00> : vector<16x16xf32>
    %708 = tpu.matmul %588, %707, %cst_372 {dimension_numbers = #tpu.dot_dimension_numbers<[1], [0], [0], [1], [0, 0, 1, 1], [], []>} : vector<16x64xbf16>, vector<64x16xbf16>, vector<16x16xf32> -> vector<16x16xf32>
    %709 = arith.addf %708, %39 : vector<16x16xf32>
    %c3_373 = arith.constant 3 : index
    %c0_374 = arith.constant 0 : index
    %c0_375 = arith.constant 0 : index
    %710 = vector.load %arg9[%c3_373, %c0_374, %c0_375] : memref<4x64x16xbf16, #tpu.memory_space<vmem>>, vector<1x64x16xbf16>
    %711 = vector.shape_cast %710 : vector<1x64x16xbf16> to vector<64x16xbf16>
    %cst_376 = arith.constant dense<0.000000e+00> : vector<16x16xf32>
    %712 = tpu.matmul %588, %711, %cst_376 {dimension_numbers = #tpu.dot_dimension_numbers<[1], [0], [0], [1], [0, 0, 1, 1], [], []>} : vector<16x64xbf16>, vector<64x16xbf16>, vector<16x16xf32> -> vector<16x16xf32>
    %713 = arith.addf %712, %55 : vector<16x16xf32>
    %714 = arith.truncf %705 : vector<16x16xf32> to vector<16x16xbf16>
    %715 = vector.shape_cast %714 : vector<16x16xbf16> to vector<2x8x16xbf16>
    %716 = arith.truncf %709 : vector<16x16xf32> to vector<16x16xbf16>
    %717 = vector.shape_cast %716 : vector<16x16xbf16> to vector<2x8x16xbf16>
    %718 = arith.truncf %713 : vector<16x16xf32> to vector<16x16xbf16>
    %719 = vector.shape_cast %718 : vector<16x16xbf16> to vector<2x8x16xbf16>
    "tpu.trace_start"() <{level = 10 : i32, message = "bqd,bkd->bqk"}> : () -> ()
    %cst_377 = arith.constant dense<0.000000e+00> : vector<2x8x8xf32>
    %720 = tpu.matmul %715, %717, %cst_377 {dimension_numbers = #tpu.dot_dimension_numbers<[2], [2], [1], [1], [0, 0, 0, 1, 1, 1], [0], [0]>} : vector<2x8x16xbf16>, vector<2x8x16xbf16>, vector<2x8x8xf32> -> vector<2x8x8xf32>
    "tpu.trace_stop"() : () -> ()
    %cst_378 = arith.constant dense<0xFF800000> : vector<2x8xf32>
    %721 = vector.multi_reduction <maximumf>, %720, %cst_378 [2] : vector<2x8x8xf32> to vector<2x8xf32>
    %722 = vector.shape_cast %721 : vector<2x8xf32> to vector<2x8x1xf32>
    %723 = vector.broadcast %722 : vector<2x8x1xf32> to vector<2x8x8xf32>
    %724 = arith.subf %720, %723 : vector<2x8x8xf32>
    %725 = math.exp %724 : vector<2x8x8xf32>
    %cst_379 = arith.constant dense<0.000000e+00> : vector<2x8xf32>
    %726 = vector.multi_reduction <add>, %725, %cst_379 [2] : vector<2x8x8xf32> to vector<2x8xf32>
    %727 = vector.shape_cast %726 : vector<2x8xf32> to vector<2x8x1xf32>
    %728 = vector.broadcast %727 : vector<2x8x1xf32> to vector<2x8x8xf32>
    %729 = arith.divf %725, %728 : vector<2x8x8xf32>
    %730 = arith.truncf %729 : vector<2x8x8xf32> to vector<2x8x8xbf16>
    "tpu.trace_start"() <{level = 10 : i32, message = "bqk,bkd->bqd"}> : () -> ()
    %cst_380 = arith.constant dense<0.000000e+00> : vector<2x8x16xf32>
    %731 = tpu.matmul %730, %719, %cst_380 {dimension_numbers = #tpu.dot_dimension_numbers<[2], [1], [1], [2], [0, 0, 0, 1, 1, 2], [0], [0]>} : vector<2x8x8xbf16>, vector<2x8x16xbf16>, vector<2x8x16xf32> -> vector<2x8x16xf32>
    "tpu.trace_stop"() : () -> ()
    %732 = vector.shape_cast %731 : vector<2x8x16xf32> to vector<16x16xf32>
    %733 = arith.truncf %732 : vector<16x16xf32> to vector<16x16xbf16>
    %734 = tpu.concatenate %637, %669, %701, %733 in 1 : vector<16x16xbf16>, vector<16x16xbf16>, vector<16x16xbf16>, vector<16x16xbf16> -> vector<16x64xbf16>
    %cst_381 = arith.constant dense<0.000000e+00> : vector<16x64xf32>
    %735 = tpu.matmul %734, %4, %cst_381 {dimension_numbers = #tpu.dot_dimension_numbers<[1], [0], [0], [1], [0, 0, 1, 1], [], []>} : vector<16x64xbf16>, vector<64x64xbf16>, vector<16x64xf32> -> vector<16x64xf32>
    %736 = arith.addf %735, %7 : vector<16x64xf32>
    %737 = vector.broadcast %575 : f32 to vector<2x8x64xf32>
    %738 = arith.mulf %737, %586 : vector<2x8x64xf32>
    %739 = arith.addf %605, %736 : vector<16x64xf32>
    %740 = vector.shape_cast %739 : vector<16x64xf32> to vector<2x8x64xf32>
    %741 = arith.addf %738, %740 : vector<2x8x64xf32>
    %742 = vector.broadcast %576 : f32 to vector<2x8x64xf32>
    %743 = arith.mulf %742, %741 : vector<2x8x64xf32>
    %744 = arith.addf %571, %743 : vector<2x8x64xf32>
    %c4 = arith.constant 4 : index
    %c0_382 = arith.constant 0 : index
    %c0_383 = arith.constant 0 : index
    %c0_384 = arith.constant 0 : index
    %745 = vector.load %arg15[%c4, %c0_382, %c0_383, %c0_384] : memref<6x2x8x64xf32, #tpu.memory_space<vmem>>, vector<1x2x8x64xf32>
    %746 = vector.shape_cast %745 : vector<1x2x8x64xf32> to vector<2x8x64xf32>
    %747 = vector.shape_cast %744 : vector<2x8x64xf32> to vector<1x2x8x64xf32>
    tpu.vector_store %arg15[%c4, %c0_382, %c0_383, %c0_384], %747 {strides = array<i32>} : memref<6x2x8x64xf32, #tpu.memory_space<vmem>>, vector<1x2x8x64xf32>,
    %c4_385 = arith.constant 4 : index
    %748 = memref.load %arg2[%c4_385] : memref<10xf32, #tpu.memory_space<smem>>
    %c9 = arith.constant 9 : index
    %749 = memref.load %arg2[%c9] : memref<10xf32, #tpu.memory_space<smem>>
    %750 = vector.extract_strided_slice %744 {offsets = [0, 7, 0], sizes = [2, 1, 64], strides = [1, 1, 1]} : vector<2x8x64xf32> to vector<2x1x64xf32>
    %751 = vector.extract_strided_slice %744 {offsets = [0, 0, 0], sizes = [2, 7, 64], strides = [1, 1, 1]} : vector<2x8x64xf32> to vector<2x7x64xf32>
    %752 = tpu.concatenate %750, %751 in 1 : vector<2x1x64xf32>, vector<2x7x64xf32> -> vector<2x8x64xf32>
    %753 = vector.extract_strided_slice %744 {offsets = [0, 1, 0], sizes = [2, 7, 64], strides = [1, 1, 1]} : vector<2x8x64xf32> to vector<2x7x64xf32>
    %754 = vector.extract_strided_slice %744 {offsets = [0, 0, 0], sizes = [2, 1, 64], strides = [1, 1, 1]} : vector<2x8x64xf32> to vector<2x1x64xf32>
    %755 = tpu.concatenate %753, %754 in 1 : vector<2x7x64xf32>, vector<2x1x64xf32> -> vector<2x8x64xf32>
    %756 = arith.addf %752, %755 : vector<2x8x64xf32>
    %cst_386 = arith.constant 2.000000e+00 : f32
    %757 = vector.broadcast %cst_386 : f32 to vector<2x8x64xf32>
    %758 = arith.mulf %757, %744 : vector<2x8x64xf32>
    %759 = arith.subf %756, %758 : vector<2x8x64xf32>
    %760 = vector.shape_cast %744 : vector<2x8x64xf32> to vector<16x64xf32>
    %761 = arith.truncf %760 : vector<16x64xf32> to vector<16x64xbf16>
    %c4_387 = arith.constant 4 : index
    %c0_388 = arith.constant 0 : index
    %c0_389 = arith.constant 0 : index
    %762 = vector.load %arg3[%c4_387, %c0_388, %c0_389] : memref<5x64x128xbf16, #tpu.memory_space<vmem>>, vector<1x64x128xbf16>
    %763 = vector.shape_cast %762 : vector<1x64x128xbf16> to vector<64x128xbf16>
    %cst_390 = arith.constant dense<0.000000e+00> : vector<16x128xf32>
    %764 = tpu.matmul %761, %763, %cst_390 {dimension_numbers = #tpu.dot_dimension_numbers<[1], [0], [0], [1], [0, 0, 1, 1], [], []>} : vector<16x64xbf16>, vector<64x128xbf16>, vector<16x128xf32> -> vector<16x128xf32>
    %c4_391 = arith.constant 4 : index
    %c0_392 = arith.constant 0 : index
    %c0_393 = arith.constant 0 : index
    %765 = vector.load %arg4[%c4_391, %c0_392, %c0_393] : memref<5x1x128xf32, #tpu.memory_space<vmem>>, vector<1x1x128xf32>
    %766 = vector.shape_cast %765 : vector<1x1x128xf32> to vector<1x128xf32>
    %767 = vector.broadcast %766 : vector<1x128xf32> to vector<16x128xf32>
    %768 = arith.addf %764, %767 : vector<16x128xf32>
    %cst_394 = arith.constant 0.000000e+00 : f32
    %769 = vector.broadcast %cst_394 : f32 to vector<16x128xf32>
    %770 = arith.maximumf %768, %769 : vector<16x128xf32>
    %771 = arith.truncf %770 : vector<16x128xf32> to vector<16x128xbf16>
    %c4_395 = arith.constant 4 : index
    %c0_396 = arith.constant 0 : index
    %c0_397 = arith.constant 0 : index
    %772 = vector.load %arg5[%c4_395, %c0_396, %c0_397] : memref<5x128x64xbf16, #tpu.memory_space<vmem>>, vector<1x128x64xbf16>
    %773 = vector.shape_cast %772 : vector<1x128x64xbf16> to vector<128x64xbf16>
    %cst_398 = arith.constant dense<0.000000e+00> : vector<16x64xf32>
    %774 = tpu.matmul %771, %773, %cst_398 {dimension_numbers = #tpu.dot_dimension_numbers<[1], [0], [0], [1], [0, 0, 1, 1], [], []>} : vector<16x128xbf16>, vector<128x64xbf16>, vector<16x64xf32> -> vector<16x64xf32>
    %c4_399 = arith.constant 4 : index
    %c0_400 = arith.constant 0 : index
    %c0_401 = arith.constant 0 : index
    %775 = vector.load %arg6[%c4_399, %c0_400, %c0_401] : memref<5x1x64xf32, #tpu.memory_space<vmem>>, vector<1x1x64xf32>
    %776 = vector.shape_cast %775 : vector<1x1x64xf32> to vector<1x64xf32>
    %777 = vector.broadcast %776 : vector<1x64xf32> to vector<16x64xf32>
    %778 = arith.addf %774, %777 : vector<16x64xf32>
    %c0_402 = arith.constant 0 : index
    %c0_403 = arith.constant 0 : index
    %c0_404 = arith.constant 0 : index
    %779 = vector.load %arg7[%c0_402, %c0_403, %c0_404] : memref<4x64x16xbf16, #tpu.memory_space<vmem>>, vector<1x64x16xbf16>
    %780 = vector.shape_cast %779 : vector<1x64x16xbf16> to vector<64x16xbf16>
    %cst_405 = arith.constant dense<0.000000e+00> : vector<16x16xf32>
    %781 = tpu.matmul %761, %780, %cst_405 {dimension_numbers = #tpu.dot_dimension_numbers<[1], [0], [0], [1], [0, 0, 1, 1], [], []>} : vector<16x64xbf16>, vector<64x16xbf16>, vector<16x16xf32> -> vector<16x16xf32>
    %782 = arith.addf %781, %11 : vector<16x16xf32>
    %c0_406 = arith.constant 0 : index
    %c0_407 = arith.constant 0 : index
    %c0_408 = arith.constant 0 : index
    %783 = vector.load %arg8[%c0_406, %c0_407, %c0_408] : memref<4x64x16xbf16, #tpu.memory_space<vmem>>, vector<1x64x16xbf16>
    %784 = vector.shape_cast %783 : vector<1x64x16xbf16> to vector<64x16xbf16>
    %cst_409 = arith.constant dense<0.000000e+00> : vector<16x16xf32>
    %785 = tpu.matmul %761, %784, %cst_409 {dimension_numbers = #tpu.dot_dimension_numbers<[1], [0], [0], [1], [0, 0, 1, 1], [], []>} : vector<16x64xbf16>, vector<64x16xbf16>, vector<16x16xf32> -> vector<16x16xf32>
    %786 = arith.addf %785, %27 : vector<16x16xf32>
    %c0_410 = arith.constant 0 : index
    %c0_411 = arith.constant 0 : index
    %c0_412 = arith.constant 0 : index
    %787 = vector.load %arg9[%c0_410, %c0_411, %c0_412] : memref<4x64x16xbf16, #tpu.memory_space<vmem>>, vector<1x64x16xbf16>
    %788 = vector.shape_cast %787 : vector<1x64x16xbf16> to vector<64x16xbf16>
    %cst_413 = arith.constant dense<0.000000e+00> : vector<16x16xf32>
    %789 = tpu.matmul %761, %788, %cst_413 {dimension_numbers = #tpu.dot_dimension_numbers<[1], [0], [0], [1], [0, 0, 1, 1], [], []>} : vector<16x64xbf16>, vector<64x16xbf16>, vector<16x16xf32> -> vector<16x16xf32>
    %790 = arith.addf %789, %43 : vector<16x16xf32>
    %791 = arith.truncf %782 : vector<16x16xf32> to vector<16x16xbf16>
    %792 = vector.shape_cast %791 : vector<16x16xbf16> to vector<2x8x16xbf16>
    %793 = arith.truncf %786 : vector<16x16xf32> to vector<16x16xbf16>
    %794 = vector.shape_cast %793 : vector<16x16xbf16> to vector<2x8x16xbf16>
    %795 = arith.truncf %790 : vector<16x16xf32> to vector<16x16xbf16>
    %796 = vector.shape_cast %795 : vector<16x16xbf16> to vector<2x8x16xbf16>
    "tpu.trace_start"() <{level = 10 : i32, message = "bqd,bkd->bqk"}> : () -> ()
    %cst_414 = arith.constant dense<0.000000e+00> : vector<2x8x8xf32>
    %797 = tpu.matmul %792, %794, %cst_414 {dimension_numbers = #tpu.dot_dimension_numbers<[2], [2], [1], [1], [0, 0, 0, 1, 1, 1], [0], [0]>} : vector<2x8x16xbf16>, vector<2x8x16xbf16>, vector<2x8x8xf32> -> vector<2x8x8xf32>
    "tpu.trace_stop"() : () -> ()
    %cst_415 = arith.constant dense<0xFF800000> : vector<2x8xf32>
    %798 = vector.multi_reduction <maximumf>, %797, %cst_415 [2] : vector<2x8x8xf32> to vector<2x8xf32>
    %799 = vector.shape_cast %798 : vector<2x8xf32> to vector<2x8x1xf32>
    %800 = vector.broadcast %799 : vector<2x8x1xf32> to vector<2x8x8xf32>
    %801 = arith.subf %797, %800 : vector<2x8x8xf32>
    %802 = math.exp %801 : vector<2x8x8xf32>
    %cst_416 = arith.constant dense<0.000000e+00> : vector<2x8xf32>
    %803 = vector.multi_reduction <add>, %802, %cst_416 [2] : vector<2x8x8xf32> to vector<2x8xf32>
    %804 = vector.shape_cast %803 : vector<2x8xf32> to vector<2x8x1xf32>
    %805 = vector.broadcast %804 : vector<2x8x1xf32> to vector<2x8x8xf32>
    %806 = arith.divf %802, %805 : vector<2x8x8xf32>
    %807 = arith.truncf %806 : vector<2x8x8xf32> to vector<2x8x8xbf16>
    "tpu.trace_start"() <{level = 10 : i32, message = "bqk,bkd->bqd"}> : () -> ()
    %cst_417 = arith.constant dense<0.000000e+00> : vector<2x8x16xf32>
    %808 = tpu.matmul %807, %796, %cst_417 {dimension_numbers = #tpu.dot_dimension_numbers<[2], [1], [1], [2], [0, 0, 0, 1, 1, 2], [0], [0]>} : vector<2x8x8xbf16>, vector<2x8x16xbf16>, vector<2x8x16xf32> -> vector<2x8x16xf32>
    "tpu.trace_stop"() : () -> ()
    %809 = vector.shape_cast %808 : vector<2x8x16xf32> to vector<16x16xf32>
    %810 = arith.truncf %809 : vector<16x16xf32> to vector<16x16xbf16>
    %c1_418 = arith.constant 1 : index
    %c0_419 = arith.constant 0 : index
    %c0_420 = arith.constant 0 : index
    %811 = vector.load %arg7[%c1_418, %c0_419, %c0_420] : memref<4x64x16xbf16, #tpu.memory_space<vmem>>, vector<1x64x16xbf16>
    %812 = vector.shape_cast %811 : vector<1x64x16xbf16> to vector<64x16xbf16>
    %cst_421 = arith.constant dense<0.000000e+00> : vector<16x16xf32>
    %813 = tpu.matmul %761, %812, %cst_421 {dimension_numbers = #tpu.dot_dimension_numbers<[1], [0], [0], [1], [0, 0, 1, 1], [], []>} : vector<16x64xbf16>, vector<64x16xbf16>, vector<16x16xf32> -> vector<16x16xf32>
    %814 = arith.addf %813, %15 : vector<16x16xf32>
    %c1_422 = arith.constant 1 : index
    %c0_423 = arith.constant 0 : index
    %c0_424 = arith.constant 0 : index
    %815 = vector.load %arg8[%c1_422, %c0_423, %c0_424] : memref<4x64x16xbf16, #tpu.memory_space<vmem>>, vector<1x64x16xbf16>
    %816 = vector.shape_cast %815 : vector<1x64x16xbf16> to vector<64x16xbf16>
    %cst_425 = arith.constant dense<0.000000e+00> : vector<16x16xf32>
    %817 = tpu.matmul %761, %816, %cst_425 {dimension_numbers = #tpu.dot_dimension_numbers<[1], [0], [0], [1], [0, 0, 1, 1], [], []>} : vector<16x64xbf16>, vector<64x16xbf16>, vector<16x16xf32> -> vector<16x16xf32>
    %818 = arith.addf %817, %31 : vector<16x16xf32>
    %c1_426 = arith.constant 1 : index
    %c0_427 = arith.constant 0 : index
    %c0_428 = arith.constant 0 : index
    %819 = vector.load %arg9[%c1_426, %c0_427, %c0_428] : memref<4x64x16xbf16, #tpu.memory_space<vmem>>, vector<1x64x16xbf16>
    %820 = vector.shape_cast %819 : vector<1x64x16xbf16> to vector<64x16xbf16>
    %cst_429 = arith.constant dense<0.000000e+00> : vector<16x16xf32>
    %821 = tpu.matmul %761, %820, %cst_429 {dimension_numbers = #tpu.dot_dimension_numbers<[1], [0], [0], [1], [0, 0, 1, 1], [], []>} : vector<16x64xbf16>, vector<64x16xbf16>, vector<16x16xf32> -> vector<16x16xf32>
    %822 = arith.addf %821, %47 : vector<16x16xf32>
    %823 = arith.truncf %814 : vector<16x16xf32> to vector<16x16xbf16>
    %824 = vector.shape_cast %823 : vector<16x16xbf16> to vector<2x8x16xbf16>
    %825 = arith.truncf %818 : vector<16x16xf32> to vector<16x16xbf16>
    %826 = vector.shape_cast %825 : vector<16x16xbf16> to vector<2x8x16xbf16>
    %827 = arith.truncf %822 : vector<16x16xf32> to vector<16x16xbf16>
    %828 = vector.shape_cast %827 : vector<16x16xbf16> to vector<2x8x16xbf16>
    "tpu.trace_start"() <{level = 10 : i32, message = "bqd,bkd->bqk"}> : () -> ()
    %cst_430 = arith.constant dense<0.000000e+00> : vector<2x8x8xf32>
    %829 = tpu.matmul %824, %826, %cst_430 {dimension_numbers = #tpu.dot_dimension_numbers<[2], [2], [1], [1], [0, 0, 0, 1, 1, 1], [0], [0]>} : vector<2x8x16xbf16>, vector<2x8x16xbf16>, vector<2x8x8xf32> -> vector<2x8x8xf32>
    "tpu.trace_stop"() : () -> ()
    %cst_431 = arith.constant dense<0xFF800000> : vector<2x8xf32>
    %830 = vector.multi_reduction <maximumf>, %829, %cst_431 [2] : vector<2x8x8xf32> to vector<2x8xf32>
    %831 = vector.shape_cast %830 : vector<2x8xf32> to vector<2x8x1xf32>
    %832 = vector.broadcast %831 : vector<2x8x1xf32> to vector<2x8x8xf32>
    %833 = arith.subf %829, %832 : vector<2x8x8xf32>
    %834 = math.exp %833 : vector<2x8x8xf32>
    %cst_432 = arith.constant dense<0.000000e+00> : vector<2x8xf32>
    %835 = vector.multi_reduction <add>, %834, %cst_432 [2] : vector<2x8x8xf32> to vector<2x8xf32>
    %836 = vector.shape_cast %835 : vector<2x8xf32> to vector<2x8x1xf32>
    %837 = vector.broadcast %836 : vector<2x8x1xf32> to vector<2x8x8xf32>
    %838 = arith.divf %834, %837 : vector<2x8x8xf32>
    %839 = arith.truncf %838 : vector<2x8x8xf32> to vector<2x8x8xbf16>
    "tpu.trace_start"() <{level = 10 : i32, message = "bqk,bkd->bqd"}> : () -> ()
    %cst_433 = arith.constant dense<0.000000e+00> : vector<2x8x16xf32>
    %840 = tpu.matmul %839, %828, %cst_433 {dimension_numbers = #tpu.dot_dimension_numbers<[2], [1], [1], [2], [0, 0, 0, 1, 1, 2], [0], [0]>} : vector<2x8x8xbf16>, vector<2x8x16xbf16>, vector<2x8x16xf32> -> vector<2x8x16xf32>
    "tpu.trace_stop"() : () -> ()
    %841 = vector.shape_cast %840 : vector<2x8x16xf32> to vector<16x16xf32>
    %842 = arith.truncf %841 : vector<16x16xf32> to vector<16x16xbf16>
    %c2_434 = arith.constant 2 : index
    %c0_435 = arith.constant 0 : index
    %c0_436 = arith.constant 0 : index
    %843 = vector.load %arg7[%c2_434, %c0_435, %c0_436] : memref<4x64x16xbf16, #tpu.memory_space<vmem>>, vector<1x64x16xbf16>
    %844 = vector.shape_cast %843 : vector<1x64x16xbf16> to vector<64x16xbf16>
    %cst_437 = arith.constant dense<0.000000e+00> : vector<16x16xf32>
    %845 = tpu.matmul %761, %844, %cst_437 {dimension_numbers = #tpu.dot_dimension_numbers<[1], [0], [0], [1], [0, 0, 1, 1], [], []>} : vector<16x64xbf16>, vector<64x16xbf16>, vector<16x16xf32> -> vector<16x16xf32>
    %846 = arith.addf %845, %19 : vector<16x16xf32>
    %c2_438 = arith.constant 2 : index
    %c0_439 = arith.constant 0 : index
    %c0_440 = arith.constant 0 : index
    %847 = vector.load %arg8[%c2_438, %c0_439, %c0_440] : memref<4x64x16xbf16, #tpu.memory_space<vmem>>, vector<1x64x16xbf16>
    %848 = vector.shape_cast %847 : vector<1x64x16xbf16> to vector<64x16xbf16>
    %cst_441 = arith.constant dense<0.000000e+00> : vector<16x16xf32>
    %849 = tpu.matmul %761, %848, %cst_441 {dimension_numbers = #tpu.dot_dimension_numbers<[1], [0], [0], [1], [0, 0, 1, 1], [], []>} : vector<16x64xbf16>, vector<64x16xbf16>, vector<16x16xf32> -> vector<16x16xf32>
    %850 = arith.addf %849, %35 : vector<16x16xf32>
    %c2_442 = arith.constant 2 : index
    %c0_443 = arith.constant 0 : index
    %c0_444 = arith.constant 0 : index
    %851 = vector.load %arg9[%c2_442, %c0_443, %c0_444] : memref<4x64x16xbf16, #tpu.memory_space<vmem>>, vector<1x64x16xbf16>
    %852 = vector.shape_cast %851 : vector<1x64x16xbf16> to vector<64x16xbf16>
    %cst_445 = arith.constant dense<0.000000e+00> : vector<16x16xf32>
    %853 = tpu.matmul %761, %852, %cst_445 {dimension_numbers = #tpu.dot_dimension_numbers<[1], [0], [0], [1], [0, 0, 1, 1], [], []>} : vector<16x64xbf16>, vector<64x16xbf16>, vector<16x16xf32> -> vector<16x16xf32>
    %854 = arith.addf %853, %51 : vector<16x16xf32>
    %855 = arith.truncf %846 : vector<16x16xf32> to vector<16x16xbf16>
    %856 = vector.shape_cast %855 : vector<16x16xbf16> to vector<2x8x16xbf16>
    %857 = arith.truncf %850 : vector<16x16xf32> to vector<16x16xbf16>
    %858 = vector.shape_cast %857 : vector<16x16xbf16> to vector<2x8x16xbf16>
    %859 = arith.truncf %854 : vector<16x16xf32> to vector<16x16xbf16>
    %860 = vector.shape_cast %859 : vector<16x16xbf16> to vector<2x8x16xbf16>
    "tpu.trace_start"() <{level = 10 : i32, message = "bqd,bkd->bqk"}> : () -> ()
    %cst_446 = arith.constant dense<0.000000e+00> : vector<2x8x8xf32>
    %861 = tpu.matmul %856, %858, %cst_446 {dimension_numbers = #tpu.dot_dimension_numbers<[2], [2], [1], [1], [0, 0, 0, 1, 1, 1], [0], [0]>} : vector<2x8x16xbf16>, vector<2x8x16xbf16>, vector<2x8x8xf32> -> vector<2x8x8xf32>
    "tpu.trace_stop"() : () -> ()
    %cst_447 = arith.constant dense<0xFF800000> : vector<2x8xf32>
    %862 = vector.multi_reduction <maximumf>, %861, %cst_447 [2] : vector<2x8x8xf32> to vector<2x8xf32>
    %863 = vector.shape_cast %862 : vector<2x8xf32> to vector<2x8x1xf32>
    %864 = vector.broadcast %863 : vector<2x8x1xf32> to vector<2x8x8xf32>
    %865 = arith.subf %861, %864 : vector<2x8x8xf32>
    %866 = math.exp %865 : vector<2x8x8xf32>
    %cst_448 = arith.constant dense<0.000000e+00> : vector<2x8xf32>
    %867 = vector.multi_reduction <add>, %866, %cst_448 [2] : vector<2x8x8xf32> to vector<2x8xf32>
    %868 = vector.shape_cast %867 : vector<2x8xf32> to vector<2x8x1xf32>
    %869 = vector.broadcast %868 : vector<2x8x1xf32> to vector<2x8x8xf32>
    %870 = arith.divf %866, %869 : vector<2x8x8xf32>
    %871 = arith.truncf %870 : vector<2x8x8xf32> to vector<2x8x8xbf16>
    "tpu.trace_start"() <{level = 10 : i32, message = "bqk,bkd->bqd"}> : () -> ()
    %cst_449 = arith.constant dense<0.000000e+00> : vector<2x8x16xf32>
    %872 = tpu.matmul %871, %860, %cst_449 {dimension_numbers = #tpu.dot_dimension_numbers<[2], [1], [1], [2], [0, 0, 0, 1, 1, 2], [0], [0]>} : vector<2x8x8xbf16>, vector<2x8x16xbf16>, vector<2x8x16xf32> -> vector<2x8x16xf32>
    "tpu.trace_stop"() : () -> ()
    %873 = vector.shape_cast %872 : vector<2x8x16xf32> to vector<16x16xf32>
    %874 = arith.truncf %873 : vector<16x16xf32> to vector<16x16xbf16>
    %c3_450 = arith.constant 3 : index
    %c0_451 = arith.constant 0 : index
    %c0_452 = arith.constant 0 : index
    %875 = vector.load %arg7[%c3_450, %c0_451, %c0_452] : memref<4x64x16xbf16, #tpu.memory_space<vmem>>, vector<1x64x16xbf16>
    %876 = vector.shape_cast %875 : vector<1x64x16xbf16> to vector<64x16xbf16>
    %cst_453 = arith.constant dense<0.000000e+00> : vector<16x16xf32>
    %877 = tpu.matmul %761, %876, %cst_453 {dimension_numbers = #tpu.dot_dimension_numbers<[1], [0], [0], [1], [0, 0, 1, 1], [], []>} : vector<16x64xbf16>, vector<64x16xbf16>, vector<16x16xf32> -> vector<16x16xf32>
    %878 = arith.addf %877, %23 : vector<16x16xf32>
    %c3_454 = arith.constant 3 : index
    %c0_455 = arith.constant 0 : index
    %c0_456 = arith.constant 0 : index
    %879 = vector.load %arg8[%c3_454, %c0_455, %c0_456] : memref<4x64x16xbf16, #tpu.memory_space<vmem>>, vector<1x64x16xbf16>
    %880 = vector.shape_cast %879 : vector<1x64x16xbf16> to vector<64x16xbf16>
    %cst_457 = arith.constant dense<0.000000e+00> : vector<16x16xf32>
    %881 = tpu.matmul %761, %880, %cst_457 {dimension_numbers = #tpu.dot_dimension_numbers<[1], [0], [0], [1], [0, 0, 1, 1], [], []>} : vector<16x64xbf16>, vector<64x16xbf16>, vector<16x16xf32> -> vector<16x16xf32>
    %882 = arith.addf %881, %39 : vector<16x16xf32>
    %c3_458 = arith.constant 3 : index
    %c0_459 = arith.constant 0 : index
    %c0_460 = arith.constant 0 : index
    %883 = vector.load %arg9[%c3_458, %c0_459, %c0_460] : memref<4x64x16xbf16, #tpu.memory_space<vmem>>, vector<1x64x16xbf16>
    %884 = vector.shape_cast %883 : vector<1x64x16xbf16> to vector<64x16xbf16>
    %cst_461 = arith.constant dense<0.000000e+00> : vector<16x16xf32>
    %885 = tpu.matmul %761, %884, %cst_461 {dimension_numbers = #tpu.dot_dimension_numbers<[1], [0], [0], [1], [0, 0, 1, 1], [], []>} : vector<16x64xbf16>, vector<64x16xbf16>, vector<16x16xf32> -> vector<16x16xf32>
    %886 = arith.addf %885, %55 : vector<16x16xf32>
    %887 = arith.truncf %878 : vector<16x16xf32> to vector<16x16xbf16>
    %888 = vector.shape_cast %887 : vector<16x16xbf16> to vector<2x8x16xbf16>
    %889 = arith.truncf %882 : vector<16x16xf32> to vector<16x16xbf16>
    %890 = vector.shape_cast %889 : vector<16x16xbf16> to vector<2x8x16xbf16>
    %891 = arith.truncf %886 : vector<16x16xf32> to vector<16x16xbf16>
    %892 = vector.shape_cast %891 : vector<16x16xbf16> to vector<2x8x16xbf16>
    "tpu.trace_start"() <{level = 10 : i32, message = "bqd,bkd->bqk"}> : () -> ()
    %cst_462 = arith.constant dense<0.000000e+00> : vector<2x8x8xf32>
    %893 = tpu.matmul %888, %890, %cst_462 {dimension_numbers = #tpu.dot_dimension_numbers<[2], [2], [1], [1], [0, 0, 0, 1, 1, 1], [0], [0]>} : vector<2x8x16xbf16>, vector<2x8x16xbf16>, vector<2x8x8xf32> -> vector<2x8x8xf32>
    "tpu.trace_stop"() : () -> ()
    %cst_463 = arith.constant dense<0xFF800000> : vector<2x8xf32>
    %894 = vector.multi_reduction <maximumf>, %893, %cst_463 [2] : vector<2x8x8xf32> to vector<2x8xf32>
    %895 = vector.shape_cast %894 : vector<2x8xf32> to vector<2x8x1xf32>
    %896 = vector.broadcast %895 : vector<2x8x1xf32> to vector<2x8x8xf32>
    %897 = arith.subf %893, %896 : vector<2x8x8xf32>
    %898 = math.exp %897 : vector<2x8x8xf32>
    %cst_464 = arith.constant dense<0.000000e+00> : vector<2x8xf32>
    %899 = vector.multi_reduction <add>, %898, %cst_464 [2] : vector<2x8x8xf32> to vector<2x8xf32>
    %900 = vector.shape_cast %899 : vector<2x8xf32> to vector<2x8x1xf32>
    %901 = vector.broadcast %900 : vector<2x8x1xf32> to vector<2x8x8xf32>
    %902 = arith.divf %898, %901 : vector<2x8x8xf32>
    %903 = arith.truncf %902 : vector<2x8x8xf32> to vector<2x8x8xbf16>
    "tpu.trace_start"() <{level = 10 : i32, message = "bqk,bkd->bqd"}> : () -> ()
    %cst_465 = arith.constant dense<0.000000e+00> : vector<2x8x16xf32>
    %904 = tpu.matmul %903, %892, %cst_465 {dimension_numbers = #tpu.dot_dimension_numbers<[2], [1], [1], [2], [0, 0, 0, 1, 1, 2], [0], [0]>} : vector<2x8x8xbf16>, vector<2x8x16xbf16>, vector<2x8x16xf32> -> vector<2x8x16xf32>
    "tpu.trace_stop"() : () -> ()
    %905 = vector.shape_cast %904 : vector<2x8x16xf32> to vector<16x16xf32>
    %906 = arith.truncf %905 : vector<16x16xf32> to vector<16x16xbf16>
    %907 = tpu.concatenate %810, %842, %874, %906 in 1 : vector<16x16xbf16>, vector<16x16xbf16>, vector<16x16xbf16>, vector<16x16xbf16> -> vector<16x64xbf16>
    %cst_466 = arith.constant dense<0.000000e+00> : vector<16x64xf32>
    %908 = tpu.matmul %907, %4, %cst_466 {dimension_numbers = #tpu.dot_dimension_numbers<[1], [0], [0], [1], [0, 0, 1, 1], [], []>} : vector<16x64xbf16>, vector<64x64xbf16>, vector<16x64xf32> -> vector<16x64xf32>
    %909 = arith.addf %908, %7 : vector<16x64xf32>
    %910 = vector.broadcast %748 : f32 to vector<2x8x64xf32>
    %911 = arith.mulf %910, %759 : vector<2x8x64xf32>
    %912 = arith.addf %778, %909 : vector<16x64xf32>
    %913 = vector.shape_cast %912 : vector<16x64xf32> to vector<2x8x64xf32>
    %914 = arith.addf %911, %913 : vector<2x8x64xf32>
    %915 = vector.broadcast %749 : f32 to vector<2x8x64xf32>
    %916 = arith.mulf %915, %914 : vector<2x8x64xf32>
    %917 = arith.addf %744, %916 : vector<2x8x64xf32>
    %c5_467 = arith.constant 5 : index
    %c0_468 = arith.constant 0 : index
    %c0_469 = arith.constant 0 : index
    %c0_470 = arith.constant 0 : index
    %918 = vector.load %arg15[%c5_467, %c0_468, %c0_469, %c0_470] : memref<6x2x8x64xf32, #tpu.memory_space<vmem>>, vector<1x2x8x64xf32>
    %919 = vector.shape_cast %918 : vector<1x2x8x64xf32> to vector<2x8x64xf32>
    %920 = vector.shape_cast %917 : vector<2x8x64xf32> to vector<1x2x8x64xf32>
    tpu.vector_store %arg15[%c5_467, %c0_468, %c0_469, %c0_470], %920 {strides = array<i32>} : memref<6x2x8x64xf32, #tpu.memory_space<vmem>>, vector<1x2x8x64xf32>,
    return
  }
  func.func @transform_0(%arg0: i32) -> (i32, i32, i32) {
    %c0_i32 = arith.constant 0 : i32
    %c0_i32_0 = arith.constant 0 : i32
    %c0_i32_1 = arith.constant 0 : i32
    return %arg0, %c0_i32, %c0_i32_0 : i32, i32, i32
  }
  func.func @transform_1(%arg0: i32) -> i32 {
    %c0_i32 = arith.constant 0 : i32
    %c0_i32_0 = arith.constant 0 : i32
    return %c0_i32 : i32
  }
  func.func @transform_2(%arg0: i32) -> (i32, i32, i32) {
    %c0_i32 = arith.constant 0 : i32
    %c0_i32_0 = arith.constant 0 : i32
    %c0_i32_1 = arith.constant 0 : i32
    %c0_i32_2 = arith.constant 0 : i32
    return %c0_i32, %c0_i32_0, %c0_i32_1 : i32, i32, i32
  }
  func.func @transform_3(%arg0: i32) -> (i32, i32, i32) {
    %c0_i32 = arith.constant 0 : i32
    %c0_i32_0 = arith.constant 0 : i32
    %c0_i32_1 = arith.constant 0 : i32
    %c0_i32_2 = arith.constant 0 : i32
    return %c0_i32, %c0_i32_0, %c0_i32_1 : i32, i32, i32
  }
  func.func @transform_4(%arg0: i32) -> (i32, i32, i32) {
    %c0_i32 = arith.constant 0 : i32
    %c0_i32_0 = arith.constant 0 : i32
    %c0_i32_1 = arith.constant 0 : i32
    %c0_i32_2 = arith.constant 0 : i32
    return %c0_i32, %c0_i32_0, %c0_i32_1 : i32, i32, i32
  }
  func.func @transform_5(%arg0: i32) -> (i32, i32, i32) {
    %c0_i32 = arith.constant 0 : i32
    %c0_i32_0 = arith.constant 0 : i32
    %c0_i32_1 = arith.constant 0 : i32
    %c0_i32_2 = arith.constant 0 : i32
    return %c0_i32, %c0_i32_0, %c0_i32_1 : i32, i32, i32
  }
  func.func @transform_6(%arg0: i32) -> (i32, i32, i32) {
    %c0_i32 = arith.constant 0 : i32
    %c0_i32_0 = arith.constant 0 : i32
    %c0_i32_1 = arith.constant 0 : i32
    %c0_i32_2 = arith.constant 0 : i32
    return %c0_i32, %c0_i32_0, %c0_i32_1 : i32, i32, i32
  }
  func.func @transform_7(%arg0: i32) -> (i32, i32, i32) {
    %c0_i32 = arith.constant 0 : i32
    %c0_i32_0 = arith.constant 0 : i32
    %c0_i32_1 = arith.constant 0 : i32
    %c0_i32_2 = arith.constant 0 : i32
    return %c0_i32, %c0_i32_0, %c0_i32_1 : i32, i32, i32
  }
  func.func @transform_8(%arg0: i32) -> (i32, i32, i32) {
    %c0_i32 = arith.constant 0 : i32
    %c0_i32_0 = arith.constant 0 : i32
    %c0_i32_1 = arith.constant 0 : i32
    %c0_i32_2 = arith.constant 0 : i32
    return %c0_i32, %c0_i32_0, %c0_i32_1 : i32, i32, i32
  }
  func.func @transform_9(%arg0: i32) -> (i32, i32, i32) {
    %c0_i32 = arith.constant 0 : i32
    %c0_i32_0 = arith.constant 0 : i32
    %c0_i32_1 = arith.constant 0 : i32
    %c0_i32_2 = arith.constant 0 : i32
    return %c0_i32, %c0_i32_0, %c0_i32_1 : i32, i32, i32
  }
  func.func @transform_10(%arg0: i32) -> (i32, i32, i32) {
    %c0_i32 = arith.constant 0 : i32
    %c0_i32_0 = arith.constant 0 : i32
    %c0_i32_1 = arith.constant 0 : i32
    %c0_i32_2 = arith.constant 0 : i32
    return %c0_i32, %c0_i32_0, %c0_i32_1 : i32, i32, i32
  }
  func.func @transform_11(%arg0: i32) -> (i32, i32, i32) {
    %c0_i32 = arith.constant 0 : i32
    %c0_i32_0 = arith.constant 0 : i32
    %c0_i32_1 = arith.constant 0 : i32
    %c0_i32_2 = arith.constant 0 : i32
    return %c0_i32, %c0_i32_0, %c0_i32_1 : i32, i32, i32
  }
  func.func @transform_12(%arg0: i32) -> (i32, i32) {
    %c0_i32 = arith.constant 0 : i32
    %c0_i32_0 = arith.constant 0 : i32
    %c0_i32_1 = arith.constant 0 : i32
    return %c0_i32, %c0_i32_0 : i32, i32
  }
  func.func @transform_13(%arg0: i32) -> (i32, i32) {
    %c0_i32 = arith.constant 0 : i32
    %c0_i32_0 = arith.constant 0 : i32
    %c0_i32_1 = arith.constant 0 : i32
    return %c0_i32, %c0_i32_0 : i32, i32
  }
  func.func @transform_14(%arg0: i32) -> (i32, i32, i32, i32) {
    %c0_i32 = arith.constant 0 : i32
    %c0_i32_0 = arith.constant 0 : i32
    %c0_i32_1 = arith.constant 0 : i32
    %c0_i32_2 = arith.constant 0 : i32
    return %c0_i32, %arg0, %c0_i32_0, %c0_i32_1 : i32, i32, i32, i32
  }
}

</mosaic_0001>

<bundles_post_ra>
// kernel: tpu_custom_call.1
= control target key start
LH: loop header
LB: loop body
LE: loop exit
PB: predicated region body
PF: predicated region fallthrough
CT: control target
= control target key end

     0   :  { %s17798_s0 = inlined_call_operand.vmem [shape: f32[4,8,64], index: 0, kind: input, shape index: {}]   ;;  %s17799_s1 = inlined_call_operand.vmem [shape: f32[10], index: 1, kind: input, shape index: {}]   ;;  %s17800_s2 = inlined_call_operand.vmem [shape: bf16[5,64,128], index: 2, kind: input, shape index: {}]   ;;  %s17801_s3 = inlined_call_operand.vmem [shape: f32[5,1,128], index: 3, kind: input, shape index: {}]   ;;  %s17802_s4 = inlined_call_operand.vmem [shape: bf16[5,128,64], index: 4, kind: input, shape index: {}]   ;;  %s17803_s5 = inlined_call_operand.vmem [shape: f32[5,1,64], index: 5, kind: input, shape index: {}]   ;;  %s17804_s6 = inlined_call_operand.vmem [shape: bf16[4,64,16], index: 6, kind: input, shape index: {}]   ;;  %s17805_s7 = inlined_call_operand.vmem [shape: bf16[4,64,16], index: 7, kind: input, shape index: {}]   ;;  %s17806_s8 = inlined_call_operand.vmem [shape: bf16[4,64,16], index: 8, kind: input, shape index: {}]   ;;  %s17807_s9 = inlined_call_operand.vmem [shape: f32[4,1,16], index: 9, kind: input, shape index: {}]   ;;  %s17808_s10 = inlined_call_operand.vmem [shape: f32[4,1,16], index: 10, kind: input, shape index: {}]   ;;  %s17809_s11 = inlined_call_operand.vmem [shape: f32[4,1,16], index: 11, kind: input, shape index: {}]   ;;  %s17810_s12 = inlined_call_operand.vmem [shape: bf16[64,64], index: 12, kind: input, shape index: {}]   ;;  %s17811_s13 = inlined_call_operand.vmem [shape: f32[1,64], index: 13, kind: input, shape index: {}]   ;;  %s17812_s14 = inlined_call_operand.hbm [shape: f32[6,4,8,64], index: 14, kind: output, shape index: {}]  }
   0x1   :  { %17823 = sst [smem:[#allocation13_spill]] %s17798_s0 }
   0x2   :  { %17824 = sst [smem:[#allocation14_spill]] %s17799_s1 }
   0x3   :  { %19 = vsyncpa [#allocation4], 0 }
   0x4   :  { %20 = vsyncpa [#allocation3], 0 }
   0x5   :  { %22 = vsyncpa [#allocation3 + $0x1], 0  ;;  %s15106_s29 = smov 0   ;;  %s15108_s30 = smov 0  }
   0x6   :  { %s15110_s15 = smov 0   ;;  %s15112_s16 = smov 0  }
   0x7 LB: > { %17825 = sst [smem:[#allocation10_spill]] %s15012_s15  ;;  %s15127_s17 = sadd.s32 4294967295, %s15016_s16   ;;  %s15016_s16 = sphi %s15112_s16, %s17837_s16   ;;  %s15012_s15 = sphi %s15110_s15, %s17839_s15   ;;  %s15008_s30 = sphi %s15108_s30, %s17841_s30   ;;  %s15004_s29 = sphi %s15106_s29, %s17840_s29  }
   0x8   : > { %s11165_s18 = sadd.s32 4294967294, %s15016_s16   ;;  %s15131_s19 = sadd.s32 1, %s15016_s16  }
   0x9   : > { %17826 = sst [smem:[#allocation11_spill]] %s15131_s19  ;;  %s334_s20 = sadd.s32 1, %s15012_s15 }
   0xa   : > { %s331_s21 = ssub.s32 %s15016_s16, %s15131_s19  ;;  %p344_p0 = scmp.ne.s32.totalorder %s15012_s15, %s15008_s30 }
   0xb   : > { %p332_p1 = scmp.eq.s32.totalorder %s331_s21, 0  ;;  %p345_p2 = scmp.eq.s32.totalorder %s15127_s17, 1 }
   0xc   : > { %p350_p3 = scmp.ne.s32.totalorder %s15008_s30, %s15004_s29  ;;  %p351_p4 = scmp.eq.s32.totalorder %s11165_s18, 1 }
   0xd   : > { %s15142_s22 = scalar_select %p332_p1, %s15012_s15, %s334_s20  }
   0xe   : > { %p15144_p5 = por %p345_p2, %p344_p0  ;;  %p15148_p6 = por %p351_p4, %p350_p3 }
   0xf   : > { %17827 = sst [smem:[#allocation12_spill]] %s15142_s22  ;;  %p11166_p7 = scmp.ge.s32.totalorder %s15016_s16, 1 }
  0x10   : > { %p358_p8 = scmp.lt.s32.totalorder %s15016_s16, 3  ;;  %p14383_p9 = scmp.eq.s32.totalorder %s15127_s17, 0 }
  0x11   : > { %s17831_s1 = sld [smem:[#allocation14_spill]] }
  0x12   : > { %p15155_p10 = pnand %p11166_p7, %p358_p8 }
  0x14   : > { %p14375_p11 = pneg %p15155_p10 }
  0x16   : > { %p14376_p12 = pnand %p14383_p9, %p14375_p11 }
  0x17   : > { %s371_s28 = sshll.u32 %s17831_s1, 4  ;;  %s372_s28 = int_to_ptr.vmem [resolvable:$true] %s371_s28 }
  0x18   : > { %s14963_s18 = scalar_lea.vmem %s372_s28, 16  ;;  %p14965_p0 = pneg %p14376_p12 }
  0x19   : > { %p14964_p13 = scmp.ne.s32.totalorder %s372_s28, %s14963_s18  ;;  %p14971_p3 = scmp.lt.s32.totalorder %s372_s28, %s372_s28 }
  0x1a   : > { %p14972_p4 = scmp.lt.s32.totalorder %s14963_s18, %s14963_s18 }
  0x1b   : > { %p14966_p1 = pnand %p14965_p0, %p14964_p13 }
  0x1c   : > { %p14973_p7 = por %p14972_p4, %p14971_p3 }
  0x1d   : > { %p14967_p2 = pneg %p14966_p1 }
  0x1f   : > { %p14974_p8 = pnand %p14973_p7, %p14967_p2 }
  0x21   : > { %14977 = shalt.err (!%p14974_p8)
}
  0x22   : > { %s15018_s20 = smov [#allocation2]   ;;  %429 = sbr.rel (%p15155_p10) target bundleno = 18449 (0x4811), region = 76 }
  0x23   : > { %14378 = dma.vmem_to_smem (!%p14376_p12), %s372_s28, 16, %s15018_s20, [#allocation4]  }
  0x29   : > { %14995 = dma.done.wait (%p14383_p9), [#allocation4], 16  }
  0x2a   : > { %14997 = vsyncadd (%p14383_p9), [#allocation4], 4294967280 }
  0x2b   : > { %435 = sfence }
  0x2c   : > { %v14431_v0 = vld [vmem:[%s17800_s2] sm:$0xff]   ;;  %v15019_v1 = vmov 0.0   ;;  %v14432_v2 = vld [vmem:[%s17800_s2 + $0x8] sm:$0xff]   ;;  %vm15020_vm0 = vmmov 0   ;;  %s11171_s28 = sshll.u32 %s15127_s17, 1  ;;  %v14433_v3 = vld [vmem:[%s17800_s2 + $0x10] sm:$0xff]  }
  0x2d   : > { %12942 = vmatprep.subr.bf16.mxu0 %v15019_v1  ;;  %12954 = vmatprep.subr.bf16.mxu1 %v15019_v1  ;;  %p477_p9 = scmp.lt.s32.totalorder %s11171_s28, 3  ;;  %s17832_s0 = sld [smem:[#allocation13_spill]]  ;;  %v14434_v4 = vld [vmem:[%s17800_s2 + $0x18] sm:$0xff]   ;;  %v14443_v8 = vld [vmem:[%s17802_s4] sm:$0xff]   ;;  %vm486_vm1 = vcmask 523264   ;;  %v14444_v10 = vld [vmem:[%s17802_s4 + $0x8] sm:$0xff]  }
  0x2e   : > { %12943 = vmatpush3.bf16.msra.mxu0 %v14431_v0  ;;  %12950 = vmatprep.mubr.msk.bf16.mxu0 %vm15020_vm0, %v15019_v1  ;;  %v14435_v9 = vld [vmem:[%s17804_s6] sm:$0xff]   ;;  %v14436_v11 = vld [vmem:[%s17804_s6 + $0x8] sm:$0xff]   ;;  %v14445_v12 = vld [vmem:[%s17802_s4 + $0x10] sm:$0xff]   ;;  %vm1057_vm2 = vcmask 130048   ;;  %vm1178_vm3 = vcmask 1043456   ;;  %vm1150_vm4 = vcmask 64512  }
  0x2f   : > { %12944 = vmatprep.subr.bf16.mxu0 %v15019_v1  ;;  %12970 = vmatprep.mubr.msk.bf16.mxu1 %vm15020_vm0, %v15019_v1  ;;  %s17843_s28 = smov (!%p477_p9, %s11171_s28), 3  ;;  %v14437_v13 = vld [vmem:[%s17804_s6 + $0x10] sm:$0xff]   ;;  %v14446_v14 = vld [vmem:[%s17802_s4 + $0x18] sm:$0xff]   ;;  %v14447_v16 = vld [vmem:[%s17802_s4 + $0x20] sm:$0xff]   ;;  %s17818_s1 = smov 16   ;;  %vm2628_vm5 = vcmask 261120  }
  0x30   : > { %s11172_s21 = sshll.u32 %s17843_s28, 3  ;;  %12955 = vmatpush3.bf16.msra.mxu1 %v14443_v8  ;;  %v14438_v15 = vld [vmem:[%s17804_s6 + $0x18] sm:$0xff]   ;;  %v14439_v17 = vld [vmem:[%s17805_s7] sm:$0xff]   ;;  %v14448_v18 = vld [vmem:[%s17802_s4 + $0x28] sm:$0xff]   ;;  %s17813_s22 = smov 32   ;;  %vm2631_vm6 = vcmask 392192  }
  0x31   : > { %12956 = vmatprep.subr.bf16.mxu1 %v15019_v1  ;;  %v14440_v19 = vld [vmem:[%s17805_s7 + $0x8] sm:$0xff]   ;;  %v14441_v20 = vld [vmem:[%s17805_s7 + $0x10] sm:$0xff]   ;;  %v14442_v21 = vld [vmem:[%s17805_s7 + $0x18] sm:$0xff]   ;;  %s17815_s25 = sand.u32 1, %s15008_s30   ;;  %s17816_s28 = smov 48  }
  0x32   : > { %12945 = vmatpush3.bf16.msra.mxu0 %v14432_v2  ;;  %v14449_v22 = vld [vmem:[%s17802_s4 + $0x30] sm:$0xff]   ;;  %v14450_v23 = vld [vmem:[%s17802_s4 + $0x38] sm:$0xff]   ;;  %v11196_v24 = vld [vmem:[%s17801_s3] ss:$0 sm:$0xff]  ;;  %s11195_s26 = sld [smem:[#allocation2 + $0x5]]  ;;  %s11390_s20 = sld [smem:[#allocation2 + $0x1]] }
  0x33   : > { %12946 = vmatprep.subr.bf16.mxu0 %v15019_v1  ;;  %s480_s27 = scalar_lea.vmem %s17832_s0, %s11172_s21  ;;  %v14451_v33 = vld [vmem:[%s17806_s8] sm:$0xff]   ;;  %v14452_v35 = vld [vmem:[%s17806_s8 + $0x8] sm:$0xff]   ;;  %v14453_v36 = vld [vmem:[%s17806_s8 + $0x10] sm:$0xff]   ;;  %s597_s21 = sld [smem:[#allocation2]] }
  0x34   : > { %v15196_v5 = vld [vmem:[%s480_s27] sm:$0xff]  ;;  %v15198_v6 = vld [vmem:[%s480_s27 + $0x8] sm:$0xff]  ;;  %12957 = vmatpush3.bf16.msra.mxu1 %v14444_v10  ;;  %v14454_v40 = vld [vmem:[%s17806_s8 + $0x18] sm:$0xff]   ;;  %s14362_s27 = smul.u32 96, %s17815_s25  ;;  %s17835_s25 = smov 48  }
  0x35   : > { %v15203_v7 = vpack.c.bf16 %v15198_v6, %v15196_v5  ;;  %12958 = vmatprep.subr.bf16.mxu1 %v15019_v1  ;;  %v11181_v42 = vld [vmem:[%s17808_s10] ss:$0 sm:$0xff]  ;;  %s12045_s0 = sld [smem:[#allocation2 + $0x9]] }
  0x36   : > { %12947 = vmatpush3.bf16.msra.mxu0 %v14433_v3  ;;  %v11174_v49 = vld [vmem:[%s17807_s9] ss:$0 sm:$0xff] }
  0x37   : > { %12948 = vmatprep.subr.bf16.mxu0 %v15019_v1  ;;  %v11188_v62 = vld [vmem:[%s17809_s11] ss:$0 sm:$0xff] }
  0x38   : > { %12959 = vmatpush3.bf16.msra.mxu1 %v14445_v12 }
  0x39   : > { %12960 = vmatprep.subr.bf16.mxu1 %v15019_v1 }
  0x3a   : > { %12949 = vmatpush3.bf16.msra.mxu0 %v14434_v4 }
  0x3b   : > { %12974 = vmatprep.subr.bf16.mxu0 %v15019_v1 }
  0x3c   : > { %12961 = vmatpush3.bf16.msra.mxu1 %v14446_v14 }
  0x3d   : > { %12951 = vmatmul.mubr.msk.bf16.vlgmr.msra.gmra.mrb[0].mxu0 %vm486_vm1, %v15203_v7  ;;  %12962 = vmatprep.subr.bf16.mxu1 %v15019_v1 }
  0x3e   : > { %12975 = vmatpush3.bf16.msra.mxu0 %v14435_v9  ;;  %12982 = vmatprep.mubr.msk.bf16.mxu0 %vm15020_vm0, %v15019_v1 }
  0x3f   : > { %12976 = vmatprep.subr.bf16.mxu0 %v15019_v1 }
  0x40   : > { %12963 = vmatpush3.bf16.msra.mxu1 %v14447_v16 }
  0x41   : > { %12964 = vmatprep.subr.bf16.mxu1 %v15019_v1 }
  0x42   : > { %12977 = vmatpush3.bf16.msra.mxu0 %v14436_v11 }
  0x43   : > { %12978 = vmatprep.subr.bf16.mxu0 %v15019_v1 }
  0x44   : > { %12965 = vmatpush3.bf16.msra.mxu1 %v14448_v18 }
  0x45   : > { %12966 = vmatprep.subr.bf16.mxu1 %v15019_v1 }
  0x46   : > { %12979 = vmatpush3.bf16.msra.mxu0 %v14437_v13 }
  0x47   : > { %12980 = vmatprep.subr.bf16.mxu0 %v15019_v1 }
  0x48   : > { %12967 = vmatpush3.bf16.msra.mxu1 %v14449_v22 }
  0x49   : > { %12968 = vmatprep.subr.bf16.mxu1 %v15019_v1 }
  0x4a   : > { %12981 = vmatpush3.bf16.msra.mxu0 %v14438_v15 }
  0x4b   : > { %12986 = vmatprep.subr.bf16.mxu0 %v15019_v1 }
  0x4c   : > { %12969 = vmatpush3.bf16.msra.mxu1 %v14450_v23 }
  0x4d   : > { %12983 = vmatmul.mubr.msk.bf16.vlgmr.msra.gmra.mrb[4].mxu0 %vm486_vm1, %v15203_v7  ;;  %12998 = vmatprep.subr.bf16.mxu1 %v15019_v1 }
  0x4e   : > { %12987 = vmatpush3.bf16.msra.mxu0 %v14439_v17  ;;  %12994 = vmatprep.mubr.msk.bf16.mxu0 %vm15020_vm0, %v15019_v1 }
  0x4f   : > { %12988 = vmatprep.subr.bf16.mxu0 %v15019_v1 }
  0x52   : > { %12989 = vmatpush3.bf16.msra.mxu0 %v14440_v19 }
  0x53   : > { %12990 = vmatprep.subr.bf16.mxu0 %v15019_v1 }
  0x56   : > { %12991 = vmatpush3.bf16.msra.mxu0 %v14441_v20 }
  0x57   : > { %12992 = vmatprep.subr.bf16.mxu0 %v15019_v1 }
  0x5a   : > { %12993 = vmatpush3.bf16.msra.mxu0 %v14442_v21 }
  0x5b   : > { %13022 = vmatprep.subr.bf16.mxu0 %v15019_v1 }
  0x5d   : > { %12995 = vmatmul.mubr.msk.bf16.vlgmr.msra.gmra.mrb[8].mxu0 %vm486_vm1, %v15203_v7 }
  0x5e   : > { %13024 = vmatprep.mubr.msk.bf16.mxu0 %vm15020_vm0, %v15019_v1 }
 0x110   : > { %v698_v25 = vpop.f32.mrb[0].mxu0 }
 0x111   : > { %v699_v26 = vadd.f32 %v11196_v24, %v698_v25  ;;  %v12952_v27 = vpop.f32.mrb[1].mxu0 }
 0x112   : > { %v701_v28 = vpop.f32.mrb[2].mxu0 }
 0x113   : > { %v705_v29 = vmax.f32 %v699_v26, 0.0  ;;  %v702_v30 = vadd.f32 %v11196_v24, %v701_v28  ;;  %v12953_v31 = vpop.f32.mrb[3].mxu0 }
 0x115   : > { %v706_v32 = vmax.f32 %v702_v30, 0.0 }
 0x117   : > { %v707_v34 = vpack.c.bf16 %v706_v32, %v705_v29 }
 0x119   : > { %12971 = vmatmul.mubr.bf16.vlgmr.msra.gmra.mrb[0].mxu1 %v707_v34 }
 0x11a   : > { %12999 = vmatpush3.bf16.msra.mxu1 %v14451_v33  ;;  %13006 = vmatprep.mubr.msk.bf16.mxu1 %vm15020_vm0, %v15019_v1 }
 0x11b   : > { %13000 = vmatprep.subr.bf16.mxu1 %v15019_v1 }
 0x11e   : > { %13001 = vmatpush3.bf16.msra.mxu1 %v14452_v35 }
 0x11f   : > { %13002 = vmatprep.subr.bf16.mxu1 %v15019_v1 }
 0x120   : > { %v886_v37 = vpop.f32.mrb[4].mxu0 }
 0x121   : > { %v12984_v38 = vpop.f32.mrb[5].mxu0  ;;  %v887_v52 = vadd.f32 %v11174_v49, %v886_v37  ;;  %v14455_v37 = vld [vmem:[%s17805_s7 + $0x20] sm:$0xff]  }
 0x122   : > { %v889_v39 = vpop.f32.mrb[6].mxu0  ;;  %13003 = vmatpush3.bf16.msra.mxu1 %v14453_v36 }
 0x123   : > { %v12985_v41 = vpop.f32.mrb[7].mxu0  ;;  %13004 = vmatprep.subr.bf16.mxu1 %v15019_v1  ;;  %v12266_v54 = vpack.c.bf16 %v887_v52, %v887_v52  ;;  %v890_v56 = vadd.f32 %v11174_v49, %v889_v39 }
 0x124   : > { %v14456_v41 = vld [vmem:[%s17805_s7 + $0x28] sm:$0xff]  }
 0x125   : > { %v12267_v57 = vpack.c.bf16 %v890_v56, %v890_v56 }
 0x126   : > { %13005 = vmatpush3.bf16.msra.mxu1 %v14454_v40 }
 0x127   : > { %13010 = vmatprep.subr.bf16.mxu1 %v15019_v1 }
 0x129   : > { %13007 = vmatmul.mubr.msk.bf16.vlgmr.msra.gmra.mrb[4].mxu1 %vm486_vm1, %v15203_v7 }
 0x12a   : > { %13012 = vmatprep.mubr.msk.bf16.mxu1 %vm15020_vm0, %v15019_v1 }
 0x130   : > { %v959_v43 = vpop.f32.mrb[8].mxu0 }
 0x131   : > { %v960_v44 = vadd.f32 %v11181_v42, %v959_v43  ;;  %v12996_v45 = vpop.f32.mrb[9].mxu0 }
 0x132   : > { %v962_v46 = vpop.f32.mrb[10].mxu0  ;;  %v14459_v45 = vld [vmem:[%s17804_s6 + $0x28] sm:$0xff]  }
 0x133   : > { %v12268_v47 = vpack.c.bf16 %v960_v44, %v960_v44  ;;  %v12997_v48 = vpop.f32.mrb[11].mxu0  ;;  %v963_v51 = vadd.f32 %v11181_v42, %v962_v46  ;;  %v14457_v42 = vld [vmem:[%s17804_s6 + $0x20] sm:$0xff]   ;;  %v14458_v44 = vld [vmem:[%s17805_s7 + $0x30] sm:$0xff]   ;;  %v14460_v46 = vld [vmem:[%s17805_s7 + $0x38] sm:$0xff]  }
 0x134   : > { %v14462_v48 = vld [vmem:[%s17804_s6 + $0x38] sm:$0xff]  }
 0x135   : > { %v1062_v50 = vsel %vm1057_vm2, %v12268_v47, 0  ;;  %v12269_v53 = vpack.c.bf16 %v963_v51, %v963_v51  ;;  %v14461_v47 = vld [vmem:[%s17804_s6 + $0x30] sm:$0xff]  }
 0x136   : > { %13011 = vmatpush3.bf16.xpose.msra.mxu1 %v1062_v50 }
 0x137   : > { %13016 = vmatprep.subr.bf16.mxu1 %v15019_v1  ;;  %v1108_v55 = vsel %vm1057_vm2, %v12269_v53, 0 }
 0x13d   : > { %13013 = vmatmul.mubr.msk.bf16.vlgmr.msra.gmra.mrb[8].mxu1 %vm1057_vm2, %v12266_v54 }
 0x13e   : > { %13017 = vmatpush3.bf16.xpose.msra.mxu1 %v1108_v55  ;;  %13018 = vmatprep.mubr.msk.bf16.mxu1 %vm15020_vm0, %v15019_v1 }
 0x13f   : > { %13028 = vmatprep.subr.bf16.mxu1 %v15019_v1 }
 0x145   : > { %13019 = vmatmul.mubr.msk.bf16.vlgmr.msra.gmra.mrb[12].mxu1 %vm1057_vm2, %v12267_v57 }
 0x146   : > { %13030 = vmatprep.mubr.msk.bf16.mxu1 %vm15020_vm0, %v15019_v1 }
 0x1ec   : > { %v15323_v58 = vpop.f32.mrb[0].mxu1 }
 0x1ed   : > { %v12972_v59 = vpop.f32.mrb[1].mxu1 }
 0x1ee   : > { %v15325_v60 = vpop.f32.mrb[2].mxu1  ;;  %v11183_v59 = vld [vmem:[%s17808_s10 + $0x1] ss:$0 sm:$0xff] }
 0x1ef   : > { %v12973_v61 = vpop.f32.mrb[3].mxu1 }
 0x1fc   : > { %v1032_v63 = vpop.f32.mrb[4].mxu1 }
 0x1fd   : > { %v1033_v0 = vadd.f32 %v11188_v62, %v1032_v63  ;;  %v13008_v2 = vpop.f32.mrb[5].mxu1 }
 0x1fe   : > { %v1035_v3 = vpop.f32.mrb[6].mxu1  ;;  %v11176_v2 = vld [vmem:[%s17807_s9 + $0x1] ss:$0 sm:$0xff] }
 0x1ff   : > { %v12270_v4 = vpack.c.bf16 %v1033_v0, %v1033_v0  ;;  %v1036_v8 = vadd.f32 %v11188_v62, %v1035_v3  ;;  %v13009_v9 = vpop.f32.mrb[7].mxu1 }
 0x201   : > { %v12271_v10 = vpack.c.bf16 %v1036_v8, %v1036_v8  ;;  %v1180_v11 = vsel %vm1178_vm3, %v12270_v4, 0 }
 0x202   : > { %13023 = vmatpush3.bf16.msra.mxu0 %v1180_v11 }
 0x203   : > { %v1226_v12 = vsel %vm1178_vm3, %v12271_v10, 0  ;;  %13034 = vmatprep.subr.bf16.mxu0 %v15019_v1 }
 0x204   : > { %13029 = vmatpush3.bf16.msra.mxu1 %v1226_v12 }
 0x205   : > { %13046 = vmatprep.subr.bf16.mxu1 %v15019_v1 }
 0x210   : > { %v1098_v13 = vpop.f32.mrb[8].mxu1 }
 0x211   : > { %v13014_v14 = vpop.f32.mrb[9].mxu1  ;;  %v1151_v22 = vsel %vm1150_vm4, %v1098_v13, -inf }
 0x212   : > { %v1101_v15 = vpop.f32.mrb[10].mxu1 }
 0x213   : > { %v13015_v16 = vpop.f32.mrb[11].mxu1 }
 0x218   : > { %v1144_v17 = vpop.f32.mrb[12].mxu1 }
 0x219   : > { %v13020_v18 = vpop.f32.mrb[13].mxu1  ;;  %v1154_v19 = vsel %vm1150_vm4, %v1144_v17, -inf }
 0x21a   : > { %1155 = vmax.xlane.f32.xlu0 %v1154_v19  ;;  %v1147_v20 = vpop.f32.mrb[14].mxu1 }
 0x21b   : > { %v13021_v21 = vpop.f32.mrb[15].mxu1  ;;  %v14463_v20 = vld [vmem:[%s17806_s8 + $0x20] sm:$0xff]  }
 0x21c   : > { %v14464_v21 = vld [vmem:[%s17806_s8 + $0x28] sm:$0xff]  }
 0x21e   : > { %1152 = vmax.xlane.f32.xlu0 %v1151_v22  ;;  %v14465_v22 = vld [vmem:[%s17806_s8 + $0x30] sm:$0xff]  }
 0x2a7   : > { %v1156_v23 = vpop.xlane.xlu0 %1155 }
 0x2a8   : > { %v1158_v24 = vsub.f32 %v1144_v17, %v1156_v23  ;;  %v14466_v23 = vld [vmem:[%s17806_s8 + $0x38] sm:$0xff]  }
 0x2aa   : > { %v1161_v25 = vmul.f32 1.442695, %v1158_v24 }
 0x2ab   : > { %v1153_v26 = vpop.xlane.xlu0 %1152 }
 0x2ac   : > { %14735 = vpow2.f32 %v1161_v25  ;;  %v1157_v27 = vsub.f32 %v1098_v13, %v1153_v26 }
 0x2ae   : > { %v1159_v28 = vmul.f32 1.442695, %v1157_v27 }
 0x2b0   : > { %14737 = vpow2.f32 %v1159_v28 }
 0x2b6   : > { %v14736_v29 = vpop.eup %14735 }
 0x2b7   : > { %v1166_v30 = vsel %vm1150_vm4, %v14736_v29, 0.0 }
 0x2b8   : > { %1167 = vadd.xlane.f32.xlu1 %v1166_v30 }
 0x2ba   : > { %v14738_v31 = vpop.eup %14737 }
 0x2bb   : > { %v1163_v32 = vsel %vm1150_vm4, %v14738_v31, 0.0 }
 0x2bc   : > { %1164 = vadd.xlane.f32.xlu1 %v1163_v32 }
 0x345   : > { %v1168_v33 = vpop.xlane.xlu1 %1167 }
 0x346   : > { %14739 = vrcp.f32 %v1168_v33 }
 0x349   : > { %v1165_v34 = vpop.xlane.xlu1 %1164 }
 0x34a   : > { %14741 = vrcp.f32 %v1165_v34 }
 0x350   : > { %v14740_v35 = vpop.eup %14739 }
 0x351   : > { %v1172_v36 = vmul.f32 %v14740_v35, %v14736_v29 }
 0x353   : > { %v1174_v38 = vpack.c.bf16 %v1172_v36, %v1172_v36 }
 0x354   : > { %v14742_v39 = vpop.eup %14741 }
 0x355   : > { %v1170_v40 = vmul.f32 %v14742_v39, %v14738_v31  ;;  %13031 = vmatmul.mubr.msk.bf16.vlgmr.msra.gmra.mrb[16].mxu1 %vm1150_vm4, %v1174_v38 }
 0x356   : > { %13047 = vmatpush3.bf16.msra.mxu1 %v14455_v37  ;;  %13054 = vmatprep.mubr.msk.bf16.mxu1 %vm15020_vm0, %v15019_v1 }
 0x357   : > { %13048 = vmatprep.subr.bf16.mxu1 %v15019_v1  ;;  %v1173_v43 = vpack.c.bf16 %v1170_v40, %v1170_v40 }
 0x359   : > { %13025 = vmatmul.mubr.msk.bf16.vlgmr.msra.gmra.mrb[12].mxu0 %vm1150_vm4, %v1173_v43 }
 0x35a   : > { %13049 = vmatpush3.bf16.msra.mxu1 %v14456_v41  ;;  %13035 = vmatpush3.bf16.msra.mxu0 %v14457_v42 }
 0x35b   : > { %13050 = vmatprep.subr.bf16.mxu1 %v15019_v1  ;;  %13036 = vmatprep.subr.bf16.mxu0 %v15019_v1 }
 0x35c   : > { %13042 = vmatprep.mubr.msk.bf16.mxu0 %vm15020_vm0, %v15019_v1 }
 0x35e   : > { %13051 = vmatpush3.bf16.msra.mxu1 %v14458_v44  ;;  %13037 = vmatpush3.bf16.msra.mxu0 %v14459_v45  ;;  %v11190_v44 = vld [vmem:[%s17809_s11 + $0x1] ss:$0 sm:$0xff] }
 0x35f   : > { %13052 = vmatprep.subr.bf16.mxu1 %v15019_v1  ;;  %13038 = vmatprep.subr.bf16.mxu0 %v15019_v1 }
 0x362   : > { %13053 = vmatpush3.bf16.msra.mxu1 %v14460_v46  ;;  %13039 = vmatpush3.bf16.msra.mxu0 %v14461_v47 }
 0x363   : > { %13040 = vmatprep.subr.bf16.mxu0 %v15019_v1  ;;  %13070 = vmatprep.subr.bf16.mxu1 %v15019_v1 }
 0x365   : > { %13055 = vmatmul.mubr.msk.bf16.vlgmr.msra.gmra.mrb[20].mxu1 %vm486_vm1, %v15203_v7 }
 0x366   : > { %13041 = vmatpush3.bf16.msra.mxu0 %v14462_v48  ;;  %13072 = vmatprep.mubr.msk.bf16.mxu1 %vm15020_vm0, %v15019_v1 }
 0x367   : > { %13058 = vmatprep.subr.bf16.mxu0 %v15019_v1 }
 0x369   : > { %13043 = vmatmul.mubr.msk.bf16.vlgmr.msra.gmra.mrb[16].mxu0 %vm486_vm1, %v15203_v7 }
 0x36a   : > { %13066 = vmatprep.mubr.msk.bf16.mxu0 %vm15020_vm0, %v15019_v1  ;;  %13059 = vmatpush3.bf16.msra.mxu0 %v14463_v20 }
 0x36b   : > { %13060 = vmatprep.subr.bf16.mxu0 %v15019_v1 }
 0x36e   : > { %13061 = vmatpush3.bf16.msra.mxu0 %v14464_v21 }
 0x36f   : > { %13062 = vmatprep.subr.bf16.mxu0 %v15019_v1 }
 0x372   : > { %13063 = vmatpush3.bf16.msra.mxu0 %v14465_v22 }
 0x373   : > { %13064 = vmatprep.subr.bf16.mxu0 %v15019_v1 }
 0x376   : > { %13065 = vmatpush3.bf16.msra.mxu0 %v14466_v23 }
 0x377   : > { %13082 = vmatprep.subr.bf16.mxu0 %v15019_v1 }
 0x379   : > { %13067 = vmatmul.mubr.msk.bf16.vlgmr.msra.gmra.mrb[20].mxu0 %vm486_vm1, %v15203_v7 }
 0x37a   : > { %13084 = vmatprep.mubr.msk.bf16.mxu0 %vm15020_vm0, %v15019_v1 }
 0x428   : > { %v15384_v49 = vpop.f32.mrb[16].mxu1 }
 0x429   : > { %v13032_v50 = vpop.f32.mrb[17].mxu1 }
 0x42a   : > { %v1265_v51 = vpop.f32.mrb[18].mxu1 }
 0x42b   : > { %v13033_v52 = vpop.f32.mrb[19].mxu1 }
 0x42c   : > { %v15386_v53 = vpop.f32.mrb[12].mxu0 }
 0x42d   : > { %v1268_v54 = vpack.c.bf16 %v15384_v49, %v15386_v53  ;;  %v13026_v55 = vpop.f32.mrb[13].mxu0  ;;  %v14497_v49 = vld [vmem:[%s17800_s2 + $0x30] sm:$0xff]   ;;  %v14498_v53 = vld [vmem:[%s17800_s2 + $0x38] sm:$0xff]  }
 0x42e   : > { %v1219_v56 = vpop.f32.mrb[14].mxu0 }
 0x42f   : > { %v13027_v57 = vpop.f32.mrb[15].mxu0 }
 0x438   : > { %v1410_v61 = vpop.f32.mrb[20].mxu1 }
 0x439   : > { %v1411_v62 = vadd.f32 %v11183_v59, %v1410_v61  ;;  %v13056_v63 = vpop.f32.mrb[21].mxu1 }
 0x43a   : > { %v1413_v0 = vpop.f32.mrb[22].mxu1 }
 0x43b   : > { %v12274_v3 = vpack.c.bf16 %v1411_v62, %v1411_v62  ;;  %v13057_v4 = vpop.f32.mrb[23].mxu1  ;;  %v1414_v9 = vadd.f32 %v11183_v59, %v1413_v0  ;;  %v14469_v0 = vld [vmem:[%s17804_s6 + $0x40] sm:$0xff]  }
 0x43c   : > { %v1336_v8 = vpop.f32.mrb[16].mxu0 }
 0x43d   : > { %v1337_v10 = vadd.f32 %v11176_v2, %v1336_v8  ;;  %v13044_v11 = vpop.f32.mrb[17].mxu0  ;;  %v1513_v12 = vsel %vm1057_vm2, %v12274_v3, 0  ;;  %v12275_v15 = vpack.c.bf16 %v1414_v9, %v1414_v9  ;;  %v14471_v3 = vld [vmem:[%s17804_s6 + $0x48] sm:$0xff]   ;;  %v14467_v9 = vld [vmem:[%s17805_s7 + $0x40] sm:$0xff]  }
 0x43e   : > { %13071 = vmatpush3.bf16.xpose.msra.mxu1 %v1513_v12  ;;  %v1339_v13 = vpop.f32.mrb[18].mxu0  ;;  %v14468_v12 = vld [vmem:[%s17805_s7 + $0x48] sm:$0xff]  }
 0x43f   : > { %v13045_v14 = vpop.f32.mrb[19].mxu0  ;;  %13076 = vmatprep.subr.bf16.mxu1 %v15019_v1  ;;  %v12272_v16 = vpack.c.bf16 %v1337_v10, %v1337_v10  ;;  %v1559_v17 = vsel %vm1057_vm2, %v12275_v15, 0  ;;  %v1340_v18 = vadd.f32 %v11176_v2, %v1339_v13  ;;  %v14473_v10 = vld [vmem:[%s17804_s6 + $0x50] sm:$0xff]   ;;  %v14474_v13 = vld [vmem:[%s17804_s6 + $0x58] sm:$0xff]  }
 0x440   : > { %v14470_v14 = vld [vmem:[%s17805_s7 + $0x50] sm:$0xff]   ;;  %v14472_v15 = vld [vmem:[%s17805_s7 + $0x58] sm:$0xff]  }
 0x441   : > { %v12273_v19 = vpack.c.bf16 %v1340_v18, %v1340_v18 }
 0x445   : > { %13073 = vmatmul.mubr.msk.bf16.vlgmr.msra.gmra.mrb[24].mxu1 %vm1057_vm2, %v12272_v16 }
 0x446   : > { %13077 = vmatpush3.bf16.xpose.msra.mxu1 %v1559_v17  ;;  %13078 = vmatprep.mubr.msk.bf16.mxu1 %vm15020_vm0, %v15019_v1 }
 0x447   : > { %13088 = vmatprep.subr.bf16.mxu1 %v15019_v1 }
 0x44c   : > { %v1484_v45 = vpop.f32.mrb[20].mxu0 }
 0x44d   : > { %13079 = vmatmul.mubr.msk.bf16.vlgmr.msra.gmra.mrb[28].mxu1 %vm1057_vm2, %v12273_v19  ;;  %v1485_v46 = vadd.f32 %v11190_v44, %v1484_v45  ;;  %v13068_v47 = vpop.f32.mrb[21].mxu0  ;;  %v14475_v45 = vld [vmem:[%s17806_s8 + $0x40] sm:$0xff]  }
 0x44e   : > { %13090 = vmatprep.mubr.msk.bf16.mxu1 %vm15020_vm0, %v15019_v1  ;;  %v1487_v50 = vpop.f32.mrb[22].mxu0  ;;  %v14477_v47 = vld [vmem:[%s17806_s8 + $0x50] sm:$0xff]  }
 0x44f   : > { %v12276_v48 = vpack.c.bf16 %v1485_v46, %v1485_v46  ;;  %v13069_v52 = vpop.f32.mrb[23].mxu0  ;;  %v1488_v55 = vadd.f32 %v11190_v44, %v1487_v50  ;;  %v14476_v46 = vld [vmem:[%s17806_s8 + $0x48] sm:$0xff]  }
 0x451   : > { %v1629_v51 = vsel %vm1178_vm3, %v12276_v48, 0  ;;  %v12277_v56 = vpack.c.bf16 %v1488_v55, %v1488_v55  ;;  %v14478_v48 = vld [vmem:[%s17806_s8 + $0x58] sm:$0xff]  }
 0x452   : > { %13083 = vmatpush3.bf16.msra.mxu0 %v1629_v51 }
 0x453   : > { %13094 = vmatprep.subr.bf16.mxu0 %v15019_v1  ;;  %v1675_v57 = vsel %vm1178_vm3, %v12277_v56, 0 }
 0x454   : > { %13089 = vmatpush3.bf16.msra.mxu1 %v1675_v57 }
 0x455   : > { %13106 = vmatprep.subr.bf16.mxu1 %v15019_v1 }
 0x518   : > { %v1549_v24 = vpop.f32.mrb[24].mxu1 }
 0x519   : > { %v13074_v25 = vpop.f32.mrb[25].mxu1  ;;  %v1601_v26 = vsel %vm1150_vm4, %v1549_v24, -inf }
 0x51a   : > { %1602 = vmax.xlane.f32.xlu1 %v1601_v26  ;;  %v1552_v27 = vpop.f32.mrb[26].mxu1 }
 0x51b   : > { %v13075_v28 = vpop.f32.mrb[27].mxu1 }
 0x520   : > { %v1595_v29 = vpop.f32.mrb[28].mxu1 }
 0x521   : > { %v13080_v30 = vpop.f32.mrb[29].mxu1  ;;  %v1604_v31 = vsel %vm1150_vm4, %v1595_v29, -inf }
 0x522   : > { %1605 = vmax.xlane.f32.xlu0 %v1604_v31  ;;  %v1598_v32 = vpop.f32.mrb[30].mxu1 }
 0x523   : > { %v13081_v33 = vpop.f32.mrb[31].mxu1 }
 0x5a7   : > { %v1603_v34 = vpop.xlane.xlu1 %1602 }
 0x5a8   : > { %v1607_v35 = vsub.f32 %v1549_v24, %v1603_v34  ;;  %v11178_v34 = vld [vmem:[%s17807_s9 + $0x2] ss:$0 sm:$0xff] }
 0x5aa   : > { %v1609_v36 = vmul.f32 1.442695, %v1607_v35 }
 0x5ac   : > { %14743 = vpow2.f32 %v1609_v36 }
 0x5af   : > { %v1606_v37 = vpop.xlane.xlu0 %1605 }
 0x5b0   : > { %v1608_v38 = vsub.f32 %v1595_v29, %v1606_v37  ;;  %v11185_v29 = vld [vmem:[%s17808_s10 + $0x2] ss:$0 sm:$0xff] }
 0x5b2   : > { %v1611_v39 = vmul.f32 1.442695, %v1608_v38 }
 0x5b4   : > { %14745 = vpow2.f32 %v1611_v39 }
 0x5b6   : > { %v14744_v40 = vpop.eup %14743 }
 0x5b7   : > { %v1613_v41 = vsel %vm1150_vm4, %v14744_v40, 0.0 }
 0x5b8   : > { %1614 = vadd.xlane.f32.xlu1 %v1613_v41 }
 0x5be   : > { %v14746_v42 = vpop.eup %14745 }
 0x5bf   : > { %v1616_v43 = vsel %vm1150_vm4, %v14746_v42, 0.0 }
 0x5c0   : > { %1617 = vadd.xlane.f32.xlu0 %v1616_v43 }
 0x645   : > { %v1615_v59 = vpop.xlane.xlu1 %1614 }
 0x646   : > { %14747 = vrcp.f32 %v1615_v59 }
 0x64d   : > { %v1618_v61 = vpop.xlane.xlu0 %1617 }
 0x64e   : > { %14749 = vrcp.f32 %v1618_v61 }
 0x650   : > { %v14748_v62 = vpop.eup %14747 }
 0x651   : > { %v1620_v63 = vmul.f32 %v14748_v62, %v14744_v40 }
 0x653   : > { %v1623_v2 = vpack.c.bf16 %v1620_v63, %v1620_v63 }
 0x655   : > { %13085 = vmatmul.mubr.msk.bf16.vlgmr.msra.gmra.mrb[24].mxu0 %vm1150_vm4, %v1623_v2 }
 0x656   : > { %13095 = vmatpush3.bf16.msra.mxu0 %v14469_v0  ;;  %13102 = vmatprep.mubr.msk.bf16.mxu0 %vm15020_vm0, %v15019_v1 }
 0x657   : > { %13096 = vmatprep.subr.bf16.mxu0 %v15019_v1 }
 0x658   : > { %v14750_v4 = vpop.eup %14749 }
 0x659   : > { %v1622_v8 = vmul.f32 %v14750_v4, %v14746_v42 }
 0x65a   : > { %13097 = vmatpush3.bf16.msra.mxu0 %v14471_v3 }
 0x65b   : > { %v1624_v11 = vpack.c.bf16 %v1622_v8, %v1622_v8  ;;  %13098 = vmatprep.subr.bf16.mxu0 %v15019_v1 }
 0x65d   : > { %13091 = vmatmul.mubr.msk.bf16.vlgmr.msra.gmra.mrb[32].mxu1 %vm1150_vm4, %v1624_v11 }
 0x65e   : > { %13107 = vmatpush3.bf16.msra.mxu1 %v14467_v9  ;;  %13099 = vmatpush3.bf16.msra.mxu0 %v14473_v10 }
 0x65f   : > { %13108 = vmatprep.subr.bf16.mxu1 %v15019_v1  ;;  %13114 = vmatprep.mubr.msk.bf16.mxu1 %vm15020_vm0, %v15019_v1 }
 0x660   : > { %13100 = vmatprep.subr.bf16.mxu0 %v15019_v1 }
 0x662   : > { %13109 = vmatpush3.bf16.msra.mxu1 %v14468_v12  ;;  %13101 = vmatpush3.bf16.msra.mxu0 %v14474_v13 }
 0x663   : > { %13110 = vmatprep.subr.bf16.mxu1 %v15019_v1  ;;  %13118 = vmatprep.subr.bf16.mxu0 %v15019_v1 }
 0x665   : > { %13103 = vmatmul.mubr.msk.bf16.vlgmr.msra.gmra.mrb[28].mxu0 %vm486_vm1, %v15203_v7 }
 0x666   : > { %13111 = vmatpush3.bf16.msra.mxu1 %v14470_v14  ;;  %13126 = vmatprep.mubr.msk.bf16.mxu0 %vm15020_vm0, %v15019_v1  ;;  %v11192_v14 = vld [vmem:[%s17809_s11 + $0x2] ss:$0 sm:$0xff] }
 0x667   : > { %13112 = vmatprep.subr.bf16.mxu1 %v15019_v1  ;;  %13119 = vmatpush3.bf16.msra.mxu0 %v14475_v45 }
 0x668   : > { %13120 = vmatprep.subr.bf16.mxu0 %v15019_v1 }
 0x66a   : > { %13113 = vmatpush3.bf16.msra.mxu1 %v14472_v15 }
 0x66b   : > { %13130 = vmatprep.subr.bf16.mxu1 %v15019_v1  ;;  %13121 = vmatpush3.bf16.msra.mxu0 %v14476_v46 }
 0x66c   : > { %13122 = vmatprep.subr.bf16.mxu0 %v15019_v1 }
 0x66d   : > { %13115 = vmatmul.mubr.msk.bf16.vlgmr.msra.gmra.mrb[36].mxu1 %vm486_vm1, %v15203_v7 }
 0x66e   : > { %13132 = vmatprep.mubr.msk.bf16.mxu1 %vm15020_vm0, %v15019_v1 }
 0x66f   : > { %13123 = vmatpush3.bf16.msra.mxu0 %v14477_v47 }
 0x670   : > { %13124 = vmatprep.subr.bf16.mxu0 %v15019_v1 }
 0x673   : > { %13125 = vmatpush3.bf16.msra.mxu0 %v14478_v48 }
 0x674   : > { %13142 = vmatprep.subr.bf16.mxu0 %v15019_v1 }
 0x676   : > { %13127 = vmatmul.mubr.msk.bf16.vlgmr.msra.gmra.mrb[32].mxu0 %vm486_vm1, %v15203_v7 }
 0x677   : > { %13144 = vmatprep.mubr.msk.bf16.mxu0 %vm15020_vm0, %v15019_v1 }
 0x728   : > { %v15483_v16 = vpop.f32.mrb[24].mxu0 }
 0x729   : > { %v13086_v17 = vpop.f32.mrb[25].mxu0 }
 0x72a   : > { %v1668_v18 = vpop.f32.mrb[26].mxu0 }
 0x72b   : > { %v13087_v19 = vpop.f32.mrb[27].mxu0 }
 0x730   : > { %v15485_v20 = vpop.f32.mrb[32].mxu1 }
 0x731   : > { %v1717_v21 = vpack.c.bf16 %v15485_v20, %v15483_v16  ;;  %v13092_v22 = vpop.f32.mrb[33].mxu1 }
 0x732   : > { %v1714_v23 = vpop.f32.mrb[34].mxu1 }
 0x733   : > { %v13093_v24 = vpop.f32.mrb[35].mxu1 }
 0x738   : > { %v1785_v25 = vpop.f32.mrb[28].mxu0 }
 0x739   : > { %v13104_v26 = vpop.f32.mrb[29].mxu0  ;;  %v1786_v38 = vadd.f32 %v11178_v34, %v1785_v25 }
 0x73a   : > { %v1788_v27 = vpop.f32.mrb[30].mxu0 }
 0x73b   : > { %v13105_v28 = vpop.f32.mrb[31].mxu0  ;;  %v12278_v41 = vpack.c.bf16 %v1786_v38, %v1786_v38  ;;  %v1789_v43 = vadd.f32 %v11178_v34, %v1788_v27  ;;  %v14483_v34 = vld [vmem:[%s17804_s6 + $0x68] sm:$0xff]   ;;  %v14485_v38 = vld [vmem:[%s17804_s6 + $0x70] sm:$0xff]  }
 0x73d   : > { %v12279_v44 = vpack.c.bf16 %v1789_v43, %v1789_v43  ;;  %v14484_v43 = vld [vmem:[%s17805_s7 + $0x78] sm:$0xff]  }
 0x740   : > { %v1859_v30 = vpop.f32.mrb[36].mxu1 }
 0x741   : > { %v1860_v31 = vadd.f32 %v11185_v29, %v1859_v30  ;;  %v13116_v32 = vpop.f32.mrb[37].mxu1 }
 0x742   : > { %v1862_v33 = vpop.f32.mrb[38].mxu1  ;;  %v14481_v32 = vld [vmem:[%s17804_s6 + $0x60] sm:$0xff]  }
 0x743   : > { %v12280_v35 = vpack.c.bf16 %v1860_v31, %v1860_v31  ;;  %v13117_v36 = vpop.f32.mrb[39].mxu1  ;;  %v1863_v37 = vadd.f32 %v11185_v29, %v1862_v33 }
 0x745   : > { %v1962_v39 = vsel %vm1057_vm2, %v12280_v35, 0  ;;  %v12281_v40 = vpack.c.bf16 %v1863_v37, %v1863_v37  ;;  %v14479_v37 = vld [vmem:[%s17805_s7 + $0x60] sm:$0xff]  }
 0x746   : > { %13131 = vmatpush3.bf16.xpose.msra.mxu1 %v1962_v39 }
 0x747   : > { %13136 = vmatprep.subr.bf16.mxu1 %v15019_v1  ;;  %v2008_v42 = vsel %vm1057_vm2, %v12281_v40, 0  ;;  %v14480_v40 = vld [vmem:[%s17805_s7 + $0x68] sm:$0xff]  }
 0x749   : > { %v1933_v15 = vpop.f32.mrb[32].mxu0 }
 0x74a   : > { %v1934_v17 = vadd.f32 %v11192_v14, %v1933_v15  ;;  %v13128_v18 = vpop.f32.mrb[33].mxu0 }
 0x74b   : > { %v1936_v22 = vpop.f32.mrb[34].mxu0 }
 0x74c   : > { %v12282_v19 = vpack.c.bf16 %v1934_v17, %v1934_v17  ;;  %v13129_v24 = vpop.f32.mrb[35].mxu0  ;;  %v1937_v25 = vadd.f32 %v11192_v14, %v1936_v22  ;;  %v14488_v22 = vld [vmem:[%s17806_s8 + $0x68] sm:$0xff]  }
 0x74d   : > { %13133 = vmatmul.mubr.msk.bf16.vlgmr.msra.gmra.mrb[40].mxu1 %vm1057_vm2, %v12278_v41  ;;  %v14486_v41 = vld [vmem:[%s17804_s6 + $0x78] sm:$0xff]  }
 0x74e   : > { %13137 = vmatpush3.bf16.xpose.msra.mxu1 %v2008_v42  ;;  %13138 = vmatprep.mubr.msk.bf16.mxu1 %vm15020_vm0, %v15019_v1  ;;  %v2078_v23 = vsel %vm1178_vm3, %v12282_v19, 0  ;;  %v12283_v26 = vpack.c.bf16 %v1937_v25, %v1937_v25  ;;  %v14482_v42 = vld [vmem:[%s17805_s7 + $0x70] sm:$0xff]   ;;  %v14487_v19 = vld [vmem:[%s17806_s8 + $0x60] sm:$0xff]   ;;  %v14490_v24 = vld [vmem:[%s17806_s8 + $0x78] sm:$0xff]  }
 0x74f   : > { %13148 = vmatprep.subr.bf16.mxu1 %v15019_v1  ;;  %13143 = vmatpush3.bf16.msra.mxu0 %v2078_v23  ;;  %v14489_v23 = vld [vmem:[%s17806_s8 + $0x70] sm:$0xff]  }
 0x750   : > { %13154 = vmatprep.subr.bf16.mxu0 %v15019_v1  ;;  %v2124_v27 = vsel %vm1178_vm3, %v12283_v26, 0 }
 0x755   : > { %13139 = vmatmul.mubr.msk.bf16.vlgmr.msra.gmra.mrb[44].mxu1 %vm1057_vm2, %v12279_v44 }
 0x756   : > { %13150 = vmatprep.mubr.msk.bf16.mxu1 %vm15020_vm0, %v15019_v1  ;;  %13149 = vmatpush3.bf16.msra.mxu1 %v2124_v27 }
 0x757   : > { %13166 = vmatprep.subr.bf16.mxu1 %v15019_v1 }
 0x820   : > { %v1998_v50 = vpop.f32.mrb[40].mxu1 }
 0x821   : > { %v13134_v51 = vpop.f32.mrb[41].mxu1  ;;  %v2050_v52 = vsel %vm1150_vm4, %v1998_v50, -inf }
 0x822   : > { %2051 = vmax.xlane.f32.xlu1 %v2050_v52  ;;  %v2001_v55 = vpop.f32.mrb[42].mxu1 }
 0x823   : > { %v13135_v56 = vpop.f32.mrb[43].mxu1 }
 0x828   : > { %v2044_v57 = vpop.f32.mrb[44].mxu1 }
 0x829   : > { %v13140_v59 = vpop.f32.mrb[45].mxu1  ;;  %v2053_v61 = vsel %vm1150_vm4, %v2044_v57, -inf }
 0x82a   : > { %2054 = vmax.xlane.f32.xlu0 %v2053_v61  ;;  %v2047_v62 = vpop.f32.mrb[46].mxu1 }
 0x82b   : > { %v13141_v63 = vpop.f32.mrb[47].mxu1  ;;  %v11187_v62 = vld [vmem:[%s17808_s10 + $0x3] ss:$0 sm:$0xff] }
 0x8af   : > { %v2052_v0 = vpop.xlane.xlu1 %2051 }
 0x8b0   : > { %v2056_v2 = vsub.f32 %v1998_v50, %v2052_v0 }
 0x8b2   : > { %v2058_v3 = vmul.f32 1.442695, %v2056_v2 }
 0x8b4   : > { %14751 = vpow2.f32 %v2058_v3 }
 0x8b7   : > { %v2055_v4 = vpop.xlane.xlu0 %2054 }
 0x8b8   : > { %v2057_v8 = vsub.f32 %v2044_v57, %v2055_v4  ;;  %v11180_v4 = vld [vmem:[%s17807_s9 + $0x3] ss:$0 sm:$0xff] }
 0x8ba   : > { %v2060_v9 = vmul.f32 1.442695, %v2057_v8 }
 0x8bc   : > { %14753 = vpow2.f32 %v2060_v9 }
 0x8be   : > { %v14752_v10 = vpop.eup %14751 }
 0x8bf   : > { %v2062_v11 = vsel %vm1150_vm4, %v14752_v10, 0.0 }
 0x8c0   : > { %2063 = vadd.xlane.f32.xlu1 %v2062_v11 }
 0x8c6   : > { %v14754_v12 = vpop.eup %14753 }
 0x8c7   : > { %v2065_v13 = vsel %vm1150_vm4, %v14754_v12, 0.0 }
 0x8c8   : > { %2066 = vadd.xlane.f32.xlu0 %v2065_v13 }
 0x94d   : > { %v2064_v28 = vpop.xlane.xlu1 %2063 }
 0x94e   : > { %14755 = vrcp.f32 %v2064_v28 }
 0x955   : > { %v2067_v29 = vpop.xlane.xlu0 %2066 }
 0x956   : > { %14757 = vrcp.f32 %v2067_v29 }
 0x958   : > { %v14756_v30 = vpop.eup %14755 }
 0x959   : > { %v2069_v31 = vmul.f32 %v14756_v30, %v14752_v10 }
 0x95b   : > { %v2072_v33 = vpack.c.bf16 %v2069_v31, %v2069_v31 }
 0x95d   : > { %13145 = vmatmul.mubr.msk.bf16.vlgmr.msra.gmra.mrb[36].mxu0 %vm1150_vm4, %v2072_v33 }
 0x95e   : > { %13155 = vmatpush3.bf16.msra.mxu0 %v14481_v32  ;;  %13162 = vmatprep.mubr.msk.bf16.mxu0 %vm15020_vm0, %v15019_v1 }
 0x95f   : > { %13156 = vmatprep.subr.bf16.mxu0 %v15019_v1 }
 0x960   : > { %v14758_v35 = vpop.eup %14757 }
 0x961   : > { %v2071_v36 = vmul.f32 %v14758_v35, %v14754_v12 }
 0x962   : > { %13157 = vmatpush3.bf16.msra.mxu0 %v14483_v34 }
 0x963   : > { %v2073_v39 = vpack.c.bf16 %v2071_v36, %v2071_v36  ;;  %13158 = vmatprep.subr.bf16.mxu0 %v15019_v1 }
 0x965   : > { %13151 = vmatmul.mubr.msk.bf16.vlgmr.msra.gmra.mrb[48].mxu1 %vm1150_vm4, %v2073_v39 }
 0x966   : > { %13167 = vmatpush3.bf16.msra.mxu1 %v14479_v37  ;;  %13159 = vmatpush3.bf16.msra.mxu0 %v14485_v38 }
 0x967   : > { %13168 = vmatprep.subr.bf16.mxu1 %v15019_v1  ;;  %13174 = vmatprep.mubr.msk.bf16.mxu1 %vm15020_vm0, %v15019_v1 }
 0x968   : > { %13160 = vmatprep.subr.bf16.mxu0 %v15019_v1 }
 0x96a   : > { %13169 = vmatpush3.bf16.msra.mxu1 %v14480_v40  ;;  %13161 = vmatpush3.bf16.msra.mxu0 %v14486_v41 }
 0x96b   : > { %13170 = vmatprep.subr.bf16.mxu1 %v15019_v1  ;;  %13178 = vmatprep.subr.bf16.mxu0 %v15019_v1 }
 0x96d   : > { %13163 = vmatmul.mubr.msk.bf16.vlgmr.msra.gmra.mrb[40].mxu0 %vm486_vm1, %v15203_v7 }
 0x96e   : > { %13171 = vmatpush3.bf16.msra.mxu1 %v14482_v42  ;;  %13186 = vmatprep.mubr.msk.bf16.mxu0 %vm15020_vm0, %v15019_v1 }
 0x96f   : > { %13172 = vmatprep.subr.bf16.mxu1 %v15019_v1  ;;  %13179 = vmatpush3.bf16.msra.mxu0 %v14487_v19 }
 0x970   : > { %13180 = vmatprep.subr.bf16.mxu0 %v15019_v1 }
 0x972   : > { %13173 = vmatpush3.bf16.msra.mxu1 %v14484_v43 }
 0x973   : > { %13190 = vmatprep.subr.bf16.mxu1 %v15019_v1  ;;  %13181 = vmatpush3.bf16.msra.mxu0 %v14488_v22 }
 0x974   : > { %13182 = vmatprep.subr.bf16.mxu0 %v15019_v1 }
 0x975   : > { %13175 = vmatmul.mubr.msk.bf16.vlgmr.msra.gmra.mrb[52].mxu1 %vm486_vm1, %v15203_v7 }
 0x976   : > { %13192 = vmatprep.mubr.msk.bf16.mxu1 %vm15020_vm0, %v15019_v1 }
 0x977   : > { %13183 = vmatpush3.bf16.msra.mxu0 %v14489_v23 }
 0x978   : > { %13184 = vmatprep.subr.bf16.mxu0 %v15019_v1 }
 0x97b   : > { %13185 = vmatpush3.bf16.msra.mxu0 %v14490_v24 }
 0x97c   : > { %13202 = vmatprep.subr.bf16.mxu0 %v15019_v1 }
 0x97e   : > { %13187 = vmatmul.mubr.msk.bf16.vlgmr.msra.gmra.mrb[44].mxu0 %vm486_vm1, %v15203_v7 }
 0x97f   : > { %13204 = vmatprep.mubr.msk.bf16.mxu0 %vm15020_vm0, %v15019_v1 }
 0xa30   : > { %v15582_v44 = vpop.f32.mrb[36].mxu0 }
 0xa31   : > { %v13146_v45 = vpop.f32.mrb[37].mxu0 }
 0xa32   : > { %v2117_v46 = vpop.f32.mrb[38].mxu0  ;;  %v11194_v45 = vld [vmem:[%s17809_s11 + $0x3] ss:$0 sm:$0xff] }
 0xa33   : > { %v13147_v47 = vpop.f32.mrb[39].mxu0 }
 0xa38   : > { %v15584_v48 = vpop.f32.mrb[48].mxu1 }
 0xa39   : > { %v2166_v50 = vpack.c.bf16 %v15584_v48, %v15582_v44  ;;  %v13152_v51 = vpop.f32.mrb[49].mxu1 }
 0xa3a   : > { %v2163_v52 = vpop.f32.mrb[50].mxu1 }
 0xa3b   : > { %v13153_v55 = vpop.f32.mrb[51].mxu1 }
 0xa40   : > { %v2234_v56 = vpop.f32.mrb[40].mxu0 }
 0xa41   : > { %v13164_v57 = vpop.f32.mrb[41].mxu0  ;;  %v2235_v11 = vadd.f32 %v11180_v4, %v2234_v56 }
 0xa42   : > { %v2237_v59 = vpop.f32.mrb[42].mxu0 }
 0xa43   : > { %v13165_v61 = vpop.f32.mrb[43].mxu0  ;;  %v12284_v14 = vpack.c.bf16 %v2235_v11, %v2235_v11  ;;  %v2238_v17 = vadd.f32 %v11180_v4, %v2237_v59  ;;  %v14493_v4 = vld [vmem:[%s17810_s12 + $0x10] sm:$0xff]  }
 0xa45   : > { %v12285_v18 = vpack.c.bf16 %v2238_v17, %v2238_v17 }
 0xa48   : > { %v2308_v63 = vpop.f32.mrb[52].mxu1 }
 0xa49   : > { %v2309_v0 = vadd.f32 %v11187_v62, %v2308_v63  ;;  %v13176_v2 = vpop.f32.mrb[53].mxu1 }
 0xa4a   : > { %v2311_v3 = vpop.f32.mrb[54].mxu1  ;;  %v14491_v2 = vld [vmem:[%s17810_s12] sm:$0xff]  }
 0xa4b   : > { %v12286_v8 = vpack.c.bf16 %v2309_v0, %v2309_v0  ;;  %v13177_v9 = vpop.f32.mrb[55].mxu1  ;;  %v2312_v10 = vadd.f32 %v11187_v62, %v2311_v3  ;;  %v14492_v3 = vld [vmem:[%s17810_s12 + $0x8] sm:$0xff]  }
 0xa4c   : > { %v14495_v9 = vld [vmem:[%s17800_s2 + $0x20] sm:$0xff]  }
 0xa4d   : > { %v2411_v12 = vsel %vm1057_vm2, %v12286_v8, 0  ;;  %v12287_v13 = vpack.c.bf16 %v2312_v10, %v2312_v10  ;;  %v14494_v8 = vld [vmem:[%s17810_s12 + $0x18] sm:$0xff]  }
 0xa4e   : > { %13191 = vmatpush3.bf16.xpose.msra.mxu1 %v2411_v12 }
 0xa4f   : > { %13196 = vmatprep.subr.bf16.mxu1 %v15019_v1  ;;  %v2457_v15 = vsel %vm1057_vm2, %v12287_v13, 0 }
 0xa51   : > { %v2382_v46 = vpop.f32.mrb[44].mxu0 }
 0xa52   : > { %v2383_v47 = vadd.f32 %v11194_v45, %v2382_v46  ;;  %v13188_v51 = vpop.f32.mrb[45].mxu0 }
 0xa53   : > { %v2385_v56 = vpop.f32.mrb[46].mxu0 }
 0xa54   : > { %v12288_v52 = vpack.c.bf16 %v2383_v47, %v2383_v47  ;;  %v13189_v57 = vpop.f32.mrb[47].mxu0  ;;  %v2386_v59 = vadd.f32 %v11194_v45, %v2385_v56  ;;  %v2701_v45 = vstv %s597_s21  ;;  %s11391_s21 = sld [smem:[#allocation2 + $0x6]] }
 0xa55   : > { %13193 = vmatmul.mubr.msk.bf16.vlgmr.msra.gmra.mrb[56].mxu1 %vm1057_vm2, %v12284_v14 }
 0xa56   : > { %13197 = vmatpush3.bf16.xpose.msra.mxu1 %v2457_v15  ;;  %13198 = vmatprep.mubr.msk.bf16.mxu1 %vm15020_vm0, %v15019_v1  ;;  %v2527_v55 = vsel %vm1178_vm3, %v12288_v52, 0  ;;  %v12289_v61 = vpack.c.bf16 %v2386_v59, %v2386_v59 }
 0xa57   : > { %13208 = vmatprep.subr.bf16.mxu1 %v15019_v1  ;;  %13203 = vmatpush3.bf16.msra.mxu0 %v2527_v55 }
 0xa58   : > { %13214 = vmatprep.subr.bf16.mxu0 %v15019_v1  ;;  %v2573_v62 = vsel %vm1178_vm3, %v12289_v61, 0 }
 0xa5d   : > { %13199 = vmatmul.mubr.msk.bf16.vlgmr.msra.gmra.mrb[60].mxu1 %vm1057_vm2, %v12285_v18 }
 0xa5e   : > { %13210 = vmatprep.mubr.msk.bf16.mxu1 %vm15020_vm0, %v15019_v1  ;;  %13209 = vmatpush3.bf16.msra.mxu1 %v2573_v62 }
 0xa5f   : > { %13226 = vmatprep.subr.bf16.mxu1 %v15019_v1 }
 0xb28   : > { %v2447_v25 = vpop.f32.mrb[56].mxu1 }
 0xb29   : > { %v13194_v26 = vpop.f32.mrb[57].mxu1  ;;  %v2499_v27 = vsel %vm1150_vm4, %v2447_v25, -inf }
 0xb2a   : > { %2500 = vmax.xlane.f32.xlu0 %v2499_v27  ;;  %v2450_v28 = vpop.f32.mrb[58].mxu1 }
 0xb2b   : > { %v13195_v29 = vpop.f32.mrb[59].mxu1  ;;  %v14496_v28 = vld [vmem:[%s17800_s2 + $0x28] sm:$0xff]  }
 0xb2c   : > { %v14508_v29 = vld [vmem:[%s17802_s4 + $0x48] sm:$0xff]  }
 0xb30   : > { %v2493_v30 = vpop.f32.mrb[60].mxu1 }
 0xb31   : > { %v13200_v31 = vpop.f32.mrb[61].mxu1  ;;  %v2502_v32 = vsel %vm1150_vm4, %v2493_v30, -inf }
 0xb32   : > { %2503 = vmax.xlane.f32.xlu1 %v2502_v32  ;;  %v2496_v33 = vpop.f32.mrb[62].mxu1  ;;  %v14510_v31 = vld [vmem:[%s17802_s4 + $0x58] sm:$0xff]   ;;  %v14511_v32 = vld [vmem:[%s17802_s4 + $0x60] sm:$0xff]  }
 0xb33   : > { %v13201_v34 = vpop.f32.mrb[63].mxu1  ;;  %v14512_v33 = vld [vmem:[%s17802_s4 + $0x68] sm:$0xff]  }
 0xb34   : > { %v601_v34 = vrot.slane %v15196_v5, 7 }
 0xbb7   : > { %v2501_v35 = vpop.xlane.xlu0 %2500 }
 0xbb8   : > { %v2505_v36 = vsub.f32 %v2447_v25, %v2501_v35  ;;  %v608_v35 = vrot.slane %v15196_v5, 1 }
 0xbba   : > { %v2507_v7 = vmul.f32 1.442695, %v2505_v36  ;;  %v602_v36 = vrot.slane %v15198_v6, 7 }
 0xbbc   : > { %14759 = vpow2.f32 %v2507_v7  ;;  %v609_v7 = vrot.slane %v15198_v6, 1 }
 0xbbf   : > { %v2504_v37 = vpop.xlane.xlu1 %2503 }
 0xbc0   : > { %v2506_v38 = vsub.f32 %v2493_v30, %v2504_v37  ;;  %v14509_v30 = vld [vmem:[%s17802_s4 + $0x50] sm:$0xff]   ;;  %v615_v37 = vadd.f32 %v608_v35, %v601_v34 }
 0xbc2   : > { %v2509_v39 = vmul.f32 1.442695, %v2506_v38  ;;  %v617_v38 = vmul.f32 2.0, %v15196_v5 }
 0xbc4   : > { %14761 = vpow2.f32 %v2509_v39  ;;  %v616_v39 = vadd.f32 %v609_v7, %v602_v36 }
 0xbc6   : > { %v14760_v40 = vpop.eup %14759 }
 0xbc7   : > { %v2511_v41 = vsel %vm1150_vm4, %v14760_v40, 0.0 }
 0xbc8   : > { %2512 = vadd.xlane.f32.xlu0 %v2511_v41  ;;  %v619_v41 = vsub.f32 %v615_v37, %v617_v38 }
 0xbca   : > { %v2702_v55 = vmul.f32 %v2701_v45, %v619_v41 }
 0xbce   : > { %v14762_v42 = vpop.eup %14761 }
 0xbcf   : > { %v2514_v43 = vsel %vm1150_vm4, %v14762_v42, 0.0 }
 0xbd0   : > { %2515 = vadd.xlane.f32.xlu1 %v2514_v43  ;;  %v11173_v43 = vld [vmem:[%s17811_s13] ss:$0 sm:$0xff] }
 0xbde   : > { %2617 = vrot.lane.b32.xlu0 %v1717_v21, %s17818_s1  ;;  %s17834_s1 = smov 32  }
 0xbe1   : > { %2620 = vrot.lane.b32.xlu1 %v2166_v50, %s17813_s22  ;;  %s15672_s22 = scalar_lea.vmem [#allocation5], %s14362_s27 }
 0xbe2   : > { %487 = vst.msk [vmem:[%s15672_s22] sm:$0xff] %vm486_vm1, %v15196_v5  ;;  %488 = vst.msk [vmem:[%s15672_s22 + $0x8] sm:$0xff] %vm486_vm1, %v15198_v6 }
 0xc55   : > { %v2513_v16 = vpop.xlane.xlu0 %2512 }
 0xc56   : > { %14763 = vrcp.f32 %v2513_v16 }
 0xc59   : > { %v2618_v22 = vpop.permute.xlu0 %2617 }
 0xc5a   : > { %v2627_v24 = vsel %vm1057_vm2, %v1268_v54, %v2618_v22  ;;  %v14507_v54 = vld [vmem:[%s17802_s4 + $0x40] sm:$0xff]  }
 0xc5d   : > { %v2516_v20 = vpop.xlane.xlu1 %2515 }
 0xc5e   : > { %14765 = vrcp.f32 %v2516_v20 }
 0xc60   : > { %v14764_v21 = vpop.eup %14763 }
 0xc61   : > { %v2518_v44 = vmul.f32 %v14764_v21, %v14760_v40  ;;  %v2621_v23 = vpop.permute.xlu1 %2620  ;;  %v618_v40 = vmul.f32 2.0, %v15198_v6  ;;  %v2708_v21 = vstv %s11195_s26 }
 0xc62   : > { %v2630_v25 = vsel %vm2628_vm5, %v2627_v24, %v2621_v23 }
 0xc63   : > { %v2521_v48 = vpack.c.bf16 %v2518_v44, %v2518_v44  ;;  %v620_v46 = vsub.f32 %v616_v39, %v618_v40  ;;  %v14896_v40 = vld [vmem:[%s17807_s9] ss:$0 sm:$0xff] }
 0xc65   : > { %13205 = vmatmul.mubr.msk.bf16.vlgmr.msra.gmra.mrb[48].mxu0 %vm1150_vm4, %v2521_v48  ;;  %v2703_v16 = vmul.f32 %v2701_v45, %v620_v46 }
 0xc66   : > { %13222 = vmatprep.mubr.msk.bf16.mxu0 %vm15020_vm0, %v15019_v1  ;;  %13215 = vmatpush3.bf16.msra.mxu0 %v14491_v2 }
 0xc67   : > { %13216 = vmatprep.subr.bf16.mxu0 %v15019_v1 }
 0xc68   : > { %v14766_v50 = vpop.eup %14765 }
 0xc69   : > { %v2520_v63 = vmul.f32 %v14766_v50, %v14762_v42  ;;  %v11202_v42 = vld [vmem:[%s17803_s5] ss:$0 sm:$0xff] }
 0xc6a   : > { %13217 = vmatpush3.bf16.msra.mxu0 %v14492_v3  ;;  %v814_v51 = vadd.f32 %v11202_v42, %v15323_v58  ;;  %v817_v59 = vadd.f32 %v11202_v42, %v15325_v60  ;;  %v14499_v60 = vld [vmem:[%s17804_s6] sm:$0xff]  }
 0xc6b   : > { %v2522_v0 = vpack.c.bf16 %v2520_v63, %v2520_v63  ;;  %13218 = vmatprep.subr.bf16.mxu0 %v15019_v1 }
 0xc6d   : > { %13211 = vmatmul.mubr.msk.bf16.vlgmr.msra.gmra.mrb[64].mxu1 %vm1150_vm4, %v2522_v0 }
 0xc6e   : > { %13234 = vmatprep.mubr.msk.bf16.mxu1 %vm15020_vm0, %v15019_v1  ;;  %13219 = vmatpush3.bf16.msra.mxu0 %v14493_v4  ;;  %v14502_v4 = vld [vmem:[%s17804_s6 + $0x18] sm:$0xff]  }
 0xc6f   : > { %13220 = vmatprep.subr.bf16.mxu0 %v15019_v1  ;;  %13227 = vmatpush3.bf16.msra.mxu1 %v14495_v9  ;;  %v14504_v9 = vld [vmem:[%s17805_s7 + $0x8] sm:$0xff]  }
 0xc70   : > { %13228 = vmatprep.subr.bf16.mxu1 %v15019_v1 }
 0xc72   : > { %13221 = vmatpush3.bf16.msra.mxu0 %v14494_v8  ;;  %v14503_v8 = vld [vmem:[%s17805_s7] sm:$0xff]  }
 0xc73   : > { %13238 = vmatprep.subr.bf16.mxu0 %v15019_v1  ;;  %13229 = vmatpush3.bf16.msra.mxu1 %v14496_v28  ;;  %v14516_v28 = vld [vmem:[%s17806_s8 + $0x8] sm:$0xff]  }
 0xc74   : > { %13230 = vmatprep.subr.bf16.mxu1 %v15019_v1 }
 0xc77   : > { %13231 = vmatpush3.bf16.msra.mxu1 %v14497_v49  ;;  %v14517_v49 = vld [vmem:[%s17806_s8 + $0x10] sm:$0xff]  }
 0xc78   : > { %13232 = vmatprep.subr.bf16.mxu1 %v15019_v1 }
 0xc7b   : > { %13233 = vmatpush3.bf16.msra.mxu1 %v14498_v53 }
 0xc7c   : > { %13258 = vmatprep.subr.bf16.mxu1 %v15019_v1 }
 0xd38   : > { %v2563_v10 = vpop.f32.mrb[48].mxu0 }
 0xd39   : > { %v13206_v11 = vpop.f32.mrb[49].mxu0 }
 0xd3a   : > { %v2566_v12 = vpop.f32.mrb[50].mxu0  ;;  %v14506_v11 = vld [vmem:[%s17805_s7 + $0x18] sm:$0xff]  }
 0xd3b   : > { %v13207_v13 = vpop.f32.mrb[51].mxu0  ;;  %v14513_v12 = vld [vmem:[%s17802_s4 + $0x70] sm:$0xff]  }
 0xd3c   : > { %v14514_v13 = vld [vmem:[%s17802_s4 + $0x78] sm:$0xff]  }
 0xd40   : > { %v2609_v14 = vpop.f32.mrb[64].mxu1 }
 0xd41   : > { %v2615_v15 = vpack.c.bf16 %v2609_v14, %v2563_v10  ;;  %v13212_v17 = vpop.f32.mrb[65].mxu1  ;;  %v14505_v10 = vld [vmem:[%s17805_s7 + $0x10] sm:$0xff]   ;;  %v11401_v14 = vld [vmem:[%s17801_s3 + $0x1] ss:$0 sm:$0xff] }
 0xd42   : > { %v2612_v18 = vpop.f32.mrb[66].mxu1 }
 0xd43   : > { %v13213_v19 = vpop.f32.mrb[67].mxu1  ;;  %2623 = vrot.lane.b32.xlu1 %v2615_v15, %s17816_s28  ;;  %s17833_s28 = smov 16  }
 0xdb5   : > { %v2624_v26 = vpop.permute.xlu1 %2623 }
 0xdb6   : > { %v2633_v27 = vsel %vm2631_vm6, %v2630_v25, %v2624_v26  ;;  %v14515_v26 = vld [vmem:[%s17806_s8] sm:$0xff]  }
 0xdb7   : > { %13223 = vmatmul.mubr.msk.bf16.vlgmr.msra.gmra.mrb[52].mxu0 %vm486_vm1, %v2633_v27 }
 0xdb8   : > { %13254 = vmatprep.mubr.msk.bf16.mxu0 %vm15020_vm0, %v15019_v1  ;;  %13239 = vmatpush3.bf16.msra.mxu0 %v14507_v54 }
 0xdb9   : > { %13240 = vmatprep.subr.bf16.mxu0 %v15019_v1 }
 0xdbc   : > { %13241 = vmatpush3.bf16.msra.mxu0 %v14508_v29 }
 0xdbd   : > { %13242 = vmatprep.subr.bf16.mxu0 %v15019_v1 }
 0xdc0   : > { %13243 = vmatpush3.bf16.msra.mxu0 %v14509_v30  ;;  %v14518_v30 = vld [vmem:[%s17806_s8 + $0x18] sm:$0xff]  }
 0xdc1   : > { %13244 = vmatprep.subr.bf16.mxu0 %v15019_v1 }
 0xdc4   : > { %13245 = vmatpush3.bf16.msra.mxu0 %v14510_v31 }
 0xdc5   : > { %13246 = vmatprep.subr.bf16.mxu0 %v15019_v1 }
 0xdc8   : > { %13247 = vmatpush3.bf16.msra.mxu0 %v14511_v32 }
 0xdc9   : > { %13248 = vmatprep.subr.bf16.mxu0 %v15019_v1 }
 0xdcc   : > { %13249 = vmatpush3.bf16.msra.mxu0 %v14512_v33  ;;  %v14895_v33 = vld [vmem:[%s17808_s10] ss:$0 sm:$0xff] }
 0xdcd   : > { %13250 = vmatprep.subr.bf16.mxu0 %v15019_v1 }
 0xdd0   : > { %13251 = vmatpush3.bf16.msra.mxu0 %v14513_v12 }
 0xdd1   : > { %13252 = vmatprep.subr.bf16.mxu0 %v15019_v1 }
 0xdd4   : > { %13253 = vmatpush3.bf16.msra.mxu0 %v14514_v13 }
 0xdd5   : > { %13282 = vmatprep.subr.bf16.mxu0 %v15019_v1 }
 0xe8a   : > { %v2694_v47 = vpop.f32.mrb[52].mxu0 }
 0xe8b   : > { %v2695_v52 = vadd.f32 %v11173_v43, %v2694_v47  ;;  %v13224_v56 = vpop.f32.mrb[53].mxu0 }
 0xe8c   : > { %v2697_v57 = vpop.f32.mrb[54].mxu0 }
 0xe8d   : > { %v2704_v61 = vadd.f32 %v2695_v52, %v814_v51  ;;  %v2698_v62 = vadd.f32 %v11173_v43, %v2697_v57  ;;  %v13225_v20 = vpop.f32.mrb[55].mxu0 }
 0xe8f   : > { %v2706_v44 = vadd.f32 %v2704_v61, %v2702_v55  ;;  %v2705_v48 = vadd.f32 %v2698_v62, %v817_v59  ;;  %v14897_v59 = vld [vmem:[%s17809_s11] ss:$0 sm:$0xff] }
 0xe91   : > { %v2709_v50 = vmul.f32 %v2708_v21, %v2706_v44  ;;  %v2707_v63 = vadd.f32 %v2705_v48, %v2703_v16 }
 0xe93   : > { %v15741_v0 = vadd.f32 %v2709_v50, %v15196_v5  ;;  %v2710_v58 = vmul.f32 %v2708_v21, %v2707_v63  ;;  %v14500_v5 = vld [vmem:[%s17804_s6 + $0x8] sm:$0xff]  }
 0xe95   : > { %11388 = vst.msk [vmem:[%s15672_s22 + $0x10] sm:$0xff] %vm486_vm1, %v15741_v0  ;;  %v15747_v2 = vadd.f32 %v2710_v58, %v15198_v6  ;;  %v14501_v6 = vld [vmem:[%s17804_s6 + $0x10] sm:$0xff]  }
 0xe97   : > { %11389 = vst.msk [vmem:[%s15672_s22 + $0x18] sm:$0xff] %vm486_vm1, %v15747_v2  ;;  %v15757_v3 = vpack.c.bf16 %v15747_v2, %v15741_v0 }
 0xe99   : > { %13235 = vmatmul.mubr.msk.bf16.vlgmr.msra.gmra.mrb[68].mxu1 %vm486_vm1, %v15757_v3 }
 0xe9a   : > { %13259 = vmatpush3.bf16.msra.mxu1 %v14499_v60  ;;  %13266 = vmatprep.mubr.msk.bf16.mxu1 %vm15020_vm0, %v15019_v1 }
 0xe9b   : > { %13260 = vmatprep.subr.bf16.mxu1 %v15019_v1 }
 0xe9e   : > { %13261 = vmatpush3.bf16.msra.mxu1 %v14500_v5 }
 0xe9f   : > { %13262 = vmatprep.subr.bf16.mxu1 %v15019_v1 }
 0xea2   : > { %13263 = vmatpush3.bf16.msra.mxu1 %v14501_v6 }
 0xea3   : > { %13264 = vmatprep.subr.bf16.mxu1 %v15019_v1 }
 0xea6   : > { %13265 = vmatpush3.bf16.msra.mxu1 %v14502_v4 }
 0xea7   : > { %13270 = vmatprep.subr.bf16.mxu1 %v15019_v1 }
 0xea9   : > { %13267 = vmatmul.mubr.msk.bf16.vlgmr.msra.gmra.mrb[72].mxu1 %vm486_vm1, %v15757_v3 }
 0xeaa   : > { %13271 = vmatpush3.bf16.msra.mxu1 %v14503_v8  ;;  %13278 = vmatprep.mubr.msk.bf16.mxu1 %vm15020_vm0, %v15019_v1 }
 0xeab   : > { %13272 = vmatprep.subr.bf16.mxu1 %v15019_v1 }
 0xeae   : > { %13273 = vmatpush3.bf16.msra.mxu1 %v14504_v9 }
 0xeaf   : > { %13274 = vmatprep.subr.bf16.mxu1 %v15019_v1 }
 0xeb2   : > { %13275 = vmatpush3.bf16.msra.mxu1 %v14505_v10 }
 0xeb3   : > { %13276 = vmatprep.subr.bf16.mxu1 %v15019_v1 }
 0xeb6   : > { %13277 = vmatpush3.bf16.msra.mxu1 %v14506_v11 }
 0xeb7   : > { %13294 = vmatprep.subr.bf16.mxu1 %v15019_v1 }
 0xeb9   : > { %13279 = vmatmul.mubr.msk.bf16.vlgmr.msra.gmra.mrb[76].mxu1 %vm486_vm1, %v15757_v3 }
 0xeba   : > { %13296 = vmatprep.mubr.msk.bf16.mxu1 %vm15020_vm0, %v15019_v1 }
 0xf6c   : > { %v2817_v15 = vpop.f32.mrb[68].mxu1 }
 0xf6d   : > { %v2818_v17 = vadd.f32 %v11401_v14, %v2817_v15  ;;  %v13236_v18 = vpop.f32.mrb[69].mxu1 }
 0xf6e   : > { %v2820_v19 = vpop.f32.mrb[70].mxu1 }
 0xf6f   : > { %v2821_v22 = vadd.f32 %v11401_v14, %v2820_v19  ;;  %v13237_v23 = vpop.f32.mrb[71].mxu1  ;;  %v2824_v24 = vmax.f32 %v2818_v17, 0.0 }
 0xf71   : > { %v2825_v25 = vmax.f32 %v2821_v22, 0.0 }
 0xf73   : > { %v2826_v27 = vpack.c.bf16 %v2825_v25, %v2824_v24 }
 0xf75   : > { %13255 = vmatmul.mubr.bf16.vlgmr.msra.gmra.mrb[56].mxu0 %v2826_v27 }
 0xf76   : > { %13283 = vmatpush3.bf16.msra.mxu0 %v14515_v26  ;;  %13290 = vmatprep.mubr.msk.bf16.mxu0 %vm15020_vm0, %v15019_v1 }
 0xf77   : > { %13284 = vmatprep.subr.bf16.mxu0 %v15019_v1 }
 0xf7a   : > { %13285 = vmatpush3.bf16.msra.mxu0 %v14516_v28 }
 0xf7b   : > { %13286 = vmatprep.subr.bf16.mxu0 %v15019_v1 }
 0xf7c   : > { %v3007_v53 = vpop.f32.mrb[72].mxu1 }
 0xf7d   : > { %v13268_v54 = vpop.f32.mrb[73].mxu1  ;;  %v3008_v41 = vadd.f32 %v14896_v40, %v3007_v53  ;;  %v14519_v53 = vld [vmem:[%s17805_s7 + $0x20] sm:$0xff]  }
 0xf7e   : > { %v3010_v29 = vpop.f32.mrb[74].mxu1  ;;  %13287 = vmatpush3.bf16.msra.mxu0 %v14517_v49 }
 0xf7f   : > { %v13269_v31 = vpop.f32.mrb[75].mxu1  ;;  %13288 = vmatprep.subr.bf16.mxu0 %v15019_v1  ;;  %v12290_v43 = vpack.c.bf16 %v3008_v41, %v3008_v41  ;;  %v3011_v46 = vadd.f32 %v14896_v40, %v3010_v29  ;;  %v14529_v40 = vld [vmem:[%s17806_s8 + $0x30] sm:$0xff]   ;;  %v14530_v41 = vld [vmem:[%s17806_s8 + $0x38] sm:$0xff]  }
 0xf80   : > { %v14520_v31 = vld [vmem:[%s17804_s6 + $0x20] sm:$0xff]  }
 0xf81   : > { %v12291_v47 = vpack.c.bf16 %v3011_v46, %v3011_v46 }
 0xf82   : > { %13289 = vmatpush3.bf16.msra.mxu0 %v14518_v30 }
 0xf83   : > { %13306 = vmatprep.subr.bf16.mxu0 %v15019_v1 }
 0xf85   : > { %13291 = vmatmul.mubr.msk.bf16.vlgmr.msra.gmra.mrb[60].mxu0 %vm486_vm1, %v15757_v3 }
 0xf86   : > { %13308 = vmatprep.mubr.msk.bf16.mxu0 %vm15020_vm0, %v15019_v1 }
 0xf8c   : > { %v3080_v32 = vpop.f32.mrb[76].mxu1 }
 0xf8d   : > { %v3081_v34 = vadd.f32 %v14895_v33, %v3080_v32  ;;  %v13280_v35 = vpop.f32.mrb[77].mxu1  ;;  %v14521_v32 = vld [vmem:[%s17805_s7 + $0x28] sm:$0xff]  }
 0xf8e   : > { %v3083_v36 = vpop.f32.mrb[78].mxu1  ;;  %v14523_v35 = vld [vmem:[%s17805_s7 + $0x30] sm:$0xff]  }
 0xf8f   : > { %v12292_v7 = vpack.c.bf16 %v3081_v34, %v3081_v34  ;;  %v13281_v37 = vpop.f32.mrb[79].mxu1  ;;  %v3084_v38 = vadd.f32 %v14895_v33, %v3083_v36  ;;  %v14522_v34 = vld [vmem:[%s17804_s6 + $0x28] sm:$0xff]   ;;  %v14524_v36 = vld [vmem:[%s17804_s6 + $0x30] sm:$0xff]  }
 0xf90   : > { %v14526_v37 = vld [vmem:[%s17804_s6 + $0x38] sm:$0xff]  }
 0xf91   : > { %v3182_v39 = vsel %vm1057_vm2, %v12292_v7, 0  ;;  %v12293_v42 = vpack.c.bf16 %v3084_v38, %v3084_v38  ;;  %v14525_v7 = vld [vmem:[%s17805_s7 + $0x38] sm:$0xff]   ;;  %v14527_v38 = vld [vmem:[%s17806_s8 + $0x20] sm:$0xff]  }
 0xf92   : > { %13295 = vmatpush3.bf16.xpose.msra.mxu1 %v3182_v39  ;;  %v14528_v39 = vld [vmem:[%s17806_s8 + $0x28] sm:$0xff]  }
 0xf93   : > { %13300 = vmatprep.subr.bf16.mxu1 %v15019_v1  ;;  %v3228_v45 = vsel %vm1057_vm2, %v12293_v42, 0 }
 0xf99   : > { %13297 = vmatmul.mubr.msk.bf16.vlgmr.msra.gmra.mrb[80].mxu1 %vm1057_vm2, %v12290_v43 }
 0xf9a   : > { %13301 = vmatpush3.bf16.xpose.msra.mxu1 %v3228_v45  ;;  %13302 = vmatprep.mubr.msk.bf16.mxu1 %vm15020_vm0, %v15019_v1 }
 0xf9b   : > { %13312 = vmatprep.subr.bf16.mxu1 %v15019_v1 }
 0xfa1   : > { %13303 = vmatmul.mubr.msk.bf16.vlgmr.msra.gmra.mrb[84].mxu1 %vm1057_vm2, %v12291_v47 }
 0xfa2   : > { %13314 = vmatprep.mubr.msk.bf16.mxu1 %vm15020_vm0, %v15019_v1 }
0x1048   : > { %v15849_v51 = vpop.f32.mrb[56].mxu0 }
0x1049   : > { %v13256_v52 = vpop.f32.mrb[57].mxu0 }
0x104a   : > { %v15851_v55 = vpop.f32.mrb[58].mxu0 }
0x104b   : > { %v13257_v56 = vpop.f32.mrb[59].mxu0 }
0x1058   : > { %v3153_v57 = vpop.f32.mrb[60].mxu0 }
0x1059   : > { %v3154_v61 = vadd.f32 %v14897_v59, %v3153_v57  ;;  %v13292_v62 = vpop.f32.mrb[61].mxu0 }
0x105a   : > { %v3156_v16 = vpop.f32.mrb[62].mxu0  ;;  %v14898_v62 = vld [vmem:[%s17808_s10 + $0x1] ss:$0 sm:$0xff] }
0x105b   : > { %v12294_v20 = vpack.c.bf16 %v3154_v61, %v3154_v61  ;;  %v3157_v21 = vadd.f32 %v14897_v59, %v3156_v16  ;;  %v13293_v44 = vpop.f32.mrb[63].mxu0 }
0x105d   : > { %v3298_v48 = vsel %vm1178_vm3, %v12294_v20, 0  ;;  %v12295_v50 = vpack.c.bf16 %v3157_v21, %v3157_v21 }
0x105e   : > { %13307 = vmatpush3.bf16.msra.mxu0 %v3298_v48 }
0x105f   : > { %v3344_v63 = vsel %vm1178_vm3, %v12295_v50, 0  ;;  %13318 = vmatprep.subr.bf16.mxu0 %v15019_v1 }
0x1060   : > { %13313 = vmatpush3.bf16.msra.mxu1 %v3344_v63 }
0x1061   : > { %13330 = vmatprep.subr.bf16.mxu1 %v15019_v1 }
0x106c   : > { %v3218_v58 = vpop.f32.mrb[80].mxu1 }
0x106d   : > { %v13298_v60 = vpop.f32.mrb[81].mxu1  ;;  %v3270_v5 = vsel %vm1150_vm4, %v3218_v58, -inf }
0x106e   : > { %3271 = vmax.xlane.f32.xlu0 %v3270_v5  ;;  %v3221_v6 = vpop.f32.mrb[82].mxu1 }
0x106f   : > { %v13299_v4 = vpop.f32.mrb[83].mxu1  ;;  %v14899_v6 = vld [vmem:[%s17807_s9 + $0x1] ss:$0 sm:$0xff] }
0x1074   : > { %v3264_v8 = vpop.f32.mrb[84].mxu1 }
0x1075   : > { %v13304_v9 = vpop.f32.mrb[85].mxu1  ;;  %v3273_v10 = vsel %vm1150_vm4, %v3264_v8, -inf }
0x1076   : > { %3274 = vmax.xlane.f32.xlu1 %v3273_v10  ;;  %v3267_v11 = vpop.f32.mrb[86].mxu1 }
0x1077   : > { %v13305_v12 = vpop.f32.mrb[87].mxu1 }
0x10fb   : > { %v3272_v13 = vpop.xlane.xlu0 %3271 }
0x10fc   : > { %v3276_v14 = vsub.f32 %v3218_v58, %v3272_v13 }
0x10fe   : > { %v3278_v18 = vmul.f32 1.442695, %v3276_v14 }
0x1103   : > { %v3275_v15 = vpop.xlane.xlu1 %3274 }
0x1104   : > { %v3277_v17 = vsub.f32 %v3264_v8, %v3275_v15  ;;  %v14900_v15 = vld [vmem:[%s17809_s11 + $0x1] ss:$0 sm:$0xff] }
0x1106   : > { %v3280_v19 = vmul.f32 1.442695, %v3277_v17 }
0x1108   : > { %14767 = vpow2.f32 %v3280_v19 }
0x1109   : > { %14769 = vpow2.f32 %v3278_v18 }
0x1112   : > { %v14768_v22 = vpop.eup %14767 }
0x1113   : > { %v3285_v23 = vsel %vm1150_vm4, %v14768_v22, 0.0  ;;  %v14770_v24 = vpop.eup %14769 }
0x1114   : > { %3286 = vadd.xlane.f32.xlu0 %v3285_v23  ;;  %v3282_v25 = vsel %vm1150_vm4, %v14770_v24, 0.0 }
0x1118   : > { %3283 = vadd.xlane.f32.xlu0 %v3282_v25 }
0x11a1   : > { %v3287_v26 = vpop.xlane.xlu0 %3286 }
0x11a2   : > { %14771 = vrcp.f32 %v3287_v26 }
0x11a5   : > { %v3284_v27 = vpop.xlane.xlu0 %3283 }
0x11a6   : > { %14773 = vrcp.f32 %v3284_v27 }
0x11ac   : > { %v14772_v28 = vpop.eup %14771 }
0x11ad   : > { %v3291_v49 = vmul.f32 %v14772_v28, %v14768_v22 }
0x11af   : > { %v3293_v54 = vpack.c.bf16 %v3291_v49, %v3291_v49 }
0x11b0   : > { %v14774_v29 = vpop.eup %14773 }
0x11b1   : > { %v3289_v30 = vmul.f32 %v14774_v29, %v14770_v24  ;;  %13315 = vmatmul.mubr.msk.bf16.vlgmr.msra.gmra.mrb[88].mxu1 %vm1150_vm4, %v3293_v54 }
0x11b2   : > { %13331 = vmatpush3.bf16.msra.mxu1 %v14519_v53  ;;  %13338 = vmatprep.mubr.msk.bf16.mxu1 %vm15020_vm0, %v15019_v1 }
0x11b3   : > { %13332 = vmatprep.subr.bf16.mxu1 %v15019_v1  ;;  %v3292_v33 = vpack.c.bf16 %v3289_v30, %v3289_v30 }
0x11b5   : > { %13309 = vmatmul.mubr.msk.bf16.vlgmr.msra.gmra.mrb[64].mxu0 %vm1150_vm4, %v3292_v33 }
0x11b6   : > { %13319 = vmatpush3.bf16.msra.mxu0 %v14520_v31  ;;  %13333 = vmatpush3.bf16.msra.mxu1 %v14521_v32 }
0x11b7   : > { %13320 = vmatprep.subr.bf16.mxu0 %v15019_v1  ;;  %13334 = vmatprep.subr.bf16.mxu1 %v15019_v1 }
0x11b8   : > { %13326 = vmatprep.mubr.msk.bf16.mxu0 %vm15020_vm0, %v15019_v1 }
0x11ba   : > { %13321 = vmatpush3.bf16.msra.mxu0 %v14522_v34  ;;  %13335 = vmatpush3.bf16.msra.mxu1 %v14523_v35 }
0x11bb   : > { %13322 = vmatprep.subr.bf16.mxu0 %v15019_v1  ;;  %13336 = vmatprep.subr.bf16.mxu1 %v15019_v1 }
0x11be   : > { %13323 = vmatpush3.bf16.msra.mxu0 %v14524_v36  ;;  %13337 = vmatpush3.bf16.msra.mxu1 %v14525_v7 }
0x11bf   : > { %13324 = vmatprep.subr.bf16.mxu0 %v15019_v1  ;;  %13354 = vmatprep.subr.bf16.mxu1 %v15019_v1 }
0x11c1   : > { %13339 = vmatmul.mubr.msk.bf16.vlgmr.msra.gmra.mrb[92].mxu1 %vm486_vm1, %v15757_v3 }
0x11c2   : > { %13325 = vmatpush3.bf16.msra.mxu0 %v14526_v37  ;;  %13356 = vmatprep.mubr.msk.bf16.mxu1 %vm15020_vm0, %v15019_v1 }
0x11c3   : > { %13342 = vmatprep.subr.bf16.mxu0 %v15019_v1 }
0x11c5   : > { %13327 = vmatmul.mubr.msk.bf16.vlgmr.msra.gmra.mrb[68].mxu0 %vm486_vm1, %v15757_v3 }
0x11c6   : > { %13343 = vmatpush3.bf16.msra.mxu0 %v14527_v38  ;;  %13350 = vmatprep.mubr.msk.bf16.mxu0 %vm15020_vm0, %v15019_v1 }
0x11c7   : > { %13344 = vmatprep.subr.bf16.mxu0 %v15019_v1 }
0x11ca   : > { %13345 = vmatpush3.bf16.msra.mxu0 %v14528_v39 }
0x11cb   : > { %13346 = vmatprep.subr.bf16.mxu0 %v15019_v1 }
0x11ce   : > { %13347 = vmatpush3.bf16.msra.mxu0 %v14529_v40 }
0x11cf   : > { %13348 = vmatprep.subr.bf16.mxu0 %v15019_v1 }
0x11d2   : > { %13349 = vmatpush3.bf16.msra.mxu0 %v14530_v41 }
0x11d3   : > { %13366 = vmatprep.subr.bf16.mxu0 %v15019_v1 }
0x11d5   : > { %13351 = vmatmul.mubr.msk.bf16.vlgmr.msra.gmra.mrb[72].mxu0 %vm486_vm1, %v15757_v3 }
0x11d6   : > { %13368 = vmatprep.mubr.msk.bf16.mxu0 %vm15020_vm0, %v15019_v1 }
0x1284   : > { %v15930_v42 = vpop.f32.mrb[88].mxu1 }
0x1285   : > { %v13316_v43 = vpop.f32.mrb[89].mxu1 }
0x1286   : > { %v3383_v45 = vpop.f32.mrb[90].mxu1 }
0x1287   : > { %v13317_v46 = vpop.f32.mrb[91].mxu1 }
0x1288   : > { %v15932_v47 = vpop.f32.mrb[64].mxu0 }
0x1289   : > { %v3386_v52 = vpack.c.bf16 %v15930_v42, %v15932_v47  ;;  %v13310_v56 = vpop.f32.mrb[65].mxu0  ;;  %v14557_v42 = vld [vmem:[%s17800_s2 + $0x50] sm:$0xff]   ;;  %v14558_v47 = vld [vmem:[%s17800_s2 + $0x58] sm:$0xff]  }
0x128a   : > { %v3337_v57 = vpop.f32.mrb[66].mxu0 }
0x128b   : > { %v13311_v59 = vpop.f32.mrb[67].mxu0 }
0x1294   : > { %v3526_v61 = vpop.f32.mrb[92].mxu1 }
0x1295   : > { %v3527_v16 = vadd.f32 %v14898_v62, %v3526_v61  ;;  %v13340_v20 = vpop.f32.mrb[93].mxu1  ;;  %v14531_v61 = vld [vmem:[%s17804_s6 + $0x40] sm:$0xff]  }
0x1296   : > { %v3529_v21 = vpop.f32.mrb[94].mxu1 }
0x1297   : > { %v12298_v44 = vpack.c.bf16 %v3527_v16, %v3527_v16  ;;  %v13341_v48 = vpop.f32.mrb[95].mxu1  ;;  %v3530_v63 = vadd.f32 %v14898_v62, %v3529_v21  ;;  %v14532_v16 = vld [vmem:[%s17804_s6 + $0x48] sm:$0xff]  }
0x1298   : > { %v3453_v50 = vpop.f32.mrb[68].mxu0  ;;  %v14534_v48 = vld [vmem:[%s17805_s7 + $0x40] sm:$0xff]  }
0x1299   : > { %v13328_v58 = vpop.f32.mrb[69].mxu0  ;;  %v3628_v60 = vsel %vm1057_vm2, %v12298_v44, 0  ;;  %v3454_v4 = vadd.f32 %v14899_v6, %v3453_v50  ;;  %v12299_v9 = vpack.c.bf16 %v3530_v63, %v3530_v63  ;;  %v14533_v44 = vld [vmem:[%s17804_s6 + $0x50] sm:$0xff]   ;;  %v14535_v63 = vld [vmem:[%s17804_s6 + $0x58] sm:$0xff]  }
0x129a   : > { %v3456_v5 = vpop.f32.mrb[70].mxu0  ;;  %13355 = vmatpush3.bf16.xpose.msra.mxu1 %v3628_v60  ;;  %v14536_v58 = vld [vmem:[%s17805_s7 + $0x48] sm:$0xff]   ;;  %v14537_v60 = vld [vmem:[%s17805_s7 + $0x50] sm:$0xff]  }
0x129b   : > { %v13329_v8 = vpop.f32.mrb[71].mxu0  ;;  %13360 = vmatprep.subr.bf16.mxu1 %v15019_v1  ;;  %v12296_v10 = vpack.c.bf16 %v3454_v4, %v3454_v4  ;;  %v3674_v11 = vsel %vm1057_vm2, %v12299_v9, 0  ;;  %v3457_v12 = vadd.f32 %v14899_v6, %v3456_v5  ;;  %v14538_v5 = vld [vmem:[%s17806_s8 + $0x40] sm:$0xff]   ;;  %v14539_v6 = vld [vmem:[%s17805_s7 + $0x58] sm:$0xff]   ;;  %v14540_v4 = vld [vmem:[%s17806_s8 + $0x48] sm:$0xff]  }
0x129c   : > { %v14541_v8 = vld [vmem:[%s17806_s8 + $0x50] sm:$0xff]   ;;  %v14542_v9 = vld [vmem:[%s17806_s8 + $0x58] sm:$0xff]  }
0x129d   : > { %v12297_v13 = vpack.c.bf16 %v3457_v12, %v3457_v12 }
0x12a1   : > { %13357 = vmatmul.mubr.msk.bf16.vlgmr.msra.gmra.mrb[96].mxu1 %vm1057_vm2, %v12296_v10 }
0x12a2   : > { %13361 = vmatpush3.bf16.xpose.msra.mxu1 %v3674_v11  ;;  %13362 = vmatprep.mubr.msk.bf16.mxu1 %vm15020_vm0, %v15019_v1 }
0x12a3   : > { %13372 = vmatprep.subr.bf16.mxu1 %v15019_v1 }
0x12a8   : > { %v3599_v14 = vpop.f32.mrb[72].mxu0 }
0x12a9   : > { %v3600_v17 = vadd.f32 %v14900_v15, %v3599_v14  ;;  %v13352_v18 = vpop.f32.mrb[73].mxu0  ;;  %13363 = vmatmul.mubr.msk.bf16.vlgmr.msra.gmra.mrb[100].mxu1 %vm1057_vm2, %v12297_v13 }
0x12aa   : > { %v3602_v19 = vpop.f32.mrb[74].mxu0  ;;  %13374 = vmatprep.mubr.msk.bf16.mxu1 %vm15020_vm0, %v15019_v1 }
0x12ab   : > { %v12300_v22 = vpack.c.bf16 %v3600_v17, %v3600_v17  ;;  %v3603_v23 = vadd.f32 %v14900_v15, %v3602_v19  ;;  %v13353_v24 = vpop.f32.mrb[75].mxu0 }
0x12ad   : > { %v3744_v25 = vsel %vm1178_vm3, %v12300_v22, 0  ;;  %v12301_v26 = vpack.c.bf16 %v3603_v23, %v3603_v23 }
0x12ae   : > { %13367 = vmatpush3.bf16.msra.mxu0 %v3744_v25 }
0x12af   : > { %v3790_v27 = vsel %vm1178_vm3, %v12301_v26, 0  ;;  %13378 = vmatprep.subr.bf16.mxu0 %v15019_v1 }
0x12b0   : > { %13373 = vmatpush3.bf16.msra.mxu1 %v3790_v27  ;;  %v14901_v27 = vld [vmem:[%s17808_s10 + $0x2] ss:$0 sm:$0xff] }
0x12b1   : > { %13390 = vmatprep.subr.bf16.mxu1 %v15019_v1 }
0x1374   : > { %v3664_v28 = vpop.f32.mrb[96].mxu1 }
0x1375   : > { %v13358_v49 = vpop.f32.mrb[97].mxu1  ;;  %v3716_v53 = vsel %vm1150_vm4, %v3664_v28, -inf }
0x1376   : > { %3717 = vmax.xlane.f32.xlu0 %v3716_v53  ;;  %v3667_v54 = vpop.f32.mrb[98].mxu1 }
0x1377   : > { %v13359_v29 = vpop.f32.mrb[99].mxu1 }
0x137c   : > { %v3710_v30 = vpop.f32.mrb[100].mxu1 }
0x137d   : > { %v13364_v31 = vpop.f32.mrb[101].mxu1  ;;  %v3719_v32 = vsel %vm1150_vm4, %v3710_v30, -inf }
0x137e   : > { %3720 = vmax.xlane.f32.xlu1 %v3719_v32  ;;  %v3713_v33 = vpop.f32.mrb[102].mxu1  ;;  %v14902_v32 = vld [vmem:[%s17807_s9 + $0x2] ss:$0 sm:$0xff] }
0x137f   : > { %v13365_v34 = vpop.f32.mrb[103].mxu1 }
0x1403   : > { %v3718_v35 = vpop.xlane.xlu0 %3717 }
0x1404   : > { %v3722_v36 = vsub.f32 %v3664_v28, %v3718_v35 }
0x1406   : > { %v3724_v7 = vmul.f32 1.442695, %v3722_v36  ;;  %v14903_v36 = vld [vmem:[%s17809_s11 + $0x2] ss:$0 sm:$0xff] }
0x1408   : > { %14775 = vpow2.f32 %v3724_v7 }
0x140b   : > { %v3721_v37 = vpop.xlane.xlu1 %3720 }
0x140c   : > { %v3723_v38 = vsub.f32 %v3710_v30, %v3721_v37 }
0x140e   : > { %v3726_v39 = vmul.f32 1.442695, %v3723_v38 }
0x1410   : > { %14777 = vpow2.f32 %v3726_v39 }
0x1412   : > { %v14776_v40 = vpop.eup %14775 }
0x1413   : > { %v3728_v41 = vsel %vm1150_vm4, %v14776_v40, 0.0 }
0x1414   : > { %3729 = vadd.xlane.f32.xlu0 %v3728_v41 }
0x141a   : > { %v14778_v43 = vpop.eup %14777 }
0x141b   : > { %v3731_v45 = vsel %vm1150_vm4, %v14778_v43, 0.0 }
0x141c   : > { %3732 = vadd.xlane.f32.xlu1 %v3731_v45 }
0x14a1   : > { %v3730_v46 = vpop.xlane.xlu0 %3729 }
0x14a2   : > { %14779 = vrcp.f32 %v3730_v46 }
0x14a9   : > { %v3733_v56 = vpop.xlane.xlu1 %3732 }
0x14aa   : > { %14781 = vrcp.f32 %v3733_v56 }
0x14ac   : > { %v14780_v57 = vpop.eup %14779 }
0x14ad   : > { %v3735_v59 = vmul.f32 %v14780_v57, %v14776_v40 }
0x14af   : > { %v3738_v62 = vpack.c.bf16 %v3735_v59, %v3735_v59 }
0x14b1   : > { %13369 = vmatmul.mubr.msk.bf16.vlgmr.msra.gmra.mrb[76].mxu0 %vm1150_vm4, %v3738_v62 }
0x14b2   : > { %13379 = vmatpush3.bf16.msra.mxu0 %v14531_v61  ;;  %13386 = vmatprep.mubr.msk.bf16.mxu0 %vm15020_vm0, %v15019_v1 }
0x14b3   : > { %13380 = vmatprep.subr.bf16.mxu0 %v15019_v1 }
0x14b4   : > { %v14782_v20 = vpop.eup %14781 }
0x14b5   : > { %v3737_v21 = vmul.f32 %v14782_v20, %v14778_v43 }
0x14b6   : > { %13381 = vmatpush3.bf16.msra.mxu0 %v14532_v16 }
0x14b7   : > { %13382 = vmatprep.subr.bf16.mxu0 %v15019_v1  ;;  %v3739_v50 = vpack.c.bf16 %v3737_v21, %v3737_v21 }
0x14b9   : > { %13375 = vmatmul.mubr.msk.bf16.vlgmr.msra.gmra.mrb[104].mxu1 %vm1150_vm4, %v3739_v50 }
0x14ba   : > { %13383 = vmatpush3.bf16.msra.mxu0 %v14533_v44  ;;  %13391 = vmatpush3.bf16.msra.mxu1 %v14534_v48 }
0x14bb   : > { %13384 = vmatprep.subr.bf16.mxu0 %v15019_v1  ;;  %13392 = vmatprep.subr.bf16.mxu1 %v15019_v1 }
0x14bc   : > { %13398 = vmatprep.mubr.msk.bf16.mxu1 %vm15020_vm0, %v15019_v1 }
0x14be   : > { %13385 = vmatpush3.bf16.msra.mxu0 %v14535_v63  ;;  %13393 = vmatpush3.bf16.msra.mxu1 %v14536_v58 }
0x14bf   : > { %13394 = vmatprep.subr.bf16.mxu1 %v15019_v1  ;;  %13402 = vmatprep.subr.bf16.mxu0 %v15019_v1 }
0x14c1   : > { %13387 = vmatmul.mubr.msk.bf16.vlgmr.msra.gmra.mrb[80].mxu0 %vm486_vm1, %v15757_v3 }
0x14c2   : > { %13395 = vmatpush3.bf16.msra.mxu1 %v14537_v60  ;;  %13403 = vmatpush3.bf16.msra.mxu0 %v14538_v5 }
0x14c3   : > { %13396 = vmatprep.subr.bf16.mxu1 %v15019_v1  ;;  %13404 = vmatprep.subr.bf16.mxu0 %v15019_v1 }
0x14c4   : > { %13410 = vmatprep.mubr.msk.bf16.mxu0 %vm15020_vm0, %v15019_v1 }
0x14c6   : > { %13397 = vmatpush3.bf16.msra.mxu1 %v14539_v6  ;;  %13405 = vmatpush3.bf16.msra.mxu0 %v14540_v4 }
0x14c7   : > { %13406 = vmatprep.subr.bf16.mxu0 %v15019_v1  ;;  %13414 = vmatprep.subr.bf16.mxu1 %v15019_v1 }
0x14c9   : > { %13399 = vmatmul.mubr.msk.bf16.vlgmr.msra.gmra.mrb[108].mxu1 %vm486_vm1, %v15757_v3 }
0x14ca   : > { %13407 = vmatpush3.bf16.msra.mxu0 %v14541_v8  ;;  %13416 = vmatprep.mubr.msk.bf16.mxu1 %vm15020_vm0, %v15019_v1 }
0x14cb   : > { %13408 = vmatprep.subr.bf16.mxu0 %v15019_v1 }
0x14ce   : > { %13409 = vmatpush3.bf16.msra.mxu0 %v14542_v9 }
0x14cf   : > { %13426 = vmatprep.subr.bf16.mxu0 %v15019_v1 }
0x14d1   : > { %13411 = vmatmul.mubr.msk.bf16.vlgmr.msra.gmra.mrb[84].mxu0 %vm486_vm1, %v15757_v3 }
0x14d2   : > { %13428 = vmatprep.mubr.msk.bf16.mxu0 %vm15020_vm0, %v15019_v1 }
0x1584   : > { %v16029_v10 = vpop.f32.mrb[76].mxu0 }
0x1585   : > { %v13370_v11 = vpop.f32.mrb[77].mxu0 }
0x1586   : > { %v3783_v12 = vpop.f32.mrb[78].mxu0 }
0x1587   : > { %v13371_v13 = vpop.f32.mrb[79].mxu0 }
0x158c   : > { %v16031_v14 = vpop.f32.mrb[104].mxu1 }
0x158d   : > { %v3832_v15 = vpack.c.bf16 %v16031_v14, %v16029_v10  ;;  %v13376_v17 = vpop.f32.mrb[105].mxu1 }
0x158e   : > { %v3829_v18 = vpop.f32.mrb[106].mxu1 }
0x158f   : > { %v13377_v19 = vpop.f32.mrb[107].mxu1 }
0x1594   : > { %v3899_v22 = vpop.f32.mrb[80].mxu0 }
0x1595   : > { %v13388_v23 = vpop.f32.mrb[81].mxu0  ;;  %v3900_v33 = vadd.f32 %v14902_v32, %v3899_v22 }
0x1596   : > { %v3902_v24 = vpop.f32.mrb[82].mxu0 }
0x1597   : > { %v13389_v25 = vpop.f32.mrb[83].mxu0  ;;  %v12302_v39 = vpack.c.bf16 %v3900_v33, %v3900_v33  ;;  %v3903_v56 = vadd.f32 %v14902_v32, %v3902_v24  ;;  %v14549_v32 = vld [vmem:[%s17805_s7 + $0x70] sm:$0xff]   ;;  %v14550_v33 = vld [vmem:[%s17806_s8 + $0x60] sm:$0xff]  }
0x1598   : > { %v14543_v25 = vld [vmem:[%s17804_s6 + $0x60] sm:$0xff]  }
0x1599   : > { %v12303_v59 = vpack.c.bf16 %v3903_v56, %v3903_v56 }
0x159c   : > { %v3972_v26 = vpop.f32.mrb[108].mxu1 }
0x159d   : > { %v3973_v28 = vadd.f32 %v14901_v27, %v3972_v26  ;;  %v13400_v49 = vpop.f32.mrb[109].mxu1 }
0x159e   : > { %v3975_v53 = vpop.f32.mrb[110].mxu1 }
0x159f   : > { %v12304_v54 = vpack.c.bf16 %v3973_v28, %v3973_v28  ;;  %v13401_v29 = vpop.f32.mrb[111].mxu1  ;;  %v3976_v31 = vadd.f32 %v14901_v27, %v3975_v53  ;;  %v14544_v27 = vld [vmem:[%s17804_s6 + $0x68] sm:$0xff]   ;;  %v14545_v53 = vld [vmem:[%s17804_s6 + $0x70] sm:$0xff]  }
0x15a1   : > { %v4074_v30 = vsel %vm1057_vm2, %v12304_v54, 0  ;;  %v12305_v35 = vpack.c.bf16 %v3976_v31, %v3976_v31  ;;  %v14546_v54 = vld [vmem:[%s17805_s7 + $0x60] sm:$0xff]   ;;  %v14548_v31 = vld [vmem:[%s17805_s7 + $0x68] sm:$0xff]  }
0x15a2   : > { %13415 = vmatpush3.bf16.xpose.msra.mxu1 %v4074_v30  ;;  %v14547_v30 = vld [vmem:[%s17804_s6 + $0x78] sm:$0xff]  }
0x15a3   : > { %13420 = vmatprep.subr.bf16.mxu1 %v15019_v1  ;;  %v4120_v43 = vsel %vm1057_vm2, %v12305_v35, 0  ;;  %v14552_v35 = vld [vmem:[%s17806_s8 + $0x68] sm:$0xff]  }
0x15a4   : > { %v4045_v34 = vpop.f32.mrb[84].mxu0 }
0x15a5   : > { %v4046_v7 = vadd.f32 %v14903_v36, %v4045_v34  ;;  %v13412_v37 = vpop.f32.mrb[85].mxu0  ;;  %v14551_v34 = vld [vmem:[%s17805_s7 + $0x78] sm:$0xff]  }
0x15a6   : > { %v4048_v38 = vpop.f32.mrb[86].mxu0 }
0x15a7   : > { %v12306_v40 = vpack.c.bf16 %v4046_v7, %v4046_v7  ;;  %v13413_v41 = vpop.f32.mrb[87].mxu0  ;;  %v4049_v46 = vadd.f32 %v14903_v36, %v4048_v38  ;;  %v14553_v36 = vld [vmem:[%s17806_s8 + $0x70] sm:$0xff]   ;;  %v14554_v7 = vld [vmem:[%s17806_s8 + $0x78] sm:$0xff]  }
0x15a9   : > { %v4190_v45 = vsel %vm1178_vm3, %v12306_v40, 0  ;;  %13417 = vmatmul.mubr.msk.bf16.vlgmr.msra.gmra.mrb[112].mxu1 %vm1057_vm2, %v12302_v39  ;;  %v12307_v57 = vpack.c.bf16 %v4049_v46, %v4049_v46 }
0x15aa   : > { %13421 = vmatpush3.bf16.xpose.msra.mxu1 %v4120_v43  ;;  %13427 = vmatpush3.bf16.msra.mxu0 %v4190_v45 }
0x15ab   : > { %13422 = vmatprep.mubr.msk.bf16.mxu1 %vm15020_vm0, %v15019_v1  ;;  %13432 = vmatprep.subr.bf16.mxu1 %v15019_v1  ;;  %v4236_v61 = vsel %vm1178_vm3, %v12307_v57, 0 }
0x15ac   : > { %13438 = vmatprep.subr.bf16.mxu0 %v15019_v1 }
0x15b1   : > { %13423 = vmatmul.mubr.msk.bf16.vlgmr.msra.gmra.mrb[116].mxu1 %vm1057_vm2, %v12303_v59 }
0x15b2   : > { %13433 = vmatpush3.bf16.msra.mxu1 %v4236_v61  ;;  %13434 = vmatprep.mubr.msk.bf16.mxu1 %vm15020_vm0, %v15019_v1 }
0x15b3   : > { %13450 = vmatprep.subr.bf16.mxu1 %v15019_v1 }
0x167c   : > { %v4110_v62 = vpop.f32.mrb[112].mxu1 }
0x167d   : > { %v13418_v16 = vpop.f32.mrb[113].mxu1  ;;  %v4162_v20 = vsel %vm1150_vm4, %v4110_v62, -inf }
0x167e   : > { %4163 = vmax.xlane.f32.xlu0 %v4162_v20  ;;  %v4113_v21 = vpop.f32.mrb[114].mxu1  ;;  %v14904_v16 = vld [vmem:[%s17808_s10 + $0x3] ss:$0 sm:$0xff] }
0x167f   : > { %v13419_v44 = vpop.f32.mrb[115].mxu1 }
0x1684   : > { %v4156_v48 = vpop.f32.mrb[116].mxu1 }
0x1685   : > { %v13424_v50 = vpop.f32.mrb[117].mxu1  ;;  %v4165_v63 = vsel %vm1150_vm4, %v4156_v48, -inf }
0x1686   : > { %4166 = vmax.xlane.f32.xlu1 %v4165_v63  ;;  %v4159_v58 = vpop.f32.mrb[118].mxu1 }
0x1687   : > { %v13425_v60 = vpop.f32.mrb[119].mxu1 }
0x1688   : > { %v14905_v60 = vld [vmem:[%s17807_s9 + $0x3] ss:$0 sm:$0xff] }
0x170b   : > { %v4164_v5 = vpop.xlane.xlu0 %4163 }
0x170c   : > { %v4168_v6 = vsub.f32 %v4110_v62, %v4164_v5 }
0x170e   : > { %v4170_v4 = vmul.f32 1.442695, %v4168_v6 }
0x1710   : > { %14783 = vpow2.f32 %v4170_v4 }
0x1713   : > { %v4167_v8 = vpop.xlane.xlu1 %4166 }
0x1714   : > { %v4169_v9 = vsub.f32 %v4156_v48, %v4167_v8  ;;  %v14906_v8 = vld [vmem:[%s17809_s11 + $0x3] ss:$0 sm:$0xff] }
0x1716   : > { %v4172_v11 = vmul.f32 1.442695, %v4169_v9 }
0x1718   : > { %14785 = vpow2.f32 %v4172_v11 }
0x171a   : > { %v14784_v12 = vpop.eup %14783 }
0x171b   : > { %v4174_v13 = vsel %vm1150_vm4, %v14784_v12, 0.0 }
0x171c   : > { %4175 = vadd.xlane.f32.xlu0 %v4174_v13 }
0x1722   : > { %v14786_v17 = vpop.eup %14785 }
0x1723   : > { %v4177_v18 = vsel %vm1150_vm4, %v14786_v17, 0.0 }
0x1724   : > { %4178 = vadd.xlane.f32.xlu1 %v4177_v18 }
0x17a9   : > { %v4176_v19 = vpop.xlane.xlu0 %4175 }
0x17aa   : > { %14787 = vrcp.f32 %v4176_v19 }
0x17b1   : > { %v4179_v22 = vpop.xlane.xlu1 %4178 }
0x17b2   : > { %14789 = vrcp.f32 %v4179_v22 }
0x17b4   : > { %v14788_v23 = vpop.eup %14787 }
0x17b5   : > { %v4181_v24 = vmul.f32 %v14788_v23, %v14784_v12 }
0x17b7   : > { %v4184_v26 = vpack.c.bf16 %v4181_v24, %v4181_v24 }
0x17b9   : > { %13429 = vmatmul.mubr.msk.bf16.vlgmr.msra.gmra.mrb[88].mxu0 %vm1150_vm4, %v4184_v26 }
0x17ba   : > { %13439 = vmatpush3.bf16.msra.mxu0 %v14543_v25  ;;  %13446 = vmatprep.mubr.msk.bf16.mxu0 %vm15020_vm0, %v15019_v1 }
0x17bb   : > { %13440 = vmatprep.subr.bf16.mxu0 %v15019_v1 }
0x17bc   : > { %v14790_v28 = vpop.eup %14789 }
0x17bd   : > { %v4183_v49 = vmul.f32 %v14790_v28, %v14786_v17 }
0x17be   : > { %13441 = vmatpush3.bf16.msra.mxu0 %v14544_v27 }
0x17bf   : > { %13442 = vmatprep.subr.bf16.mxu0 %v15019_v1  ;;  %v4185_v29 = vpack.c.bf16 %v4183_v49, %v4183_v49 }
0x17c1   : > { %13435 = vmatmul.mubr.msk.bf16.vlgmr.msra.gmra.mrb[120].mxu1 %vm1150_vm4, %v4185_v29 }
0x17c2   : > { %13443 = vmatpush3.bf16.msra.mxu0 %v14545_v53  ;;  %13451 = vmatpush3.bf16.msra.mxu1 %v14546_v54 }
0x17c3   : > { %13444 = vmatprep.subr.bf16.mxu0 %v15019_v1  ;;  %13452 = vmatprep.subr.bf16.mxu1 %v15019_v1 }
0x17c4   : > { %13458 = vmatprep.mubr.msk.bf16.mxu1 %vm15020_vm0, %v15019_v1 }
0x17c6   : > { %13445 = vmatpush3.bf16.msra.mxu0 %v14547_v30  ;;  %13453 = vmatpush3.bf16.msra.mxu1 %v14548_v31 }
0x17c7   : > { %13454 = vmatprep.subr.bf16.mxu1 %v15019_v1  ;;  %13462 = vmatprep.subr.bf16.mxu0 %v15019_v1 }
0x17c9   : > { %13447 = vmatmul.mubr.msk.bf16.vlgmr.msra.gmra.mrb[92].mxu0 %vm486_vm1, %v15757_v3 }
0x17ca   : > { %13455 = vmatpush3.bf16.msra.mxu1 %v14549_v32  ;;  %13463 = vmatpush3.bf16.msra.mxu0 %v14550_v33 }
0x17cb   : > { %13456 = vmatprep.subr.bf16.mxu1 %v15019_v1  ;;  %13464 = vmatprep.subr.bf16.mxu0 %v15019_v1 }
0x17cc   : > { %13470 = vmatprep.mubr.msk.bf16.mxu0 %vm15020_vm0, %v15019_v1 }
0x17ce   : > { %13457 = vmatpush3.bf16.msra.mxu1 %v14551_v34  ;;  %13465 = vmatpush3.bf16.msra.mxu0 %v14552_v35 }
0x17cf   : > { %13466 = vmatprep.subr.bf16.mxu0 %v15019_v1  ;;  %13474 = vmatprep.subr.bf16.mxu1 %v15019_v1 }
0x17d1   : > { %13459 = vmatmul.mubr.msk.bf16.vlgmr.msra.gmra.mrb[124].mxu1 %vm486_vm1, %v15757_v3 }
0x17d2   : > { %13467 = vmatpush3.bf16.msra.mxu0 %v14553_v36  ;;  %13476 = vmatprep.mubr.msk.bf16.mxu1 %vm15020_vm0, %v15019_v1 }
0x17d3   : > { %13468 = vmatprep.subr.bf16.mxu0 %v15019_v1 }
0x17d6   : > { %13469 = vmatpush3.bf16.msra.mxu0 %v14554_v7 }
0x17d7   : > { %13486 = vmatprep.subr.bf16.mxu0 %v15019_v1 }
0x17d9   : > { %13471 = vmatmul.mubr.msk.bf16.vlgmr.msra.gmra.mrb[96].mxu0 %vm486_vm1, %v15757_v3 }
0x17da   : > { %13488 = vmatprep.mubr.msk.bf16.mxu0 %vm15020_vm0, %v15019_v1 }
0x188c   : > { %v16128_v37 = vpop.f32.mrb[88].mxu0 }
0x188d   : > { %v13430_v38 = vpop.f32.mrb[89].mxu0 }
0x188e   : > { %v4229_v39 = vpop.f32.mrb[90].mxu0 }
0x188f   : > { %v13431_v40 = vpop.f32.mrb[91].mxu0 }
0x1894   : > { %v16130_v41 = vpop.f32.mrb[120].mxu1 }
0x1895   : > { %v4278_v43 = vpack.c.bf16 %v16130_v41, %v16128_v37  ;;  %v13436_v45 = vpop.f32.mrb[121].mxu1  ;;  %v14909_v41 = vld [vmem:[%s17810_s12 + $0x10] sm:$0xff]  }
0x1896   : > { %v4275_v46 = vpop.f32.mrb[122].mxu1 }
0x1897   : > { %v13437_v56 = vpop.f32.mrb[123].mxu1 }
0x189c   : > { %v4345_v57 = vpop.f32.mrb[92].mxu0 }
0x189d   : > { %v13448_v59 = vpop.f32.mrb[93].mxu0  ;;  %v4346_v5 = vadd.f32 %v14905_v60, %v4345_v57 }
0x189e   : > { %v4348_v61 = vpop.f32.mrb[94].mxu0 }
0x189f   : > { %v13449_v3 = vpop.f32.mrb[95].mxu0  ;;  %v12308_v13 = vpack.c.bf16 %v4346_v5, %v4346_v5  ;;  %v4349_v24 = vadd.f32 %v14905_v60, %v4348_v61 }
0x18a1   : > { %v12309_v26 = vpack.c.bf16 %v4349_v24, %v4349_v24  ;;  %v14571_v24 = vld [vmem:[%s17802_s4 + $0xa0] sm:$0xff]  }
0x18a4   : > { %v4418_v62 = vpop.f32.mrb[124].mxu1 }
0x18a5   : > { %v4419_v20 = vadd.f32 %v14904_v16, %v4418_v62  ;;  %v13460_v21 = vpop.f32.mrb[125].mxu1 }
0x18a6   : > { %v4421_v44 = vpop.f32.mrb[126].mxu1  ;;  %v14555_v21 = vld [vmem:[%s17800_s2 + $0x40] sm:$0xff]  }
0x18a7   : > { %v12310_v48 = vpack.c.bf16 %v4419_v20, %v4419_v20  ;;  %v13461_v50 = vpop.f32.mrb[127].mxu1  ;;  %v4422_v58 = vadd.f32 %v14904_v16, %v4421_v44  ;;  %v14907_v20 = vld [vmem:[%s17810_s12] sm:$0xff]  }
0x18a9   : > { %v4520_v63 = vsel %vm1057_vm2, %v12310_v48, 0  ;;  %v12311_v4 = vpack.c.bf16 %v4422_v58, %v4422_v58 }
0x18aa   : > { %13475 = vmatpush3.bf16.xpose.msra.mxu1 %v4520_v63 }
0x18ab   : > { %13480 = vmatprep.subr.bf16.mxu1 %v15019_v1  ;;  %v4566_v19 = vsel %vm1057_vm2, %v12311_v4, 0 }
0x18ac   : > { %v4491_v6 = vpop.f32.mrb[96].mxu0 }
0x18ad   : > { %v4492_v9 = vadd.f32 %v14906_v8, %v4491_v6  ;;  %v13472_v11 = vpop.f32.mrb[97].mxu0 }
0x18ae   : > { %v4494_v12 = vpop.f32.mrb[98].mxu0 }
0x18af   : > { %v12312_v17 = vpack.c.bf16 %v4492_v9, %v4492_v9  ;;  %v13473_v18 = vpop.f32.mrb[99].mxu0  ;;  %v4495_v23 = vadd.f32 %v14906_v8, %v4494_v12 }
0x18b0   : > { %v14556_v18 = vld [vmem:[%s17800_s2 + $0x48] sm:$0xff]  }
0x18b1   : > { %v4636_v22 = vsel %vm1178_vm3, %v12312_v17, 0  ;;  %13477 = vmatmul.mubr.msk.bf16.vlgmr.msra.gmra.mrb[128].mxu1 %vm1057_vm2, %v12308_v13  ;;  %v12313_v25 = vpack.c.bf16 %v4495_v23, %v4495_v23  ;;  %v14570_v23 = vld [vmem:[%s17802_s4 + $0x98] sm:$0xff]  }
0x18b2   : > { %13481 = vmatpush3.bf16.xpose.msra.mxu1 %v4566_v19  ;;  %13487 = vmatpush3.bf16.msra.mxu0 %v4636_v22  ;;  %v14568_v19 = vld [vmem:[%s17802_s4 + $0x88] sm:$0xff]   ;;  %v14569_v22 = vld [vmem:[%s17802_s4 + $0x90] sm:$0xff]  }
0x18b3   : > { %13482 = vmatprep.mubr.msk.bf16.mxu1 %vm15020_vm0, %v15019_v1  ;;  %13492 = vmatprep.subr.bf16.mxu1 %v15019_v1  ;;  %v4682_v27 = vsel %vm1178_vm3, %v12313_v25, 0  ;;  %v14572_v25 = vld [vmem:[%s17802_s4 + $0xa8] sm:$0xff]  }
0x18b4   : > { %13498 = vmatprep.subr.bf16.mxu0 %v15019_v1 }
0x18b9   : > { %13483 = vmatmul.mubr.msk.bf16.vlgmr.msra.gmra.mrb[132].mxu1 %vm1057_vm2, %v12309_v26  ;;  %v2720_v26 = vrot.slane %v15741_v0, 7 }
0x18ba   : > { %13493 = vmatpush3.bf16.msra.mxu1 %v4682_v27  ;;  %13494 = vmatprep.mubr.msk.bf16.mxu1 %vm15020_vm0, %v15019_v1  ;;  %v2726_v27 = vrot.slane %v15741_v0, 1 }
0x18bb   : > { %13510 = vmatprep.subr.bf16.mxu1 %v15019_v1 }
0x1984   : > { %v4556_v28 = vpop.f32.mrb[128].mxu1 }
0x1985   : > { %v13478_v49 = vpop.f32.mrb[129].mxu1  ;;  %v4608_v53 = vsel %vm1150_vm4, %v4556_v28, -inf }
0x1986   : > { %4609 = vmax.xlane.f32.xlu1 %v4608_v53  ;;  %v4559_v54 = vpop.f32.mrb[130].mxu1  ;;  %v2727_v49 = vrot.slane %v15747_v2, 1  ;;  %v2732_v53 = vadd.f32 %v2726_v27, %v2720_v26 }
0x1987   : > { %v13479_v29 = vpop.f32.mrb[131].mxu1  ;;  %v2734_v54 = vmul.f32 2.0, %v15741_v0 }
0x198c   : > { %v4602_v30 = vpop.f32.mrb[132].mxu1 }
0x198d   : > { %v13484_v31 = vpop.f32.mrb[133].mxu1  ;;  %v4611_v32 = vsel %vm1150_vm4, %v4602_v30, -inf }
0x198e   : > { %4612 = vmax.xlane.f32.xlu0 %v4611_v32  ;;  %v4605_v33 = vpop.f32.mrb[134].mxu1  ;;  %v2736_v31 = vsub.f32 %v2732_v53, %v2734_v54  ;;  %v2735_v32 = vmul.f32 2.0, %v15747_v2 }
0x198f   : > { %v13485_v34 = vpop.f32.mrb[135].mxu1 }
0x1990   : > { %v4784_v34 = vstv %s11390_s20  ;;  %s11608_s20 = sld [smem:[#allocation2 + $0x2]] }
0x1a13   : > { %v4610_v35 = vpop.xlane.xlu1 %4609 }
0x1a14   : > { %v4614_v36 = vsub.f32 %v4556_v28, %v4610_v35  ;;  %v2721_v28 = vrot.slane %v15747_v2, 7 }
0x1a16   : > { %v4616_v7 = vmul.f32 1.442695, %v4614_v36  ;;  %v2733_v29 = vadd.f32 %v2727_v49, %v2721_v28  ;;  %v14911_v36 = vld [vmem:[%s17811_s13] ss:$0 sm:$0xff] }
0x1a18   : > { %14791 = vpow2.f32 %v4616_v7 }
0x1a1b   : > { %v4613_v38 = vpop.xlane.xlu0 %4612 }
0x1a1c   : > { %v4615_v39 = vsub.f32 %v4602_v30, %v4613_v38  ;;  %v11424_v30 = vld [vmem:[%s17803_s5 + $0x1] ss:$0 sm:$0xff] }
0x1a1d   : > { %v2935_v35 = vadd.f32 %v11424_v30, %v15849_v51 }
0x1a1e   : > { %v4618_v40 = vmul.f32 1.442695, %v4615_v39  ;;  %v2737_v39 = vsub.f32 %v2733_v29, %v2735_v32 }
0x1a20   : > { %14793 = vpow2.f32 %v4618_v40 }
0x1a22   : > { %v14792_v45 = vpop.eup %14791 }
0x1a23   : > { %v4620_v46 = vsel %vm1150_vm4, %v14792_v45, 0.0 }
0x1a24   : > { %4621 = vadd.xlane.f32.xlu1 %v4620_v46  ;;  %v4785_v46 = vmul.f32 %v4784_v34, %v2736_v31 }
0x1a2a   : > { %v14794_v56 = vpop.eup %14793 }
0x1a2b   : > { %v4623_v57 = vsel %vm1150_vm4, %v14794_v56, 0.0 }
0x1a2c   : > { %4624 = vadd.xlane.f32.xlu0 %v4623_v57 }
0x1a35   : > { %4726 = vrot.lane.b32.xlu1 %v3832_v15, %s17833_s28  ;;  %v14908_v15 = vld [vmem:[%s17810_s12 + $0x8] sm:$0xff]  }
0x1a42   : > { %4729 = vrot.lane.b32.xlu0 %v4278_v43, %s17834_s1  ;;  %v14910_v43 = vld [vmem:[%s17810_s12 + $0x18] sm:$0xff]  }
0x1ab1   : > { %v4622_v59 = vpop.xlane.xlu1 %4621 }
0x1ab2   : > { %14795 = vrcp.f32 %v4622_v59 }
0x1ab5   : > { %v4727_v8 = vpop.permute.xlu1 %4726 }
0x1ab6   : > { %v4736_v11 = vsel %vm1057_vm2, %v3386_v52, %v4727_v8  ;;  %v14567_v52 = vld [vmem:[%s17802_s4 + $0x80] sm:$0xff]  }
0x1ab9   : > { %v4625_v61 = vpop.xlane.xlu0 %4624 }
0x1aba   : > { %14797 = vrcp.f32 %v4625_v61  ;;  %v4791_v61 = vstv %s11391_s21  ;;  %s11609_s21 = sld [smem:[#allocation2 + $0x7]] }
0x1abc   : > { %v14796_v3 = vpop.eup %14795 }
0x1abd   : > { %v4627_v62 = vmul.f32 %v14796_v3, %v14792_v45  ;;  %v4730_v9 = vpop.permute.xlu0 %4729  ;;  %v2938_v45 = vadd.f32 %v11424_v30, %v15851_v55  ;;  %v14913_v30 = vld [vmem:[%s17807_s9] ss:$0 sm:$0xff] }
0x1abe   : > { %v4738_v12 = vsel %vm2628_vm5, %v4736_v11, %v4730_v9 }
0x1abf   : > { %v4630_v16 = vpack.c.bf16 %v4627_v62, %v4627_v62  ;;  %v4786_v62 = vmul.f32 %v4784_v34, %v2737_v39 }
0x1ac1   : > { %13489 = vmatmul.mubr.msk.bf16.vlgmr.msra.gmra.mrb[100].mxu0 %vm1150_vm4, %v4630_v16 }
0x1ac2   : > { %13499 = vmatpush3.bf16.msra.mxu0 %v14907_v20  ;;  %13506 = vmatprep.mubr.msk.bf16.mxu0 %vm15020_vm0, %v15019_v1 }
0x1ac3   : > { %13500 = vmatprep.subr.bf16.mxu0 %v15019_v1 }
0x1ac4   : > { %v14798_v10 = vpop.eup %14797 }
0x1ac5   : > { %v4629_v14 = vmul.f32 %v14798_v10, %v14794_v56 }
0x1ac6   : > { %13501 = vmatpush3.bf16.msra.mxu0 %v14908_v15  ;;  %v14559_v15 = vld [vmem:[%s17804_s6] sm:$0xff]  }
0x1ac7   : > { %v4631_v37 = vpack.c.bf16 %v4629_v14, %v4629_v14  ;;  %13502 = vmatprep.subr.bf16.mxu0 %v15019_v1 }
0x1ac9   : > { %13495 = vmatmul.mubr.msk.bf16.vlgmr.msra.gmra.mrb[136].mxu1 %vm1150_vm4, %v4631_v37 }
0x1aca   : > { %13503 = vmatpush3.bf16.msra.mxu0 %v14909_v41  ;;  %13518 = vmatprep.mubr.msk.bf16.mxu1 %vm15020_vm0, %v15019_v1  ;;  %v14562_v41 = vld [vmem:[%s17804_s6 + $0x18] sm:$0xff]  }
0x1acb   : > { %13504 = vmatprep.subr.bf16.mxu0 %v15019_v1  ;;  %13511 = vmatpush3.bf16.msra.mxu1 %v14555_v21  ;;  %v14564_v21 = vld [vmem:[%s17805_s7 + $0x8] sm:$0xff]  }
0x1acc   : > { %13512 = vmatprep.subr.bf16.mxu1 %v15019_v1 }
0x1ace   : > { %13505 = vmatpush3.bf16.msra.mxu0 %v14910_v43  ;;  %v14563_v43 = vld [vmem:[%s17805_s7] sm:$0xff]  }
0x1acf   : > { %13522 = vmatprep.subr.bf16.mxu0 %v15019_v1  ;;  %13513 = vmatpush3.bf16.msra.mxu1 %v14556_v18  ;;  %v14576_v18 = vld [vmem:[%s17806_s8 + $0x8] sm:$0xff]  }
0x1ad0   : > { %13514 = vmatprep.subr.bf16.mxu1 %v15019_v1 }
0x1ad3   : > { %13515 = vmatpush3.bf16.msra.mxu1 %v14557_v42  ;;  %v14577_v42 = vld [vmem:[%s17806_s8 + $0x10] sm:$0xff]  }
0x1ad4   : > { %13516 = vmatprep.subr.bf16.mxu1 %v15019_v1 }
0x1ad7   : > { %13517 = vmatpush3.bf16.msra.mxu1 %v14558_v47 }
0x1ad8   : > { %13542 = vmatprep.subr.bf16.mxu1 %v15019_v1 }
0x1b94   : > { %v4672_v44 = vpop.f32.mrb[100].mxu0 }
0x1b95   : > { %v13490_v48 = vpop.f32.mrb[101].mxu0 }
0x1b96   : > { %v4675_v50 = vpop.f32.mrb[102].mxu0  ;;  %v14566_v48 = vld [vmem:[%s17805_s7 + $0x18] sm:$0xff]  }
0x1b97   : > { %v13491_v63 = vpop.f32.mrb[103].mxu0  ;;  %v14573_v50 = vld [vmem:[%s17802_s4 + $0xb0] sm:$0xff]  }
0x1b98   : > { %v14574_v63 = vld [vmem:[%s17802_s4 + $0xb8] sm:$0xff]  }
0x1b9c   : > { %v4718_v58 = vpop.f32.mrb[136].mxu1 }
0x1b9d   : > { %v4724_v60 = vpack.c.bf16 %v4718_v58, %v4672_v44  ;;  %v13496_v5 = vpop.f32.mrb[137].mxu1  ;;  %v14565_v44 = vld [vmem:[%s17805_s7 + $0x10] sm:$0xff]   ;;  %v11619_v58 = vld [vmem:[%s17801_s3 + $0x2] ss:$0 sm:$0xff] }
0x1b9e   : > { %v4721_v6 = vpop.f32.mrb[138].mxu1 }
0x1b9f   : > { %4732 = vrot.lane.b32.xlu1 %v4724_v60, %s17835_s25  ;;  %v13497_v4 = vpop.f32.mrb[139].mxu1 }
0x1c11   : > { %v4733_v13 = vpop.permute.xlu1 %4732 }
0x1c12   : > { %v4740_v17 = vsel %vm2631_vm6, %v4738_v12, %v4733_v13  ;;  %v14575_v13 = vld [vmem:[%s17806_s8] sm:$0xff]  }
0x1c13   : > { %13507 = vmatmul.mubr.msk.bf16.vlgmr.msra.gmra.mrb[104].mxu0 %vm486_vm1, %v4740_v17 }
0x1c14   : > { %13538 = vmatprep.mubr.msk.bf16.mxu0 %vm15020_vm0, %v15019_v1  ;;  %13523 = vmatpush3.bf16.msra.mxu0 %v14567_v52 }
0x1c15   : > { %13524 = vmatprep.subr.bf16.mxu0 %v15019_v1 }
0x1c18   : > { %13525 = vmatpush3.bf16.msra.mxu0 %v14568_v19 }
0x1c19   : > { %13526 = vmatprep.subr.bf16.mxu0 %v15019_v1 }
0x1c1c   : > { %13527 = vmatpush3.bf16.msra.mxu0 %v14569_v22  ;;  %v14578_v22 = vld [vmem:[%s17806_s8 + $0x18] sm:$0xff]  }
0x1c1d   : > { %13528 = vmatprep.subr.bf16.mxu0 %v15019_v1 }
0x1c20   : > { %13529 = vmatpush3.bf16.msra.mxu0 %v14570_v23 }
0x1c21   : > { %13530 = vmatprep.subr.bf16.mxu0 %v15019_v1 }
0x1c24   : > { %13531 = vmatpush3.bf16.msra.mxu0 %v14571_v24 }
0x1c25   : > { %13532 = vmatprep.subr.bf16.mxu0 %v15019_v1 }
0x1c28   : > { %13533 = vmatpush3.bf16.msra.mxu0 %v14572_v25  ;;  %v14912_v25 = vld [vmem:[%s17808_s10] ss:$0 sm:$0xff] }
0x1c29   : > { %13534 = vmatprep.subr.bf16.mxu0 %v15019_v1 }
0x1c2c   : > { %13535 = vmatpush3.bf16.msra.mxu0 %v14573_v50 }
0x1c2d   : > { %13536 = vmatprep.subr.bf16.mxu0 %v15019_v1 }
0x1c30   : > { %13537 = vmatpush3.bf16.msra.mxu0 %v14574_v63 }
0x1c31   : > { %13566 = vmatprep.subr.bf16.mxu0 %v15019_v1 }
0x1ce6   : > { %v4777_v33 = vpop.f32.mrb[104].mxu0 }
0x1ce7   : > { %v4778_v7 = vadd.f32 %v14911_v36, %v4777_v33  ;;  %v13508_v38 = vpop.f32.mrb[105].mxu0 }
0x1ce8   : > { %v4780_v40 = vpop.f32.mrb[106].mxu0 }
0x1ce9   : > { %v4787_v56 = vadd.f32 %v4778_v7, %v2935_v35  ;;  %v4781_v57 = vadd.f32 %v14911_v36, %v4780_v40  ;;  %v13509_v59 = vpop.f32.mrb[107].mxu0 }
0x1ceb   : > { %v4789_v3 = vadd.f32 %v4787_v56, %v4785_v46  ;;  %v4788_v51 = vadd.f32 %v4781_v57, %v2938_v45  ;;  %v14914_v46 = vld [vmem:[%s17809_s11] ss:$0 sm:$0xff] }
0x1ced   : > { %v4792_v16 = vmul.f32 %v4791_v61, %v4789_v3  ;;  %v4790_v20 = vadd.f32 %v4788_v51, %v4786_v62 }
0x1cef   : > { %v16256_v10 = vadd.f32 %v4792_v16, %v15741_v0  ;;  %v4793_v14 = vmul.f32 %v4791_v61, %v4790_v20  ;;  %v14560_v0 = vld [vmem:[%s17804_s6 + $0x8] sm:$0xff]  }
0x1cf1   : > { %11606 = vst.msk [vmem:[%s15672_s22 + $0x20] sm:$0xff] %vm486_vm1, %v16256_v10  ;;  %v16262_v55 = vadd.f32 %v4793_v14, %v15747_v2  ;;  %v14561_v2 = vld [vmem:[%s17804_s6 + $0x10] sm:$0xff]  }
0x1cf3   : > { %11607 = vst.msk [vmem:[%s15672_s22 + $0x28] sm:$0xff] %vm486_vm1, %v16262_v55  ;;  %v16272_v37 = vpack.c.bf16 %v16262_v55, %v16256_v10 }
0x1cf5   : > { %13519 = vmatmul.mubr.msk.bf16.vlgmr.msra.gmra.mrb[140].mxu1 %vm486_vm1, %v16272_v37 }
0x1cf6   : > { %13543 = vmatpush3.bf16.msra.mxu1 %v14559_v15  ;;  %13550 = vmatprep.mubr.msk.bf16.mxu1 %vm15020_vm0, %v15019_v1 }
0x1cf7   : > { %13544 = vmatprep.subr.bf16.mxu1 %v15019_v1 }
0x1cfa   : > { %13545 = vmatpush3.bf16.msra.mxu1 %v14560_v0 }
0x1cfb   : > { %13546 = vmatprep.subr.bf16.mxu1 %v15019_v1 }
0x1cfe   : > { %13547 = vmatpush3.bf16.msra.mxu1 %v14561_v2 }
0x1cff   : > { %13548 = vmatprep.subr.bf16.mxu1 %v15019_v1 }
0x1d02   : > { %13549 = vmatpush3.bf16.msra.mxu1 %v14562_v41 }
0x1d03   : > { %13554 = vmatprep.subr.bf16.mxu1 %v15019_v1 }
0x1d05   : > { %13551 = vmatmul.mubr.msk.bf16.vlgmr.msra.gmra.mrb[144].mxu1 %vm486_vm1, %v16272_v37 }
0x1d06   : > { %13555 = vmatpush3.bf16.msra.mxu1 %v14563_v43  ;;  %13562 = vmatprep.mubr.msk.bf16.mxu1 %vm15020_vm0, %v15019_v1 }
0x1d07   : > { %13556 = vmatprep.subr.bf16.mxu1 %v15019_v1 }
0x1d0a   : > { %13557 = vmatpush3.bf16.msra.mxu1 %v14564_v21 }
0x1d0b   : > { %13558 = vmatprep.subr.bf16.mxu1 %v15019_v1 }
0x1d0e   : > { %13559 = vmatpush3.bf16.msra.mxu1 %v14565_v44 }
0x1d0f   : > { %13560 = vmatprep.subr.bf16.mxu1 %v15019_v1 }
0x1d12   : > { %13561 = vmatpush3.bf16.msra.mxu1 %v14566_v48 }
0x1d13   : > { %13578 = vmatprep.subr.bf16.mxu1 %v15019_v1 }
0x1d15   : > { %13563 = vmatmul.mubr.msk.bf16.vlgmr.msra.gmra.mrb[148].mxu1 %vm486_vm1, %v16272_v37 }
0x1d16   : > { %13580 = vmatprep.mubr.msk.bf16.mxu1 %vm15020_vm0, %v15019_v1 }
0x1dc8   : > { %v4900_v60 = vpop.f32.mrb[140].mxu1 }
0x1dc9   : > { %v4901_v5 = vadd.f32 %v11619_v58, %v4900_v60  ;;  %v13520_v6 = vpop.f32.mrb[141].mxu1 }
0x1dca   : > { %v4903_v4 = vpop.f32.mrb[142].mxu1 }
0x1dcb   : > { %v4904_v8 = vadd.f32 %v11619_v58, %v4903_v4  ;;  %v13521_v9 = vpop.f32.mrb[143].mxu1  ;;  %v4907_v11 = vmax.f32 %v4901_v5, 0.0 }
0x1dcd   : > { %v4908_v12 = vmax.f32 %v4904_v8, 0.0 }
0x1dcf   : > { %v4909_v17 = vpack.c.bf16 %v4908_v12, %v4907_v11 }
0x1dd1   : > { %13539 = vmatmul.mubr.bf16.vlgmr.msra.gmra.mrb[108].mxu0 %v4909_v17 }
0x1dd2   : > { %13567 = vmatpush3.bf16.msra.mxu0 %v14575_v13  ;;  %13574 = vmatprep.mubr.msk.bf16.mxu0 %vm15020_vm0, %v15019_v1 }
0x1dd3   : > { %13568 = vmatprep.subr.bf16.mxu0 %v15019_v1 }
0x1dd6   : > { %13569 = vmatpush3.bf16.msra.mxu0 %v14576_v18 }
0x1dd7   : > { %13570 = vmatprep.subr.bf16.mxu0 %v15019_v1 }
0x1dd8   : > { %v5090_v47 = vpop.f32.mrb[144].mxu1 }
0x1dd9   : > { %v13552_v52 = vpop.f32.mrb[145].mxu1  ;;  %v5091_v31 = vadd.f32 %v14913_v30, %v5090_v47  ;;  %v14579_v47 = vld [vmem:[%s17804_s6 + $0x20] sm:$0xff]  }
0x1dda   : > { %v5093_v19 = vpop.f32.mrb[146].mxu1  ;;  %13571 = vmatpush3.bf16.msra.mxu0 %v14577_v42 }
0x1ddb   : > { %v13553_v23 = vpop.f32.mrb[147].mxu1  ;;  %13572 = vmatprep.subr.bf16.mxu0 %v15019_v1  ;;  %v12314_v33 = vpack.c.bf16 %v5091_v31, %v5091_v31  ;;  %v5094_v35 = vadd.f32 %v14913_v30, %v5093_v19  ;;  %v14580_v19 = vld [vmem:[%s17804_s6 + $0x28] sm:$0xff]   ;;  %v14589_v30 = vld [vmem:[%s17806_s8 + $0x30] sm:$0xff]   ;;  %v14590_v31 = vld [vmem:[%s17806_s8 + $0x38] sm:$0xff]  }
0x1ddd   : > { %v12315_v36 = vpack.c.bf16 %v5094_v35, %v5094_v35 }
0x1dde   : > { %13573 = vmatpush3.bf16.msra.mxu0 %v14578_v22 }
0x1ddf   : > { %13590 = vmatprep.subr.bf16.mxu0 %v15019_v1 }
0x1de1   : > { %13575 = vmatmul.mubr.msk.bf16.vlgmr.msra.gmra.mrb[112].mxu0 %vm486_vm1, %v16272_v37 }
0x1de2   : > { %13592 = vmatprep.mubr.msk.bf16.mxu0 %vm15020_vm0, %v15019_v1 }
0x1de8   : > { %v5163_v24 = vpop.f32.mrb[148].mxu1 }
0x1de9   : > { %v5164_v26 = vadd.f32 %v14912_v25, %v5163_v24  ;;  %v13564_v27 = vpop.f32.mrb[149].mxu1  ;;  %v14581_v24 = vld [vmem:[%s17804_s6 + $0x30] sm:$0xff]  }
0x1dea   : > { %v5166_v28 = vpop.f32.mrb[150].mxu1  ;;  %v14583_v27 = vld [vmem:[%s17804_s6 + $0x38] sm:$0xff]  }
0x1deb   : > { %v12316_v49 = vpack.c.bf16 %v5164_v26, %v5164_v26  ;;  %v13565_v53 = vpop.f32.mrb[151].mxu1  ;;  %v5167_v29 = vadd.f32 %v14912_v25, %v5166_v28  ;;  %v14582_v25 = vld [vmem:[%s17805_s7 + $0x20] sm:$0xff]   ;;  %v14584_v28 = vld [vmem:[%s17805_s7 + $0x28] sm:$0xff]  }
0x1dec   : > { %v14586_v53 = vld [vmem:[%s17806_s8 + $0x20] sm:$0xff]  }
0x1ded   : > { %v5265_v54 = vsel %vm1057_vm2, %v12316_v49, 0  ;;  %v12317_v32 = vpack.c.bf16 %v5167_v29, %v5167_v29  ;;  %v14585_v49 = vld [vmem:[%s17805_s7 + $0x30] sm:$0xff]   ;;  %v14588_v29 = vld [vmem:[%s17806_s8 + $0x28] sm:$0xff]  }
0x1dee   : > { %13579 = vmatpush3.bf16.xpose.msra.mxu1 %v5265_v54  ;;  %v14587_v54 = vld [vmem:[%s17805_s7 + $0x38] sm:$0xff]  }
0x1def   : > { %13584 = vmatprep.subr.bf16.mxu1 %v15019_v1  ;;  %v5311_v34 = vsel %vm1057_vm2, %v12317_v32, 0 }
0x1df5   : > { %13581 = vmatmul.mubr.msk.bf16.vlgmr.msra.gmra.mrb[152].mxu1 %vm1057_vm2, %v12314_v33 }
0x1df6   : > { %13585 = vmatpush3.bf16.xpose.msra.mxu1 %v5311_v34  ;;  %13586 = vmatprep.mubr.msk.bf16.mxu1 %vm15020_vm0, %v15019_v1 }
0x1df7   : > { %13596 = vmatprep.subr.bf16.mxu1 %v15019_v1 }
0x1dfd   : > { %13587 = vmatmul.mubr.msk.bf16.vlgmr.msra.gmra.mrb[156].mxu1 %vm1057_vm2, %v12315_v36 }
0x1dfe   : > { %13598 = vmatprep.mubr.msk.bf16.mxu1 %vm15020_vm0, %v15019_v1 }
0x1ea4   : > { %v16364_v7 = vpop.f32.mrb[108].mxu0 }
0x1ea5   : > { %v13540_v38 = vpop.f32.mrb[109].mxu0 }
0x1ea6   : > { %v16366_v39 = vpop.f32.mrb[110].mxu0 }
0x1ea7   : > { %v13541_v40 = vpop.f32.mrb[111].mxu0 }
0x1eb4   : > { %v5236_v45 = vpop.f32.mrb[112].mxu0 }
0x1eb5   : > { %v5237_v56 = vadd.f32 %v14914_v46, %v5236_v45  ;;  %v13576_v57 = vpop.f32.mrb[113].mxu0 }
0x1eb6   : > { %v5239_v59 = vpop.f32.mrb[114].mxu0 }
0x1eb7   : > { %v12318_v61 = vpack.c.bf16 %v5237_v56, %v5237_v56  ;;  %v5240_v3 = vadd.f32 %v14914_v46, %v5239_v59  ;;  %v13577_v62 = vpop.f32.mrb[115].mxu0 }
0x1eb8   : > { %v14915_v62 = vld [vmem:[%s17808_s10 + $0x1] ss:$0 sm:$0xff] }
0x1eb9   : > { %v5381_v51 = vsel %vm1178_vm3, %v12318_v61, 0  ;;  %v12319_v16 = vpack.c.bf16 %v5240_v3, %v5240_v3 }
0x1eba   : > { %13591 = vmatpush3.bf16.msra.mxu0 %v5381_v51 }
0x1ebb   : > { %v5427_v20 = vsel %vm1178_vm3, %v12319_v16, 0  ;;  %13602 = vmatprep.subr.bf16.mxu0 %v15019_v1 }
0x1ebc   : > { %13597 = vmatpush3.bf16.msra.mxu1 %v5427_v20 }
0x1ebd   : > { %13614 = vmatprep.subr.bf16.mxu1 %v15019_v1 }
0x1ec8   : > { %v5301_v14 = vpop.f32.mrb[152].mxu1 }
0x1ec9   : > { %v13582_v15 = vpop.f32.mrb[153].mxu1  ;;  %v5353_v0 = vsel %vm1150_vm4, %v5301_v14, -inf }
0x1eca   : > { %5354 = vmax.xlane.f32.xlu0 %v5353_v0  ;;  %v5304_v2 = vpop.f32.mrb[154].mxu1 }
0x1ecb   : > { %v13583_v41 = vpop.f32.mrb[155].mxu1 }
0x1ecc   : > { %v14916_v41 = vld [vmem:[%s17807_s9 + $0x1] ss:$0 sm:$0xff] }
0x1ed0   : > { %v5347_v43 = vpop.f32.mrb[156].mxu1 }
0x1ed1   : > { %v13588_v21 = vpop.f32.mrb[157].mxu1  ;;  %v5356_v44 = vsel %vm1150_vm4, %v5347_v43, -inf }
0x1ed2   : > { %5357 = vmax.xlane.f32.xlu1 %v5356_v44  ;;  %v5350_v48 = vpop.f32.mrb[158].mxu1 }
0x1ed3   : > { %v13589_v50 = vpop.f32.mrb[159].mxu1  ;;  %v14917_v48 = vld [vmem:[%s17809_s11 + $0x1] ss:$0 sm:$0xff] }
0x1f57   : > { %v5355_v63 = vpop.xlane.xlu0 %5354 }
0x1f58   : > { %v5359_v58 = vsub.f32 %v5301_v14, %v5355_v63 }
0x1f5a   : > { %v5361_v60 = vmul.f32 1.442695, %v5359_v58 }
0x1f5c   : > { %14799 = vpow2.f32 %v5361_v60 }
0x1f5f   : > { %v5358_v5 = vpop.xlane.xlu1 %5357 }
0x1f60   : > { %v5360_v6 = vsub.f32 %v5347_v43, %v5358_v5 }
0x1f62   : > { %v5363_v4 = vmul.f32 1.442695, %v5360_v6 }
0x1f64   : > { %14801 = vpow2.f32 %v5363_v4 }
0x1f66   : > { %v14800_v8 = vpop.eup %14799 }
0x1f67   : > { %v5365_v9 = vsel %vm1150_vm4, %v14800_v8, 0.0 }
0x1f68   : > { %5366 = vadd.xlane.f32.xlu1 %v5365_v9 }
0x1f6e   : > { %v14802_v11 = vpop.eup %14801 }
0x1f6f   : > { %v5368_v12 = vsel %vm1150_vm4, %v14802_v11, 0.0 }
0x1f70   : > { %5369 = vadd.xlane.f32.xlu0 %v5368_v12 }
0x1ff5   : > { %v5367_v13 = vpop.xlane.xlu1 %5366 }
0x1ff6   : > { %14803 = vrcp.f32 %v5367_v13 }
0x1ffd   : > { %v5370_v17 = vpop.xlane.xlu0 %5369 }
0x1ffe   : > { %14805 = vrcp.f32 %v5370_v17 }
0x2000   : > { %v14804_v18 = vpop.eup %14803 }
0x2001   : > { %v5372_v42 = vmul.f32 %v14804_v18, %v14800_v8 }
0x2003   : > { %v5375_v52 = vpack.c.bf16 %v5372_v42, %v5372_v42 }
0x2005   : > { %13593 = vmatmul.mubr.msk.bf16.vlgmr.msra.gmra.mrb[116].mxu0 %vm1150_vm4, %v5375_v52 }
0x2006   : > { %13603 = vmatpush3.bf16.msra.mxu0 %v14579_v47  ;;  %13610 = vmatprep.mubr.msk.bf16.mxu0 %vm15020_vm0, %v15019_v1 }
0x2007   : > { %13604 = vmatprep.subr.bf16.mxu0 %v15019_v1 }
0x2008   : > { %v14806_v22 = vpop.eup %14805 }
0x2009   : > { %v5374_v23 = vmul.f32 %v14806_v22, %v14802_v11 }
0x200a   : > { %13605 = vmatpush3.bf16.msra.mxu0 %v14580_v19 }
0x200b   : > { %13606 = vmatprep.subr.bf16.mxu0 %v15019_v1  ;;  %v5376_v26 = vpack.c.bf16 %v5374_v23, %v5374_v23 }
0x200d   : > { %13599 = vmatmul.mubr.msk.bf16.vlgmr.msra.gmra.mrb[160].mxu1 %vm1150_vm4, %v5376_v26 }
0x200e   : > { %13607 = vmatpush3.bf16.msra.mxu0 %v14581_v24  ;;  %13615 = vmatpush3.bf16.msra.mxu1 %v14582_v25 }
0x200f   : > { %13608 = vmatprep.subr.bf16.mxu0 %v15019_v1  ;;  %13616 = vmatprep.subr.bf16.mxu1 %v15019_v1 }
0x2010   : > { %13622 = vmatprep.mubr.msk.bf16.mxu1 %vm15020_vm0, %v15019_v1 }
0x2012   : > { %13609 = vmatpush3.bf16.msra.mxu0 %v14583_v27  ;;  %13617 = vmatpush3.bf16.msra.mxu1 %v14584_v28 }
0x2013   : > { %13618 = vmatprep.subr.bf16.mxu1 %v15019_v1  ;;  %13626 = vmatprep.subr.bf16.mxu0 %v15019_v1 }
0x2015   : > { %13611 = vmatmul.mubr.msk.bf16.vlgmr.msra.gmra.mrb[120].mxu0 %vm486_vm1, %v16272_v37 }
0x2016   : > { %13619 = vmatpush3.bf16.msra.mxu1 %v14585_v49  ;;  %13627 = vmatpush3.bf16.msra.mxu0 %v14586_v53 }
0x2017   : > { %13620 = vmatprep.subr.bf16.mxu1 %v15019_v1  ;;  %13628 = vmatprep.subr.bf16.mxu0 %v15019_v1 }
0x2018   : > { %13634 = vmatprep.mubr.msk.bf16.mxu0 %vm15020_vm0, %v15019_v1 }
0x201a   : > { %13621 = vmatpush3.bf16.msra.mxu1 %v14587_v54  ;;  %13629 = vmatpush3.bf16.msra.mxu0 %v14588_v29 }
0x201b   : > { %13630 = vmatprep.subr.bf16.mxu0 %v15019_v1  ;;  %13638 = vmatprep.subr.bf16.mxu1 %v15019_v1 }
0x201d   : > { %13623 = vmatmul.mubr.msk.bf16.vlgmr.msra.gmra.mrb[164].mxu1 %vm486_vm1, %v16272_v37 }
0x201e   : > { %13631 = vmatpush3.bf16.msra.mxu0 %v14589_v30  ;;  %13640 = vmatprep.mubr.msk.bf16.mxu1 %vm15020_vm0, %v15019_v1 }
0x201f   : > { %13632 = vmatprep.subr.bf16.mxu0 %v15019_v1 }
0x2022   : > { %13633 = vmatpush3.bf16.msra.mxu0 %v14590_v31 }
0x2023   : > { %13650 = vmatprep.subr.bf16.mxu0 %v15019_v1 }
0x2025   : > { %13635 = vmatmul.mubr.msk.bf16.vlgmr.msra.gmra.mrb[124].mxu0 %vm486_vm1, %v16272_v37 }
0x2026   : > { %13652 = vmatprep.mubr.msk.bf16.mxu0 %vm15020_vm0, %v15019_v1 }
0x20d8   : > { %v16445_v32 = vpop.f32.mrb[116].mxu0 }
0x20d9   : > { %v13594_v33 = vpop.f32.mrb[117].mxu0 }
0x20da   : > { %v5420_v34 = vpop.f32.mrb[118].mxu0 }
0x20db   : > { %v13595_v35 = vpop.f32.mrb[119].mxu0 }
0x20e0   : > { %v16447_v36 = vpop.f32.mrb[160].mxu1 }
0x20e1   : > { %v5469_v38 = vpack.c.bf16 %v16447_v36, %v16445_v32  ;;  %v13600_v40 = vpop.f32.mrb[161].mxu1  ;;  %v14617_v32 = vld [vmem:[%s17800_s2 + $0x70] sm:$0xff]   ;;  %v14618_v36 = vld [vmem:[%s17800_s2 + $0x78] sm:$0xff]  }
0x20e2   : > { %v5466_v45 = vpop.f32.mrb[162].mxu1 }
0x20e3   : > { %v13601_v46 = vpop.f32.mrb[163].mxu1 }
0x20e8   : > { %v5536_v56 = vpop.f32.mrb[120].mxu0 }
0x20e9   : > { %v13612_v57 = vpop.f32.mrb[121].mxu0  ;;  %v5537_v43 = vadd.f32 %v14916_v41, %v5536_v56  ;;  %v14591_v56 = vld [vmem:[%s17804_s6 + $0x40] sm:$0xff]  }
0x20ea   : > { %v5539_v59 = vpop.f32.mrb[122].mxu0 }
0x20eb   : > { %v13613_v61 = vpop.f32.mrb[123].mxu0  ;;  %v12320_v60 = vpack.c.bf16 %v5537_v43, %v5537_v43  ;;  %v5540_v11 = vadd.f32 %v14916_v41, %v5539_v59  ;;  %v14592_v59 = vld [vmem:[%s17804_s6 + $0x48] sm:$0xff]   ;;  %v14601_v43 = vld [vmem:[%s17806_s8 + $0x50] sm:$0xff]  }
0x20ec   : > { %v14600_v41 = vld [vmem:[%s17806_s8 + $0x48] sm:$0xff]  }
0x20ed   : > { %v12321_v13 = vpack.c.bf16 %v5540_v11, %v5540_v11 }
0x20f0   : > { %v5609_v3 = vpop.f32.mrb[164].mxu1 }
0x20f1   : > { %v5610_v51 = vadd.f32 %v14915_v62, %v5609_v3  ;;  %v13624_v16 = vpop.f32.mrb[165].mxu1 }
0x20f2   : > { %v5612_v20 = vpop.f32.mrb[166].mxu1 }
0x20f3   : > { %v12322_v14 = vpack.c.bf16 %v5610_v51, %v5610_v51  ;;  %v13625_v15 = vpop.f32.mrb[167].mxu1  ;;  %v5613_v2 = vadd.f32 %v14915_v62, %v5612_v20  ;;  %v14593_v62 = vld [vmem:[%s17804_s6 + $0x50] sm:$0xff]   ;;  %v14594_v51 = vld [vmem:[%s17805_s7 + $0x40] sm:$0xff]   ;;  %v14595_v20 = vld [vmem:[%s17804_s6 + $0x58] sm:$0xff]  }
0x20f4   : > { %v14597_v15 = vld [vmem:[%s17805_s7 + $0x50] sm:$0xff]  }
0x20f5   : > { %v5711_v0 = vsel %vm1057_vm2, %v12322_v14, 0  ;;  %v12323_v44 = vpack.c.bf16 %v5613_v2, %v5613_v2  ;;  %v14596_v14 = vld [vmem:[%s17805_s7 + $0x48] sm:$0xff]   ;;  %v14599_v2 = vld [vmem:[%s17805_s7 + $0x58] sm:$0xff]  }
0x20f6   : > { %13639 = vmatpush3.bf16.xpose.msra.mxu1 %v5711_v0  ;;  %v14598_v0 = vld [vmem:[%s17806_s8 + $0x40] sm:$0xff]  }
0x20f7   : > { %13644 = vmatprep.subr.bf16.mxu1 %v15019_v1  ;;  %v5757_v4 = vsel %vm1057_vm2, %v12323_v44, 0 }
0x20f8   : > { %v5682_v21 = vpop.f32.mrb[124].mxu0 }
0x20f9   : > { %v5683_v50 = vadd.f32 %v14917_v48, %v5682_v21  ;;  %v13636_v63 = vpop.f32.mrb[125].mxu0  ;;  %v14602_v21 = vld [vmem:[%s17806_s8 + $0x58] sm:$0xff]  }
0x20fa   : > { %v5685_v58 = vpop.f32.mrb[126].mxu0 }
0x20fb   : > { %v12324_v5 = vpack.c.bf16 %v5683_v50, %v5683_v50  ;;  %v13637_v6 = vpop.f32.mrb[127].mxu0  ;;  %v5686_v9 = vadd.f32 %v14917_v48, %v5685_v58 }
0x20fd   : > { %v5827_v8 = vsel %vm1178_vm3, %v12324_v5, 0  ;;  %13641 = vmatmul.mubr.msk.bf16.vlgmr.msra.gmra.mrb[168].mxu1 %vm1057_vm2, %v12320_v60  ;;  %v12325_v12 = vpack.c.bf16 %v5686_v9, %v5686_v9 }
0x20fe   : > { %13645 = vmatpush3.bf16.xpose.msra.mxu1 %v5757_v4  ;;  %13651 = vmatpush3.bf16.msra.mxu0 %v5827_v8 }
0x20ff   : > { %13646 = vmatprep.mubr.msk.bf16.mxu1 %vm15020_vm0, %v15019_v1  ;;  %13656 = vmatprep.subr.bf16.mxu1 %v15019_v1  ;;  %v5873_v17 = vsel %vm1178_vm3, %v12325_v12, 0 }
0x2100   : > { %13662 = vmatprep.subr.bf16.mxu0 %v15019_v1 }
0x2105   : > { %13647 = vmatmul.mubr.msk.bf16.vlgmr.msra.gmra.mrb[172].mxu1 %vm1057_vm2, %v12321_v13 }
0x2106   : > { %13657 = vmatpush3.bf16.msra.mxu1 %v5873_v17  ;;  %13658 = vmatprep.mubr.msk.bf16.mxu1 %vm15020_vm0, %v15019_v1  ;;  %v14918_v17 = vld [vmem:[%s17808_s10 + $0x2] ss:$0 sm:$0xff] }
0x2107   : > { %13674 = vmatprep.subr.bf16.mxu1 %v15019_v1 }
0x21d0   : > { %v5747_v18 = vpop.f32.mrb[168].mxu1 }
0x21d1   : > { %v13642_v42 = vpop.f32.mrb[169].mxu1  ;;  %v5799_v47 = vsel %vm1150_vm4, %v5747_v18, -inf }
0x21d2   : > { %5800 = vmax.xlane.f32.xlu1 %v5799_v47  ;;  %v5750_v52 = vpop.f32.mrb[170].mxu1 }
0x21d3   : > { %v13643_v19 = vpop.f32.mrb[171].mxu1 }
0x21d8   : > { %v5793_v22 = vpop.f32.mrb[172].mxu1 }
0x21d9   : > { %v13648_v23 = vpop.f32.mrb[173].mxu1  ;;  %v5802_v24 = vsel %vm1150_vm4, %v5793_v22, -inf }
0x21da   : > { %5803 = vmax.xlane.f32.xlu0 %v5802_v24  ;;  %v5796_v25 = vpop.f32.mrb[174].mxu1  ;;  %v14919_v24 = vld [vmem:[%s17807_s9 + $0x2] ss:$0 sm:$0xff] }
0x21db   : > { %v13649_v26 = vpop.f32.mrb[175].mxu1 }
0x225f   : > { %v5801_v27 = vpop.xlane.xlu1 %5800 }
0x2260   : > { %v5805_v28 = vsub.f32 %v5747_v18, %v5801_v27 }
0x2262   : > { %v5807_v49 = vmul.f32 1.442695, %v5805_v28  ;;  %v14920_v28 = vld [vmem:[%s17809_s11 + $0x2] ss:$0 sm:$0xff] }
0x2264   : > { %14807 = vpow2.f32 %v5807_v49 }
0x2267   : > { %v5804_v53 = vpop.xlane.xlu0 %5803 }
0x2268   : > { %v5806_v54 = vsub.f32 %v5793_v22, %v5804_v53 }
0x226a   : > { %v5809_v29 = vmul.f32 1.442695, %v5806_v54 }
0x226c   : > { %14809 = vpow2.f32 %v5809_v29 }
0x226e   : > { %v14808_v30 = vpop.eup %14807 }
0x226f   : > { %v5811_v31 = vsel %vm1150_vm4, %v14808_v30, 0.0 }
0x2270   : > { %5812 = vadd.xlane.f32.xlu1 %v5811_v31 }
0x2276   : > { %v14810_v33 = vpop.eup %14809 }
0x2277   : > { %v5814_v34 = vsel %vm1150_vm4, %v14810_v33, 0.0 }
0x2278   : > { %5815 = vadd.xlane.f32.xlu0 %v5814_v34 }
0x22fd   : > { %v5813_v35 = vpop.xlane.xlu1 %5812 }
0x22fe   : > { %14811 = vrcp.f32 %v5813_v35 }
0x2305   : > { %v5816_v40 = vpop.xlane.xlu0 %5815 }
0x2306   : > { %14813 = vrcp.f32 %v5816_v40 }
0x2308   : > { %v14812_v45 = vpop.eup %14811 }
0x2309   : > { %v5818_v46 = vmul.f32 %v14812_v45, %v14808_v30 }
0x230b   : > { %v5821_v57 = vpack.c.bf16 %v5818_v46, %v5818_v46 }
0x230d   : > { %13653 = vmatmul.mubr.msk.bf16.vlgmr.msra.gmra.mrb[128].mxu0 %vm1150_vm4, %v5821_v57 }
0x230e   : > { %13663 = vmatpush3.bf16.msra.mxu0 %v14591_v56  ;;  %13670 = vmatprep.mubr.msk.bf16.mxu0 %vm15020_vm0, %v15019_v1 }
0x230f   : > { %13664 = vmatprep.subr.bf16.mxu0 %v15019_v1 }
0x2310   : > { %v14814_v61 = vpop.eup %14813 }
0x2311   : > { %v5820_v3 = vmul.f32 %v14814_v61, %v14810_v33 }
0x2312   : > { %13665 = vmatpush3.bf16.msra.mxu0 %v14592_v59 }
0x2313   : > { %13666 = vmatprep.subr.bf16.mxu0 %v15019_v1  ;;  %v5822_v16 = vpack.c.bf16 %v5820_v3, %v5820_v3 }
0x2315   : > { %13659 = vmatmul.mubr.msk.bf16.vlgmr.msra.gmra.mrb[176].mxu1 %vm1150_vm4, %v5822_v16 }
0x2316   : > { %13667 = vmatpush3.bf16.msra.mxu0 %v14593_v62  ;;  %13675 = vmatpush3.bf16.msra.mxu1 %v14594_v51 }
0x2317   : > { %13668 = vmatprep.subr.bf16.mxu0 %v15019_v1  ;;  %13676 = vmatprep.subr.bf16.mxu1 %v15019_v1 }
0x2318   : > { %13682 = vmatprep.mubr.msk.bf16.mxu1 %vm15020_vm0, %v15019_v1 }
0x231a   : > { %13669 = vmatpush3.bf16.msra.mxu0 %v14595_v20  ;;  %13677 = vmatpush3.bf16.msra.mxu1 %v14596_v14 }
0x231b   : > { %13678 = vmatprep.subr.bf16.mxu1 %v15019_v1  ;;  %13686 = vmatprep.subr.bf16.mxu0 %v15019_v1 }
0x231d   : > { %13671 = vmatmul.mubr.msk.bf16.vlgmr.msra.gmra.mrb[132].mxu0 %vm486_vm1, %v16272_v37 }
0x231e   : > { %13679 = vmatpush3.bf16.msra.mxu1 %v14597_v15  ;;  %13687 = vmatpush3.bf16.msra.mxu0 %v14598_v0 }
0x231f   : > { %13680 = vmatprep.subr.bf16.mxu1 %v15019_v1  ;;  %13688 = vmatprep.subr.bf16.mxu0 %v15019_v1 }
0x2320   : > { %13694 = vmatprep.mubr.msk.bf16.mxu0 %vm15020_vm0, %v15019_v1 }
0x2322   : > { %13681 = vmatpush3.bf16.msra.mxu1 %v14599_v2  ;;  %13689 = vmatpush3.bf16.msra.mxu0 %v14600_v41 }
0x2323   : > { %13690 = vmatprep.subr.bf16.mxu0 %v15019_v1  ;;  %13698 = vmatprep.subr.bf16.mxu1 %v15019_v1 }
0x2325   : > { %13683 = vmatmul.mubr.msk.bf16.vlgmr.msra.gmra.mrb[180].mxu1 %vm486_vm1, %v16272_v37 }
0x2326   : > { %13691 = vmatpush3.bf16.msra.mxu0 %v14601_v43  ;;  %13700 = vmatprep.mubr.msk.bf16.mxu1 %vm15020_vm0, %v15019_v1 }
0x2327   : > { %13692 = vmatprep.subr.bf16.mxu0 %v15019_v1 }
0x232a   : > { %13693 = vmatpush3.bf16.msra.mxu0 %v14602_v21 }
0x232b   : > { %13710 = vmatprep.subr.bf16.mxu0 %v15019_v1 }
0x232d   : > { %13695 = vmatmul.mubr.msk.bf16.vlgmr.msra.gmra.mrb[136].mxu0 %vm486_vm1, %v16272_v37 }
0x232e   : > { %13712 = vmatprep.mubr.msk.bf16.mxu0 %vm15020_vm0, %v15019_v1 }
0x23e0   : > { %v16544_v44 = vpop.f32.mrb[128].mxu0 }
0x23e1   : > { %v13654_v48 = vpop.f32.mrb[129].mxu0 }
0x23e2   : > { %v5866_v50 = vpop.f32.mrb[130].mxu0 }
0x23e3   : > { %v13655_v63 = vpop.f32.mrb[131].mxu0 }
0x23e8   : > { %v16546_v58 = vpop.f32.mrb[176].mxu1 }
0x23e9   : > { %v5915_v60 = vpack.c.bf16 %v16546_v58, %v16544_v44  ;;  %v13660_v5 = vpop.f32.mrb[177].mxu1 }
0x23ea   : > { %v5912_v6 = vpop.f32.mrb[178].mxu1 }
0x23eb   : > { %v13661_v4 = vpop.f32.mrb[179].mxu1 }
0x23f0   : > { %v5982_v8 = vpop.f32.mrb[132].mxu0 }
0x23f1   : > { %v13672_v9 = vpop.f32.mrb[133].mxu0  ;;  %v5983_v25 = vadd.f32 %v14919_v24, %v5982_v8 }
0x23f2   : > { %v5985_v11 = vpop.f32.mrb[134].mxu0 }
0x23f3   : > { %v13673_v12 = vpop.f32.mrb[135].mxu0  ;;  %v12326_v29 = vpack.c.bf16 %v5983_v25, %v5983_v25  ;;  %v5986_v40 = vadd.f32 %v14919_v24, %v5985_v11  ;;  %v14609_v24 = vld [vmem:[%s17805_s7 + $0x70] sm:$0xff]   ;;  %v14610_v25 = vld [vmem:[%s17806_s8 + $0x60] sm:$0xff]  }
0x23f4   : > { %v14603_v12 = vld [vmem:[%s17804_s6 + $0x60] sm:$0xff]  }
0x23f5   : > { %v12327_v46 = vpack.c.bf16 %v5986_v40, %v5986_v40 }
0x23f8   : > { %v6055_v13 = vpop.f32.mrb[180].mxu1 }
0x23f9   : > { %v6056_v18 = vadd.f32 %v14918_v17, %v6055_v13  ;;  %v13684_v42 = vpop.f32.mrb[181].mxu1 }
0x23fa   : > { %v6058_v47 = vpop.f32.mrb[182].mxu1 }
0x23fb   : > { %v12328_v52 = vpack.c.bf16 %v6056_v18, %v6056_v18  ;;  %v13685_v19 = vpop.f32.mrb[183].mxu1  ;;  %v6059_v23 = vadd.f32 %v14918_v17, %v6058_v47  ;;  %v14604_v17 = vld [vmem:[%s17804_s6 + $0x68] sm:$0xff]   ;;  %v14605_v47 = vld [vmem:[%s17804_s6 + $0x70] sm:$0xff]  }
0x23fd   : > { %v6157_v22 = vsel %vm1057_vm2, %v12328_v52, 0  ;;  %v12329_v27 = vpack.c.bf16 %v6059_v23, %v6059_v23  ;;  %v14606_v52 = vld [vmem:[%s17805_s7 + $0x60] sm:$0xff]   ;;  %v14608_v23 = vld [vmem:[%s17805_s7 + $0x68] sm:$0xff]  }
0x23fe   : > { %13699 = vmatpush3.bf16.xpose.msra.mxu1 %v6157_v22  ;;  %v14607_v22 = vld [vmem:[%s17804_s6 + $0x78] sm:$0xff]  }
0x23ff   : > { %13704 = vmatprep.subr.bf16.mxu1 %v15019_v1  ;;  %v6203_v33 = vsel %vm1057_vm2, %v12329_v27, 0  ;;  %v14612_v27 = vld [vmem:[%s17806_s8 + $0x68] sm:$0xff]  }
0x2400   : > { %v6128_v26 = vpop.f32.mrb[136].mxu0 }
0x2401   : > { %v6129_v49 = vadd.f32 %v14920_v28, %v6128_v26  ;;  %v13696_v53 = vpop.f32.mrb[137].mxu0  ;;  %v14611_v26 = vld [vmem:[%s17805_s7 + $0x78] sm:$0xff]  }
0x2402   : > { %v6131_v54 = vpop.f32.mrb[138].mxu0 }
0x2403   : > { %v12330_v30 = vpack.c.bf16 %v6129_v49, %v6129_v49  ;;  %v13697_v31 = vpop.f32.mrb[139].mxu0  ;;  %v6132_v35 = vadd.f32 %v14920_v28, %v6131_v54  ;;  %v14613_v28 = vld [vmem:[%s17806_s8 + $0x70] sm:$0xff]   ;;  %v14614_v49 = vld [vmem:[%s17806_s8 + $0x78] sm:$0xff]  }
0x2405   : > { %v6273_v34 = vsel %vm1178_vm3, %v12330_v30, 0  ;;  %13701 = vmatmul.mubr.msk.bf16.vlgmr.msra.gmra.mrb[184].mxu1 %vm1057_vm2, %v12326_v29  ;;  %v12331_v45 = vpack.c.bf16 %v6132_v35, %v6132_v35 }
0x2406   : > { %13705 = vmatpush3.bf16.xpose.msra.mxu1 %v6203_v33  ;;  %13711 = vmatpush3.bf16.msra.mxu0 %v6273_v34 }
0x2407   : > { %13706 = vmatprep.mubr.msk.bf16.mxu1 %vm15020_vm0, %v15019_v1  ;;  %13716 = vmatprep.subr.bf16.mxu1 %v15019_v1  ;;  %v6319_v56 = vsel %vm1178_vm3, %v12331_v45, 0 }
0x2408   : > { %13722 = vmatprep.subr.bf16.mxu0 %v15019_v1 }
0x240d   : > { %13707 = vmatmul.mubr.msk.bf16.vlgmr.msra.gmra.mrb[188].mxu1 %vm1057_vm2, %v12327_v46 }
0x240e   : > { %13717 = vmatpush3.bf16.msra.mxu1 %v6319_v56  ;;  %13718 = vmatprep.mubr.msk.bf16.mxu1 %vm15020_vm0, %v15019_v1 }
0x240f   : > { %13734 = vmatprep.subr.bf16.mxu1 %v15019_v1 }
0x24d8   : > { %v6193_v57 = vpop.f32.mrb[184].mxu1 }
0x24d9   : > { %v13702_v59 = vpop.f32.mrb[185].mxu1  ;;  %v6245_v61 = vsel %vm1150_vm4, %v6193_v57, -inf }
0x24da   : > { %6246 = vmax.xlane.f32.xlu1 %v6245_v61  ;;  %v6196_v3 = vpop.f32.mrb[186].mxu1  ;;  %v14921_v59 = vld [vmem:[%s17808_s10 + $0x3] ss:$0 sm:$0xff] }
0x24db   : > { %v13703_v62 = vpop.f32.mrb[187].mxu1 }
0x24e0   : > { %v6239_v51 = vpop.f32.mrb[188].mxu1 }
0x24e1   : > { %v13708_v16 = vpop.f32.mrb[189].mxu1  ;;  %v6248_v20 = vsel %vm1150_vm4, %v6239_v51, -inf }
0x24e2   : > { %6249 = vmax.xlane.f32.xlu0 %v6248_v20  ;;  %v6242_v14 = vpop.f32.mrb[190].mxu1 }
0x24e3   : > { %v13709_v15 = vpop.f32.mrb[191].mxu1 }
0x24e4   : > { %v14922_v15 = vld [vmem:[%s17807_s9 + $0x3] ss:$0 sm:$0xff] }
0x2567   : > { %v6247_v0 = vpop.xlane.xlu1 %6246 }
0x2568   : > { %v6251_v2 = vsub.f32 %v6193_v57, %v6247_v0 }
0x256a   : > { %v6253_v41 = vmul.f32 1.442695, %v6251_v2 }
0x256c   : > { %14815 = vpow2.f32 %v6253_v41 }
0x256f   : > { %v6250_v43 = vpop.xlane.xlu0 %6249 }
0x2570   : > { %v6252_v21 = vsub.f32 %v6239_v51, %v6250_v43  ;;  %v14923_v43 = vld [vmem:[%s17809_s11 + $0x3] ss:$0 sm:$0xff] }
0x2572   : > { %v6255_v48 = vmul.f32 1.442695, %v6252_v21 }
0x2574   : > { %14817 = vpow2.f32 %v6255_v48 }
0x2576   : > { %v14816_v50 = vpop.eup %14815 }
0x2577   : > { %v6257_v63 = vsel %vm1150_vm4, %v14816_v50, 0.0 }
0x2578   : > { %6258 = vadd.xlane.f32.xlu1 %v6257_v63 }
0x257e   : > { %v14818_v5 = vpop.eup %14817 }
0x257f   : > { %v6260_v6 = vsel %vm1150_vm4, %v14818_v5, 0.0 }
0x2580   : > { %6261 = vadd.xlane.f32.xlu0 %v6260_v6 }
0x2605   : > { %v6259_v4 = vpop.xlane.xlu1 %6258 }
0x2606   : > { %14819 = vrcp.f32 %v6259_v4 }
0x260d   : > { %v6262_v8 = vpop.xlane.xlu0 %6261 }
0x260e   : > { %14821 = vrcp.f32 %v6262_v8 }
0x2610   : > { %v14820_v9 = vpop.eup %14819 }
0x2611   : > { %v6264_v11 = vmul.f32 %v14820_v9, %v14816_v50 }
0x2613   : > { %v6267_v13 = vpack.c.bf16 %v6264_v11, %v6264_v11 }
0x2615   : > { %13713 = vmatmul.mubr.msk.bf16.vlgmr.msra.gmra.mrb[140].mxu0 %vm1150_vm4, %v6267_v13 }
0x2616   : > { %13723 = vmatpush3.bf16.msra.mxu0 %v14603_v12  ;;  %13730 = vmatprep.mubr.msk.bf16.mxu0 %vm15020_vm0, %v15019_v1 }
0x2617   : > { %13724 = vmatprep.subr.bf16.mxu0 %v15019_v1 }
0x2618   : > { %v14822_v18 = vpop.eup %14821 }
0x2619   : > { %v6266_v42 = vmul.f32 %v14822_v18, %v14818_v5 }
0x261a   : > { %13725 = vmatpush3.bf16.msra.mxu0 %v14604_v17 }
0x261b   : > { %13726 = vmatprep.subr.bf16.mxu0 %v15019_v1  ;;  %v6268_v19 = vpack.c.bf16 %v6266_v42, %v6266_v42 }
0x261d   : > { %13719 = vmatmul.mubr.msk.bf16.vlgmr.msra.gmra.mrb[192].mxu1 %vm1150_vm4, %v6268_v19 }
0x261e   : > { %13727 = vmatpush3.bf16.msra.mxu0 %v14605_v47  ;;  %13735 = vmatpush3.bf16.msra.mxu1 %v14606_v52 }
0x261f   : > { %13728 = vmatprep.subr.bf16.mxu0 %v15019_v1  ;;  %13736 = vmatprep.subr.bf16.mxu1 %v15019_v1 }
0x2620   : > { %13742 = vmatprep.mubr.msk.bf16.mxu1 %vm15020_vm0, %v15019_v1 }
0x2622   : > { %13729 = vmatpush3.bf16.msra.mxu0 %v14607_v22  ;;  %13737 = vmatpush3.bf16.msra.mxu1 %v14608_v23 }
0x2623   : > { %13738 = vmatprep.subr.bf16.mxu1 %v15019_v1  ;;  %13746 = vmatprep.subr.bf16.mxu0 %v15019_v1 }
0x2625   : > { %13731 = vmatmul.mubr.msk.bf16.vlgmr.msra.gmra.mrb[144].mxu0 %vm486_vm1, %v16272_v37 }
0x2626   : > { %13739 = vmatpush3.bf16.msra.mxu1 %v14609_v24  ;;  %13747 = vmatpush3.bf16.msra.mxu0 %v14610_v25 }
0x2627   : > { %13740 = vmatprep.subr.bf16.mxu1 %v15019_v1  ;;  %13748 = vmatprep.subr.bf16.mxu0 %v15019_v1 }
0x2628   : > { %13754 = vmatprep.mubr.msk.bf16.mxu0 %vm15020_vm0, %v15019_v1 }
0x262a   : > { %13741 = vmatpush3.bf16.msra.mxu1 %v14611_v26  ;;  %13749 = vmatpush3.bf16.msra.mxu0 %v14612_v27 }
0x262b   : > { %13750 = vmatprep.subr.bf16.mxu0 %v15019_v1  ;;  %13758 = vmatprep.subr.bf16.mxu1 %v15019_v1 }
0x262d   : > { %13743 = vmatmul.mubr.msk.bf16.vlgmr.msra.gmra.mrb[196].mxu1 %vm486_vm1, %v16272_v37 }
0x262e   : > { %13751 = vmatpush3.bf16.msra.mxu0 %v14613_v28  ;;  %13760 = vmatprep.mubr.msk.bf16.mxu1 %vm15020_vm0, %v15019_v1 }
0x262f   : > { %13752 = vmatprep.subr.bf16.mxu0 %v15019_v1 }
0x2632   : > { %13753 = vmatpush3.bf16.msra.mxu0 %v14614_v49 }
0x2633   : > { %13770 = vmatprep.subr.bf16.mxu0 %v15019_v1 }
0x2635   : > { %13755 = vmatmul.mubr.msk.bf16.vlgmr.msra.gmra.mrb[148].mxu0 %vm486_vm1, %v16272_v37 }
0x2636   : > { %13772 = vmatprep.mubr.msk.bf16.mxu0 %vm15020_vm0, %v15019_v1 }
0x26e8   : > { %v16643_v53 = vpop.f32.mrb[140].mxu0 }
0x26e9   : > { %v13714_v54 = vpop.f32.mrb[141].mxu0 }
0x26ea   : > { %v6312_v29 = vpop.f32.mrb[142].mxu0 }
0x26eb   : > { %v13715_v30 = vpop.f32.mrb[143].mxu0 }
0x26f0   : > { %v16645_v31 = vpop.f32.mrb[192].mxu1 }
0x26f1   : > { %v6361_v33 = vpack.c.bf16 %v16645_v31, %v16643_v53  ;;  %v13720_v34 = vpop.f32.mrb[193].mxu1  ;;  %v14926_v31 = vld [vmem:[%s17810_s12 + $0x10] sm:$0xff]  }
0x26f2   : > { %v6358_v35 = vpop.f32.mrb[194].mxu1 }
0x26f3   : > { %v13721_v40 = vpop.f32.mrb[195].mxu1 }
0x26f8   : > { %v6428_v45 = vpop.f32.mrb[144].mxu0 }
0x26f9   : > { %v13732_v46 = vpop.f32.mrb[145].mxu0  ;;  %v6429_v0 = vadd.f32 %v14922_v15, %v6428_v45 }
0x26fa   : > { %v6431_v56 = vpop.f32.mrb[146].mxu0 }
0x26fb   : > { %v13733_v37 = vpop.f32.mrb[147].mxu0  ;;  %v12332_v63 = vpack.c.bf16 %v6429_v0, %v6429_v0  ;;  %v6432_v11 = vadd.f32 %v14922_v15, %v6431_v56 }
0x26fd   : > { %v12333_v13 = vpack.c.bf16 %v6432_v11, %v6432_v11  ;;  %v14631_v11 = vld [vmem:[%s17802_s4 + $0xe0] sm:$0xff]  }
0x2700   : > { %v6501_v57 = vpop.f32.mrb[196].mxu1 }
0x2701   : > { %v6502_v61 = vadd.f32 %v14921_v59, %v6501_v57  ;;  %v13744_v3 = vpop.f32.mrb[197].mxu1 }
0x2702   : > { %v6504_v62 = vpop.f32.mrb[198].mxu1  ;;  %v14615_v3 = vld [vmem:[%s17800_s2 + $0x60] sm:$0xff]  }
0x2703   : > { %v12334_v51 = vpack.c.bf16 %v6502_v61, %v6502_v61  ;;  %v13745_v16 = vpop.f32.mrb[199].mxu1  ;;  %v6505_v14 = vadd.f32 %v14921_v59, %v6504_v62  ;;  %v14924_v61 = vld [vmem:[%s17810_s12] sm:$0xff]  }
0x2705   : > { %v6603_v20 = vsel %vm1057_vm2, %v12334_v51, 0  ;;  %v12335_v41 = vpack.c.bf16 %v6505_v14, %v6505_v14 }
0x2706   : > { %13759 = vmatpush3.bf16.xpose.msra.mxu1 %v6603_v20 }
0x2707   : > { %13764 = vmatprep.subr.bf16.mxu1 %v15019_v1  ;;  %v6649_v4 = vsel %vm1057_vm2, %v12335_v41, 0 }
0x2708   : > { %v6574_v2 = vpop.f32.mrb[148].mxu0 }
0x2709   : > { %v6575_v21 = vadd.f32 %v14923_v43, %v6574_v2  ;;  %v13756_v48 = vpop.f32.mrb[149].mxu0 }
0x270a   : > { %v6577_v50 = vpop.f32.mrb[150].mxu0 }
0x270b   : > { %v12336_v5 = vpack.c.bf16 %v6575_v21, %v6575_v21  ;;  %v13757_v6 = vpop.f32.mrb[151].mxu0  ;;  %v6578_v9 = vadd.f32 %v14923_v43, %v6577_v50 }
0x270c   : > { %v14616_v6 = vld [vmem:[%s17800_s2 + $0x68] sm:$0xff]  }
0x270d   : > { %v6719_v8 = vsel %vm1178_vm3, %v12336_v5, 0  ;;  %13761 = vmatmul.mubr.msk.bf16.vlgmr.msra.gmra.mrb[200].mxu1 %vm1057_vm2, %v12332_v63  ;;  %v12337_v12 = vpack.c.bf16 %v6578_v9, %v6578_v9  ;;  %v14630_v9 = vld [vmem:[%s17802_s4 + $0xd8] sm:$0xff]  }
0x270e   : > { %13765 = vmatpush3.bf16.xpose.msra.mxu1 %v6649_v4  ;;  %13771 = vmatpush3.bf16.msra.mxu0 %v6719_v8  ;;  %v14628_v4 = vld [vmem:[%s17802_s4 + $0xc8] sm:$0xff]   ;;  %v14629_v8 = vld [vmem:[%s17802_s4 + $0xd0] sm:$0xff]  }
0x270f   : > { %13766 = vmatprep.mubr.msk.bf16.mxu1 %vm15020_vm0, %v15019_v1  ;;  %13776 = vmatprep.subr.bf16.mxu1 %v15019_v1  ;;  %v6765_v17 = vsel %vm1178_vm3, %v12337_v12, 0  ;;  %v14632_v12 = vld [vmem:[%s17802_s4 + $0xe8] sm:$0xff]  }
0x2710   : > { %13782 = vmatprep.subr.bf16.mxu0 %v15019_v1 }
0x2715   : > { %13767 = vmatmul.mubr.msk.bf16.vlgmr.msra.gmra.mrb[204].mxu1 %vm1057_vm2, %v12333_v13  ;;  %v4803_v13 = vrot.slane %v16256_v10, 7 }
0x2716   : > { %13777 = vmatpush3.bf16.msra.mxu1 %v6765_v17  ;;  %13778 = vmatprep.mubr.msk.bf16.mxu1 %vm15020_vm0, %v15019_v1  ;;  %v4809_v17 = vrot.slane %v16256_v10, 1 }
0x2717   : > { %13794 = vmatprep.subr.bf16.mxu1 %v15019_v1 }
0x27e0   : > { %v6639_v18 = vpop.f32.mrb[200].mxu1 }
0x27e1   : > { %v13762_v42 = vpop.f32.mrb[201].mxu1  ;;  %v6691_v47 = vsel %vm1150_vm4, %v6639_v18, -inf }
0x27e2   : > { %6692 = vmax.xlane.f32.xlu0 %v6691_v47  ;;  %v6642_v52 = vpop.f32.mrb[202].mxu1  ;;  %v4810_v42 = vrot.slane %v16262_v55, 1  ;;  %v4815_v47 = vadd.f32 %v4809_v17, %v4803_v13 }
0x27e3   : > { %v13763_v19 = vpop.f32.mrb[203].mxu1  ;;  %v4817_v52 = vmul.f32 2.0, %v16256_v10 }
0x27e8   : > { %v6685_v22 = vpop.f32.mrb[204].mxu1 }
0x27e9   : > { %v13768_v23 = vpop.f32.mrb[205].mxu1  ;;  %v6694_v24 = vsel %vm1150_vm4, %v6685_v22, -inf }
0x27ea   : > { %6695 = vmax.xlane.f32.xlu1 %v6694_v24  ;;  %v6688_v25 = vpop.f32.mrb[206].mxu1  ;;  %v4819_v23 = vsub.f32 %v4815_v47, %v4817_v52  ;;  %v4818_v24 = vmul.f32 2.0, %v16262_v55 }
0x27eb   : > { %v13769_v26 = vpop.f32.mrb[207].mxu1 }
0x27ec   : > { %v6867_v26 = vstv %s11608_s20  ;;  %s11826_s20 = sld [smem:[#allocation2 + $0x3]] }
0x286f   : > { %v6693_v27 = vpop.xlane.xlu0 %6692 }
0x2870   : > { %v6697_v28 = vsub.f32 %v6639_v18, %v6693_v27  ;;  %v4804_v18 = vrot.slane %v16262_v55, 7 }
0x2872   : > { %v6699_v49 = vmul.f32 1.442695, %v6697_v28  ;;  %v4816_v19 = vadd.f32 %v4810_v42, %v4804_v18  ;;  %v14928_v28 = vld [vmem:[%s17811_s13] ss:$0 sm:$0xff] }
0x2874   : > { %14823 = vpow2.f32 %v6699_v49 }
0x2877   : > { %v6696_v54 = vpop.xlane.xlu1 %6695 }
0x2878   : > { %v6698_v29 = vsub.f32 %v6685_v22, %v6696_v54  ;;  %v11642_v22 = vld [vmem:[%s17803_s5 + $0x2] ss:$0 sm:$0xff] }
0x2879   : > { %v5018_v27 = vadd.f32 %v11642_v22, %v16364_v7 }
0x287a   : > { %v6701_v30 = vmul.f32 1.442695, %v6698_v29  ;;  %v4820_v29 = vsub.f32 %v4816_v19, %v4818_v24 }
0x287c   : > { %14825 = vpow2.f32 %v6701_v30 }
0x287e   : > { %v14824_v34 = vpop.eup %14823 }
0x287f   : > { %v6703_v35 = vsel %vm1150_vm4, %v14824_v34, 0.0 }
0x2880   : > { %6704 = vadd.xlane.f32.xlu0 %v6703_v35  ;;  %v6868_v35 = vmul.f32 %v6867_v26, %v4819_v23 }
0x2886   : > { %v14826_v40 = vpop.eup %14825 }
0x2887   : > { %v6706_v45 = vsel %vm1150_vm4, %v14826_v40, 0.0 }
0x2888   : > { %6707 = vadd.xlane.f32.xlu1 %v6706_v45 }
0x2896   : > { %6809 = vrot.lane.b32.xlu0 %v5915_v60, %s17833_s28  ;;  %v14925_v60 = vld [vmem:[%s17810_s12 + $0x8] sm:$0xff]  }
0x2899   : > { %6812 = vrot.lane.b32.xlu1 %v6361_v33, %s17834_s1  ;;  %v14927_v33 = vld [vmem:[%s17810_s12 + $0x18] sm:$0xff]  }
0x290d   : > { %v6705_v46 = vpop.xlane.xlu0 %6704 }
0x290e   : > { %14827 = vrcp.f32 %v6705_v46 }
0x2911   : > { %v6810_v43 = vpop.permute.xlu0 %6809 }
0x2912   : > { %v6819_v48 = vsel %vm1057_vm2, %v5469_v38, %v6810_v43  ;;  %v14627_v38 = vld [vmem:[%s17802_s4 + $0xc0] sm:$0xff]  }
0x2915   : > { %v6708_v56 = vpop.xlane.xlu1 %6707 }
0x2916   : > { %14829 = vrcp.f32 %v6708_v56  ;;  %v6874_v56 = vstv %s11609_s21  ;;  %s11827_s21 = sld [smem:[#allocation2 + $0x8]] }
0x2918   : > { %v14828_v37 = vpop.eup %14827 }
0x2919   : > { %v6710_v57 = vmul.f32 %v14828_v37, %v14824_v34  ;;  %v6813_v21 = vpop.permute.xlu1 %6812  ;;  %v5021_v34 = vadd.f32 %v11642_v22, %v16366_v39  ;;  %v14930_v22 = vld [vmem:[%s17807_s9] ss:$0 sm:$0xff] }
0x291a   : > { %v6821_v50 = vsel %vm2628_vm5, %v6819_v48, %v6813_v21 }
0x291b   : > { %v6713_v59 = vpack.c.bf16 %v6710_v57, %v6710_v57  ;;  %v6869_v57 = vmul.f32 %v6867_v26, %v4820_v29 }
0x291d   : > { %13773 = vmatmul.mubr.msk.bf16.vlgmr.msra.gmra.mrb[152].mxu0 %vm1150_vm4, %v6713_v59 }
0x291e   : > { %13783 = vmatpush3.bf16.msra.mxu0 %v14924_v61  ;;  %13790 = vmatprep.mubr.msk.bf16.mxu0 %vm15020_vm0, %v15019_v1 }
0x291f   : > { %13784 = vmatprep.subr.bf16.mxu0 %v15019_v1 }
0x2920   : > { %v14830_v44 = vpop.eup %14829 }
0x2921   : > { %v6712_v58 = vmul.f32 %v14830_v44, %v14826_v40 }
0x2922   : > { %13785 = vmatpush3.bf16.msra.mxu0 %v14925_v60  ;;  %v14619_v60 = vld [vmem:[%s17804_s6] sm:$0xff]  }
0x2923   : > { %v6714_v53 = vpack.c.bf16 %v6712_v58, %v6712_v58  ;;  %13786 = vmatprep.subr.bf16.mxu0 %v15019_v1 }
0x2925   : > { %13779 = vmatmul.mubr.msk.bf16.vlgmr.msra.gmra.mrb[208].mxu1 %vm1150_vm4, %v6714_v53 }
0x2926   : > { %13787 = vmatpush3.bf16.msra.mxu0 %v14926_v31  ;;  %13802 = vmatprep.mubr.msk.bf16.mxu1 %vm15020_vm0, %v15019_v1  ;;  %v14622_v31 = vld [vmem:[%s17804_s6 + $0x18] sm:$0xff]  }
0x2927   : > { %13788 = vmatprep.subr.bf16.mxu0 %v15019_v1  ;;  %13795 = vmatpush3.bf16.msra.mxu1 %v14615_v3  ;;  %v14624_v3 = vld [vmem:[%s17805_s7 + $0x8] sm:$0xff]  }
0x2928   : > { %13796 = vmatprep.subr.bf16.mxu1 %v15019_v1 }
0x292a   : > { %13789 = vmatpush3.bf16.msra.mxu0 %v14927_v33  ;;  %v14623_v33 = vld [vmem:[%s17805_s7] sm:$0xff]  }
0x292b   : > { %13806 = vmatprep.subr.bf16.mxu0 %v15019_v1  ;;  %13797 = vmatpush3.bf16.msra.mxu1 %v14616_v6  ;;  %v14636_v6 = vld [vmem:[%s17806_s8 + $0x8] sm:$0xff]  }
0x292c   : > { %13798 = vmatprep.subr.bf16.mxu1 %v15019_v1 }
0x292f   : > { %13799 = vmatpush3.bf16.msra.mxu1 %v14617_v32  ;;  %v14637_v32 = vld [vmem:[%s17806_s8 + $0x10] sm:$0xff]  }
0x2930   : > { %13800 = vmatprep.subr.bf16.mxu1 %v15019_v1 }
0x2933   : > { %13801 = vmatpush3.bf16.msra.mxu1 %v14618_v36 }
0x2934   : > { %13826 = vmatprep.subr.bf16.mxu1 %v15019_v1 }
0x29f0   : > { %v6755_v62 = vpop.f32.mrb[152].mxu0 }
0x29f1   : > { %v13774_v51 = vpop.f32.mrb[153].mxu0 }
0x29f2   : > { %v6758_v16 = vpop.f32.mrb[154].mxu0  ;;  %v14626_v51 = vld [vmem:[%s17805_s7 + $0x18] sm:$0xff]  }
0x29f3   : > { %v13775_v20 = vpop.f32.mrb[155].mxu0  ;;  %v14633_v16 = vld [vmem:[%s17802_s4 + $0xf0] sm:$0xff]  }
0x29f4   : > { %v14634_v20 = vld [vmem:[%s17802_s4 + $0xf8] sm:$0xff]  }
0x29f8   : > { %v6801_v14 = vpop.f32.mrb[208].mxu1 }
0x29f9   : > { %v6807_v15 = vpack.c.bf16 %v6801_v14, %v6755_v62  ;;  %v13780_v0 = vpop.f32.mrb[209].mxu1  ;;  %v14625_v62 = vld [vmem:[%s17805_s7 + $0x10] sm:$0xff]   ;;  %v11837_v14 = vld [vmem:[%s17801_s3 + $0x3] ss:$0 sm:$0xff] }
0x29fa   : > { %v6804_v2 = vpop.f32.mrb[210].mxu1 }
0x29fb   : > { %6815 = vrot.lane.b32.xlu1 %v6807_v15, %s17835_s25  ;;  %v13781_v41 = vpop.f32.mrb[211].mxu1 }
0x2a6d   : > { %v6816_v63 = vpop.permute.xlu1 %6815 }
0x2a6e   : > { %v6823_v5 = vsel %vm2631_vm6, %v6821_v50, %v6816_v63  ;;  %v14635_v63 = vld [vmem:[%s17806_s8] sm:$0xff]  }
0x2a6f   : > { %13791 = vmatmul.mubr.msk.bf16.vlgmr.msra.gmra.mrb[156].mxu0 %vm486_vm1, %v6823_v5 }
0x2a70   : > { %13822 = vmatprep.mubr.msk.bf16.mxu0 %vm15020_vm0, %v15019_v1  ;;  %13807 = vmatpush3.bf16.msra.mxu0 %v14627_v38 }
0x2a71   : > { %13808 = vmatprep.subr.bf16.mxu0 %v15019_v1 }
0x2a74   : > { %13809 = vmatpush3.bf16.msra.mxu0 %v14628_v4 }
0x2a75   : > { %13810 = vmatprep.subr.bf16.mxu0 %v15019_v1 }
0x2a78   : > { %13811 = vmatpush3.bf16.msra.mxu0 %v14629_v8  ;;  %v14638_v8 = vld [vmem:[%s17806_s8 + $0x18] sm:$0xff]  }
0x2a79   : > { %13812 = vmatprep.subr.bf16.mxu0 %v15019_v1 }
0x2a7c   : > { %13813 = vmatpush3.bf16.msra.mxu0 %v14630_v9 }
0x2a7d   : > { %13814 = vmatprep.subr.bf16.mxu0 %v15019_v1 }
0x2a80   : > { %13815 = vmatpush3.bf16.msra.mxu0 %v14631_v11 }
0x2a81   : > { %13816 = vmatprep.subr.bf16.mxu0 %v15019_v1 }
0x2a84   : > { %13817 = vmatpush3.bf16.msra.mxu0 %v14632_v12  ;;  %v14929_v12 = vld [vmem:[%s17808_s10] ss:$0 sm:$0xff] }
0x2a85   : > { %13818 = vmatprep.subr.bf16.mxu0 %v15019_v1 }
0x2a88   : > { %13819 = vmatpush3.bf16.msra.mxu0 %v14633_v16 }
0x2a89   : > { %13820 = vmatprep.subr.bf16.mxu0 %v15019_v1 }
0x2a8c   : > { %13821 = vmatpush3.bf16.msra.mxu0 %v14634_v20 }
0x2a8d   : > { %13850 = vmatprep.subr.bf16.mxu0 %v15019_v1 }
0x2b42   : > { %v6860_v25 = vpop.f32.mrb[156].mxu0 }
0x2b43   : > { %v6861_v49 = vadd.f32 %v14928_v28, %v6860_v25  ;;  %v13792_v54 = vpop.f32.mrb[157].mxu0 }
0x2b44   : > { %v6863_v30 = vpop.f32.mrb[158].mxu0 }
0x2b45   : > { %v6870_v40 = vadd.f32 %v6861_v49, %v5018_v27  ;;  %v6864_v45 = vadd.f32 %v14928_v28, %v6863_v30  ;;  %v13793_v46 = vpop.f32.mrb[159].mxu0 }
0x2b47   : > { %v6872_v37 = vadd.f32 %v6870_v40, %v6868_v35  ;;  %v6871_v7 = vadd.f32 %v6864_v45, %v5021_v34  ;;  %v14931_v35 = vld [vmem:[%s17809_s11] ss:$0 sm:$0xff] }
0x2b49   : > { %v6875_v59 = vmul.f32 %v6874_v56, %v6872_v37  ;;  %v6873_v61 = vadd.f32 %v6871_v7, %v6869_v57 }
0x2b4b   : > { %v16771_v44 = vadd.f32 %v6875_v59, %v16256_v10  ;;  %v6876_v58 = vmul.f32 %v6874_v56, %v6873_v61  ;;  %v14620_v10 = vld [vmem:[%s17804_s6 + $0x8] sm:$0xff]  }
0x2b4d   : > { %11824 = vst.msk [vmem:[%s15672_s22 + $0x30] sm:$0xff] %vm486_vm1, %v16771_v44  ;;  %v16777_v39 = vadd.f32 %v6876_v58, %v16262_v55  ;;  %v14621_v55 = vld [vmem:[%s17804_s6 + $0x10] sm:$0xff]  }
0x2b4f   : > { %11825 = vst.msk [vmem:[%s15672_s22 + $0x38] sm:$0xff] %vm486_vm1, %v16777_v39  ;;  %v16787_v53 = vpack.c.bf16 %v16777_v39, %v16771_v44 }
0x2b51   : > { %13803 = vmatmul.mubr.msk.bf16.vlgmr.msra.gmra.mrb[212].mxu1 %vm486_vm1, %v16787_v53 }
0x2b52   : > { %13827 = vmatpush3.bf16.msra.mxu1 %v14619_v60  ;;  %13834 = vmatprep.mubr.msk.bf16.mxu1 %vm15020_vm0, %v15019_v1 }
0x2b53   : > { %13828 = vmatprep.subr.bf16.mxu1 %v15019_v1 }
0x2b56   : > { %13829 = vmatpush3.bf16.msra.mxu1 %v14620_v10 }
0x2b57   : > { %13830 = vmatprep.subr.bf16.mxu1 %v15019_v1 }
0x2b5a   : > { %13831 = vmatpush3.bf16.msra.mxu1 %v14621_v55 }
0x2b5b   : > { %13832 = vmatprep.subr.bf16.mxu1 %v15019_v1 }
0x2b5e   : > { %13833 = vmatpush3.bf16.msra.mxu1 %v14622_v31 }
0x2b5f   : > { %13838 = vmatprep.subr.bf16.mxu1 %v15019_v1 }
0x2b61   : > { %13835 = vmatmul.mubr.msk.bf16.vlgmr.msra.gmra.mrb[216].mxu1 %vm486_vm1, %v16787_v53 }
0x2b62   : > { %13839 = vmatpush3.bf16.msra.mxu1 %v14623_v33  ;;  %13846 = vmatprep.mubr.msk.bf16.mxu1 %vm15020_vm0, %v15019_v1 }
0x2b63   : > { %13840 = vmatprep.subr.bf16.mxu1 %v15019_v1 }
0x2b66   : > { %13841 = vmatpush3.bf16.msra.mxu1 %v14624_v3 }
0x2b67   : > { %13842 = vmatprep.subr.bf16.mxu1 %v15019_v1 }
0x2b6a   : > { %13843 = vmatpush3.bf16.msra.mxu1 %v14625_v62 }
0x2b6b   : > { %13844 = vmatprep.subr.bf16.mxu1 %v15019_v1 }
0x2b6e   : > { %13845 = vmatpush3.bf16.msra.mxu1 %v14626_v51 }
0x2b6f   : > { %13862 = vmatprep.subr.bf16.mxu1 %v15019_v1 }
0x2b71   : > { %13847 = vmatmul.mubr.msk.bf16.vlgmr.msra.gmra.mrb[220].mxu1 %vm486_vm1, %v16787_v53 }
0x2b72   : > { %13864 = vmatprep.mubr.msk.bf16.mxu1 %vm15020_vm0, %v15019_v1 }
0x2c24   : > { %v6983_v15 = vpop.f32.mrb[212].mxu1 }
0x2c25   : > { %v6984_v0 = vadd.f32 %v11837_v14, %v6983_v15  ;;  %v13804_v2 = vpop.f32.mrb[213].mxu1 }
0x2c26   : > { %v6986_v41 = vpop.f32.mrb[214].mxu1 }
0x2c27   : > { %v6987_v43 = vadd.f32 %v11837_v14, %v6986_v41  ;;  %v13805_v21 = vpop.f32.mrb[215].mxu1  ;;  %v6990_v48 = vmax.f32 %v6984_v0, 0.0 }
0x2c29   : > { %v6991_v50 = vmax.f32 %v6987_v43, 0.0 }
0x2c2b   : > { %v6992_v5 = vpack.c.bf16 %v6991_v50, %v6990_v48 }
0x2c2d   : > { %13823 = vmatmul.mubr.bf16.vlgmr.msra.gmra.mrb[160].mxu0 %v6992_v5 }
0x2c2e   : > { %13851 = vmatpush3.bf16.msra.mxu0 %v14635_v63  ;;  %13858 = vmatprep.mubr.msk.bf16.mxu0 %vm15020_vm0, %v15019_v1 }
0x2c2f   : > { %13852 = vmatprep.subr.bf16.mxu0 %v15019_v1 }
0x2c32   : > { %13853 = vmatpush3.bf16.msra.mxu0 %v14636_v6 }
0x2c33   : > { %13854 = vmatprep.subr.bf16.mxu0 %v15019_v1 }
0x2c34   : > { %v7173_v36 = vpop.f32.mrb[216].mxu1 }
0x2c35   : > { %v13836_v38 = vpop.f32.mrb[217].mxu1  ;;  %v7174_v23 = vadd.f32 %v14930_v22, %v7173_v36  ;;  %v14639_v36 = vld [vmem:[%s17805_s7 + $0x20] sm:$0xff]  }
0x2c36   : > { %v7176_v4 = vpop.f32.mrb[218].mxu1  ;;  %13855 = vmatpush3.bf16.msra.mxu0 %v14637_v32 }
0x2c37   : > { %v13837_v9 = vpop.f32.mrb[219].mxu1  ;;  %13856 = vmatprep.subr.bf16.mxu0 %v15019_v1  ;;  %v12338_v25 = vpack.c.bf16 %v7174_v23, %v7174_v23  ;;  %v7177_v27 = vadd.f32 %v14930_v22, %v7176_v4  ;;  %v14649_v22 = vld [vmem:[%s17806_s8 + $0x30] sm:$0xff]   ;;  %v14650_v23 = vld [vmem:[%s17806_s8 + $0x38] sm:$0xff]  }
0x2c38   : > { %v14640_v9 = vld [vmem:[%s17804_s6 + $0x20] sm:$0xff]  }
0x2c39   : > { %v12339_v28 = vpack.c.bf16 %v7177_v27, %v7177_v27 }
0x2c3a   : > { %13857 = vmatpush3.bf16.msra.mxu0 %v14638_v8 }
0x2c3b   : > { %13874 = vmatprep.subr.bf16.mxu0 %v15019_v1 }
0x2c3d   : > { %13859 = vmatmul.mubr.msk.bf16.vlgmr.msra.gmra.mrb[164].mxu0 %vm486_vm1, %v16787_v53 }
0x2c3e   : > { %13876 = vmatprep.mubr.msk.bf16.mxu0 %vm15020_vm0, %v15019_v1 }
0x2c44   : > { %v7246_v11 = vpop.f32.mrb[220].mxu1 }
0x2c45   : > { %v7247_v13 = vadd.f32 %v14929_v12, %v7246_v11  ;;  %v13848_v17 = vpop.f32.mrb[221].mxu1  ;;  %v14641_v11 = vld [vmem:[%s17805_s7 + $0x28] sm:$0xff]  }
0x2c46   : > { %v7249_v18 = vpop.f32.mrb[222].mxu1  ;;  %v14643_v17 = vld [vmem:[%s17805_s7 + $0x30] sm:$0xff]  }
0x2c47   : > { %v12340_v42 = vpack.c.bf16 %v7247_v13, %v7247_v13  ;;  %v13849_v47 = vpop.f32.mrb[223].mxu1  ;;  %v7250_v19 = vadd.f32 %v14929_v12, %v7249_v18  ;;  %v14642_v13 = vld [vmem:[%s17804_s6 + $0x28] sm:$0xff]   ;;  %v14644_v18 = vld [vmem:[%s17804_s6 + $0x30] sm:$0xff]  }
0x2c48   : > { %v14646_v47 = vld [vmem:[%s17804_s6 + $0x38] sm:$0xff]  }
0x2c49   : > { %v7348_v52 = vsel %vm1057_vm2, %v12340_v42, 0  ;;  %v12341_v24 = vpack.c.bf16 %v7250_v19, %v7250_v19  ;;  %v14645_v42 = vld [vmem:[%s17805_s7 + $0x38] sm:$0xff]   ;;  %v14648_v19 = vld [vmem:[%s17806_s8 + $0x28] sm:$0xff]  }
0x2c4a   : > { %13863 = vmatpush3.bf16.xpose.msra.mxu1 %v7348_v52  ;;  %v14647_v52 = vld [vmem:[%s17806_s8 + $0x20] sm:$0xff]  }
0x2c4b   : > { %13868 = vmatprep.subr.bf16.mxu1 %v15019_v1  ;;  %v7394_v26 = vsel %vm1057_vm2, %v12341_v24, 0 }
0x2c51   : > { %13865 = vmatmul.mubr.msk.bf16.vlgmr.msra.gmra.mrb[224].mxu1 %vm1057_vm2, %v12338_v25 }
0x2c52   : > { %13869 = vmatpush3.bf16.xpose.msra.mxu1 %v7394_v26  ;;  %13870 = vmatprep.mubr.msk.bf16.mxu1 %vm15020_vm0, %v15019_v1 }
0x2c53   : > { %13880 = vmatprep.subr.bf16.mxu1 %v15019_v1 }
0x2c59   : > { %13871 = vmatmul.mubr.msk.bf16.vlgmr.msra.gmra.mrb[228].mxu1 %vm1057_vm2, %v12339_v28 }
0x2c5a   : > { %13882 = vmatprep.mubr.msk.bf16.mxu1 %vm15020_vm0, %v15019_v1 }
0x2d00   : > { %v16879_v49 = vpop.f32.mrb[160].mxu0 }
0x2d01   : > { %v13824_v54 = vpop.f32.mrb[161].mxu0 }
0x2d02   : > { %v16881_v29 = vpop.f32.mrb[162].mxu0 }
0x2d03   : > { %v13825_v30 = vpop.f32.mrb[163].mxu0 }
0x2d10   : > { %v7319_v34 = vpop.f32.mrb[164].mxu0 }
0x2d11   : > { %v7320_v40 = vadd.f32 %v14931_v35, %v7319_v34  ;;  %v13860_v45 = vpop.f32.mrb[165].mxu0 }
0x2d12   : > { %v7322_v46 = vpop.f32.mrb[166].mxu0  ;;  %v14932_v45 = vld [vmem:[%s17808_s10 + $0x1] ss:$0 sm:$0xff] }
0x2d13   : > { %v12342_v56 = vpack.c.bf16 %v7320_v40, %v7320_v40  ;;  %v7323_v37 = vadd.f32 %v14931_v35, %v7322_v46  ;;  %v13861_v57 = vpop.f32.mrb[167].mxu0 }
0x2d15   : > { %v7464_v7 = vsel %vm1178_vm3, %v12342_v56, 0  ;;  %v12343_v59 = vpack.c.bf16 %v7323_v37, %v7323_v37 }
0x2d16   : > { %13875 = vmatpush3.bf16.msra.mxu0 %v7464_v7 }
0x2d17   : > { %v7510_v61 = vsel %vm1178_vm3, %v12343_v59, 0  ;;  %13886 = vmatprep.subr.bf16.mxu0 %v15019_v1 }
0x2d18   : > { %13881 = vmatpush3.bf16.msra.mxu1 %v7510_v61 }
0x2d19   : > { %13898 = vmatprep.subr.bf16.mxu1 %v15019_v1 }
0x2d24   : > { %v7384_v58 = vpop.f32.mrb[224].mxu1 }
0x2d25   : > { %v13866_v60 = vpop.f32.mrb[225].mxu1  ;;  %v7436_v10 = vsel %vm1150_vm4, %v7384_v58, -inf }
0x2d26   : > { %7437 = vmax.xlane.f32.xlu0 %v7436_v10  ;;  %v7387_v55 = vpop.f32.mrb[226].mxu1 }
0x2d27   : > { %v13867_v31 = vpop.f32.mrb[227].mxu1  ;;  %v14933_v55 = vld [vmem:[%s17807_s9 + $0x1] ss:$0 sm:$0xff] }
0x2d2c   : > { %v7430_v33 = vpop.f32.mrb[228].mxu1 }
0x2d2d   : > { %v13872_v3 = vpop.f32.mrb[229].mxu1  ;;  %v7439_v62 = vsel %vm1150_vm4, %v7430_v33, -inf }
0x2d2e   : > { %7440 = vmax.xlane.f32.xlu1 %v7439_v62  ;;  %v7433_v51 = vpop.f32.mrb[230].mxu1 }
0x2d2f   : > { %v13873_v16 = vpop.f32.mrb[231].mxu1 }
0x2db3   : > { %v7438_v20 = vpop.xlane.xlu0 %7437 }
0x2db4   : > { %v7442_v14 = vsub.f32 %v7384_v58, %v7438_v20 }
0x2db6   : > { %v7444_v2 = vmul.f32 1.442695, %v7442_v14 }
0x2dbb   : > { %v7441_v15 = vpop.xlane.xlu1 %7440 }
0x2dbc   : > { %v7443_v0 = vsub.f32 %v7430_v33, %v7441_v15  ;;  %v14934_v15 = vld [vmem:[%s17809_s11 + $0x1] ss:$0 sm:$0xff] }
0x2dbe   : > { %v7446_v41 = vmul.f32 1.442695, %v7443_v0 }
0x2dc0   : > { %14831 = vpow2.f32 %v7446_v41 }
0x2dc1   : > { %14833 = vpow2.f32 %v7444_v2 }
0x2dca   : > { %v14832_v43 = vpop.eup %14831 }
0x2dcb   : > { %v7451_v21 = vsel %vm1150_vm4, %v14832_v43, 0.0  ;;  %v14834_v48 = vpop.eup %14833 }
0x2dcc   : > { %7452 = vadd.xlane.f32.xlu0 %v7451_v21  ;;  %v7448_v50 = vsel %vm1150_vm4, %v14834_v48, 0.0 }
0x2dd0   : > { %7449 = vadd.xlane.f32.xlu0 %v7448_v50 }
0x2e59   : > { %v7453_v63 = vpop.xlane.xlu0 %7452 }
0x2e5a   : > { %14835 = vrcp.f32 %v7453_v63 }
0x2e5d   : > { %v7450_v5 = vpop.xlane.xlu0 %7449 }
0x2e5e   : > { %14837 = vrcp.f32 %v7450_v5 }
0x2e64   : > { %v14836_v6 = vpop.eup %14835 }
0x2e65   : > { %v7457_v32 = vmul.f32 %v14836_v6, %v14832_v43 }
0x2e67   : > { %v7459_v38 = vpack.c.bf16 %v7457_v32, %v7457_v32 }
0x2e68   : > { %v14838_v4 = vpop.eup %14837 }
0x2e69   : > { %v7455_v8 = vmul.f32 %v14838_v4, %v14834_v48  ;;  %13883 = vmatmul.mubr.msk.bf16.vlgmr.msra.gmra.mrb[232].mxu1 %vm1150_vm4, %v7459_v38 }
0x2e6a   : > { %13899 = vmatpush3.bf16.msra.mxu1 %v14639_v36  ;;  %13906 = vmatprep.mubr.msk.bf16.mxu1 %vm15020_vm0, %v15019_v1 }
0x2e6b   : > { %13900 = vmatprep.subr.bf16.mxu1 %v15019_v1  ;;  %v7458_v12 = vpack.c.bf16 %v7455_v8, %v7455_v8 }
0x2e6d   : > { %13877 = vmatmul.mubr.msk.bf16.vlgmr.msra.gmra.mrb[168].mxu0 %vm1150_vm4, %v7458_v12 }
0x2e6e   : > { %13887 = vmatpush3.bf16.msra.mxu0 %v14640_v9  ;;  %13901 = vmatpush3.bf16.msra.mxu1 %v14641_v11 }
0x2e6f   : > { %13888 = vmatprep.subr.bf16.mxu0 %v15019_v1  ;;  %13902 = vmatprep.subr.bf16.mxu1 %v15019_v1 }
0x2e70   : > { %13894 = vmatprep.mubr.msk.bf16.mxu0 %vm15020_vm0, %v15019_v1 }
0x2e72   : > { %13889 = vmatpush3.bf16.msra.mxu0 %v14642_v13  ;;  %13903 = vmatpush3.bf16.msra.mxu1 %v14643_v17 }
0x2e73   : > { %13890 = vmatprep.subr.bf16.mxu0 %v15019_v1  ;;  %13904 = vmatprep.subr.bf16.mxu1 %v15019_v1 }
0x2e76   : > { %13891 = vmatpush3.bf16.msra.mxu0 %v14644_v18  ;;  %13905 = vmatpush3.bf16.msra.mxu1 %v14645_v42 }
0x2e77   : > { %13892 = vmatprep.subr.bf16.mxu0 %v15019_v1  ;;  %13922 = vmatprep.subr.bf16.mxu1 %v15019_v1 }
0x2e79   : > { %13907 = vmatmul.mubr.msk.bf16.vlgmr.msra.gmra.mrb[236].mxu1 %vm486_vm1, %v16787_v53 }
0x2e7a   : > { %13893 = vmatpush3.bf16.msra.mxu0 %v14646_v47  ;;  %13924 = vmatprep.mubr.msk.bf16.mxu1 %vm15020_vm0, %v15019_v1 }
0x2e7b   : > { %13910 = vmatprep.subr.bf16.mxu0 %v15019_v1 }
0x2e7d   : > { %13895 = vmatmul.mubr.msk.bf16.vlgmr.msra.gmra.mrb[172].mxu0 %vm486_vm1, %v16787_v53 }
0x2e7e   : > { %13911 = vmatpush3.bf16.msra.mxu0 %v14647_v52  ;;  %13918 = vmatprep.mubr.msk.bf16.mxu0 %vm15020_vm0, %v15019_v1 }
0x2e7f   : > { %13912 = vmatprep.subr.bf16.mxu0 %v15019_v1 }
0x2e82   : > { %13913 = vmatpush3.bf16.msra.mxu0 %v14648_v19 }
0x2e83   : > { %13914 = vmatprep.subr.bf16.mxu0 %v15019_v1 }
0x2e86   : > { %13915 = vmatpush3.bf16.msra.mxu0 %v14649_v22 }
0x2e87   : > { %13916 = vmatprep.subr.bf16.mxu0 %v15019_v1 }
0x2e8a   : > { %13917 = vmatpush3.bf16.msra.mxu0 %v14650_v23 }
0x2e8b   : > { %13934 = vmatprep.subr.bf16.mxu0 %v15019_v1 }
0x2e8d   : > { %13919 = vmatmul.mubr.msk.bf16.vlgmr.msra.gmra.mrb[176].mxu0 %vm486_vm1, %v16787_v53 }
0x2e8e   : > { %13936 = vmatprep.mubr.msk.bf16.mxu0 %vm15020_vm0, %v15019_v1 }
0x2f3c   : > { %v16960_v24 = vpop.f32.mrb[232].mxu1 }
0x2f3d   : > { %v13884_v25 = vpop.f32.mrb[233].mxu1 }
0x2f3e   : > { %v7549_v26 = vpop.f32.mrb[234].mxu1 }
0x2f3f   : > { %v13885_v27 = vpop.f32.mrb[235].mxu1 }
0x2f40   : > { %v16962_v28 = vpop.f32.mrb[168].mxu0 }
0x2f41   : > { %v7552_v54 = vpack.c.bf16 %v16960_v24, %v16962_v28  ;;  %v13878_v30 = vpop.f32.mrb[169].mxu0  ;;  %v14677_v24 = vld [vmem:[%s17800_s2 + $0x90] sm:$0xff]   ;;  %v14678_v28 = vld [vmem:[%s17800_s2 + $0x98] sm:$0xff]  }
0x2f42   : > { %v7503_v34 = vpop.f32.mrb[170].mxu0 }
0x2f43   : > { %v13879_v35 = vpop.f32.mrb[171].mxu0 }
0x2f4c   : > { %v7692_v40 = vpop.f32.mrb[236].mxu1 }
0x2f4d   : > { %v7693_v46 = vadd.f32 %v14932_v45, %v7692_v40  ;;  %v13908_v56 = vpop.f32.mrb[237].mxu1  ;;  %v14651_v40 = vld [vmem:[%s17804_s6 + $0x40] sm:$0xff]  }
0x2f4e   : > { %v7695_v37 = vpop.f32.mrb[238].mxu1 }
0x2f4f   : > { %v12346_v57 = vpack.c.bf16 %v7693_v46, %v7693_v46  ;;  %v13909_v7 = vpop.f32.mrb[239].mxu1  ;;  %v7696_v58 = vadd.f32 %v14932_v45, %v7695_v37  ;;  %v14652_v46 = vld [vmem:[%s17804_s6 + $0x48] sm:$0xff]  }
0x2f50   : > { %v7619_v59 = vpop.f32.mrb[172].mxu0  ;;  %v14654_v7 = vld [vmem:[%s17805_s7 + $0x40] sm:$0xff]  }
0x2f51   : > { %v7794_v61 = vsel %vm1057_vm2, %v12346_v57, 0  ;;  %v13896_v60 = vpop.f32.mrb[173].mxu0  ;;  %v7620_v31 = vadd.f32 %v14933_v55, %v7619_v59  ;;  %v12347_v3 = vpack.c.bf16 %v7696_v58, %v7696_v58  ;;  %v14653_v57 = vld [vmem:[%s17804_s6 + $0x50] sm:$0xff]   ;;  %v14656_v58 = vld [vmem:[%s17805_s7 + $0x48] sm:$0xff]  }
0x2f52   : > { %v7622_v10 = vpop.f32.mrb[174].mxu0  ;;  %13923 = vmatpush3.bf16.xpose.msra.mxu1 %v7794_v61  ;;  %v14655_v61 = vld [vmem:[%s17804_s6 + $0x58] sm:$0xff]   ;;  %v14657_v60 = vld [vmem:[%s17805_s7 + $0x50] sm:$0xff]  }
0x2f53   : > { %v13897_v33 = vpop.f32.mrb[175].mxu0  ;;  %13928 = vmatprep.subr.bf16.mxu1 %v15019_v1  ;;  %v12344_v62 = vpack.c.bf16 %v7620_v31, %v7620_v31  ;;  %v7840_v51 = vsel %vm1057_vm2, %v12347_v3, 0  ;;  %v7623_v16 = vadd.f32 %v14933_v55, %v7622_v10  ;;  %v14658_v10 = vld [vmem:[%s17806_s8 + $0x40] sm:$0xff]   ;;  %v14659_v55 = vld [vmem:[%s17805_s7 + $0x58] sm:$0xff]   ;;  %v14660_v31 = vld [vmem:[%s17806_s8 + $0x48] sm:$0xff]  }
0x2f54   : > { %v14661_v33 = vld [vmem:[%s17806_s8 + $0x50] sm:$0xff]   ;;  %v14662_v3 = vld [vmem:[%s17806_s8 + $0x58] sm:$0xff]  }
0x2f55   : > { %v12345_v20 = vpack.c.bf16 %v7623_v16, %v7623_v16 }
0x2f59   : > { %13925 = vmatmul.mubr.msk.bf16.vlgmr.msra.gmra.mrb[240].mxu1 %vm1057_vm2, %v12344_v62 }
0x2f5a   : > { %13929 = vmatpush3.bf16.xpose.msra.mxu1 %v7840_v51  ;;  %13930 = vmatprep.mubr.msk.bf16.mxu1 %vm15020_vm0, %v15019_v1 }
0x2f5b   : > { %13940 = vmatprep.subr.bf16.mxu1 %v15019_v1 }
0x2f60   : > { %v7765_v14 = vpop.f32.mrb[176].mxu0 }
0x2f61   : > { %v7766_v0 = vadd.f32 %v14934_v15, %v7765_v14  ;;  %v13920_v2 = vpop.f32.mrb[177].mxu0  ;;  %13931 = vmatmul.mubr.msk.bf16.vlgmr.msra.gmra.mrb[244].mxu1 %vm1057_vm2, %v12345_v20 }
0x2f62   : > { %v7768_v41 = vpop.f32.mrb[178].mxu0  ;;  %13942 = vmatprep.mubr.msk.bf16.mxu1 %vm15020_vm0, %v15019_v1 }
0x2f63   : > { %v12348_v43 = vpack.c.bf16 %v7766_v0, %v7766_v0  ;;  %v7769_v21 = vadd.f32 %v14934_v15, %v7768_v41  ;;  %v13921_v48 = vpop.f32.mrb[179].mxu0 }
0x2f65   : > { %v7910_v50 = vsel %vm1178_vm3, %v12348_v43, 0  ;;  %v12349_v63 = vpack.c.bf16 %v7769_v21, %v7769_v21 }
0x2f66   : > { %13935 = vmatpush3.bf16.msra.mxu0 %v7910_v50 }
0x2f67   : > { %v7956_v5 = vsel %vm1178_vm3, %v12349_v63, 0  ;;  %13946 = vmatprep.subr.bf16.mxu0 %v15019_v1 }
0x2f68   : > { %13941 = vmatpush3.bf16.msra.mxu1 %v7956_v5  ;;  %v14935_v5 = vld [vmem:[%s17808_s10 + $0x2] ss:$0 sm:$0xff] }
0x2f69   : > { %13958 = vmatprep.subr.bf16.mxu1 %v15019_v1 }
0x302c   : > { %v7830_v6 = vpop.f32.mrb[240].mxu1 }
0x302d   : > { %v13926_v32 = vpop.f32.mrb[241].mxu1  ;;  %v7882_v36 = vsel %vm1150_vm4, %v7830_v6, -inf }
0x302e   : > { %7883 = vmax.xlane.f32.xlu0 %v7882_v36  ;;  %v7833_v38 = vpop.f32.mrb[242].mxu1 }
0x302f   : > { %v13927_v4 = vpop.f32.mrb[243].mxu1 }
0x3034   : > { %v7876_v8 = vpop.f32.mrb[244].mxu1 }
0x3035   : > { %v13932_v9 = vpop.f32.mrb[245].mxu1  ;;  %v7885_v11 = vsel %vm1150_vm4, %v7876_v8, -inf }
0x3036   : > { %7886 = vmax.xlane.f32.xlu1 %v7885_v11  ;;  %v7879_v12 = vpop.f32.mrb[246].mxu1  ;;  %v14936_v11 = vld [vmem:[%s17807_s9 + $0x2] ss:$0 sm:$0xff] }
0x3037   : > { %v13933_v13 = vpop.f32.mrb[247].mxu1 }
0x30bb   : > { %v7884_v17 = vpop.xlane.xlu0 %7883 }
0x30bc   : > { %v7888_v18 = vsub.f32 %v7830_v6, %v7884_v17 }
0x30be   : > { %v7890_v42 = vmul.f32 1.442695, %v7888_v18  ;;  %v14937_v18 = vld [vmem:[%s17809_s11 + $0x2] ss:$0 sm:$0xff] }
0x30c0   : > { %14839 = vpow2.f32 %v7890_v42 }
0x30c3   : > { %v7887_v47 = vpop.xlane.xlu1 %7886 }
0x30c4   : > { %v7889_v52 = vsub.f32 %v7876_v8, %v7887_v47 }
0x30c6   : > { %v7892_v19 = vmul.f32 1.442695, %v7889_v52 }
0x30c8   : > { %14841 = vpow2.f32 %v7892_v19 }
0x30ca   : > { %v14840_v22 = vpop.eup %14839 }
0x30cb   : > { %v7894_v23 = vsel %vm1150_vm4, %v14840_v22, 0.0 }
0x30cc   : > { %7895 = vadd.xlane.f32.xlu0 %v7894_v23 }
0x30d2   : > { %v14842_v25 = vpop.eup %14841 }
0x30d3   : > { %v7897_v26 = vsel %vm1150_vm4, %v14842_v25, 0.0 }
0x30d4   : > { %7898 = vadd.xlane.f32.xlu1 %v7897_v26 }
0x3159   : > { %v7896_v27 = vpop.xlane.xlu0 %7895 }
0x315a   : > { %14843 = vrcp.f32 %v7896_v27 }
0x3161   : > { %v7899_v30 = vpop.xlane.xlu1 %7898 }
0x3162   : > { %14845 = vrcp.f32 %v7899_v30 }
0x3164   : > { %v14844_v34 = vpop.eup %14843 }
0x3165   : > { %v7901_v35 = vmul.f32 %v14844_v34, %v14840_v22 }
0x3167   : > { %v7904_v45 = vpack.c.bf16 %v7901_v35, %v7901_v35 }
0x3169   : > { %13937 = vmatmul.mubr.msk.bf16.vlgmr.msra.gmra.mrb[180].mxu0 %vm1150_vm4, %v7904_v45 }
0x316a   : > { %13947 = vmatpush3.bf16.msra.mxu0 %v14651_v40  ;;  %13954 = vmatprep.mubr.msk.bf16.mxu0 %vm15020_vm0, %v15019_v1 }
0x316b   : > { %13948 = vmatprep.subr.bf16.mxu0 %v15019_v1 }
0x316c   : > { %v14846_v56 = vpop.eup %14845 }
0x316d   : > { %v7903_v37 = vmul.f32 %v14846_v56, %v14842_v25 }
0x316e   : > { %13949 = vmatpush3.bf16.msra.mxu0 %v14652_v46 }
0x316f   : > { %13950 = vmatprep.subr.bf16.mxu0 %v15019_v1  ;;  %v7905_v59 = vpack.c.bf16 %v7903_v37, %v7903_v37 }
0x3171   : > { %13943 = vmatmul.mubr.msk.bf16.vlgmr.msra.gmra.mrb[248].mxu1 %vm1150_vm4, %v7905_v59 }
0x3172   : > { %13951 = vmatpush3.bf16.msra.mxu0 %v14653_v57  ;;  %13959 = vmatpush3.bf16.msra.mxu1 %v14654_v7 }
0x3173   : > { %13952 = vmatprep.subr.bf16.mxu0 %v15019_v1  ;;  %13960 = vmatprep.subr.bf16.mxu1 %v15019_v1 }
0x3174   : > { %13966 = vmatprep.mubr.msk.bf16.mxu1 %vm15020_vm0, %v15019_v1 }
0x3176   : > { %13953 = vmatpush3.bf16.msra.mxu0 %v14655_v61  ;;  %13961 = vmatpush3.bf16.msra.mxu1 %v14656_v58 }
0x3177   : > { %13962 = vmatprep.subr.bf16.mxu1 %v15019_v1  ;;  %13970 = vmatprep.subr.bf16.mxu0 %v15019_v1 }
0x3179   : > { %13955 = vmatmul.mubr.msk.bf16.vlgmr.msra.gmra.mrb[184].mxu0 %vm486_vm1, %v16787_v53 }
0x317a   : > { %13963 = vmatpush3.bf16.msra.mxu1 %v14657_v60  ;;  %13971 = vmatpush3.bf16.msra.mxu0 %v14658_v10 }
0x317b   : > { %13964 = vmatprep.subr.bf16.mxu1 %v15019_v1  ;;  %13972 = vmatprep.subr.bf16.mxu0 %v15019_v1 }
0x317c   : > { %13978 = vmatprep.mubr.msk.bf16.mxu0 %vm15020_vm0, %v15019_v1 }
0x317e   : > { %13965 = vmatpush3.bf16.msra.mxu1 %v14659_v55  ;;  %13973 = vmatpush3.bf16.msra.mxu0 %v14660_v31 }
0x317f   : > { %13974 = vmatprep.subr.bf16.mxu0 %v15019_v1  ;;  %13982 = vmatprep.subr.bf16.mxu1 %v15019_v1 }
0x3181   : > { %13967 = vmatmul.mubr.msk.bf16.vlgmr.msra.gmra.mrb[252].mxu1 %vm486_vm1, %v16787_v53 }
0x3182   : > { %13975 = vmatpush3.bf16.msra.mxu0 %v14661_v33  ;;  %13984 = vmatprep.mubr.msk.bf16.mxu1 %vm15020_vm0, %v15019_v1 }
0x3183   : > { %13976 = vmatprep.subr.bf16.mxu0 %v15019_v1 }
0x3186   : > { %13977 = vmatpush3.bf16.msra.mxu0 %v14662_v3 }
0x3187   : > { %13994 = vmatprep.subr.bf16.mxu0 %v15019_v1 }
0x3189   : > { %13979 = vmatmul.mubr.msk.bf16.vlgmr.msra.gmra.mrb[188].mxu0 %vm486_vm1, %v16787_v53 }
0x318a   : > { %13996 = vmatprep.mubr.msk.bf16.mxu0 %vm15020_vm0, %v15019_v1 }
0x323c   : > { %v17059_v62 = vpop.f32.mrb[180].mxu0 }
0x323d   : > { %v13938_v51 = vpop.f32.mrb[181].mxu0 }
0x323e   : > { %v7949_v16 = vpop.f32.mrb[182].mxu0 }
0x323f   : > { %v13939_v20 = vpop.f32.mrb[183].mxu0 }
0x3244   : > { %v17061_v14 = vpop.f32.mrb[248].mxu1 }
0x3245   : > { %v7998_v15 = vpack.c.bf16 %v17061_v14, %v17059_v62  ;;  %v13944_v0 = vpop.f32.mrb[249].mxu1 }
0x3246   : > { %v7995_v2 = vpop.f32.mrb[250].mxu1 }
0x3247   : > { %v13945_v41 = vpop.f32.mrb[251].mxu1 }
0x324c   : > { %v8065_v43 = vpop.f32.mrb[184].mxu0 }
0x324d   : > { %v13956_v21 = vpop.f32.mrb[185].mxu0  ;;  %v8066_v12 = vadd.f32 %v14936_v11, %v8065_v43 }
0x324e   : > { %v8068_v48 = vpop.f32.mrb[186].mxu0 }
0x324f   : > { %v13957_v50 = vpop.f32.mrb[187].mxu0  ;;  %v12350_v19 = vpack.c.bf16 %v8066_v12, %v8066_v12  ;;  %v8069_v30 = vadd.f32 %v14936_v11, %v8068_v48  ;;  %v14669_v11 = vld [vmem:[%s17805_s7 + $0x70] sm:$0xff]   ;;  %v14670_v12 = vld [vmem:[%s17806_s8 + $0x60] sm:$0xff]  }
0x3250   : > { %v14663_v50 = vld [vmem:[%s17804_s6 + $0x60] sm:$0xff]  }
0x3251   : > { %v12351_v35 = vpack.c.bf16 %v8069_v30, %v8069_v30 }
0x3254   : > { %v8138_v63 = vpop.f32.mrb[252].mxu1 }
0x3255   : > { %v8139_v6 = vadd.f32 %v14935_v5, %v8138_v63  ;;  %v13968_v32 = vpop.f32.mrb[253].mxu1 }
0x3256   : > { %v8141_v36 = vpop.f32.mrb[254].mxu1 }
0x3257   : > { %v12352_v38 = vpack.c.bf16 %v8139_v6, %v8139_v6  ;;  %v13969_v4 = vpop.f32.mrb[255].mxu1  ;;  %v8142_v9 = vadd.f32 %v14935_v5, %v8141_v36  ;;  %v14664_v5 = vld [vmem:[%s17804_s6 + $0x68] sm:$0xff]   ;;  %v14665_v36 = vld [vmem:[%s17804_s6 + $0x70] sm:$0xff]  }
0x3259   : > { %v8240_v8 = vsel %vm1057_vm2, %v12352_v38, 0  ;;  %v12353_v17 = vpack.c.bf16 %v8142_v9, %v8142_v9  ;;  %v14666_v38 = vld [vmem:[%s17805_s7 + $0x60] sm:$0xff]   ;;  %v14668_v9 = vld [vmem:[%s17805_s7 + $0x68] sm:$0xff]  }
0x325a   : > { %13983 = vmatpush3.bf16.xpose.msra.mxu1 %v8240_v8  ;;  %v14667_v8 = vld [vmem:[%s17804_s6 + $0x78] sm:$0xff]  }
0x325b   : > { %13988 = vmatprep.subr.bf16.mxu1 %v15019_v1  ;;  %v8286_v25 = vsel %vm1057_vm2, %v12353_v17, 0  ;;  %v14672_v17 = vld [vmem:[%s17806_s8 + $0x68] sm:$0xff]  }
0x325c   : > { %v8211_v13 = vpop.f32.mrb[188].mxu0 }
0x325d   : > { %v8212_v42 = vadd.f32 %v14937_v18, %v8211_v13  ;;  %v13980_v47 = vpop.f32.mrb[189].mxu0  ;;  %v14671_v13 = vld [vmem:[%s17805_s7 + $0x78] sm:$0xff]  }
0x325e   : > { %v8214_v52 = vpop.f32.mrb[190].mxu0 }
0x325f   : > { %v12354_v22 = vpack.c.bf16 %v8212_v42, %v8212_v42  ;;  %v13981_v23 = vpop.f32.mrb[191].mxu0  ;;  %v8215_v27 = vadd.f32 %v14937_v18, %v8214_v52  ;;  %v14673_v18 = vld [vmem:[%s17806_s8 + $0x70] sm:$0xff]   ;;  %v14674_v42 = vld [vmem:[%s17806_s8 + $0x78] sm:$0xff]  }
0x3261   : > { %v8356_v26 = vsel %vm1178_vm3, %v12354_v22, 0  ;;  %13985 = vmatmul.mubr.msk.bf16.vlgmr.msra.gmra.mrb[0].mxu1 %vm1057_vm2, %v12350_v19  ;;  %v12355_v34 = vpack.c.bf16 %v8215_v27, %v8215_v27 }
0x3262   : > { %13989 = vmatpush3.bf16.xpose.msra.mxu1 %v8286_v25  ;;  %13995 = vmatpush3.bf16.msra.mxu0 %v8356_v26 }
0x3263   : > { %13990 = vmatprep.mubr.msk.bf16.mxu1 %vm15020_vm0, %v15019_v1  ;;  %14000 = vmatprep.subr.bf16.mxu1 %v15019_v1  ;;  %v8402_v40 = vsel %vm1178_vm3, %v12355_v34, 0 }
0x3264   : > { %14006 = vmatprep.subr.bf16.mxu0 %v15019_v1 }
0x3269   : > { %13991 = vmatmul.mubr.msk.bf16.vlgmr.msra.gmra.mrb[4].mxu1 %vm1057_vm2, %v12351_v35 }
0x326a   : > { %14001 = vmatpush3.bf16.msra.mxu1 %v8402_v40  ;;  %14002 = vmatprep.mubr.msk.bf16.mxu1 %vm15020_vm0, %v15019_v1 }
0x326b   : > { %14018 = vmatprep.subr.bf16.mxu1 %v15019_v1 }
0x3334   : > { %v8276_v45 = vpop.f32.mrb[0].mxu1 }
0x3335   : > { %v13986_v46 = vpop.f32.mrb[1].mxu1  ;;  %v8328_v56 = vsel %vm1150_vm4, %v8276_v45, -inf }
0x3336   : > { %8329 = vmax.xlane.f32.xlu0 %v8328_v56  ;;  %v8279_v37 = vpop.f32.mrb[2].mxu1  ;;  %v14938_v46 = vld [vmem:[%s17808_s10 + $0x3] ss:$0 sm:$0xff] }
0x3337   : > { %v13987_v57 = vpop.f32.mrb[3].mxu1 }
0x333c   : > { %v8322_v7 = vpop.f32.mrb[4].mxu1 }
0x333d   : > { %v13992_v59 = vpop.f32.mrb[5].mxu1  ;;  %v8331_v61 = vsel %vm1150_vm4, %v8322_v7, -inf }
0x333e   : > { %8332 = vmax.xlane.f32.xlu1 %v8331_v61  ;;  %v8325_v58 = vpop.f32.mrb[6].mxu1 }
0x333f   : > { %v13993_v60 = vpop.f32.mrb[7].mxu1 }
0x3340   : > { %v14939_v60 = vld [vmem:[%s17807_s9 + $0x3] ss:$0 sm:$0xff] }
0x33c3   : > { %v8330_v10 = vpop.xlane.xlu0 %8329 }
0x33c4   : > { %v8334_v55 = vsub.f32 %v8276_v45, %v8330_v10 }
0x33c6   : > { %v8336_v31 = vmul.f32 1.442695, %v8334_v55 }
0x33c8   : > { %14847 = vpow2.f32 %v8336_v31 }
0x33cb   : > { %v8333_v33 = vpop.xlane.xlu1 %8332 }
0x33cc   : > { %v8335_v3 = vsub.f32 %v8322_v7, %v8333_v33  ;;  %v14940_v33 = vld [vmem:[%s17809_s11 + $0x3] ss:$0 sm:$0xff] }
0x33ce   : > { %v8338_v51 = vmul.f32 1.442695, %v8335_v3 }
0x33d0   : > { %14849 = vpow2.f32 %v8338_v51 }
0x33d2   : > { %v14848_v16 = vpop.eup %14847 }
0x33d3   : > { %v8340_v20 = vsel %vm1150_vm4, %v14848_v16, 0.0 }
0x33d4   : > { %8341 = vadd.xlane.f32.xlu0 %v8340_v20 }
0x33da   : > { %v14850_v0 = vpop.eup %14849 }
0x33db   : > { %v8343_v2 = vsel %vm1150_vm4, %v14850_v0, 0.0 }
0x33dc   : > { %8344 = vadd.xlane.f32.xlu1 %v8343_v2 }
0x3461   : > { %v8342_v41 = vpop.xlane.xlu0 %8341 }
0x3462   : > { %14851 = vrcp.f32 %v8342_v41 }
0x3469   : > { %v8345_v43 = vpop.xlane.xlu1 %8344 }
0x346a   : > { %14853 = vrcp.f32 %v8345_v43 }
0x346c   : > { %v14852_v21 = vpop.eup %14851 }
0x346d   : > { %v8347_v48 = vmul.f32 %v14852_v21, %v14848_v16 }
0x346f   : > { %v8350_v63 = vpack.c.bf16 %v8347_v48, %v8347_v48 }
0x3471   : > { %13997 = vmatmul.mubr.msk.bf16.vlgmr.msra.gmra.mrb[192].mxu0 %vm1150_vm4, %v8350_v63 }
0x3472   : > { %14007 = vmatpush3.bf16.msra.mxu0 %v14663_v50  ;;  %14014 = vmatprep.mubr.msk.bf16.mxu0 %vm15020_vm0, %v15019_v1 }
0x3473   : > { %14008 = vmatprep.subr.bf16.mxu0 %v15019_v1 }
0x3474   : > { %v14854_v6 = vpop.eup %14853 }
0x3475   : > { %v8349_v32 = vmul.f32 %v14854_v6, %v14850_v0 }
0x3476   : > { %14009 = vmatpush3.bf16.msra.mxu0 %v14664_v5 }
0x3477   : > { %v8351_v4 = vpack.c.bf16 %v8349_v32, %v8349_v32  ;;  %14010 = vmatprep.subr.bf16.mxu0 %v15019_v1 }
0x3479   : > { %14003 = vmatmul.mubr.msk.bf16.vlgmr.msra.gmra.mrb[8].mxu1 %vm1150_vm4, %v8351_v4 }
0x347a   : > { %14011 = vmatpush3.bf16.msra.mxu0 %v14665_v36  ;;  %14019 = vmatpush3.bf16.msra.mxu1 %v14666_v38 }
0x347b   : > { %14012 = vmatprep.subr.bf16.mxu0 %v15019_v1  ;;  %14020 = vmatprep.subr.bf16.mxu1 %v15019_v1 }
0x347c   : > { %14026 = vmatprep.mubr.msk.bf16.mxu1 %vm15020_vm0, %v15019_v1 }
0x347e   : > { %14013 = vmatpush3.bf16.msra.mxu0 %v14667_v8  ;;  %14021 = vmatpush3.bf16.msra.mxu1 %v14668_v9 }
0x347f   : > { %14022 = vmatprep.subr.bf16.mxu1 %v15019_v1  ;;  %14030 = vmatprep.subr.bf16.mxu0 %v15019_v1 }
0x3481   : > { %14015 = vmatmul.mubr.msk.bf16.vlgmr.msra.gmra.mrb[196].mxu0 %vm486_vm1, %v16787_v53 }
0x3482   : > { %14023 = vmatpush3.bf16.msra.mxu1 %v14669_v11  ;;  %14031 = vmatpush3.bf16.msra.mxu0 %v14670_v12 }
0x3483   : > { %14024 = vmatprep.subr.bf16.mxu1 %v15019_v1  ;;  %14032 = vmatprep.subr.bf16.mxu0 %v15019_v1 }
0x3484   : > { %14038 = vmatprep.mubr.msk.bf16.mxu0 %vm15020_vm0, %v15019_v1 }
0x3486   : > { %14025 = vmatpush3.bf16.msra.mxu1 %v14671_v13  ;;  %14033 = vmatpush3.bf16.msra.mxu0 %v14672_v17 }
0x3487   : > { %14034 = vmatprep.subr.bf16.mxu0 %v15019_v1  ;;  %14042 = vmatprep.subr.bf16.mxu1 %v15019_v1 }
0x3489   : > { %14027 = vmatmul.mubr.msk.bf16.vlgmr.msra.gmra.mrb[12].mxu1 %vm486_vm1, %v16787_v53 }
0x348a   : > { %14035 = vmatpush3.bf16.msra.mxu0 %v14673_v18  ;;  %14044 = vmatprep.mubr.msk.bf16.mxu1 %vm15020_vm0, %v15019_v1 }
0x348b   : > { %14036 = vmatprep.subr.bf16.mxu0 %v15019_v1 }
0x348e   : > { %14037 = vmatpush3.bf16.msra.mxu0 %v14674_v42 }
0x348f   : > { %14054 = vmatprep.subr.bf16.mxu0 %v15019_v1 }
0x3491   : > { %14039 = vmatmul.mubr.msk.bf16.vlgmr.msra.gmra.mrb[200].mxu0 %vm486_vm1, %v16787_v53 }
0x3492   : > { %14056 = vmatprep.mubr.msk.bf16.mxu0 %vm15020_vm0, %v15019_v1 }
0x3544   : > { %v17158_v47 = vpop.f32.mrb[192].mxu0 }
0x3545   : > { %v13998_v52 = vpop.f32.mrb[193].mxu0 }
0x3546   : > { %v8395_v19 = vpop.f32.mrb[194].mxu0 }
0x3547   : > { %v13999_v22 = vpop.f32.mrb[195].mxu0 }
0x354c   : > { %v17160_v23 = vpop.f32.mrb[8].mxu1 }
0x354d   : > { %v8444_v25 = vpack.c.bf16 %v17160_v23, %v17158_v47  ;;  %v14004_v26 = vpop.f32.mrb[9].mxu1  ;;  %v14943_v23 = vld [vmem:[%s17810_s12 + $0x10] sm:$0xff]  }
0x354e   : > { %v8441_v27 = vpop.f32.mrb[10].mxu1 }
0x354f   : > { %v14005_v30 = vpop.f32.mrb[11].mxu1 }
0x3554   : > { %v8511_v34 = vpop.f32.mrb[196].mxu0 }
0x3555   : > { %v14016_v35 = vpop.f32.mrb[197].mxu0  ;;  %v8512_v10 = vadd.f32 %v14939_v60, %v8511_v34 }
0x3556   : > { %v8514_v40 = vpop.f32.mrb[198].mxu0 }
0x3557   : > { %v14017_v53 = vpop.f32.mrb[199].mxu0  ;;  %v12356_v20 = vpack.c.bf16 %v8512_v10, %v8512_v10  ;;  %v8515_v48 = vadd.f32 %v14939_v60, %v8514_v40 }
0x3559   : > { %v12357_v63 = vpack.c.bf16 %v8515_v48, %v8515_v48  ;;  %v14691_v48 = vld [vmem:[%s17802_s4 + $0x120] sm:$0xff]  }
0x355c   : > { %v8584_v45 = vpop.f32.mrb[12].mxu1 }
0x355d   : > { %v8585_v56 = vadd.f32 %v14938_v46, %v8584_v45  ;;  %v14028_v37 = vpop.f32.mrb[13].mxu1 }
0x355e   : > { %v8587_v57 = vpop.f32.mrb[14].mxu1  ;;  %v14675_v37 = vld [vmem:[%s17800_s2 + $0x80] sm:$0xff]  }
0x355f   : > { %v12358_v7 = vpack.c.bf16 %v8585_v56, %v8585_v56  ;;  %v14029_v59 = vpop.f32.mrb[15].mxu1  ;;  %v8588_v58 = vadd.f32 %v14938_v46, %v8587_v57  ;;  %v14941_v56 = vld [vmem:[%s17810_s12] sm:$0xff]  }
0x3561   : > { %v8686_v61 = vsel %vm1057_vm2, %v12358_v7, 0  ;;  %v12359_v31 = vpack.c.bf16 %v8588_v58, %v8588_v58 }
0x3562   : > { %14043 = vmatpush3.bf16.xpose.msra.mxu1 %v8686_v61 }
0x3563   : > { %14048 = vmatprep.subr.bf16.mxu1 %v15019_v1  ;;  %v8732_v41 = vsel %vm1057_vm2, %v12359_v31, 0 }
0x3564   : > { %v8657_v55 = vpop.f32.mrb[200].mxu0 }
0x3565   : > { %v8658_v3 = vadd.f32 %v14940_v33, %v8657_v55  ;;  %v14040_v51 = vpop.f32.mrb[201].mxu0 }
0x3566   : > { %v8660_v16 = vpop.f32.mrb[202].mxu0 }
0x3567   : > { %v12360_v0 = vpack.c.bf16 %v8658_v3, %v8658_v3  ;;  %v14041_v2 = vpop.f32.mrb[203].mxu0  ;;  %v8661_v21 = vadd.f32 %v14940_v33, %v8660_v16 }
0x3568   : > { %v14676_v2 = vld [vmem:[%s17800_s2 + $0x88] sm:$0xff]  }
0x3569   : > { %v8802_v43 = vsel %vm1178_vm3, %v12360_v0, 0  ;;  %14045 = vmatmul.mubr.msk.bf16.vlgmr.msra.gmra.mrb[16].mxu1 %vm1057_vm2, %v12356_v20  ;;  %v12361_v50 = vpack.c.bf16 %v8661_v21, %v8661_v21  ;;  %v14690_v21 = vld [vmem:[%s17802_s4 + $0x118] sm:$0xff]  }
0x356a   : > { %14049 = vmatpush3.bf16.xpose.msra.mxu1 %v8732_v41  ;;  %14055 = vmatpush3.bf16.msra.mxu0 %v8802_v43  ;;  %v14688_v41 = vld [vmem:[%s17802_s4 + $0x108] sm:$0xff]   ;;  %v14689_v43 = vld [vmem:[%s17802_s4 + $0x110] sm:$0xff]  }
0x356b   : > { %14050 = vmatprep.mubr.msk.bf16.mxu1 %vm15020_vm0, %v15019_v1  ;;  %14060 = vmatprep.subr.bf16.mxu1 %v15019_v1  ;;  %v8848_v5 = vsel %vm1178_vm3, %v12361_v50, 0  ;;  %v14692_v50 = vld [vmem:[%s17802_s4 + $0x128] sm:$0xff]  }
0x356c   : > { %14066 = vmatprep.subr.bf16.mxu0 %v15019_v1 }
0x3571   : > { %14051 = vmatmul.mubr.msk.bf16.vlgmr.msra.gmra.mrb[20].mxu1 %vm1057_vm2, %v12357_v63  ;;  %v6886_v63 = vrot.slane %v16771_v44, 7 }
0x3572   : > { %14061 = vmatpush3.bf16.msra.mxu1 %v8848_v5  ;;  %14062 = vmatprep.mubr.msk.bf16.mxu1 %vm15020_vm0, %v15019_v1  ;;  %v6892_v5 = vrot.slane %v16771_v44, 1 }
0x3573   : > { %14078 = vmatprep.subr.bf16.mxu1 %v15019_v1 }
0x363c   : > { %v8722_v6 = vpop.f32.mrb[16].mxu1 }
0x363d   : > { %v14046_v32 = vpop.f32.mrb[17].mxu1  ;;  %v8774_v36 = vsel %vm1150_vm4, %v8722_v6, -inf }
0x363e   : > { %8775 = vmax.xlane.f32.xlu1 %v8774_v36  ;;  %v8725_v38 = vpop.f32.mrb[18].mxu1  ;;  %v6893_v32 = vrot.slane %v16777_v39, 1  ;;  %v6898_v36 = vadd.f32 %v6892_v5, %v6886_v63 }
0x363f   : > { %v14047_v4 = vpop.f32.mrb[19].mxu1  ;;  %v6900_v38 = vmul.f32 2.0, %v16771_v44 }
0x3644   : > { %v8768_v8 = vpop.f32.mrb[20].mxu1 }
0x3645   : > { %v14052_v9 = vpop.f32.mrb[21].mxu1  ;;  %v8777_v11 = vsel %vm1150_vm4, %v8768_v8, -inf }
0x3646   : > { %8778 = vmax.xlane.f32.xlu0 %v8777_v11  ;;  %v8771_v12 = vpop.f32.mrb[22].mxu1  ;;  %v6902_v9 = vsub.f32 %v6898_v36, %v6900_v38  ;;  %v6901_v11 = vmul.f32 2.0, %v16777_v39 }
0x3647   : > { %v14053_v13 = vpop.f32.mrb[23].mxu1 }
0x3648   : > { %v8950_v13 = vstv %s11826_s20 }
0x36cb   : > { %v8776_v17 = vpop.xlane.xlu1 %8775 }
0x36cc   : > { %v8780_v18 = vsub.f32 %v8722_v6, %v8776_v17  ;;  %v6887_v6 = vrot.slane %v16777_v39, 7 }
0x36ce   : > { %v8782_v42 = vmul.f32 1.442695, %v8780_v18  ;;  %v6899_v4 = vadd.f32 %v6893_v32, %v6887_v6  ;;  %v14945_v18 = vld [vmem:[%s17811_s13] ss:$0 sm:$0xff] }
0x36d0   : > { %14855 = vpow2.f32 %v8782_v42 }
0x36d3   : > { %v8779_v52 = vpop.xlane.xlu0 %8778 }
0x36d4   : > { %v8781_v19 = vsub.f32 %v8768_v8, %v8779_v52  ;;  %v11860_v8 = vld [vmem:[%s17803_s5 + $0x3] ss:$0 sm:$0xff] }
0x36d5   : > { %v7101_v17 = vadd.f32 %v11860_v8, %v16879_v49 }
0x36d6   : > { %v8784_v22 = vmul.f32 1.442695, %v8781_v19  ;;  %v6903_v19 = vsub.f32 %v6899_v4, %v6901_v11 }
0x36d8   : > { %14857 = vpow2.f32 %v8784_v22 }
0x36da   : > { %v14856_v26 = vpop.eup %14855 }
0x36db   : > { %v8786_v27 = vsel %vm1150_vm4, %v14856_v26, 0.0 }
0x36dc   : > { %8787 = vadd.xlane.f32.xlu1 %v8786_v27  ;;  %v8951_v27 = vmul.f32 %v8950_v13, %v6902_v9 }
0x36e2   : > { %v14858_v30 = vpop.eup %14857 }
0x36e3   : > { %v8789_v34 = vsel %vm1150_vm4, %v14858_v30, 0.0 }
0x36e4   : > { %8790 = vadd.xlane.f32.xlu0 %v8789_v34 }
0x36ed   : > { %8892 = vrot.lane.b32.xlu1 %v7998_v15, %s17833_s28  ;;  %v14942_v15 = vld [vmem:[%s17810_s12 + $0x8] sm:$0xff]  }
0x36fa   : > { %8895 = vrot.lane.b32.xlu0 %v8444_v25, %s17834_s1  ;;  %v14944_v25 = vld [vmem:[%s17810_s12 + $0x18] sm:$0xff]  }
0x3769   : > { %v8788_v35 = vpop.xlane.xlu1 %8787 }
0x376a   : > { %14859 = vrcp.f32 %v8788_v35 }
0x376d   : > { %v8893_v33 = vpop.permute.xlu1 %8892 }
0x376e   : > { %v8902_v51 = vsel %vm1057_vm2, %v7552_v54, %v8893_v33  ;;  %v14687_v54 = vld [vmem:[%s17802_s4 + $0x100] sm:$0xff]  }
0x3771   : > { %v8791_v40 = vpop.xlane.xlu0 %8790 }
0x3772   : > { %14861 = vrcp.f32 %v8791_v40  ;;  %v8957_v40 = vstv %s11827_s21 }
0x3774   : > { %v14860_v53 = vpop.eup %14859 }
0x3775   : > { %v8793_v45 = vmul.f32 %v14860_v53, %v14856_v26  ;;  %v8896_v3 = vpop.permute.xlu0 %8895  ;;  %v7104_v26 = vadd.f32 %v11860_v8, %v16881_v29  ;;  %v14947_v8 = vld [vmem:[%s17807_s9] ss:$0 sm:$0xff] }
0x3776   : > { %v8904_v16 = vsel %vm2628_vm5, %v8902_v51, %v8896_v3 }
0x3777   : > { %v8796_v46 = vpack.c.bf16 %v8793_v45, %v8793_v45  ;;  %v8952_v45 = vmul.f32 %v8950_v13, %v6903_v19 }
0x3779   : > { %14057 = vmatmul.mubr.msk.bf16.vlgmr.msra.gmra.mrb[204].mxu0 %vm1150_vm4, %v8796_v46 }
0x377a   : > { %14067 = vmatpush3.bf16.msra.mxu0 %v14941_v56  ;;  %14074 = vmatprep.mubr.msk.bf16.mxu0 %vm15020_vm0, %v15019_v1 }
0x377b   : > { %14068 = vmatprep.subr.bf16.mxu0 %v15019_v1 }
0x377c   : > { %v14862_v62 = vpop.eup %14861 }
0x377d   : > { %v8795_v14 = vmul.f32 %v14862_v62, %v14858_v30 }
0x377e   : > { %14069 = vmatpush3.bf16.msra.mxu0 %v14942_v15  ;;  %v14679_v15 = vld [vmem:[%s17804_s6] sm:$0xff]  }
0x377f   : > { %v8797_v47 = vpack.c.bf16 %v8795_v14, %v8795_v14  ;;  %14070 = vmatprep.subr.bf16.mxu0 %v15019_v1 }
0x3781   : > { %14063 = vmatmul.mubr.msk.bf16.vlgmr.msra.gmra.mrb[24].mxu1 %vm1150_vm4, %v8797_v47 }
0x3782   : > { %14071 = vmatpush3.bf16.msra.mxu0 %v14943_v23  ;;  %14086 = vmatprep.mubr.msk.bf16.mxu1 %vm15020_vm0, %v15019_v1  ;;  %v14682_v23 = vld [vmem:[%s17804_s6 + $0x18] sm:$0xff]  }
0x3783   : > { %14072 = vmatprep.subr.bf16.mxu0 %v15019_v1  ;;  %14079 = vmatpush3.bf16.msra.mxu1 %v14675_v37  ;;  %v14684_v37 = vld [vmem:[%s17805_s7 + $0x8] sm:$0xff]  }
0x3784   : > { %14080 = vmatprep.subr.bf16.mxu1 %v15019_v1 }
0x3786   : > { %14073 = vmatpush3.bf16.msra.mxu0 %v14944_v25  ;;  %v14683_v25 = vld [vmem:[%s17805_s7] sm:$0xff]  }
0x3787   : > { %14090 = vmatprep.subr.bf16.mxu0 %v15019_v1  ;;  %14081 = vmatpush3.bf16.msra.mxu1 %v14676_v2  ;;  %v14696_v2 = vld [vmem:[%s17806_s8 + $0x8] sm:$0xff]  }
0x3788   : > { %14082 = vmatprep.subr.bf16.mxu1 %v15019_v1 }
0x378b   : > { %14083 = vmatpush3.bf16.msra.mxu1 %v14677_v24  ;;  %v14697_v24 = vld [vmem:[%s17806_s8 + $0x10] sm:$0xff]  }
0x378c   : > { %14084 = vmatprep.subr.bf16.mxu1 %v15019_v1 }
0x378f   : > { %14085 = vmatpush3.bf16.msra.mxu1 %v14678_v28 }
0x3790   : > { %14110 = vmatprep.subr.bf16.mxu1 %v15019_v1 }
0x384c   : > { %v8838_v57 = vpop.f32.mrb[204].mxu0 }
0x384d   : > { %v14058_v7 = vpop.f32.mrb[205].mxu0 }
0x384e   : > { %v8841_v59 = vpop.f32.mrb[206].mxu0  ;;  %v14686_v7 = vld [vmem:[%s17805_s7 + $0x18] sm:$0xff]  }
0x384f   : > { %v14059_v61 = vpop.f32.mrb[207].mxu0  ;;  %v14693_v59 = vld [vmem:[%s17802_s4 + $0x130] sm:$0xff]  }
0x3850   : > { %v14694_v61 = vld [vmem:[%s17802_s4 + $0x138] sm:$0xff]  }
0x3854   : > { %v8884_v58 = vpop.f32.mrb[24].mxu1 }
0x3855   : > { %v8890_v60 = vpack.c.bf16 %v8884_v58, %v8838_v57  ;;  %v14064_v10 = vpop.f32.mrb[25].mxu1  ;;  %v14685_v57 = vld [vmem:[%s17805_s7 + $0x10] sm:$0xff]   ;;  %v12055_v58 = vld [vmem:[%s17801_s3 + $0x4] ss:$0 sm:$0xff] }
0x3856   : > { %v8887_v55 = vpop.f32.mrb[26].mxu1 }
0x3857   : > { %8898 = vrot.lane.b32.xlu1 %v8890_v60, %s17835_s25  ;;  %v14065_v31 = vpop.f32.mrb[27].mxu1 }
0x38c9   : > { %v8899_v20 = vpop.permute.xlu1 %8898 }
0x38ca   : > { %v8906_v0 = vsel %vm2631_vm6, %v8904_v16, %v8899_v20  ;;  %v14695_v20 = vld [vmem:[%s17806_s8] sm:$0xff]  }
0x38cb   : > { %14075 = vmatmul.mubr.msk.bf16.vlgmr.msra.gmra.mrb[208].mxu0 %vm486_vm1, %v8906_v0 }
0x38cc   : > { %14106 = vmatprep.mubr.msk.bf16.mxu0 %vm15020_vm0, %v15019_v1  ;;  %14091 = vmatpush3.bf16.msra.mxu0 %v14687_v54 }
0x38cd   : > { %14092 = vmatprep.subr.bf16.mxu0 %v15019_v1 }
0x38d0   : > { %14093 = vmatpush3.bf16.msra.mxu0 %v14688_v41 }
0x38d1   : > { %14094 = vmatprep.subr.bf16.mxu0 %v15019_v1 }
0x38d4   : > { %14095 = vmatpush3.bf16.msra.mxu0 %v14689_v43  ;;  %v14698_v43 = vld [vmem:[%s17806_s8 + $0x18] sm:$0xff]  }
0x38d5   : > { %14096 = vmatprep.subr.bf16.mxu0 %v15019_v1 }
0x38d8   : > { %14097 = vmatpush3.bf16.msra.mxu0 %v14690_v21 }
0x38d9   : > { %14098 = vmatprep.subr.bf16.mxu0 %v15019_v1 }
0x38dc   : > { %14099 = vmatpush3.bf16.msra.mxu0 %v14691_v48 }
0x38dd   : > { %14100 = vmatprep.subr.bf16.mxu0 %v15019_v1 }
0x38e0   : > { %14101 = vmatpush3.bf16.msra.mxu0 %v14692_v50  ;;  %v14946_v50 = vld [vmem:[%s17808_s10] ss:$0 sm:$0xff] }
0x38e1   : > { %14102 = vmatprep.subr.bf16.mxu0 %v15019_v1 }
0x38e4   : > { %14103 = vmatpush3.bf16.msra.mxu0 %v14693_v59 }
0x38e5   : > { %14104 = vmatprep.subr.bf16.mxu0 %v15019_v1 }
0x38e8   : > { %14105 = vmatpush3.bf16.msra.mxu0 %v14694_v61 }
0x38e9   : > { %14134 = vmatprep.subr.bf16.mxu0 %v15019_v1 }
0x399e   : > { %v8943_v12 = vpop.f32.mrb[208].mxu0 }
0x399f   : > { %v8944_v42 = vadd.f32 %v14945_v18, %v8943_v12  ;;  %v14076_v52 = vpop.f32.mrb[209].mxu0 }
0x39a0   : > { %v8946_v22 = vpop.f32.mrb[210].mxu0 }
0x39a1   : > { %v8953_v30 = vadd.f32 %v8944_v42, %v7101_v17  ;;  %v8947_v34 = vadd.f32 %v14945_v18, %v8946_v22  ;;  %v14077_v35 = vpop.f32.mrb[211].mxu0 }
0x39a3   : > { %v8955_v53 = vadd.f32 %v8953_v30, %v8951_v27  ;;  %v8954_v49 = vadd.f32 %v8947_v34, %v7104_v26  ;;  %v14948_v27 = vld [vmem:[%s17809_s11] ss:$0 sm:$0xff] }
0x39a5   : > { %v8958_v46 = vmul.f32 %v8957_v40, %v8955_v53  ;;  %v8956_v56 = vadd.f32 %v8954_v49, %v8952_v45 }
0x39a7   : > { %v17286_v62 = vadd.f32 %v8958_v46, %v16771_v44  ;;  %v8959_v14 = vmul.f32 %v8957_v40, %v8956_v56  ;;  %v14680_v44 = vld [vmem:[%s17804_s6 + $0x8] sm:$0xff]  }
0x39a9   : > { %12042 = vst.msk [vmem:[%s15672_s22 + $0x40] sm:$0xff] %vm486_vm1, %v17286_v62  ;;  %v17292_v29 = vadd.f32 %v8959_v14, %v16777_v39  ;;  %v14681_v39 = vld [vmem:[%s17804_s6 + $0x10] sm:$0xff]  }
0x39ab   : > { %12043 = vst.msk [vmem:[%s15672_s22 + $0x48] sm:$0xff] %vm486_vm1, %v17292_v29  ;;  %v17302_v47 = vpack.c.bf16 %v17292_v29, %v17286_v62 }
0x39ad   : > { %14087 = vmatmul.mubr.msk.bf16.vlgmr.msra.gmra.mrb[28].mxu1 %vm486_vm1, %v17302_v47 }
0x39ae   : > { %14111 = vmatpush3.bf16.msra.mxu1 %v14679_v15  ;;  %14118 = vmatprep.mubr.msk.bf16.mxu1 %vm15020_vm0, %v15019_v1 }
0x39af   : > { %14112 = vmatprep.subr.bf16.mxu1 %v15019_v1 }
0x39b2   : > { %14113 = vmatpush3.bf16.msra.mxu1 %v14680_v44 }
0x39b3   : > { %14114 = vmatprep.subr.bf16.mxu1 %v15019_v1 }
0x39b6   : > { %14115 = vmatpush3.bf16.msra.mxu1 %v14681_v39 }
0x39b7   : > { %14116 = vmatprep.subr.bf16.mxu1 %v15019_v1 }
0x39ba   : > { %14117 = vmatpush3.bf16.msra.mxu1 %v14682_v23 }
0x39bb   : > { %14122 = vmatprep.subr.bf16.mxu1 %v15019_v1 }
0x39bd   : > { %14119 = vmatmul.mubr.msk.bf16.vlgmr.msra.gmra.mrb[32].mxu1 %vm486_vm1, %v17302_v47 }
0x39be   : > { %14123 = vmatpush3.bf16.msra.mxu1 %v14683_v25  ;;  %14130 = vmatprep.mubr.msk.bf16.mxu1 %vm15020_vm0, %v15019_v1 }
0x39bf   : > { %14124 = vmatprep.subr.bf16.mxu1 %v15019_v1 }
0x39c2   : > { %14125 = vmatpush3.bf16.msra.mxu1 %v14684_v37 }
0x39c3   : > { %14126 = vmatprep.subr.bf16.mxu1 %v15019_v1 }
0x39c6   : > { %14127 = vmatpush3.bf16.msra.mxu1 %v14685_v57 }
0x39c7   : > { %14128 = vmatprep.subr.bf16.mxu1 %v15019_v1 }
0x39ca   : > { %14129 = vmatpush3.bf16.msra.mxu1 %v14686_v7 }
0x39cb   : > { %14146 = vmatprep.subr.bf16.mxu1 %v15019_v1 }
0x39cd   : > { %14131 = vmatmul.mubr.msk.bf16.vlgmr.msra.gmra.mrb[36].mxu1 %vm486_vm1, %v17302_v47 }
0x39ce   : > { %14148 = vmatprep.mubr.msk.bf16.mxu1 %vm15020_vm0, %v15019_v1 }
0x3a80   : > { %v9066_v60 = vpop.f32.mrb[28].mxu1 }
0x3a81   : > { %v9067_v10 = vadd.f32 %v12055_v58, %v9066_v60  ;;  %v14088_v55 = vpop.f32.mrb[29].mxu1 }
0x3a82   : > { %v9069_v31 = vpop.f32.mrb[30].mxu1 }
0x3a83   : > { %v9070_v33 = vadd.f32 %v12055_v58, %v9069_v31  ;;  %v14089_v3 = vpop.f32.mrb[31].mxu1  ;;  %v9073_v51 = vmax.f32 %v9067_v10, 0.0 }
0x3a85   : > { %v9074_v16 = vmax.f32 %v9070_v33, 0.0 }
0x3a87   : > { %v9075_v0 = vpack.c.bf16 %v9074_v16, %v9073_v51 }
0x3a89   : > { %14107 = vmatmul.mubr.bf16.vlgmr.msra.gmra.mrb[212].mxu0 %v9075_v0 }
0x3a8a   : > { %14135 = vmatpush3.bf16.msra.mxu0 %v14695_v20  ;;  %14142 = vmatprep.mubr.msk.bf16.mxu0 %vm15020_vm0, %v15019_v1 }
0x3a8b   : > { %14136 = vmatprep.subr.bf16.mxu0 %v15019_v1 }
0x3a8e   : > { %14137 = vmatpush3.bf16.msra.mxu0 %v14696_v2 }
0x3a8f   : > { %14138 = vmatprep.subr.bf16.mxu0 %v15019_v1 }
0x3a90   : > { %v9256_v28 = vpop.f32.mrb[32].mxu1 }
0x3a91   : > { %v14120_v54 = vpop.f32.mrb[33].mxu1  ;;  %v9257_v9 = vadd.f32 %v14947_v8, %v9256_v28  ;;  %v14699_v28 = vld [vmem:[%s17804_s6 + $0x20] sm:$0xff]  }
0x3a92   : > { %v9259_v41 = vpop.f32.mrb[34].mxu1  ;;  %14139 = vmatpush3.bf16.msra.mxu0 %v14697_v24 }
0x3a93   : > { %v14121_v21 = vpop.f32.mrb[35].mxu1  ;;  %14140 = vmatprep.subr.bf16.mxu0 %v15019_v1  ;;  %v12362_v12 = vpack.c.bf16 %v9257_v9, %v9257_v9  ;;  %v9260_v17 = vadd.f32 %v14947_v8, %v9259_v41  ;;  %v14700_v41 = vld [vmem:[%s17804_s6 + $0x28] sm:$0xff]   ;;  %v14709_v8 = vld [vmem:[%s17806_s8 + $0x30] sm:$0xff]   ;;  %v14710_v9 = vld [vmem:[%s17806_s8 + $0x38] sm:$0xff]  }
0x3a95   : > { %v12363_v18 = vpack.c.bf16 %v9260_v17, %v9260_v17 }
0x3a96   : > { %14141 = vmatpush3.bf16.msra.mxu0 %v14698_v43 }
0x3a97   : > { %14158 = vmatprep.subr.bf16.mxu0 %v15019_v1 }
0x3a99   : > { %14143 = vmatmul.mubr.msk.bf16.vlgmr.msra.gmra.mrb[216].mxu0 %vm486_vm1, %v17302_v47 }
0x3a9a   : > { %14160 = vmatprep.mubr.msk.bf16.mxu0 %vm15020_vm0, %v15019_v1 }
0x3aa0   : > { %v9329_v48 = vpop.f32.mrb[36].mxu1 }
0x3aa1   : > { %v9330_v63 = vadd.f32 %v14946_v50, %v9329_v48  ;;  %v14132_v5 = vpop.f32.mrb[37].mxu1  ;;  %v14701_v48 = vld [vmem:[%s17804_s6 + $0x30] sm:$0xff]  }
0x3aa2   : > { %v9332_v6 = vpop.f32.mrb[38].mxu1  ;;  %v14703_v5 = vld [vmem:[%s17804_s6 + $0x38] sm:$0xff]  }
0x3aa3   : > { %v12364_v32 = vpack.c.bf16 %v9330_v63, %v9330_v63  ;;  %v14133_v36 = vpop.f32.mrb[39].mxu1  ;;  %v9333_v4 = vadd.f32 %v14946_v50, %v9332_v6  ;;  %v14702_v50 = vld [vmem:[%s17805_s7 + $0x20] sm:$0xff]   ;;  %v14704_v6 = vld [vmem:[%s17805_s7 + $0x28] sm:$0xff]  }
0x3aa4   : > { %v14706_v36 = vld [vmem:[%s17806_s8 + $0x20] sm:$0xff]  }
0x3aa5   : > { %v9431_v38 = vsel %vm1057_vm2, %v12364_v32, 0  ;;  %v12365_v11 = vpack.c.bf16 %v9333_v4, %v9333_v4  ;;  %v14705_v32 = vld [vmem:[%s17805_s7 + $0x30] sm:$0xff]   ;;  %v14708_v4 = vld [vmem:[%s17806_s8 + $0x28] sm:$0xff]  }
0x3aa6   : > { %14147 = vmatpush3.bf16.xpose.msra.mxu1 %v9431_v38  ;;  %v14707_v38 = vld [vmem:[%s17805_s7 + $0x38] sm:$0xff]  }
0x3aa7   : > { %14152 = vmatprep.subr.bf16.mxu1 %v15019_v1  ;;  %v9477_v13 = vsel %vm1057_vm2, %v12365_v11, 0 }
0x3aad   : > { %14149 = vmatmul.mubr.msk.bf16.vlgmr.msra.gmra.mrb[40].mxu1 %vm1057_vm2, %v12362_v12 }
0x3aae   : > { %14153 = vmatpush3.bf16.xpose.msra.mxu1 %v9477_v13  ;;  %14154 = vmatprep.mubr.msk.bf16.mxu1 %vm15020_vm0, %v15019_v1 }
0x3aaf   : > { %14164 = vmatprep.subr.bf16.mxu1 %v15019_v1 }
0x3ab5   : > { %14155 = vmatmul.mubr.msk.bf16.vlgmr.msra.gmra.mrb[44].mxu1 %vm1057_vm2, %v12363_v18 }
0x3ab6   : > { %14166 = vmatprep.mubr.msk.bf16.mxu1 %vm15020_vm0, %v15019_v1 }
0x3b5c   : > { %v17394_v42 = vpop.f32.mrb[212].mxu0 }
0x3b5d   : > { %v14108_v52 = vpop.f32.mrb[213].mxu0 }
0x3b5e   : > { %v17396_v19 = vpop.f32.mrb[214].mxu0 }
0x3b5f   : > { %v14109_v22 = vpop.f32.mrb[215].mxu0 }
0x3b6c   : > { %v9402_v26 = vpop.f32.mrb[216].mxu0 }
0x3b6d   : > { %v9403_v30 = vadd.f32 %v14948_v27, %v9402_v26  ;;  %v14144_v34 = vpop.f32.mrb[217].mxu0 }
0x3b6e   : > { %v9405_v35 = vpop.f32.mrb[218].mxu0 }
0x3b6f   : > { %v12366_v40 = vpack.c.bf16 %v9403_v30, %v9403_v30  ;;  %v9406_v53 = vadd.f32 %v14948_v27, %v9405_v35  ;;  %v14145_v45 = vpop.f32.mrb[219].mxu0 }
0x3b70   : > { %v14949_v45 = vld [vmem:[%s17808_s10 + $0x1] ss:$0 sm:$0xff] }
0x3b71   : > { %v9547_v49 = vsel %vm1178_vm3, %v12366_v40, 0  ;;  %v12367_v46 = vpack.c.bf16 %v9406_v53, %v9406_v53 }
0x3b72   : > { %14159 = vmatpush3.bf16.msra.mxu0 %v9547_v49 }
0x3b73   : > { %v9593_v56 = vsel %vm1178_vm3, %v12367_v46, 0  ;;  %14170 = vmatprep.subr.bf16.mxu0 %v15019_v1 }
0x3b74   : > { %14165 = vmatpush3.bf16.msra.mxu1 %v9593_v56 }
0x3b75   : > { %14182 = vmatprep.subr.bf16.mxu1 %v15019_v1 }
0x3b80   : > { %v9467_v14 = vpop.f32.mrb[40].mxu1 }
0x3b81   : > { %v14150_v15 = vpop.f32.mrb[41].mxu1  ;;  %v9519_v44 = vsel %vm1150_vm4, %v9467_v14, -inf }
0x3b82   : > { %9520 = vmax.xlane.f32.xlu0 %v9519_v44  ;;  %v9470_v39 = vpop.f32.mrb[42].mxu1 }
0x3b83   : > { %v14151_v23 = vpop.f32.mrb[43].mxu1 }
0x3b84   : > { %v14950_v23 = vld [vmem:[%s17807_s9 + $0x1] ss:$0 sm:$0xff] }
0x3b88   : > { %v9513_v25 = vpop.f32.mrb[44].mxu1 }
0x3b89   : > { %v14156_v37 = vpop.f32.mrb[45].mxu1  ;;  %v9522_v57 = vsel %vm1150_vm4, %v9513_v25, -inf }
0x3b8a   : > { %9523 = vmax.xlane.f32.xlu1 %v9522_v57  ;;  %v9516_v7 = vpop.f32.mrb[46].mxu1 }
0x3b8b   : > { %v14157_v59 = vpop.f32.mrb[47].mxu1  ;;  %v14951_v7 = vld [vmem:[%s17809_s11 + $0x1] ss:$0 sm:$0xff] }
0x3c0f   : > { %v9521_v61 = vpop.xlane.xlu0 %9520 }
0x3c10   : > { %v9525_v58 = vsub.f32 %v9467_v14, %v9521_v61 }
0x3c12   : > { %v9527_v60 = vmul.f32 1.442695, %v9525_v58 }
0x3c14   : > { %14863 = vpow2.f32 %v9527_v60 }
0x3c17   : > { %v9524_v10 = vpop.xlane.xlu1 %9523 }
0x3c18   : > { %v9526_v55 = vsub.f32 %v9513_v25, %v9524_v10 }
0x3c1a   : > { %v9529_v31 = vmul.f32 1.442695, %v9526_v55 }
0x3c1c   : > { %14865 = vpow2.f32 %v9529_v31 }
0x3c1e   : > { %v14864_v33 = vpop.eup %14863 }
0x3c1f   : > { %v9531_v3 = vsel %vm1150_vm4, %v14864_v33, 0.0 }
0x3c20   : > { %9532 = vadd.xlane.f32.xlu1 %v9531_v3 }
0x3c26   : > { %v14866_v51 = vpop.eup %14865 }
0x3c27   : > { %v9534_v16 = vsel %vm1150_vm4, %v14866_v51, 0.0 }
0x3c28   : > { %9535 = vadd.xlane.f32.xlu0 %v9534_v16 }
0x3cad   : > { %v9533_v20 = vpop.xlane.xlu1 %9532 }
0x3cae   : > { %14867 = vrcp.f32 %v9533_v20 }
0x3cb5   : > { %v9536_v0 = vpop.xlane.xlu0 %9535 }
0x3cb6   : > { %14869 = vrcp.f32 %v9536_v0 }
0x3cb8   : > { %v14868_v2 = vpop.eup %14867 }
0x3cb9   : > { %v9538_v24 = vmul.f32 %v14868_v2, %v14864_v33 }
0x3cbb   : > { %v9541_v54 = vpack.c.bf16 %v9538_v24, %v9538_v24 }
0x3cbd   : > { %14161 = vmatmul.mubr.msk.bf16.vlgmr.msra.gmra.mrb[220].mxu0 %vm1150_vm4, %v9541_v54 }
0x3cbe   : > { %14171 = vmatpush3.bf16.msra.mxu0 %v14699_v28  ;;  %14178 = vmatprep.mubr.msk.bf16.mxu0 %vm15020_vm0, %v15019_v1 }
0x3cbf   : > { %14172 = vmatprep.subr.bf16.mxu0 %v15019_v1 }
0x3cc0   : > { %v14870_v43 = vpop.eup %14869 }
0x3cc1   : > { %v9540_v21 = vmul.f32 %v14870_v43, %v14866_v51 }
0x3cc2   : > { %14173 = vmatpush3.bf16.msra.mxu0 %v14700_v41 }
0x3cc3   : > { %v9542_v63 = vpack.c.bf16 %v9540_v21, %v9540_v21  ;;  %14174 = vmatprep.subr.bf16.mxu0 %v15019_v1 }
0x3cc5   : > { %14167 = vmatmul.mubr.msk.bf16.vlgmr.msra.gmra.mrb[48].mxu1 %vm1150_vm4, %v9542_v63 }
0x3cc6   : > { %14175 = vmatpush3.bf16.msra.mxu0 %v14701_v48  ;;  %14183 = vmatpush3.bf16.msra.mxu1 %v14702_v50 }
0x3cc7   : > { %14176 = vmatprep.subr.bf16.mxu0 %v15019_v1  ;;  %14184 = vmatprep.subr.bf16.mxu1 %v15019_v1 }
0x3cc8   : > { %14190 = vmatprep.mubr.msk.bf16.mxu1 %vm15020_vm0, %v15019_v1 }
0x3cca   : > { %14177 = vmatpush3.bf16.msra.mxu0 %v14703_v5  ;;  %14185 = vmatpush3.bf16.msra.mxu1 %v14704_v6 }
0x3ccb   : > { %14186 = vmatprep.subr.bf16.mxu1 %v15019_v1  ;;  %14194 = vmatprep.subr.bf16.mxu0 %v15019_v1 }
0x3ccd   : > { %14179 = vmatmul.mubr.msk.bf16.vlgmr.msra.gmra.mrb[224].mxu0 %vm486_vm1, %v17302_v47 }
0x3cce   : > { %14187 = vmatpush3.bf16.msra.mxu1 %v14705_v32  ;;  %14195 = vmatpush3.bf16.msra.mxu0 %v14706_v36 }
0x3ccf   : > { %14188 = vmatprep.subr.bf16.mxu1 %v15019_v1  ;;  %14196 = vmatprep.subr.bf16.mxu0 %v15019_v1 }
0x3cd0   : > { %14202 = vmatprep.mubr.msk.bf16.mxu0 %vm15020_vm0, %v15019_v1 }
0x3cd2   : > { %14189 = vmatpush3.bf16.msra.mxu1 %v14707_v38  ;;  %14197 = vmatpush3.bf16.msra.mxu0 %v14708_v4 }
0x3cd3   : > { %14198 = vmatprep.subr.bf16.mxu0 %v15019_v1  ;;  %14206 = vmatprep.subr.bf16.mxu1 %v15019_v1 }
0x3cd5   : > { %14191 = vmatmul.mubr.msk.bf16.vlgmr.msra.gmra.mrb[52].mxu1 %vm486_vm1, %v17302_v47 }
0x3cd6   : > { %14199 = vmatpush3.bf16.msra.mxu0 %v14709_v8  ;;  %14208 = vmatprep.mubr.msk.bf16.mxu1 %vm15020_vm0, %v15019_v1 }
0x3cd7   : > { %14200 = vmatprep.subr.bf16.mxu0 %v15019_v1 }
0x3cda   : > { %14201 = vmatpush3.bf16.msra.mxu0 %v14710_v9 }
0x3cdb   : > { %14218 = vmatprep.subr.bf16.mxu0 %v15019_v1 }
0x3cdd   : > { %14203 = vmatmul.mubr.msk.bf16.vlgmr.msra.gmra.mrb[228].mxu0 %vm486_vm1, %v17302_v47 }
0x3cde   : > { %14220 = vmatprep.mubr.msk.bf16.mxu0 %vm15020_vm0, %v15019_v1 }
0x3d90   : > { %v17475_v11 = vpop.f32.mrb[220].mxu0 }
0x3d91   : > { %v14162_v12 = vpop.f32.mrb[221].mxu0 }
0x3d92   : > { %v9586_v13 = vpop.f32.mrb[222].mxu0 }
0x3d93   : > { %v14163_v17 = vpop.f32.mrb[223].mxu0 }
0x3d98   : > { %v17477_v18 = vpop.f32.mrb[48].mxu1 }
0x3d99   : > { %v9635_v52 = vpack.c.bf16 %v17477_v18, %v17475_v11  ;;  %v14168_v22 = vpop.f32.mrb[49].mxu1  ;;  %v8983_v11 = vmul.f32 2.0, %v17286_v62 }
0x3d9a   : > { %v9632_v26 = vpop.f32.mrb[50].mxu1 }
0x3d9b   : > { %v14169_v27 = vpop.f32.mrb[51].mxu1 }
0x3da0   : > { %v9702_v30 = vpop.f32.mrb[224].mxu0 }
0x3da1   : > { %v14180_v34 = vpop.f32.mrb[225].mxu0  ;;  %v9703_v25 = vadd.f32 %v14950_v23, %v9702_v30  ;;  %v14711_v30 = vld [vmem:[%s17804_s6 + $0x40] sm:$0xff]  }
0x3da2   : > { %v9705_v35 = vpop.f32.mrb[226].mxu0 }
0x3da3   : > { %v14181_v40 = vpop.f32.mrb[227].mxu0  ;;  %v12368_v60 = vpack.c.bf16 %v9703_v25, %v9703_v25  ;;  %v9706_v51 = vadd.f32 %v14950_v23, %v9705_v35  ;;  %v14712_v35 = vld [vmem:[%s17804_s6 + $0x48] sm:$0xff]   ;;  %v14721_v25 = vld [vmem:[%s17806_s8 + $0x50] sm:$0xff]  }
0x3da4   : > { %v14720_v23 = vld [vmem:[%s17806_s8 + $0x48] sm:$0xff]  }
0x3da5   : > { %v12369_v20 = vpack.c.bf16 %v9706_v51, %v9706_v51 }
0x3da8   : > { %v9775_v53 = vpop.f32.mrb[52].mxu1 }
0x3da9   : > { %v9776_v49 = vadd.f32 %v14949_v45, %v9775_v53  ;;  %v14192_v46 = vpop.f32.mrb[53].mxu1 }
0x3daa   : > { %v9778_v56 = vpop.f32.mrb[54].mxu1 }
0x3dab   : > { %v12370_v14 = vpack.c.bf16 %v9776_v49, %v9776_v49  ;;  %v14193_v15 = vpop.f32.mrb[55].mxu1  ;;  %v9779_v39 = vadd.f32 %v14949_v45, %v9778_v56  ;;  %v14713_v45 = vld [vmem:[%s17804_s6 + $0x50] sm:$0xff]   ;;  %v14714_v49 = vld [vmem:[%s17805_s7 + $0x40] sm:$0xff]   ;;  %v14715_v56 = vld [vmem:[%s17804_s6 + $0x58] sm:$0xff]  }
0x3dac   : > { %v14717_v15 = vld [vmem:[%s17805_s7 + $0x50] sm:$0xff]  }
0x3dad   : > { %v9877_v44 = vsel %vm1057_vm2, %v12370_v14, 0  ;;  %v12371_v57 = vpack.c.bf16 %v9779_v39, %v9779_v39  ;;  %v14716_v14 = vld [vmem:[%s17805_s7 + $0x48] sm:$0xff]   ;;  %v14719_v39 = vld [vmem:[%s17805_s7 + $0x58] sm:$0xff]  }
0x3dae   : > { %14207 = vmatpush3.bf16.xpose.msra.mxu1 %v9877_v44  ;;  %v14718_v44 = vld [vmem:[%s17806_s8 + $0x40] sm:$0xff]  }
0x3daf   : > { %14212 = vmatprep.subr.bf16.mxu1 %v15019_v1  ;;  %v9923_v31 = vsel %vm1057_vm2, %v12371_v57, 0 }
0x3db0   : > { %v9848_v37 = vpop.f32.mrb[228].mxu0 }
0x3db1   : > { %v9849_v59 = vadd.f32 %v14951_v7, %v9848_v37  ;;  %v14204_v61 = vpop.f32.mrb[229].mxu0  ;;  %v14722_v37 = vld [vmem:[%s17806_s8 + $0x58] sm:$0xff]  }
0x3db2   : > { %v9851_v58 = vpop.f32.mrb[230].mxu0 }
0x3db3   : > { %v12372_v10 = vpack.c.bf16 %v9849_v59, %v9849_v59  ;;  %v14205_v55 = vpop.f32.mrb[231].mxu0  ;;  %v9852_v3 = vadd.f32 %v14951_v7, %v9851_v58 }
0x3db5   : > { %v9993_v33 = vsel %vm1178_vm3, %v12372_v10, 0  ;;  %14209 = vmatmul.mubr.msk.bf16.vlgmr.msra.gmra.mrb[56].mxu1 %vm1057_vm2, %v12368_v60  ;;  %v12373_v16 = vpack.c.bf16 %v9852_v3, %v9852_v3 }
0x3db6   : > { %14213 = vmatpush3.bf16.xpose.msra.mxu1 %v9923_v31  ;;  %14219 = vmatpush3.bf16.msra.mxu0 %v9993_v33 }
0x3db7   : > { %14214 = vmatprep.mubr.msk.bf16.mxu1 %vm15020_vm0, %v15019_v1  ;;  %14224 = vmatprep.subr.bf16.mxu1 %v15019_v1  ;;  %v10039_v0 = vsel %vm1178_vm3, %v12373_v16, 0 }
0x3db8   : > { %14230 = vmatprep.subr.bf16.mxu0 %v15019_v1 }
0x3dbd   : > { %14215 = vmatmul.mubr.msk.bf16.vlgmr.msra.gmra.mrb[60].mxu1 %vm1057_vm2, %v12369_v20 }
0x3dbe   : > { %14225 = vmatpush3.bf16.msra.mxu1 %v10039_v0  ;;  %14226 = vmatprep.mubr.msk.bf16.mxu1 %vm15020_vm0, %v15019_v1  ;;  %v14952_v0 = vld [vmem:[%s17808_s10 + $0x2] ss:$0 sm:$0xff] }
0x3dbf   : > { %14242 = vmatprep.subr.bf16.mxu1 %v15019_v1 }
0x3e88   : > { %v9913_v2 = vpop.f32.mrb[56].mxu1 }
0x3e89   : > { %v14210_v24 = vpop.f32.mrb[57].mxu1  ;;  %v9965_v28 = vsel %vm1150_vm4, %v9913_v2, -inf }
0x3e8a   : > { %9966 = vmax.xlane.f32.xlu1 %v9965_v28  ;;  %v9916_v54 = vpop.f32.mrb[58].mxu1 }
0x3e8b   : > { %v14211_v41 = vpop.f32.mrb[59].mxu1 }
0x3e90   : > { %v9959_v43 = vpop.f32.mrb[60].mxu1 }
0x3e91   : > { %v14216_v21 = vpop.f32.mrb[61].mxu1  ;;  %v9968_v48 = vsel %vm1150_vm4, %v9959_v43, -inf }
0x3e92   : > { %9969 = vmax.xlane.f32.xlu0 %v9968_v48  ;;  %v9962_v50 = vpop.f32.mrb[62].mxu1  ;;  %v14953_v48 = vld [vmem:[%s17807_s9 + $0x2] ss:$0 sm:$0xff] }
0x3e93   : > { %v14217_v63 = vpop.f32.mrb[63].mxu1 }
0x3f17   : > { %v9967_v5 = vpop.xlane.xlu1 %9966 }
0x3f18   : > { %v9971_v6 = vsub.f32 %v9913_v2, %v9967_v5 }
0x3f1a   : > { %v9973_v32 = vmul.f32 1.442695, %v9971_v6  ;;  %v14954_v6 = vld [vmem:[%s17809_s11 + $0x2] ss:$0 sm:$0xff] }
0x3f1c   : > { %14871 = vpow2.f32 %v9973_v32 }
0x3f1f   : > { %v9970_v36 = vpop.xlane.xlu0 %9969 }
0x3f20   : > { %v9972_v38 = vsub.f32 %v9959_v43, %v9970_v36 }
0x3f22   : > { %v9975_v4 = vmul.f32 1.442695, %v9972_v38 }
0x3f24   : > { %14873 = vpow2.f32 %v9975_v4 }
0x3f26   : > { %v14872_v8 = vpop.eup %14871 }
0x3f27   : > { %v9977_v9 = vsel %vm1150_vm4, %v14872_v8, 0.0 }
0x3f28   : > { %9978 = vadd.xlane.f32.xlu1 %v9977_v9 }
0x3f2e   : > { %v14874_v12 = vpop.eup %14873 }
0x3f2f   : > { %v9980_v13 = vsel %vm1150_vm4, %v14874_v12, 0.0 }
0x3f30   : > { %9981 = vadd.xlane.f32.xlu0 %v9980_v13 }
0x3fb5   : > { %v9979_v17 = vpop.xlane.xlu1 %9978 }
0x3fb6   : > { %14875 = vrcp.f32 %v9979_v17 }
0x3fbd   : > { %v9982_v22 = vpop.xlane.xlu0 %9981 }
0x3fbe   : > { %14877 = vrcp.f32 %v9982_v22 }
0x3fc0   : > { %v14876_v26 = vpop.eup %14875 }
0x3fc1   : > { %v9984_v27 = vmul.f32 %v14876_v26, %v14872_v8 }
0x3fc3   : > { %v9987_v34 = vpack.c.bf16 %v9984_v27, %v9984_v27 }
0x3fc5   : > { %14221 = vmatmul.mubr.msk.bf16.vlgmr.msra.gmra.mrb[232].mxu0 %vm1150_vm4, %v9987_v34 }
0x3fc6   : > { %14231 = vmatpush3.bf16.msra.mxu0 %v14711_v30  ;;  %14238 = vmatprep.mubr.msk.bf16.mxu0 %vm15020_vm0, %v15019_v1 }
0x3fc7   : > { %14232 = vmatprep.subr.bf16.mxu0 %v15019_v1 }
0x3fc8   : > { %v14878_v40 = vpop.eup %14877 }
0x3fc9   : > { %v9986_v53 = vmul.f32 %v14878_v40, %v14874_v12 }
0x3fca   : > { %14233 = vmatpush3.bf16.msra.mxu0 %v14712_v35 }
0x3fcb   : > { %v9988_v46 = vpack.c.bf16 %v9986_v53, %v9986_v53  ;;  %14234 = vmatprep.subr.bf16.mxu0 %v15019_v1 }
0x3fcd   : > { %14227 = vmatmul.mubr.msk.bf16.vlgmr.msra.gmra.mrb[64].mxu1 %vm1150_vm4, %v9988_v46 }
0x3fce   : > { %14235 = vmatpush3.bf16.msra.mxu0 %v14713_v45  ;;  %14243 = vmatpush3.bf16.msra.mxu1 %v14714_v49 }
0x3fcf   : > { %14236 = vmatprep.subr.bf16.mxu0 %v15019_v1  ;;  %14244 = vmatprep.subr.bf16.mxu1 %v15019_v1 }
0x3fd0   : > { %14250 = vmatprep.mubr.msk.bf16.mxu1 %vm15020_vm0, %v15019_v1 }
0x3fd2   : > { %14237 = vmatpush3.bf16.msra.mxu0 %v14715_v56  ;;  %14245 = vmatpush3.bf16.msra.mxu1 %v14716_v14 }
0x3fd3   : > { %14246 = vmatprep.subr.bf16.mxu1 %v15019_v1  ;;  %14254 = vmatprep.subr.bf16.mxu0 %v15019_v1 }
0x3fd5   : > { %14239 = vmatmul.mubr.msk.bf16.vlgmr.msra.gmra.mrb[236].mxu0 %vm486_vm1, %v17302_v47 }
0x3fd6   : > { %14247 = vmatpush3.bf16.msra.mxu1 %v14717_v15  ;;  %14255 = vmatpush3.bf16.msra.mxu0 %v14718_v44 }
0x3fd7   : > { %14248 = vmatprep.subr.bf16.mxu1 %v15019_v1  ;;  %14256 = vmatprep.subr.bf16.mxu0 %v15019_v1 }
0x3fd8   : > { %14262 = vmatprep.mubr.msk.bf16.mxu0 %vm15020_vm0, %v15019_v1 }
0x3fda   : > { %14249 = vmatpush3.bf16.msra.mxu1 %v14719_v39  ;;  %14257 = vmatpush3.bf16.msra.mxu0 %v14720_v23 }
0x3fdb   : > { %14258 = vmatprep.subr.bf16.mxu0 %v15019_v1  ;;  %14266 = vmatprep.subr.bf16.mxu1 %v15019_v1 }
0x3fdd   : > { %14251 = vmatmul.mubr.msk.bf16.vlgmr.msra.gmra.mrb[68].mxu1 %vm486_vm1, %v17302_v47 }
0x3fde   : > { %14259 = vmatpush3.bf16.msra.mxu0 %v14721_v25  ;;  %14268 = vmatprep.mubr.msk.bf16.mxu1 %vm15020_vm0, %v15019_v1 }
0x3fdf   : > { %14260 = vmatprep.subr.bf16.mxu0 %v15019_v1 }
0x3fe2   : > { %14261 = vmatpush3.bf16.msra.mxu0 %v14722_v37 }
0x3fe3   : > { %14278 = vmatprep.subr.bf16.mxu0 %v15019_v1 }
0x3fe5   : > { %14263 = vmatmul.mubr.msk.bf16.vlgmr.msra.gmra.mrb[240].mxu0 %vm486_vm1, %v17302_v47 }
0x3fe6   : > { %14280 = vmatprep.mubr.msk.bf16.mxu0 %vm15020_vm0, %v15019_v1 }
0x4098   : > { %v17574_v57 = vpop.f32.mrb[232].mxu0 }
0x4099   : > { %v14222_v7 = vpop.f32.mrb[233].mxu0 }
0x409a   : > { %v10032_v59 = vpop.f32.mrb[234].mxu0 }
0x409b   : > { %v14223_v61 = vpop.f32.mrb[235].mxu0 }
0x40a0   : > { %v17576_v58 = vpop.f32.mrb[64].mxu1 }
0x40a1   : > { %v10081_v60 = vpack.c.bf16 %v17576_v58, %v17574_v57  ;;  %v14228_v10 = vpop.f32.mrb[65].mxu1 }
0x40a2   : > { %v10078_v55 = vpop.f32.mrb[66].mxu1 }
0x40a3   : > { %v14229_v31 = vpop.f32.mrb[67].mxu1 }
0x40a8   : > { %v10148_v33 = vpop.f32.mrb[236].mxu0 }
0x40a9   : > { %v14240_v3 = vpop.f32.mrb[237].mxu0  ;;  %v10149_v50 = vadd.f32 %v14953_v48, %v10148_v33 }
0x40aa   : > { %v10151_v51 = vpop.f32.mrb[238].mxu0 }
0x40ab   : > { %v14241_v16 = vpop.f32.mrb[239].mxu0  ;;  %v12374_v4 = vpack.c.bf16 %v10149_v50, %v10149_v50  ;;  %v10152_v22 = vadd.f32 %v14953_v48, %v10151_v51  ;;  %v14729_v48 = vld [vmem:[%s17805_s7 + $0x70] sm:$0xff]   ;;  %v14730_v50 = vld [vmem:[%s17806_s8 + $0x60] sm:$0xff]  }
0x40ac   : > { %v14723_v16 = vld [vmem:[%s17804_s6 + $0x60] sm:$0xff]  }
0x40ad   : > { %v12375_v27 = vpack.c.bf16 %v10152_v22, %v10152_v22 }
0x40b0   : > { %v10221_v20 = vpop.f32.mrb[68].mxu1 }
0x40b1   : > { %v10222_v2 = vadd.f32 %v14952_v0, %v10221_v20  ;;  %v14252_v24 = vpop.f32.mrb[69].mxu1 }
0x40b2   : > { %v10224_v28 = vpop.f32.mrb[70].mxu1 }
0x40b3   : > { %v12376_v54 = vpack.c.bf16 %v10222_v2, %v10222_v2  ;;  %v14253_v41 = vpop.f32.mrb[71].mxu1  ;;  %v10225_v21 = vadd.f32 %v14952_v0, %v10224_v28  ;;  %v14724_v0 = vld [vmem:[%s17804_s6 + $0x68] sm:$0xff]   ;;  %v14725_v28 = vld [vmem:[%s17804_s6 + $0x70] sm:$0xff]  }
0x40b5   : > { %v10323_v43 = vsel %vm1057_vm2, %v12376_v54, 0  ;;  %v12377_v5 = vpack.c.bf16 %v10225_v21, %v10225_v21  ;;  %v14726_v54 = vld [vmem:[%s17805_s7 + $0x60] sm:$0xff]   ;;  %v14728_v21 = vld [vmem:[%s17805_s7 + $0x68] sm:$0xff]  }
0x40b6   : > { %14267 = vmatpush3.bf16.xpose.msra.mxu1 %v10323_v43  ;;  %v14727_v43 = vld [vmem:[%s17804_s6 + $0x78] sm:$0xff]  }
0x40b7   : > { %14272 = vmatprep.subr.bf16.mxu1 %v15019_v1  ;;  %v10369_v12 = vsel %vm1057_vm2, %v12377_v5, 0  ;;  %v14732_v5 = vld [vmem:[%s17806_s8 + $0x68] sm:$0xff]  }
0x40b8   : > { %v10294_v63 = vpop.f32.mrb[240].mxu0 }
0x40b9   : > { %v10295_v32 = vadd.f32 %v14954_v6, %v10294_v63  ;;  %v14264_v36 = vpop.f32.mrb[241].mxu0  ;;  %v14731_v63 = vld [vmem:[%s17805_s7 + $0x78] sm:$0xff]  }
0x40ba   : > { %v10297_v38 = vpop.f32.mrb[242].mxu0 }
0x40bb   : > { %v12378_v8 = vpack.c.bf16 %v10295_v32, %v10295_v32  ;;  %v14265_v9 = vpop.f32.mrb[243].mxu0  ;;  %v10298_v17 = vadd.f32 %v14954_v6, %v10297_v38  ;;  %v14733_v6 = vld [vmem:[%s17806_s8 + $0x70] sm:$0xff]   ;;  %v14734_v32 = vld [vmem:[%s17806_s8 + $0x78] sm:$0xff]  }
0x40bd   : > { %v10439_v13 = vsel %vm1178_vm3, %v12378_v8, 0  ;;  %14269 = vmatmul.mubr.msk.bf16.vlgmr.msra.gmra.mrb[72].mxu1 %vm1057_vm2, %v12374_v4  ;;  %v12379_v26 = vpack.c.bf16 %v10298_v17, %v10298_v17 }
0x40be   : > { %14273 = vmatpush3.bf16.xpose.msra.mxu1 %v10369_v12  ;;  %14279 = vmatpush3.bf16.msra.mxu0 %v10439_v13 }
0x40bf   : > { %14274 = vmatprep.mubr.msk.bf16.mxu1 %vm15020_vm0, %v15019_v1  ;;  %14284 = vmatprep.subr.bf16.mxu1 %v15019_v1  ;;  %v10485_v30 = vsel %vm1178_vm3, %v12379_v26, 0 }
0x40c0   : > { %14290 = vmatprep.subr.bf16.mxu0 %v15019_v1 }
0x40c5   : > { %14275 = vmatmul.mubr.msk.bf16.vlgmr.msra.gmra.mrb[76].mxu1 %vm1057_vm2, %v12375_v27 }
0x40c6   : > { %14285 = vmatpush3.bf16.msra.mxu1 %v10485_v30  ;;  %14286 = vmatprep.mubr.msk.bf16.mxu1 %vm15020_vm0, %v15019_v1 }
0x40c7   : > { %14302 = vmatprep.subr.bf16.mxu1 %v15019_v1 }
0x4190   : > { %v10359_v34 = vpop.f32.mrb[72].mxu1 }
0x4191   : > { %v14270_v35 = vpop.f32.mrb[73].mxu1  ;;  %v10411_v40 = vsel %vm1150_vm4, %v10359_v34, -inf }
0x4192   : > { %10412 = vmax.xlane.f32.xlu1 %v10411_v40  ;;  %v10362_v53 = vpop.f32.mrb[74].mxu1  ;;  %v14955_v35 = vld [vmem:[%s17808_s10 + $0x3] ss:$0 sm:$0xff] }
0x4193   : > { %v14271_v45 = vpop.f32.mrb[75].mxu1 }
0x4198   : > { %v10405_v49 = vpop.f32.mrb[76].mxu1 }
0x4199   : > { %v14276_v46 = vpop.f32.mrb[77].mxu1  ;;  %v10414_v56 = vsel %vm1150_vm4, %v10405_v49, -inf }
0x419a   : > { %10415 = vmax.xlane.f32.xlu0 %v10414_v56  ;;  %v10408_v14 = vpop.f32.mrb[78].mxu1 }
0x419b   : > { %v14277_v15 = vpop.f32.mrb[79].mxu1 }
0x419c   : > { %v14956_v15 = vld [vmem:[%s17807_s9 + $0x3] ss:$0 sm:$0xff] }
0x421f   : > { %v10413_v44 = vpop.xlane.xlu1 %10412 }
0x4220   : > { %v10417_v39 = vsub.f32 %v10359_v34, %v10413_v44 }
0x4222   : > { %v10419_v23 = vmul.f32 1.442695, %v10417_v39 }
0x4224   : > { %14879 = vpow2.f32 %v10419_v23 }
0x4227   : > { %v10416_v25 = vpop.xlane.xlu0 %10415 }
0x4228   : > { %v10418_v37 = vsub.f32 %v10405_v49, %v10416_v25  ;;  %v14957_v25 = vld [vmem:[%s17809_s11 + $0x3] ss:$0 sm:$0xff] }
0x422a   : > { %v10421_v7 = vmul.f32 1.442695, %v10418_v37 }
0x422c   : > { %14881 = vpow2.f32 %v10421_v7 }
0x422e   : > { %v14880_v59 = vpop.eup %14879 }
0x422f   : > { %v10423_v61 = vsel %vm1150_vm4, %v14880_v59, 0.0 }
0x4230   : > { %10424 = vadd.xlane.f32.xlu1 %v10423_v61 }
0x4236   : > { %v14882_v10 = vpop.eup %14881 }
0x4237   : > { %v10426_v55 = vsel %vm1150_vm4, %v14882_v10, 0.0 }
0x4238   : > { %10427 = vadd.xlane.f32.xlu0 %v10426_v55 }
0x42bd   : > { %v10425_v31 = vpop.xlane.xlu1 %10424 }
0x42be   : > { %14883 = vrcp.f32 %v10425_v31 }
0x42c5   : > { %v10428_v33 = vpop.xlane.xlu0 %10427 }
0x42c6   : > { %14885 = vrcp.f32 %v10428_v33 }
0x42c8   : > { %v14884_v3 = vpop.eup %14883 }
0x42c9   : > { %v10430_v51 = vmul.f32 %v14884_v3, %v14880_v59 }
0x42cb   : > { %v10433_v20 = vpack.c.bf16 %v10430_v51, %v10430_v51 }
0x42cd   : > { %14281 = vmatmul.mubr.msk.bf16.vlgmr.msra.gmra.mrb[244].mxu0 %vm1150_vm4, %v10433_v20 }
0x42ce   : > { %14291 = vmatpush3.bf16.msra.mxu0 %v14723_v16  ;;  %14298 = vmatprep.mubr.msk.bf16.mxu0 %vm15020_vm0, %v15019_v1 }
0x42cf   : > { %14292 = vmatprep.subr.bf16.mxu0 %v15019_v1 }
0x42d0   : > { %v14886_v2 = vpop.eup %14885 }
0x42d1   : > { %v10432_v24 = vmul.f32 %v14886_v2, %v14882_v10 }
0x42d2   : > { %14293 = vmatpush3.bf16.msra.mxu0 %v14724_v0 }
0x42d3   : > { %v10434_v41 = vpack.c.bf16 %v10432_v24, %v10432_v24  ;;  %14294 = vmatprep.subr.bf16.mxu0 %v15019_v1 }
0x42d5   : > { %14287 = vmatmul.mubr.msk.bf16.vlgmr.msra.gmra.mrb[80].mxu1 %vm1150_vm4, %v10434_v41 }
0x42d6   : > { %14295 = vmatpush3.bf16.msra.mxu0 %v14725_v28  ;;  %14303 = vmatpush3.bf16.msra.mxu1 %v14726_v54 }
0x42d7   : > { %14296 = vmatprep.subr.bf16.mxu0 %v15019_v1  ;;  %14304 = vmatprep.subr.bf16.mxu1 %v15019_v1 }
0x42d8   : > { %14310 = vmatprep.mubr.msk.bf16.mxu1 %vm15020_vm0, %v15019_v1 }
0x42da   : > { %14297 = vmatpush3.bf16.msra.mxu0 %v14727_v43  ;;  %14305 = vmatpush3.bf16.msra.mxu1 %v14728_v21 }
0x42db   : > { %14306 = vmatprep.subr.bf16.mxu1 %v15019_v1  ;;  %14314 = vmatprep.subr.bf16.mxu0 %v15019_v1 }
0x42dd   : > { %14299 = vmatmul.mubr.msk.bf16.vlgmr.msra.gmra.mrb[248].mxu0 %vm486_vm1, %v17302_v47 }
0x42de   : > { %14307 = vmatpush3.bf16.msra.mxu1 %v14729_v48  ;;  %14315 = vmatpush3.bf16.msra.mxu0 %v14730_v50 }
0x42df   : > { %14308 = vmatprep.subr.bf16.mxu1 %v15019_v1  ;;  %14316 = vmatprep.subr.bf16.mxu0 %v15019_v1 }
0x42e0   : > { %14322 = vmatprep.mubr.msk.bf16.mxu0 %vm15020_vm0, %v15019_v1 }
0x42e2   : > { %14309 = vmatpush3.bf16.msra.mxu1 %v14731_v63  ;;  %14317 = vmatpush3.bf16.msra.mxu0 %v14732_v5 }
0x42e3   : > { %14318 = vmatprep.subr.bf16.mxu0 %v15019_v1  ;;  %14326 = vmatprep.subr.bf16.mxu1 %v15019_v1 }
0x42e5   : > { %14311 = vmatmul.mubr.msk.bf16.vlgmr.msra.gmra.mrb[84].mxu1 %vm486_vm1, %v17302_v47 }
0x42e6   : > { %14319 = vmatpush3.bf16.msra.mxu0 %v14733_v6  ;;  %14328 = vmatprep.mubr.msk.bf16.mxu1 %vm15020_vm0, %v15019_v1 }
0x42e7   : > { %14320 = vmatprep.subr.bf16.mxu0 %v15019_v1 }
0x42ea   : > { %14321 = vmatpush3.bf16.msra.mxu0 %v14734_v32 }
0x42eb   : > { %14338 = vmatprep.subr.bf16.mxu0 %v15019_v1 }
0x42ed   : > { %14323 = vmatmul.mubr.msk.bf16.vlgmr.msra.gmra.mrb[252].mxu0 %vm486_vm1, %v17302_v47 }
0x42ee   : > { %14340 = vmatprep.mubr.msk.bf16.mxu0 %vm15020_vm0, %v15019_v1 }
0x43a0   : > { %v17673_v36 = vpop.f32.mrb[244].mxu0 }
0x43a1   : > { %v14282_v38 = vpop.f32.mrb[245].mxu0 }
0x43a2   : > { %v10478_v4 = vpop.f32.mrb[246].mxu0 }
0x43a3   : > { %v14283_v8 = vpop.f32.mrb[247].mxu0 }
0x43a8   : > { %v17675_v9 = vpop.f32.mrb[80].mxu1 }
0x43a9   : > { %v10527_v12 = vpack.c.bf16 %v17675_v9, %v17673_v36  ;;  %v14288_v13 = vpop.f32.mrb[81].mxu1  ;;  %v14960_v9 = vld [vmem:[%s17810_s12 + $0x10] sm:$0xff]  }
0x43aa   : > { %v10524_v17 = vpop.f32.mrb[82].mxu1 }
0x43ab   : > { %v14289_v22 = vpop.f32.mrb[83].mxu1 }
0x43b0   : > { %v10594_v26 = vpop.f32.mrb[248].mxu0 }
0x43b1   : > { %v14300_v27 = vpop.f32.mrb[249].mxu0  ;;  %v10595_v44 = vadd.f32 %v14956_v15, %v10594_v26 }
0x43b2   : > { %v10597_v30 = vpop.f32.mrb[250].mxu0 }
0x43b3   : > { %v14301_v47 = vpop.f32.mrb[251].mxu0  ;;  %v12380_v61 = vpack.c.bf16 %v10595_v44, %v10595_v44  ;;  %v10598_v51 = vadd.f32 %v14956_v15, %v10597_v30 }
0x43b5   : > { %v12381_v20 = vpack.c.bf16 %v10598_v51, %v10598_v51  ;;  %v8984_v51 = vmul.f32 2.0, %v17292_v29 }
0x43b8   : > { %v10667_v34 = vpop.f32.mrb[84].mxu1 }
0x43b9   : > { %v10668_v40 = vadd.f32 %v14955_v35, %v10667_v34  ;;  %v14312_v53 = vpop.f32.mrb[85].mxu1 }
0x43ba   : > { %v10670_v45 = vpop.f32.mrb[86].mxu1 }
0x43bb   : > { %v12382_v49 = vpack.c.bf16 %v10668_v40, %v10668_v40  ;;  %v14313_v46 = vpop.f32.mrb[87].mxu1  ;;  %v10671_v14 = vadd.f32 %v14955_v35, %v10670_v45  ;;  %v14958_v40 = vld [vmem:[%s17810_s12] sm:$0xff]  }
0x43bd   : > { %v10769_v56 = vsel %vm1057_vm2, %v12382_v49, 0  ;;  %v12383_v23 = vpack.c.bf16 %v10671_v14, %v10671_v14 }
0x43be   : > { %14327 = vmatpush3.bf16.xpose.msra.mxu1 %v10769_v56 }
0x43bf   : > { %14332 = vmatprep.subr.bf16.mxu1 %v15019_v1  ;;  %v10815_v31 = vsel %vm1057_vm2, %v12383_v23, 0 }
0x43c0   : > { %v10740_v39 = vpop.f32.mrb[252].mxu0 }
0x43c1   : > { %v10741_v37 = vadd.f32 %v14957_v25, %v10740_v39  ;;  %v14324_v7 = vpop.f32.mrb[253].mxu0 }
0x43c2   : > { %v10743_v59 = vpop.f32.mrb[254].mxu0 }
0x43c3   : > { %v12384_v10 = vpack.c.bf16 %v10741_v37, %v10741_v37  ;;  %v14325_v55 = vpop.f32.mrb[255].mxu0  ;;  %v10744_v3 = vadd.f32 %v14957_v25, %v10743_v59 }
0x43c4   : > { %v8970_v55 = vrot.slane %v17292_v29, 7 }
0x43c5   : > { %v10885_v33 = vsel %vm1178_vm3, %v12384_v10, 0  ;;  %14329 = vmatmul.mubr.msk.bf16.vlgmr.msra.gmra.mrb[88].mxu1 %vm1057_vm2, %v12380_v61  ;;  %v12385_v16 = vpack.c.bf16 %v10744_v3, %v10744_v3  ;;  %v8969_v61 = vrot.slane %v17286_v62, 7  ;;  %v8975_v10 = vrot.slane %v17286_v62, 1 }
0x43c6   : > { %14333 = vmatpush3.bf16.xpose.msra.mxu1 %v10815_v31  ;;  %14339 = vmatpush3.bf16.msra.mxu0 %v10885_v33  ;;  %v8976_v31 = vrot.slane %v17292_v29, 1 }
0x43c7   : > { %14334 = vmatprep.mubr.msk.bf16.mxu1 %vm15020_vm0, %v15019_v1  ;;  %14344 = vmatprep.subr.bf16.mxu1 %v15019_v1  ;;  %v10931_v0 = vsel %vm1178_vm3, %v12385_v16, 0  ;;  %v8981_v33 = vadd.f32 %v8975_v10, %v8969_v61 }
0x43c8   : > { %14350 = vmatprep.subr.bf16.mxu0 %v15019_v1  ;;  %v8982_v18 = vadd.f32 %v8976_v31, %v8970_v55 }
0x43c9   : > { %v8985_v3 = vsub.f32 %v8981_v33, %v8983_v11 }
0x43cd   : > { %14335 = vmatmul.mubr.msk.bf16.vlgmr.msra.gmra.mrb[92].mxu1 %vm1057_vm2, %v12381_v20 }
0x43ce   : > { %14345 = vmatpush3.bf16.msra.mxu1 %v10931_v0  ;;  %14346 = vmatprep.mubr.msk.bf16.mxu1 %vm15020_vm0, %v15019_v1 }
0x4498   : > { %v10805_v2 = vpop.f32.mrb[88].mxu1 }
0x4499   : > { %v14330_v24 = vpop.f32.mrb[89].mxu1  ;;  %v10857_v28 = vsel %vm1150_vm4, %v10805_v2, -inf }
0x449a   : > { %10858 = vmax.xlane.f32.xlu0 %v10857_v28  ;;  %v10808_v54 = vpop.f32.mrb[90].mxu1 }
0x449b   : > { %v14331_v41 = vpop.f32.mrb[91].mxu1  ;;  %v8986_v54 = vsub.f32 %v8982_v18, %v8984_v51 }
0x44a0   : > { %v10851_v43 = vpop.f32.mrb[92].mxu1 }
0x44a1   : > { %v14336_v21 = vpop.f32.mrb[93].mxu1  ;;  %v10860_v48 = vsel %vm1150_vm4, %v10851_v43, -inf }
0x44a2   : > { %10861 = vmax.xlane.f32.xlu1 %v10860_v48  ;;  %v10854_v50 = vpop.f32.mrb[94].mxu1 }
0x44a3   : > { %v14337_v63 = vpop.f32.mrb[95].mxu1 }
0x4527   : > { %v10859_v5 = vpop.xlane.xlu0 %10858 }
0x4528   : > { %v10863_v6 = vsub.f32 %v10805_v2, %v10859_v5  ;;  %v14962_v2 = vld [vmem:[%s17811_s13] ss:$0 sm:$0xff]  ;;  %v11040_v5 = vstv %s12045_s0 }
0x452a   : > { %v10865_v32 = vmul.f32 1.442695, %v10863_v6 }
0x452c   : > { %14887 = vpow2.f32 %v10865_v32 }
0x452f   : > { %v10862_v38 = vpop.xlane.xlu1 %10861 }
0x4530   : > { %v10864_v4 = vsub.f32 %v10851_v43, %v10862_v38 }
0x4532   : > { %v10867_v8 = vmul.f32 1.442695, %v10864_v4 }
0x4534   : > { %14889 = vpow2.f32 %v10867_v8 }
0x4536   : > { %v14888_v13 = vpop.eup %14887 }
0x4537   : > { %v10869_v17 = vsel %vm1150_vm4, %v14888_v13, 0.0 }
0x4538   : > { %10870 = vadd.xlane.f32.xlu0 %v10869_v17 }
0x453e   : > { %v14890_v22 = vpop.eup %14889 }
0x453f   : > { %v10872_v26 = vsel %vm1150_vm4, %v14890_v22, 0.0 }
0x4540   : > { %10873 = vadd.xlane.f32.xlu1 %v10872_v26 }
0x454e   : > { %10975 = vrot.lane.b32.xlu0 %v10081_v60, %s17833_s28  ;;  %v14959_v60 = vld [vmem:[%s17810_s12 + $0x8] sm:$0xff]  }
0x4551   : > { %10978 = vrot.lane.b32.xlu1 %v10527_v12, %s17834_s1  ;;  %v14961_v12 = vld [vmem:[%s17810_s12 + $0x18] sm:$0xff]   ;;  %s17836_s1 = sand.u32 1, %s15008_s30  }
0x4552   : > { %s11049_s27 = scalar_lea.sflag [#allocation3], %s17836_s1 }
0x45c5   : > { %v10871_v27 = vpop.xlane.xlu0 %10870 }
0x45c6   : > { %14891 = vrcp.f32 %v10871_v27 }
0x45c9   : > { %v10976_v23 = vpop.permute.xlu0 %10975 }
0x45cd   : > { %v10874_v30 = vpop.xlane.xlu1 %10873 }
0x45ce   : > { %14893 = vrcp.f32 %v10874_v30 }
0x45d0   : > { %v14892_v47 = vpop.eup %14891 }
0x45d1   : > { %v10876_v34 = vmul.f32 %v14892_v47, %v14888_v13  ;;  %v10979_v25 = vpop.permute.xlu1 %10978 }
0x45d3   : > { %v10879_v35 = vpack.c.bf16 %v10876_v34, %v10876_v34 }
0x45d5   : > { %14341 = vmatmul.mubr.msk.bf16.vlgmr.msra.gmra.mrb[0].mxu0 %vm1150_vm4, %v10879_v35 }
0x45d6   : > { %14351 = vmatpush3.bf16.msra.mxu0 %v14958_v40  ;;  %14358 = vmatprep.mubr.msk.bf16.mxu0 %vm15020_vm0, %v15019_v1 }
0x45d7   : > { %14352 = vmatprep.subr.bf16.mxu0 %v15019_v1 }
0x45d8   : > { %v14894_v57 = vpop.eup %14893 }
0x45d9   : > { %v10878_v58 = vmul.f32 %v14894_v57, %v14890_v22 }
0x45da   : > { %14353 = vmatpush3.bf16.msra.mxu0 %v14959_v60 }
0x45db   : > { %v10880_v36 = vpack.c.bf16 %v10878_v58, %v10878_v58  ;;  %14354 = vmatprep.subr.bf16.mxu0 %v15019_v1 }
0x45dd   : > { %14347 = vmatmul.mubr.msk.bf16.vlgmr.msra.gmra.mrb[96].mxu1 %vm1150_vm4, %v10880_v36 }
0x45de   : > { %14355 = vmatpush3.bf16.msra.mxu0 %v14960_v9 }
0x45df   : > { %14356 = vmatprep.subr.bf16.mxu0 %v15019_v1  ;;  %v10985_v1 = vsel %vm1057_vm2, %v9635_v52, %v10976_v23  ;;  %v12078_v52 = vld [vmem:[%s17803_s5 + $0x4] ss:$0 sm:$0xff] }
0x45e0   : > { %v10987_v37 = vsel %vm2628_vm5, %v10985_v1, %v10979_v25  ;;  %v9184_v0 = vadd.f32 %v12078_v52, %v17394_v42  ;;  %v9187_v43 = vadd.f32 %v12078_v52, %v17396_v19 }
0x45e2   : > { %14357 = vmatpush3.bf16.msra.mxu0 %v14961_v12 }
0x46a8   : > { %v10921_v53 = vpop.f32.mrb[0].mxu0 }
0x46a9   : > { %v14342_v45 = vpop.f32.mrb[1].mxu0 }
0x46aa   : > { %v10924_v49 = vpop.f32.mrb[2].mxu0 }
0x46ab   : > { %v14343_v46 = vpop.f32.mrb[3].mxu0 }
0x46b0   : > { %v10967_v56 = vpop.f32.mrb[96].mxu1 }
0x46b1   : > { %v10973_v14 = vpack.c.bf16 %v10967_v56, %v10921_v53  ;;  %v14348_v15 = vpop.f32.mrb[97].mxu1 }
0x46b2   : > { %v10970_v44 = vpop.f32.mrb[98].mxu1 }
0x46b3   : > { %10981 = vrot.lane.b32.xlu1 %v10973_v14, %s17835_s25  ;;  %v14349_v39 = vpop.f32.mrb[99].mxu1  ;;  %s12044_s25 = sld [smem:[#allocation2 + $0x4]] }
0x46b9   : > { %v11033_v20 = vstv %s12044_s25 }
0x46ba   : > { %v11034_v21 = vmul.f32 %v11033_v20, %v8985_v3  ;;  %v11035_v42 = vmul.f32 %v11033_v20, %v8986_v54 }
0x4725   : > { %v10982_v7 = vpop.permute.xlu1 %10981 }
0x4726   : > { %v10989_v59 = vsel %vm2631_vm6, %v10987_v37, %v10982_v7 }
0x4727   : > { %14359 = vmatmul.mubr.msk.bf16.vlgmr.msra.gmra.mrb[4].mxu0 %vm486_vm1, %v10989_v59 }
0x47fa   : > { %v11026_v16 = vpop.f32.mrb[4].mxu0 }
0x47fb   : > { %v11027_v24 = vadd.f32 %v14962_v2, %v11026_v16  ;;  %v14360_v28 = vpop.f32.mrb[5].mxu0 }
0x47fc   : > { %v11029_v41 = vpop.f32.mrb[6].mxu0 }
0x47fd   : > { %v11036_v48 = vadd.f32 %v11027_v24, %v9184_v0  ;;  %v11030_v50 = vadd.f32 %v14962_v2, %v11029_v41  ;;  %v14361_v63 = vpop.f32.mrb[7].mxu0 }
0x47ff   : > { %v11038_v6 = vadd.f32 %v11036_v48, %v11034_v21  ;;  %v11037_v32 = vadd.f32 %v11030_v50, %v9187_v43 }
0x4801   : > { %v11041_v38 = vmul.f32 %v11040_v5, %v11038_v6  ;;  %v11039_v4 = vadd.f32 %v11037_v32, %v11035_v42 }
0x4803   : > { %v11043_v8 = vadd.f32 %v11041_v38, %v17286_v62  ;;  %v11042_v13 = vmul.f32 %v11040_v5, %v11039_v4 }
0x4805   : > { %12260 = vst.msk [vmem:[%s15672_s22 + $0x50] sm:$0xff] %vm486_vm1, %v11043_v8  ;;  %v11044_v17 = vadd.f32 %v11042_v13, %v17292_v29 }
0x4807   : > { %12261 = vst.msk [vmem:[%s15672_s22 + $0x58] sm:$0xff] %vm486_vm1, %v11044_v17 }
0x4808   : > { %s12386_s18 = sshll.u32 %s15127_s17, 8  ;;  %s11078_s20 = sshll.u32 %s15672_s22, 4  ;;  %s11079_s20 = int_to_ptr.vmem [resolvable:$true] %s11078_s20 }
0x4809   : > { %s11061_s0 = scalar_lea.hbm %s17812_s14, %s12386_s18  ;;  %s15024_s26 = smov 256  }
0x480a   : > { %14367 = sst [smem:[#allocation7]] (%p15144_p5), %s15024_s26  ;;  %s15025_s15 = smov 512  }
0x480b   : > { %14368 = sst [smem:[#allocation7 + $0x1]] (%p15144_p5), %s15025_s15  ;;  %s15026_s19 = smov 2  }
0x480c   : > { %14369 = sst [smem:[#allocation7 + $0x2]] (%p15144_p5), %s15026_s19  ;;  %s15027_s28 = smov 128  }
0x480d   : > { %14370 = sst [smem:[#allocation7 + $0x3]] (%p15144_p5), %s15027_s28  ;;  %s15028_s17 = smov 8  }
0x480e   : > { %14371 = sst [smem:[#allocation7 + $0x4]] (%p15144_p5), %s15027_s28  ;;  %s15029_s22 = smov [#allocation6]  }
0x480f   : > { %14372 = sst [smem:[#allocation7 + $0x5]] (%p15144_p5), %s15028_s17  ;;  %s15030_s1 = smov 0  }
0x4810   : > { %14373 = dma.general (%p15144_p5), %s11079_s20, 1536, %s11061_s0, %s11049_s27, %s15029_s22, [#allocation7], %s15030_s1, 0  }
0x4811 PF: > { %p14385_p10 = scmp.ge.s32.totalorder %s15016_s16, 2  ;;  %s11106_s18 = sand.u32 1, %s15004_s29  }
0x4812   : > { %s11107_s21 = scalar_lea.sflag [#allocation3], %s11106_s18 }
0x4813   : > { %p14380_p11 = pnand %p14385_p10, %p15148_p6 }
0x4815   : > { %14999 = dma.done.wait (!%p14380_p11), %s11107_s21, 1536  }
0x4816   : > { %15001 = vsyncadd (!%p14380_p11), %s11107_s21, 4294965760  ;;  %s17837_s16 = sld [smem:[#allocation11_spill]]  ;;  %s17838_s25 = sld [smem:[#allocation10_spill]] }
0x4817   : > { %s17839_s15 = sld [smem:[#allocation12_spill]]  ;;  %s17840_s29 = smov %s15008_s30 }
0x481c   : > { %p25_p12 = scmp.ge.s32.totalorder %s17837_s16, 4   ;;  %s17841_s30 = smov %s17838_s25 }
0x481e   :  { %27 = sbr.rel (!%p25_p12) target bundleno = 7 (0x7), region = 160 }
0x4825   :  { %11112 = vsyncpa [#allocation3], 1 }
0x4826   :  { %11114 = vsyncpa [#allocation3 + $0x1], 1 }
0x4827   :  { %11115 = vsyncpa [#allocation4], 1 }
0x4828   :  { %11117 = vsyncpa [#allocation4 + $0x1], 1 }

</bundles_post_ra>
